<compile_context>
chip_gen: v7x
topology: tpu7x:2x2x1
jax: 0.10.0
libtpu: 0.0.40
codegen_flags: <defaults>
</compile_context>

<pallas_src>
import math

import jax
import jax.numpy as jnp
import numpy as np
from jax.experimental import pallas as pl
from jax.experimental.pallas import tpu as pltpu


# ------------------------------------------------------------ architecture ---
C1, C2 = 24, 48                 # conv1 / conv2+pooling channel counts
KD1, KH1, KW1 = 11, 3, 3        # conv1 kernel
KD2 = 11                        # conv2 kernel (D only)
KD3 = 9                         # pooling kernel & stride (D only)
C1P = 32                        # conv1 out-channels padded to a bf16 sublane tile
KS = KH1 * KW1                  # 9 spatial taps of conv1
KSP = 16                        # spatial taps padded to a bf16 sublane tile
HWP = 128                       # lanes per depth row (H*W padded to one lane tile)


# ------------------------------------------------------------------ kernel ---
def _make_fused_kernel(NB, D1, D2):
    """NB samples per grid step; activations laid out as (C, depth_row * 128)."""
    M1 = D1 * HWP                # stage-1 activation width per sample
    M2 = D2 * HWP                # stage-2 activation width per sample
    MXS = (D1 + KD1 - 1) * HWP   # spatial-tap tensor width per sample (= D*128)

    def kernel(xs_ref, w1_ref, w2_ref, w3_ref, par_ref, o_ref,
               acc1_ref, x1_ref, acc2_ref, x2_ref):
        # Folded-BN shifts and PReLU alphas (hoisted out of the sample loop).
        sh1 = par_ref[0:C1P, 0:1]
        sh2 = par_ref[:, 1:2]
        sh3 = par_ref[:, 2:3]
        a1 = par_ref[0:C1P, 3:4]
        a2 = par_ref[:, 4:5]

        for j in range(NB):
            # ---- stage 1: Conv3d(1,24,(11,3,3)) + BN + PReLU --------------
            # 11 depth-tap accumulating matmuls; contraction = 9 (padded 16)
            # spatial taps.  Every tap slice starts at a multiple of 128.
            for kd in range(KD1):
                upd = jnp.dot(w1_ref[kd],
                              xs_ref[j, :, kd * HWP:kd * HWP + M1],
                              preferred_element_type=jnp.float32)    # (C1P, M1)
                if kd == 0:
                    acc1_ref[...] = upd
                else:
                    acc1_ref[...] += upd
            y1 = acc1_ref[...] + sh1
            x1_ref[...] = jnp.where(y1 >= 0, y1, a1 * y1).astype(x1_ref.dtype)

            # ---- stage 2: Conv3d(24,48,(11,1,1)) + BN + PReLU --------------
            for t in range(KD2):
                upd = jnp.dot(w2_ref[t],
                              x1_ref[:, t * HWP:t * HWP + M2],
                              preferred_element_type=jnp.float32)     # (C2, M2)
                if t == 0:
                    acc2_ref[...] = upd
                else:
                    acc2_ref[...] += upd
            y2 = acc2_ref[...] + sh2
            x2_ref[...] = jnp.where(y2 >= 0, y2, a2 * y2).astype(x2_ref.dtype)

            # ---- stage 3: Conv3d(48,48,(9,1,1),stride=(9,1,1)), Do == 1 ----
            # (48,128) f32 accumulator is only 6 vregs -> keep it in registers.
            y3 = jnp.zeros((C2, HWP), jnp.float32)
            for t in range(KD3):
                y3 = y3 + jnp.dot(w3_ref[t],
                                  x2_ref[:, t * HWP:t * HWP + HWP],
                                  preferred_element_type=jnp.float32)
            o_ref[j] = y3 + sh3

    return kernel


# ------------------------------------------------------ wrapper-side layout ---
def _build_xs(x, D, H, W):
    """Spatial-tap tensor for conv1: (B,1,D,H,W) -> (B, 16, D*128) bf16.
    Row khw = kh*3+kw holds the input shifted by kh*W+kw lanes within each
    128-lane depth row; only 9 cheap shifted pads (vs the old 99-slice im2col)."""
    B = x.shape[0]
    xf = x[:, 0].reshape(B, D, H * W)                     # (B, D, 81)
    rows = []
    for kh in range(KH1):
        for kw in range(KW1):
            s = kh * W + kw
            sl = xf[:, :, s:]                              # (B, D, 81-s)
            sl = jnp.pad(sl, ((0, 0), (0, 0), (0, HWP - (H * W - s))))
            rows.append(sl)                                # (B, D, 128)
    xs = jnp.stack(rows, axis=1)                           # (B, 9, D, 128)
    xs = jnp.pad(xs, ((0, 0), (0, KSP - KS), (0, 0), (0, 0)))
    return xs.reshape(B, KSP, D * HWP).astype(jnp.bfloat16)


def _prep_weights(p, eps=1e-5):
    """Fold eval-mode BatchNorm into the conv weights, lay weights out per-tap,
    and pack per-channel shifts + PReLU alphas."""
    g1, be1, m1, v1 = p["bn1"]
    g2, be2, m2, v2 = p["bn2"]
    sc1 = g1 / jnp.sqrt(v1 + eps)
    sc2 = g2 / jnp.sqrt(v2 + eps)

    # conv1: (24,1,11,3,3) -> (KD1, C1P, KSP); w1t[kd,c,khw] = W1[c,0,kd,kh,kw]*sc1[c]
    w1 = p["w1"][:, 0] * sc1[:, None, None, None]          # (24,11,3,3)
    w1 = w1.reshape(C1, KD1, KS)
    w1 = jnp.pad(w1, ((0, C1P - C1), (0, 0), (0, KSP - KS)))
    w1 = jnp.transpose(w1, (1, 0, 2))                      # (11,32,16)
    sh1 = (p["b1"] - m1) * sc1 + be1

    # conv2: (48,24,11,1,1) -> (KD2, C2, C1P); w2t[t,c,ci] = W2[c,ci,t]*sc2[c]
    w2 = p["w2"][:, :, :, 0, 0] * sc2[:, None, None]       # (48,24,11)
    w2 = jnp.transpose(w2, (2, 0, 1))                      # (11,48,24)
    w2 = jnp.pad(w2, ((0, 0), (0, 0), (0, C1P - C1)))      # (11,48,32)
    sh2 = (p["b2"] - m2) * sc2 + be2

    # pooling: (48,48,9,1,1) -> (KD3, C2, C2); w3t[t,c,ci] = W3[c,ci,t]
    w3 = jnp.transpose(p["w3"][:, :, :, 0, 0], (2, 0, 1))  # (9,48,48)
    sh3 = p["b3"]

    par = jnp.zeros((C2, 5), jnp.float32)
    par = par.at[:C1, 0].set(sh1)        # padded conv1 channels keep shift 0 -> stay 0
    par = par.at[:, 1].set(sh2)
    par = par.at[:, 2].set(sh3)
    par = par.at[:C1, 3].set(p["alpha1"])
    par = par.at[:, 4].set(p["alpha2"])

    return (w1.astype(jnp.bfloat16), w2.astype(jnp.bfloat16),
            w3.astype(jnp.bfloat16), par)


@jax.jit
def cae3d_forward(x, p):
    B, Ci, D, H, W = x.shape
    assert Ci == 1
    D1, H1, W1 = D - KD1 + 1, H - KH1 + 1, W - KW1 + 1
    D2 = D1 - KD2 + 1
    D3 = (D2 - KD3) // KD3 + 1
    # TODO(synk): the fused kernel assumes the pooling conv collapses D to a
    # single output step (true for the module's 30-band input); D3 > 1 unsupported.
    assert D3 == 1
    assert H * W <= HWP                  # one depth row fits a 128-lane tile

    # Samples packed per grid step: amortize per-step overhead / DMA prologue,
    # keep >= 2 grid steps so both v7x TensorCores get work.
    NB = 2 if (B % 2 == 0 and B >= 4) else 1
    G = B // NB
    M1, M2 = D1 * HWP, D2 * HWP

    xs = _build_xs(x, D, H, W)
    w1, w2, w3, par = _prep_weights(p)

    out = pl.pallas_call(
        _make_fused_kernel(NB, D1, D2),
        out_shape=jax.ShapeDtypeStruct((B, C2, HWP), jnp.float32),
        grid=(G,),
        in_specs=[
            pl.BlockSpec((NB, KSP, D * HWP), lambda g: (g, 0, 0)),   # spatial-tap input
            pl.BlockSpec((KD1, C1P, KSP), lambda g: (0, 0, 0)),      # w1 (BN-folded)
            pl.BlockSpec((KD2, C2, C1P), lambda g: (0, 0, 0)),       # w2 (BN-folded)
            pl.BlockSpec((KD3, C2, C2), lambda g: (0, 0, 0)),        # w3
            pl.BlockSpec((C2, 5), lambda g: (0, 0)),                 # shifts + alphas
        ],
        out_specs=pl.BlockSpec((NB, C2, HWP), lambda g: (g, 0, 0)),
        scratch_shapes=[
            pltpu.VMEM((C1P, M1), jnp.float32),                      # stage-1 f32 acc
            pltpu.VMEM((C1P, M1), jnp.bfloat16),                     # stage-1 activations
            pltpu.VMEM((C2, M2), jnp.float32),                       # stage-2 f32 acc
            pltpu.VMEM((C2, M2), jnp.bfloat16),                      # stage-2 activations
        ],
        compiler_params=pltpu.CompilerParams(
            dimension_semantics=("parallel",)),
    )(xs, w1, w2, w3, par)

    # Valid spatial columns inside each 128-lane row are h*W + w, h,w < 7.
    out = out[:, :, :H1 * W].reshape(B, C2, H1, W)[:, :, :, :W1]
    return out.reshape(B, C2, D3, H1, W1)


# ------------------------------------------------------------------ params ---
def init_params(key):
    ks = jax.random.split(key, 8)

    def conv_init(k, co, ci, ksz):
        kw_, kb_ = jax.random.split(k)
        fan_in = ci * ksz[0] * ksz[1] * ksz[2]
        bound = 1.0 / math.sqrt(fan_in)
        w = jax.random.uniform(kw_, (co, ci) + ksz, jnp.float32, -bound, bound)
        b = jax.random.uniform(kb_, (co,), jnp.float32, -bound, bound)
        return w, b

    def bn_init(k, c):
        k1, k2, k3, k4 = jax.random.split(k, 4)
        gamma = 1.0 + 0.1 * jax.random.normal(k1, (c,), jnp.float32)
        beta = 0.1 * jax.random.normal(k2, (c,), jnp.float32)
        mean = 0.1 * jax.random.normal(k3, (c,), jnp.float32)
        var = 1.0 + 0.1 * jnp.abs(jax.random.normal(k4, (c,), jnp.float32))
        return gamma, beta, mean, var

    p = {}
    p["w1"], p["b1"] = conv_init(ks[0], 24, 1, (11, 3, 3))
    p["bn1"] = bn_init(ks[1], 24)
    p["alpha1"] = jnp.float32(0.25)          # nn.PReLU() default single alpha
    p["w2"], p["b2"] = conv_init(ks[2], 48, 24, (11, 1, 1))
    p["bn2"] = bn_init(ks[3], 48)
    p["alpha2"] = jnp.float32(0.25)
    p["w3"], p["b3"] = conv_init(ks[4], 48, 48, (9, 1, 1))
    return p


# --------------------------------------------------------------- reference ---
def _ref_conv3d(x, w, b, stride):
    y = jax.lax.conv_general_dilated(
        x, w, window_strides=stride, padding="VALID",
        dimension_numbers=("NCDHW", "OIDHW", "NCDHW"),
        precision=jax.lax.Precision.HIGHEST)
    return y + b[None, :, None, None, None]


def _ref_bn_prelu(y, bn, alpha, eps=1e-5):
    gamma, beta, mean, var = bn
    bc = lambda v: v[None, :, None, None, None]
    y = (y - bc(mean)) / jnp.sqrt(bc(var) + eps) * bc(gamma) + bc(beta)
    return jnp.where(y >= 0, y, alpha * y)


def cae3d_reference(x, p):
    # TODO(synk): BatchNorm is evaluated in inference mode (running stats);
    # training-mode batch statistics are not computed.
    y = _ref_conv3d(x, p["w1"], p["b1"], (1, 1, 1))
    y = _ref_bn_prelu(y, p["bn1"], p["alpha1"])
    y = _ref_conv3d(y, p["w2"], p["b2"], (1, 1, 1))
    y = _ref_bn_prelu(y, p["bn2"], p["alpha2"])
    y = _ref_conv3d(y, p["w3"], p["b3"], (9, 1, 1))
    return y


if __name__ == "__main__":
    key = jax.random.PRNGKey(0)
    kx, kp = jax.random.split(key)
    # (B, C, D, H, W) = (8, 1, 30, 9, 9): 30 spectral bands, 9x9 spatial patch;
    # B=8 exercises the 2-samples-per-step packing (grid of 4 steps).
    x = jax.random.normal(kx, (8, 1, 30, 9, 9), jnp.float32)
    params = init_params(kp)

    out = jax.block_until_ready(cae3d_forward(x, params))
    assert out.shape == (8, 48, 1, 7, 7), out.shape

    ref = jax.block_until_ready(cae3d_reference(x, params))
    np.testing.assert_allclose(np.asarray(out), np.asarray(ref),
                               rtol=2e-2, atol=2e-2)
    print("KERNEL_OK")
</pallas_src>

<mosaic_0001>
module attributes {stable_mosaic.version = 11 : i64} {
  func.func @kernel(%arg0: i32, %arg1: memref<2x16x3840xbf16, #tpu.memory_space<vmem>>, %arg2: memref<11x32x16xbf16, #tpu.memory_space<vmem>>, %arg3: memref<11x48x32xbf16, #tpu.memory_space<vmem>>, %arg4: memref<9x48x48xbf16, #tpu.memory_space<vmem>>, %arg5: memref<48x5xf32, #tpu.memory_space<vmem>>, %arg6: memref<2x48x128xf32, #tpu.memory_space<vmem>>, %arg7: memref<32x2560xf32, #tpu.memory_space<vmem>>, %arg8: memref<32x2560xbf16, #tpu.memory_space<vmem>>, %arg9: memref<48x1280xf32, #tpu.memory_space<vmem>>, %arg10: memref<48x1280xbf16, #tpu.memory_space<vmem>>) attributes {dimension_semantics = [#tpu.dimension_semantics<parallel>], iteration_bounds = array<i64: 4>, scalar_prefetch = 0 : i64, scratch_operands = 4 : i64, tpu.core_type = #tpu.core_type<tc>, window_params = [{transform_indices = @transform_0, window_bounds = array<i64: 2, 16, 3840>}, {pipeline_mode = #tpu.pipeline_mode<synchronous>, transform_indices = @transform_1, window_bounds = array<i64: 11, 32, 16>}, {pipeline_mode = #tpu.pipeline_mode<synchronous>, transform_indices = @transform_2, window_bounds = array<i64: 11, 48, 32>}, {pipeline_mode = #tpu.pipeline_mode<synchronous>, transform_indices = @transform_3, window_bounds = array<i64: 9, 48, 48>}, {pipeline_mode = #tpu.pipeline_mode<synchronous>, transform_indices = @transform_4, window_bounds = array<i64: 48, 5>}, {transform_indices = @transform_5, window_bounds = array<i64: 2, 48, 128>}]} {
    %c0 = arith.constant 0 : index
    %c0_0 = arith.constant 0 : index
    %0 = vector.load %arg5[%c0, %c0_0] : memref<48x5xf32, #tpu.memory_space<vmem>>, vector<32x1xf32>
    %c0_1 = arith.constant 0 : index
    %c1 = arith.constant 1 : index
    %1 = vector.load %arg5[%c0_1, %c1] : memref<48x5xf32, #tpu.memory_space<vmem>>, vector<48x1xf32>
    %c0_2 = arith.constant 0 : index
    %c2 = arith.constant 2 : index
    %2 = vector.load %arg5[%c0_2, %c2] : memref<48x5xf32, #tpu.memory_space<vmem>>, vector<48x1xf32>
    %c0_3 = arith.constant 0 : index
    %c3 = arith.constant 3 : index
    %3 = vector.load %arg5[%c0_3, %c3] : memref<48x5xf32, #tpu.memory_space<vmem>>, vector<32x1xf32>
    %c0_4 = arith.constant 0 : index
    %c4 = arith.constant 4 : index
    %4 = vector.load %arg5[%c0_4, %c4] : memref<48x5xf32, #tpu.memory_space<vmem>>, vector<48x1xf32>
    %c0_5 = arith.constant 0 : index
    %c0_6 = arith.constant 0 : index
    %c0_7 = arith.constant 0 : index
    %5 = vector.load %arg2[%c0_5, %c0_6, %c0_7] : memref<11x32x16xbf16, #tpu.memory_space<vmem>>, vector<1x32x16xbf16>
    %6 = vector.shape_cast %5 : vector<1x32x16xbf16> to vector<32x16xbf16>
    %c0_8 = arith.constant 0 : index
    %c0_9 = arith.constant 0 : index
    %c0_10 = arith.constant 0 : index
    %7 = vector.load %arg1[%c0_8, %c0_9, %c0_10] : memref<2x16x3840xbf16, #tpu.memory_space<vmem>>, vector<1x16x2560xbf16>
    %8 = vector.shape_cast %7 : vector<1x16x2560xbf16> to vector<16x2560xbf16>
    %cst = arith.constant dense<0.000000e+00> : vector<32x2560xf32>
    %9 = tpu.matmul %6, %8, %cst {dimension_numbers = #tpu.dot_dimension_numbers<[1], [0], [0], [1], [0, 0, 1, 1], [], []>} : vector<32x16xbf16>, vector<16x2560xbf16>, vector<32x2560xf32> -> vector<32x2560xf32>
    %c0_11 = arith.constant 0 : index
    %c0_12 = arith.constant 0 : index
    %10 = vector.load %arg7[%c0_11, %c0_12] : memref<32x2560xf32, #tpu.memory_space<vmem>>, vector<32x2560xf32>
    tpu.vector_store %arg7[%c0_11, %c0_12], %9 {strides = array<i32>} : memref<32x2560xf32, #tpu.memory_space<vmem>>, vector<32x2560xf32>,
    %c1_13 = arith.constant 1 : index
    %c0_14 = arith.constant 0 : index
    %c0_15 = arith.constant 0 : index
    %11 = vector.load %arg2[%c1_13, %c0_14, %c0_15] : memref<11x32x16xbf16, #tpu.memory_space<vmem>>, vector<1x32x16xbf16>
    %12 = vector.shape_cast %11 : vector<1x32x16xbf16> to vector<32x16xbf16>
    %c0_16 = arith.constant 0 : index
    %c0_17 = arith.constant 0 : index
    %c128 = arith.constant 128 : index
    %13 = vector.load %arg1[%c0_16, %c0_17, %c128] : memref<2x16x3840xbf16, #tpu.memory_space<vmem>>, vector<1x16x2560xbf16>
    %14 = vector.shape_cast %13 : vector<1x16x2560xbf16> to vector<16x2560xbf16>
    %cst_18 = arith.constant dense<0.000000e+00> : vector<32x2560xf32>
    %15 = tpu.matmul %12, %14, %cst_18 {dimension_numbers = #tpu.dot_dimension_numbers<[1], [0], [0], [1], [0, 0, 1, 1], [], []>} : vector<32x16xbf16>, vector<16x2560xbf16>, vector<32x2560xf32> -> vector<32x2560xf32>
    %c0_19 = arith.constant 0 : index
    %c0_20 = arith.constant 0 : index
    %16 = vector.load %arg7[%c0_19, %c0_20] : memref<32x2560xf32, #tpu.memory_space<vmem>>, vector<32x2560xf32>
    %17 = arith.addf %16, %15 : vector<32x2560xf32>
    %c0_21 = arith.constant 0 : index
    %c0_22 = arith.constant 0 : index
    %18 = vector.load %arg7[%c0_21, %c0_22] : memref<32x2560xf32, #tpu.memory_space<vmem>>, vector<32x2560xf32>
    tpu.vector_store %arg7[%c0_21, %c0_22], %17 {strides = array<i32>} : memref<32x2560xf32, #tpu.memory_space<vmem>>, vector<32x2560xf32>,
    %c2_23 = arith.constant 2 : index
    %c0_24 = arith.constant 0 : index
    %c0_25 = arith.constant 0 : index
    %19 = vector.load %arg2[%c2_23, %c0_24, %c0_25] : memref<11x32x16xbf16, #tpu.memory_space<vmem>>, vector<1x32x16xbf16>
    %20 = vector.shape_cast %19 : vector<1x32x16xbf16> to vector<32x16xbf16>
    %c0_26 = arith.constant 0 : index
    %c0_27 = arith.constant 0 : index
    %c256 = arith.constant 256 : index
    %21 = vector.load %arg1[%c0_26, %c0_27, %c256] : memref<2x16x3840xbf16, #tpu.memory_space<vmem>>, vector<1x16x2560xbf16>
    %22 = vector.shape_cast %21 : vector<1x16x2560xbf16> to vector<16x2560xbf16>
    %cst_28 = arith.constant dense<0.000000e+00> : vector<32x2560xf32>
    %23 = tpu.matmul %20, %22, %cst_28 {dimension_numbers = #tpu.dot_dimension_numbers<[1], [0], [0], [1], [0, 0, 1, 1], [], []>} : vector<32x16xbf16>, vector<16x2560xbf16>, vector<32x2560xf32> -> vector<32x2560xf32>
    %c0_29 = arith.constant 0 : index
    %c0_30 = arith.constant 0 : index
    %24 = vector.load %arg7[%c0_29, %c0_30] : memref<32x2560xf32, #tpu.memory_space<vmem>>, vector<32x2560xf32>
    %25 = arith.addf %24, %23 : vector<32x2560xf32>
    %c0_31 = arith.constant 0 : index
    %c0_32 = arith.constant 0 : index
    %26 = vector.load %arg7[%c0_31, %c0_32] : memref<32x2560xf32, #tpu.memory_space<vmem>>, vector<32x2560xf32>
    tpu.vector_store %arg7[%c0_31, %c0_32], %25 {strides = array<i32>} : memref<32x2560xf32, #tpu.memory_space<vmem>>, vector<32x2560xf32>,
    %c3_33 = arith.constant 3 : index
    %c0_34 = arith.constant 0 : index
    %c0_35 = arith.constant 0 : index
    %27 = vector.load %arg2[%c3_33, %c0_34, %c0_35] : memref<11x32x16xbf16, #tpu.memory_space<vmem>>, vector<1x32x16xbf16>
    %28 = vector.shape_cast %27 : vector<1x32x16xbf16> to vector<32x16xbf16>
    %c0_36 = arith.constant 0 : index
    %c0_37 = arith.constant 0 : index
    %c384 = arith.constant 384 : index
    %29 = vector.load %arg1[%c0_36, %c0_37, %c384] : memref<2x16x3840xbf16, #tpu.memory_space<vmem>>, vector<1x16x2560xbf16>
    %30 = vector.shape_cast %29 : vector<1x16x2560xbf16> to vector<16x2560xbf16>
    %cst_38 = arith.constant dense<0.000000e+00> : vector<32x2560xf32>
    %31 = tpu.matmul %28, %30, %cst_38 {dimension_numbers = #tpu.dot_dimension_numbers<[1], [0], [0], [1], [0, 0, 1, 1], [], []>} : vector<32x16xbf16>, vector<16x2560xbf16>, vector<32x2560xf32> -> vector<32x2560xf32>
    %c0_39 = arith.constant 0 : index
    %c0_40 = arith.constant 0 : index
    %32 = vector.load %arg7[%c0_39, %c0_40] : memref<32x2560xf32, #tpu.memory_space<vmem>>, vector<32x2560xf32>
    %33 = arith.addf %32, %31 : vector<32x2560xf32>
    %c0_41 = arith.constant 0 : index
    %c0_42 = arith.constant 0 : index
    %34 = vector.load %arg7[%c0_41, %c0_42] : memref<32x2560xf32, #tpu.memory_space<vmem>>, vector<32x2560xf32>
    tpu.vector_store %arg7[%c0_41, %c0_42], %33 {strides = array<i32>} : memref<32x2560xf32, #tpu.memory_space<vmem>>, vector<32x2560xf32>,
    %c4_43 = arith.constant 4 : index
    %c0_44 = arith.constant 0 : index
    %c0_45 = arith.constant 0 : index
    %35 = vector.load %arg2[%c4_43, %c0_44, %c0_45] : memref<11x32x16xbf16, #tpu.memory_space<vmem>>, vector<1x32x16xbf16>
    %36 = vector.shape_cast %35 : vector<1x32x16xbf16> to vector<32x16xbf16>
    %c0_46 = arith.constant 0 : index
    %c0_47 = arith.constant 0 : index
    %c512 = arith.constant 512 : index
    %37 = vector.load %arg1[%c0_46, %c0_47, %c512] : memref<2x16x3840xbf16, #tpu.memory_space<vmem>>, vector<1x16x2560xbf16>
    %38 = vector.shape_cast %37 : vector<1x16x2560xbf16> to vector<16x2560xbf16>
    %cst_48 = arith.constant dense<0.000000e+00> : vector<32x2560xf32>
    %39 = tpu.matmul %36, %38, %cst_48 {dimension_numbers = #tpu.dot_dimension_numbers<[1], [0], [0], [1], [0, 0, 1, 1], [], []>} : vector<32x16xbf16>, vector<16x2560xbf16>, vector<32x2560xf32> -> vector<32x2560xf32>
    %c0_49 = arith.constant 0 : index
    %c0_50 = arith.constant 0 : index
    %40 = vector.load %arg7[%c0_49, %c0_50] : memref<32x2560xf32, #tpu.memory_space<vmem>>, vector<32x2560xf32>
    %41 = arith.addf %40, %39 : vector<32x2560xf32>
    %c0_51 = arith.constant 0 : index
    %c0_52 = arith.constant 0 : index
    %42 = vector.load %arg7[%c0_51, %c0_52] : memref<32x2560xf32, #tpu.memory_space<vmem>>, vector<32x2560xf32>
    tpu.vector_store %arg7[%c0_51, %c0_52], %41 {strides = array<i32>} : memref<32x2560xf32, #tpu.memory_space<vmem>>, vector<32x2560xf32>,
    %c5 = arith.constant 5 : index
    %c0_53 = arith.constant 0 : index
    %c0_54 = arith.constant 0 : index
    %43 = vector.load %arg2[%c5, %c0_53, %c0_54] : memref<11x32x16xbf16, #tpu.memory_space<vmem>>, vector<1x32x16xbf16>
    %44 = vector.shape_cast %43 : vector<1x32x16xbf16> to vector<32x16xbf16>
    %c0_55 = arith.constant 0 : index
    %c0_56 = arith.constant 0 : index
    %c640 = arith.constant 640 : index
    %45 = vector.load %arg1[%c0_55, %c0_56, %c640] : memref<2x16x3840xbf16, #tpu.memory_space<vmem>>, vector<1x16x2560xbf16>
    %46 = vector.shape_cast %45 : vector<1x16x2560xbf16> to vector<16x2560xbf16>
    %cst_57 = arith.constant dense<0.000000e+00> : vector<32x2560xf32>
    %47 = tpu.matmul %44, %46, %cst_57 {dimension_numbers = #tpu.dot_dimension_numbers<[1], [0], [0], [1], [0, 0, 1, 1], [], []>} : vector<32x16xbf16>, vector<16x2560xbf16>, vector<32x2560xf32> -> vector<32x2560xf32>
    %c0_58 = arith.constant 0 : index
    %c0_59 = arith.constant 0 : index
    %48 = vector.load %arg7[%c0_58, %c0_59] : memref<32x2560xf32, #tpu.memory_space<vmem>>, vector<32x2560xf32>
    %49 = arith.addf %48, %47 : vector<32x2560xf32>
    %c0_60 = arith.constant 0 : index
    %c0_61 = arith.constant 0 : index
    %50 = vector.load %arg7[%c0_60, %c0_61] : memref<32x2560xf32, #tpu.memory_space<vmem>>, vector<32x2560xf32>
    tpu.vector_store %arg7[%c0_60, %c0_61], %49 {strides = array<i32>} : memref<32x2560xf32, #tpu.memory_space<vmem>>, vector<32x2560xf32>,
    %c6 = arith.constant 6 : index
    %c0_62 = arith.constant 0 : index
    %c0_63 = arith.constant 0 : index
    %51 = vector.load %arg2[%c6, %c0_62, %c0_63] : memref<11x32x16xbf16, #tpu.memory_space<vmem>>, vector<1x32x16xbf16>
    %52 = vector.shape_cast %51 : vector<1x32x16xbf16> to vector<32x16xbf16>
    %c0_64 = arith.constant 0 : index
    %c0_65 = arith.constant 0 : index
    %c768 = arith.constant 768 : index
    %53 = vector.load %arg1[%c0_64, %c0_65, %c768] : memref<2x16x3840xbf16, #tpu.memory_space<vmem>>, vector<1x16x2560xbf16>
    %54 = vector.shape_cast %53 : vector<1x16x2560xbf16> to vector<16x2560xbf16>
    %cst_66 = arith.constant dense<0.000000e+00> : vector<32x2560xf32>
    %55 = tpu.matmul %52, %54, %cst_66 {dimension_numbers = #tpu.dot_dimension_numbers<[1], [0], [0], [1], [0, 0, 1, 1], [], []>} : vector<32x16xbf16>, vector<16x2560xbf16>, vector<32x2560xf32> -> vector<32x2560xf32>
    %c0_67 = arith.constant 0 : index
    %c0_68 = arith.constant 0 : index
    %56 = vector.load %arg7[%c0_67, %c0_68] : memref<32x2560xf32, #tpu.memory_space<vmem>>, vector<32x2560xf32>
    %57 = arith.addf %56, %55 : vector<32x2560xf32>
    %c0_69 = arith.constant 0 : index
    %c0_70 = arith.constant 0 : index
    %58 = vector.load %arg7[%c0_69, %c0_70] : memref<32x2560xf32, #tpu.memory_space<vmem>>, vector<32x2560xf32>
    tpu.vector_store %arg7[%c0_69, %c0_70], %57 {strides = array<i32>} : memref<32x2560xf32, #tpu.memory_space<vmem>>, vector<32x2560xf32>,
    %c7 = arith.constant 7 : index
    %c0_71 = arith.constant 0 : index
    %c0_72 = arith.constant 0 : index
    %59 = vector.load %arg2[%c7, %c0_71, %c0_72] : memref<11x32x16xbf16, #tpu.memory_space<vmem>>, vector<1x32x16xbf16>
    %60 = vector.shape_cast %59 : vector<1x32x16xbf16> to vector<32x16xbf16>
    %c0_73 = arith.constant 0 : index
    %c0_74 = arith.constant 0 : index
    %c896 = arith.constant 896 : index
    %61 = vector.load %arg1[%c0_73, %c0_74, %c896] : memref<2x16x3840xbf16, #tpu.memory_space<vmem>>, vector<1x16x2560xbf16>
    %62 = vector.shape_cast %61 : vector<1x16x2560xbf16> to vector<16x2560xbf16>
    %cst_75 = arith.constant dense<0.000000e+00> : vector<32x2560xf32>
    %63 = tpu.matmul %60, %62, %cst_75 {dimension_numbers = #tpu.dot_dimension_numbers<[1], [0], [0], [1], [0, 0, 1, 1], [], []>} : vector<32x16xbf16>, vector<16x2560xbf16>, vector<32x2560xf32> -> vector<32x2560xf32>
    %c0_76 = arith.constant 0 : index
    %c0_77 = arith.constant 0 : index
    %64 = vector.load %arg7[%c0_76, %c0_77] : memref<32x2560xf32, #tpu.memory_space<vmem>>, vector<32x2560xf32>
    %65 = arith.addf %64, %63 : vector<32x2560xf32>
    %c0_78 = arith.constant 0 : index
    %c0_79 = arith.constant 0 : index
    %66 = vector.load %arg7[%c0_78, %c0_79] : memref<32x2560xf32, #tpu.memory_space<vmem>>, vector<32x2560xf32>
    tpu.vector_store %arg7[%c0_78, %c0_79], %65 {strides = array<i32>} : memref<32x2560xf32, #tpu.memory_space<vmem>>, vector<32x2560xf32>,
    %c8 = arith.constant 8 : index
    %c0_80 = arith.constant 0 : index
    %c0_81 = arith.constant 0 : index
    %67 = vector.load %arg2[%c8, %c0_80, %c0_81] : memref<11x32x16xbf16, #tpu.memory_space<vmem>>, vector<1x32x16xbf16>
    %68 = vector.shape_cast %67 : vector<1x32x16xbf16> to vector<32x16xbf16>
    %c0_82 = arith.constant 0 : index
    %c0_83 = arith.constant 0 : index
    %c1024 = arith.constant 1024 : index
    %69 = vector.load %arg1[%c0_82, %c0_83, %c1024] : memref<2x16x3840xbf16, #tpu.memory_space<vmem>>, vector<1x16x2560xbf16>
    %70 = vector.shape_cast %69 : vector<1x16x2560xbf16> to vector<16x2560xbf16>
    %cst_84 = arith.constant dense<0.000000e+00> : vector<32x2560xf32>
    %71 = tpu.matmul %68, %70, %cst_84 {dimension_numbers = #tpu.dot_dimension_numbers<[1], [0], [0], [1], [0, 0, 1, 1], [], []>} : vector<32x16xbf16>, vector<16x2560xbf16>, vector<32x2560xf32> -> vector<32x2560xf32>
    %c0_85 = arith.constant 0 : index
    %c0_86 = arith.constant 0 : index
    %72 = vector.load %arg7[%c0_85, %c0_86] : memref<32x2560xf32, #tpu.memory_space<vmem>>, vector<32x2560xf32>
    %73 = arith.addf %72, %71 : vector<32x2560xf32>
    %c0_87 = arith.constant 0 : index
    %c0_88 = arith.constant 0 : index
    %74 = vector.load %arg7[%c0_87, %c0_88] : memref<32x2560xf32, #tpu.memory_space<vmem>>, vector<32x2560xf32>
    tpu.vector_store %arg7[%c0_87, %c0_88], %73 {strides = array<i32>} : memref<32x2560xf32, #tpu.memory_space<vmem>>, vector<32x2560xf32>,
    %c9 = arith.constant 9 : index
    %c0_89 = arith.constant 0 : index
    %c0_90 = arith.constant 0 : index
    %75 = vector.load %arg2[%c9, %c0_89, %c0_90] : memref<11x32x16xbf16, #tpu.memory_space<vmem>>, vector<1x32x16xbf16>
    %76 = vector.shape_cast %75 : vector<1x32x16xbf16> to vector<32x16xbf16>
    %c0_91 = arith.constant 0 : index
    %c0_92 = arith.constant 0 : index
    %c1152 = arith.constant 1152 : index
    %77 = vector.load %arg1[%c0_91, %c0_92, %c1152] : memref<2x16x3840xbf16, #tpu.memory_space<vmem>>, vector<1x16x2560xbf16>
    %78 = vector.shape_cast %77 : vector<1x16x2560xbf16> to vector<16x2560xbf16>
    %cst_93 = arith.constant dense<0.000000e+00> : vector<32x2560xf32>
    %79 = tpu.matmul %76, %78, %cst_93 {dimension_numbers = #tpu.dot_dimension_numbers<[1], [0], [0], [1], [0, 0, 1, 1], [], []>} : vector<32x16xbf16>, vector<16x2560xbf16>, vector<32x2560xf32> -> vector<32x2560xf32>
    %c0_94 = arith.constant 0 : index
    %c0_95 = arith.constant 0 : index
    %80 = vector.load %arg7[%c0_94, %c0_95] : memref<32x2560xf32, #tpu.memory_space<vmem>>, vector<32x2560xf32>
    %81 = arith.addf %80, %79 : vector<32x2560xf32>
    %c0_96 = arith.constant 0 : index
    %c0_97 = arith.constant 0 : index
    %82 = vector.load %arg7[%c0_96, %c0_97] : memref<32x2560xf32, #tpu.memory_space<vmem>>, vector<32x2560xf32>
    tpu.vector_store %arg7[%c0_96, %c0_97], %81 {strides = array<i32>} : memref<32x2560xf32, #tpu.memory_space<vmem>>, vector<32x2560xf32>,
    %c10 = arith.constant 10 : index
    %c0_98 = arith.constant 0 : index
    %c0_99 = arith.constant 0 : index
    %83 = vector.load %arg2[%c10, %c0_98, %c0_99] : memref<11x32x16xbf16, #tpu.memory_space<vmem>>, vector<1x32x16xbf16>
    %84 = vector.shape_cast %83 : vector<1x32x16xbf16> to vector<32x16xbf16>
    %c0_100 = arith.constant 0 : index
    %c0_101 = arith.constant 0 : index
    %c1280 = arith.constant 1280 : index
    %85 = vector.load %arg1[%c0_100, %c0_101, %c1280] : memref<2x16x3840xbf16, #tpu.memory_space<vmem>>, vector<1x16x2560xbf16>
    %86 = vector.shape_cast %85 : vector<1x16x2560xbf16> to vector<16x2560xbf16>
    %cst_102 = arith.constant dense<0.000000e+00> : vector<32x2560xf32>
    %87 = tpu.matmul %84, %86, %cst_102 {dimension_numbers = #tpu.dot_dimension_numbers<[1], [0], [0], [1], [0, 0, 1, 1], [], []>} : vector<32x16xbf16>, vector<16x2560xbf16>, vector<32x2560xf32> -> vector<32x2560xf32>
    %c0_103 = arith.constant 0 : index
    %c0_104 = arith.constant 0 : index
    %88 = vector.load %arg7[%c0_103, %c0_104] : memref<32x2560xf32, #tpu.memory_space<vmem>>, vector<32x2560xf32>
    %89 = arith.addf %88, %87 : vector<32x2560xf32>
    %c0_105 = arith.constant 0 : index
    %c0_106 = arith.constant 0 : index
    %90 = vector.load %arg7[%c0_105, %c0_106] : memref<32x2560xf32, #tpu.memory_space<vmem>>, vector<32x2560xf32>
    tpu.vector_store %arg7[%c0_105, %c0_106], %89 {strides = array<i32>} : memref<32x2560xf32, #tpu.memory_space<vmem>>, vector<32x2560xf32>,
    %c0_107 = arith.constant 0 : index
    %c0_108 = arith.constant 0 : index
    %91 = vector.load %arg7[%c0_107, %c0_108] : memref<32x2560xf32, #tpu.memory_space<vmem>>, vector<32x2560xf32>
    %92 = vector.broadcast %0 : vector<32x1xf32> to vector<32x2560xf32>
    %93 = arith.addf %91, %92 : vector<32x2560xf32>
    %cst_109 = arith.constant 0.000000e+00 : f32
    %94 = vector.broadcast %cst_109 : f32 to vector<32x2560xf32>
    %95 = arith.cmpf oge, %93, %94 : vector<32x2560xf32>
    %96 = vector.broadcast %3 : vector<32x1xf32> to vector<32x2560xf32>
    %97 = arith.mulf %96, %93 : vector<32x2560xf32>
    %98 = arith.select %95, %93, %97 : vector<32x2560xi1>, vector<32x2560xf32>
    %99 = arith.truncf %98 : vector<32x2560xf32> to vector<32x2560xbf16>
    %c0_110 = arith.constant 0 : index
    %c0_111 = arith.constant 0 : index
    %100 = vector.load %arg8[%c0_110, %c0_111] : memref<32x2560xbf16, #tpu.memory_space<vmem>>, vector<32x2560xbf16>
    tpu.vector_store %arg8[%c0_110, %c0_111], %99 {strides = array<i32>} : memref<32x2560xbf16, #tpu.memory_space<vmem>>, vector<32x2560xbf16>,
    %c0_112 = arith.constant 0 : index
    %c0_113 = arith.constant 0 : index
    %c0_114 = arith.constant 0 : index
    %101 = vector.load %arg3[%c0_112, %c0_113, %c0_114] : memref<11x48x32xbf16, #tpu.memory_space<vmem>>, vector<1x48x32xbf16>
    %102 = vector.shape_cast %101 : vector<1x48x32xbf16> to vector<48x32xbf16>
    %c0_115 = arith.constant 0 : index
    %c0_116 = arith.constant 0 : index
    %103 = vector.load %arg8[%c0_115, %c0_116] : memref<32x2560xbf16, #tpu.memory_space<vmem>>, vector<32x1280xbf16>
    %cst_117 = arith.constant dense<0.000000e+00> : vector<48x1280xf32>
    %104 = tpu.matmul %102, %103, %cst_117 {dimension_numbers = #tpu.dot_dimension_numbers<[1], [0], [0], [1], [0, 0, 1, 1], [], []>} : vector<48x32xbf16>, vector<32x1280xbf16>, vector<48x1280xf32> -> vector<48x1280xf32>
    %c0_118 = arith.constant 0 : index
    %c0_119 = arith.constant 0 : index
    %105 = vector.load %arg9[%c0_118, %c0_119] : memref<48x1280xf32, #tpu.memory_space<vmem>>, vector<48x1280xf32>
    tpu.vector_store %arg9[%c0_118, %c0_119], %104 {strides = array<i32>} : memref<48x1280xf32, #tpu.memory_space<vmem>>, vector<48x1280xf32>,
    %c1_120 = arith.constant 1 : index
    %c0_121 = arith.constant 0 : index
    %c0_122 = arith.constant 0 : index
    %106 = vector.load %arg3[%c1_120, %c0_121, %c0_122] : memref<11x48x32xbf16, #tpu.memory_space<vmem>>, vector<1x48x32xbf16>
    %107 = vector.shape_cast %106 : vector<1x48x32xbf16> to vector<48x32xbf16>
    %c0_123 = arith.constant 0 : index
    %c128_124 = arith.constant 128 : index
    %108 = vector.load %arg8[%c0_123, %c128_124] : memref<32x2560xbf16, #tpu.memory_space<vmem>>, vector<32x1280xbf16>
    %cst_125 = arith.constant dense<0.000000e+00> : vector<48x1280xf32>
    %109 = tpu.matmul %107, %108, %cst_125 {dimension_numbers = #tpu.dot_dimension_numbers<[1], [0], [0], [1], [0, 0, 1, 1], [], []>} : vector<48x32xbf16>, vector<32x1280xbf16>, vector<48x1280xf32> -> vector<48x1280xf32>
    %c0_126 = arith.constant 0 : index
    %c0_127 = arith.constant 0 : index
    %110 = vector.load %arg9[%c0_126, %c0_127] : memref<48x1280xf32, #tpu.memory_space<vmem>>, vector<48x1280xf32>
    %111 = arith.addf %110, %109 : vector<48x1280xf32>
    %c0_128 = arith.constant 0 : index
    %c0_129 = arith.constant 0 : index
    %112 = vector.load %arg9[%c0_128, %c0_129] : memref<48x1280xf32, #tpu.memory_space<vmem>>, vector<48x1280xf32>
    tpu.vector_store %arg9[%c0_128, %c0_129], %111 {strides = array<i32>} : memref<48x1280xf32, #tpu.memory_space<vmem>>, vector<48x1280xf32>,
    %c2_130 = arith.constant 2 : index
    %c0_131 = arith.constant 0 : index
    %c0_132 = arith.constant 0 : index
    %113 = vector.load %arg3[%c2_130, %c0_131, %c0_132] : memref<11x48x32xbf16, #tpu.memory_space<vmem>>, vector<1x48x32xbf16>
    %114 = vector.shape_cast %113 : vector<1x48x32xbf16> to vector<48x32xbf16>
    %c0_133 = arith.constant 0 : index
    %c256_134 = arith.constant 256 : index
    %115 = vector.load %arg8[%c0_133, %c256_134] : memref<32x2560xbf16, #tpu.memory_space<vmem>>, vector<32x1280xbf16>
    %cst_135 = arith.constant dense<0.000000e+00> : vector<48x1280xf32>
    %116 = tpu.matmul %114, %115, %cst_135 {dimension_numbers = #tpu.dot_dimension_numbers<[1], [0], [0], [1], [0, 0, 1, 1], [], []>} : vector<48x32xbf16>, vector<32x1280xbf16>, vector<48x1280xf32> -> vector<48x1280xf32>
    %c0_136 = arith.constant 0 : index
    %c0_137 = arith.constant 0 : index
    %117 = vector.load %arg9[%c0_136, %c0_137] : memref<48x1280xf32, #tpu.memory_space<vmem>>, vector<48x1280xf32>
    %118 = arith.addf %117, %116 : vector<48x1280xf32>
    %c0_138 = arith.constant 0 : index
    %c0_139 = arith.constant 0 : index
    %119 = vector.load %arg9[%c0_138, %c0_139] : memref<48x1280xf32, #tpu.memory_space<vmem>>, vector<48x1280xf32>
    tpu.vector_store %arg9[%c0_138, %c0_139], %118 {strides = array<i32>} : memref<48x1280xf32, #tpu.memory_space<vmem>>, vector<48x1280xf32>,
    %c3_140 = arith.constant 3 : index
    %c0_141 = arith.constant 0 : index
    %c0_142 = arith.constant 0 : index
    %120 = vector.load %arg3[%c3_140, %c0_141, %c0_142] : memref<11x48x32xbf16, #tpu.memory_space<vmem>>, vector<1x48x32xbf16>
    %121 = vector.shape_cast %120 : vector<1x48x32xbf16> to vector<48x32xbf16>
    %c0_143 = arith.constant 0 : index
    %c384_144 = arith.constant 384 : index
    %122 = vector.load %arg8[%c0_143, %c384_144] : memref<32x2560xbf16, #tpu.memory_space<vmem>>, vector<32x1280xbf16>
    %cst_145 = arith.constant dense<0.000000e+00> : vector<48x1280xf32>
    %123 = tpu.matmul %121, %122, %cst_145 {dimension_numbers = #tpu.dot_dimension_numbers<[1], [0], [0], [1], [0, 0, 1, 1], [], []>} : vector<48x32xbf16>, vector<32x1280xbf16>, vector<48x1280xf32> -> vector<48x1280xf32>
    %c0_146 = arith.constant 0 : index
    %c0_147 = arith.constant 0 : index
    %124 = vector.load %arg9[%c0_146, %c0_147] : memref<48x1280xf32, #tpu.memory_space<vmem>>, vector<48x1280xf32>
    %125 = arith.addf %124, %123 : vector<48x1280xf32>
    %c0_148 = arith.constant 0 : index
    %c0_149 = arith.constant 0 : index
    %126 = vector.load %arg9[%c0_148, %c0_149] : memref<48x1280xf32, #tpu.memory_space<vmem>>, vector<48x1280xf32>
    tpu.vector_store %arg9[%c0_148, %c0_149], %125 {strides = array<i32>} : memref<48x1280xf32, #tpu.memory_space<vmem>>, vector<48x1280xf32>,
    %c4_150 = arith.constant 4 : index
    %c0_151 = arith.constant 0 : index
    %c0_152 = arith.constant 0 : index
    %127 = vector.load %arg3[%c4_150, %c0_151, %c0_152] : memref<11x48x32xbf16, #tpu.memory_space<vmem>>, vector<1x48x32xbf16>
    %128 = vector.shape_cast %127 : vector<1x48x32xbf16> to vector<48x32xbf16>
    %c0_153 = arith.constant 0 : index
    %c512_154 = arith.constant 512 : index
    %129 = vector.load %arg8[%c0_153, %c512_154] : memref<32x2560xbf16, #tpu.memory_space<vmem>>, vector<32x1280xbf16>
    %cst_155 = arith.constant dense<0.000000e+00> : vector<48x1280xf32>
    %130 = tpu.matmul %128, %129, %cst_155 {dimension_numbers = #tpu.dot_dimension_numbers<[1], [0], [0], [1], [0, 0, 1, 1], [], []>} : vector<48x32xbf16>, vector<32x1280xbf16>, vector<48x1280xf32> -> vector<48x1280xf32>
    %c0_156 = arith.constant 0 : index
    %c0_157 = arith.constant 0 : index
    %131 = vector.load %arg9[%c0_156, %c0_157] : memref<48x1280xf32, #tpu.memory_space<vmem>>, vector<48x1280xf32>
    %132 = arith.addf %131, %130 : vector<48x1280xf32>
    %c0_158 = arith.constant 0 : index
    %c0_159 = arith.constant 0 : index
    %133 = vector.load %arg9[%c0_158, %c0_159] : memref<48x1280xf32, #tpu.memory_space<vmem>>, vector<48x1280xf32>
    tpu.vector_store %arg9[%c0_158, %c0_159], %132 {strides = array<i32>} : memref<48x1280xf32, #tpu.memory_space<vmem>>, vector<48x1280xf32>,
    %c5_160 = arith.constant 5 : index
    %c0_161 = arith.constant 0 : index
    %c0_162 = arith.constant 0 : index
    %134 = vector.load %arg3[%c5_160, %c0_161, %c0_162] : memref<11x48x32xbf16, #tpu.memory_space<vmem>>, vector<1x48x32xbf16>
    %135 = vector.shape_cast %134 : vector<1x48x32xbf16> to vector<48x32xbf16>
    %c0_163 = arith.constant 0 : index
    %c640_164 = arith.constant 640 : index
    %136 = vector.load %arg8[%c0_163, %c640_164] : memref<32x2560xbf16, #tpu.memory_space<vmem>>, vector<32x1280xbf16>
    %cst_165 = arith.constant dense<0.000000e+00> : vector<48x1280xf32>
    %137 = tpu.matmul %135, %136, %cst_165 {dimension_numbers = #tpu.dot_dimension_numbers<[1], [0], [0], [1], [0, 0, 1, 1], [], []>} : vector<48x32xbf16>, vector<32x1280xbf16>, vector<48x1280xf32> -> vector<48x1280xf32>
    %c0_166 = arith.constant 0 : index
    %c0_167 = arith.constant 0 : index
    %138 = vector.load %arg9[%c0_166, %c0_167] : memref<48x1280xf32, #tpu.memory_space<vmem>>, vector<48x1280xf32>
    %139 = arith.addf %138, %137 : vector<48x1280xf32>
    %c0_168 = arith.constant 0 : index
    %c0_169 = arith.constant 0 : index
    %140 = vector.load %arg9[%c0_168, %c0_169] : memref<48x1280xf32, #tpu.memory_space<vmem>>, vector<48x1280xf32>
    tpu.vector_store %arg9[%c0_168, %c0_169], %139 {strides = array<i32>} : memref<48x1280xf32, #tpu.memory_space<vmem>>, vector<48x1280xf32>,
    %c6_170 = arith.constant 6 : index
    %c0_171 = arith.constant 0 : index
    %c0_172 = arith.constant 0 : index
    %141 = vector.load %arg3[%c6_170, %c0_171, %c0_172] : memref<11x48x32xbf16, #tpu.memory_space<vmem>>, vector<1x48x32xbf16>
    %142 = vector.shape_cast %141 : vector<1x48x32xbf16> to vector<48x32xbf16>
    %c0_173 = arith.constant 0 : index
    %c768_174 = arith.constant 768 : index
    %143 = vector.load %arg8[%c0_173, %c768_174] : memref<32x2560xbf16, #tpu.memory_space<vmem>>, vector<32x1280xbf16>
    %cst_175 = arith.constant dense<0.000000e+00> : vector<48x1280xf32>
    %144 = tpu.matmul %142, %143, %cst_175 {dimension_numbers = #tpu.dot_dimension_numbers<[1], [0], [0], [1], [0, 0, 1, 1], [], []>} : vector<48x32xbf16>, vector<32x1280xbf16>, vector<48x1280xf32> -> vector<48x1280xf32>
    %c0_176 = arith.constant 0 : index
    %c0_177 = arith.constant 0 : index
    %145 = vector.load %arg9[%c0_176, %c0_177] : memref<48x1280xf32, #tpu.memory_space<vmem>>, vector<48x1280xf32>
    %146 = arith.addf %145, %144 : vector<48x1280xf32>
    %c0_178 = arith.constant 0 : index
    %c0_179 = arith.constant 0 : index
    %147 = vector.load %arg9[%c0_178, %c0_179] : memref<48x1280xf32, #tpu.memory_space<vmem>>, vector<48x1280xf32>
    tpu.vector_store %arg9[%c0_178, %c0_179], %146 {strides = array<i32>} : memref<48x1280xf32, #tpu.memory_space<vmem>>, vector<48x1280xf32>,
    %c7_180 = arith.constant 7 : index
    %c0_181 = arith.constant 0 : index
    %c0_182 = arith.constant 0 : index
    %148 = vector.load %arg3[%c7_180, %c0_181, %c0_182] : memref<11x48x32xbf16, #tpu.memory_space<vmem>>, vector<1x48x32xbf16>
    %149 = vector.shape_cast %148 : vector<1x48x32xbf16> to vector<48x32xbf16>
    %c0_183 = arith.constant 0 : index
    %c896_184 = arith.constant 896 : index
    %150 = vector.load %arg8[%c0_183, %c896_184] : memref<32x2560xbf16, #tpu.memory_space<vmem>>, vector<32x1280xbf16>
    %cst_185 = arith.constant dense<0.000000e+00> : vector<48x1280xf32>
    %151 = tpu.matmul %149, %150, %cst_185 {dimension_numbers = #tpu.dot_dimension_numbers<[1], [0], [0], [1], [0, 0, 1, 1], [], []>} : vector<48x32xbf16>, vector<32x1280xbf16>, vector<48x1280xf32> -> vector<48x1280xf32>
    %c0_186 = arith.constant 0 : index
    %c0_187 = arith.constant 0 : index
    %152 = vector.load %arg9[%c0_186, %c0_187] : memref<48x1280xf32, #tpu.memory_space<vmem>>, vector<48x1280xf32>
    %153 = arith.addf %152, %151 : vector<48x1280xf32>
    %c0_188 = arith.constant 0 : index
    %c0_189 = arith.constant 0 : index
    %154 = vector.load %arg9[%c0_188, %c0_189] : memref<48x1280xf32, #tpu.memory_space<vmem>>, vector<48x1280xf32>
    tpu.vector_store %arg9[%c0_188, %c0_189], %153 {strides = array<i32>} : memref<48x1280xf32, #tpu.memory_space<vmem>>, vector<48x1280xf32>,
    %c8_190 = arith.constant 8 : index
    %c0_191 = arith.constant 0 : index
    %c0_192 = arith.constant 0 : index
    %155 = vector.load %arg3[%c8_190, %c0_191, %c0_192] : memref<11x48x32xbf16, #tpu.memory_space<vmem>>, vector<1x48x32xbf16>
    %156 = vector.shape_cast %155 : vector<1x48x32xbf16> to vector<48x32xbf16>
    %c0_193 = arith.constant 0 : index
    %c1024_194 = arith.constant 1024 : index
    %157 = vector.load %arg8[%c0_193, %c1024_194] : memref<32x2560xbf16, #tpu.memory_space<vmem>>, vector<32x1280xbf16>
    %cst_195 = arith.constant dense<0.000000e+00> : vector<48x1280xf32>
    %158 = tpu.matmul %156, %157, %cst_195 {dimension_numbers = #tpu.dot_dimension_numbers<[1], [0], [0], [1], [0, 0, 1, 1], [], []>} : vector<48x32xbf16>, vector<32x1280xbf16>, vector<48x1280xf32> -> vector<48x1280xf32>
    %c0_196 = arith.constant 0 : index
    %c0_197 = arith.constant 0 : index
    %159 = vector.load %arg9[%c0_196, %c0_197] : memref<48x1280xf32, #tpu.memory_space<vmem>>, vector<48x1280xf32>
    %160 = arith.addf %159, %158 : vector<48x1280xf32>
    %c0_198 = arith.constant 0 : index
    %c0_199 = arith.constant 0 : index
    %161 = vector.load %arg9[%c0_198, %c0_199] : memref<48x1280xf32, #tpu.memory_space<vmem>>, vector<48x1280xf32>
    tpu.vector_store %arg9[%c0_198, %c0_199], %160 {strides = array<i32>} : memref<48x1280xf32, #tpu.memory_space<vmem>>, vector<48x1280xf32>,
    %c9_200 = arith.constant 9 : index
    %c0_201 = arith.constant 0 : index
    %c0_202 = arith.constant 0 : index
    %162 = vector.load %arg3[%c9_200, %c0_201, %c0_202] : memref<11x48x32xbf16, #tpu.memory_space<vmem>>, vector<1x48x32xbf16>
    %163 = vector.shape_cast %162 : vector<1x48x32xbf16> to vector<48x32xbf16>
    %c0_203 = arith.constant 0 : index
    %c1152_204 = arith.constant 1152 : index
    %164 = vector.load %arg8[%c0_203, %c1152_204] : memref<32x2560xbf16, #tpu.memory_space<vmem>>, vector<32x1280xbf16>
    %cst_205 = arith.constant dense<0.000000e+00> : vector<48x1280xf32>
    %165 = tpu.matmul %163, %164, %cst_205 {dimension_numbers = #tpu.dot_dimension_numbers<[1], [0], [0], [1], [0, 0, 1, 1], [], []>} : vector<48x32xbf16>, vector<32x1280xbf16>, vector<48x1280xf32> -> vector<48x1280xf32>
    %c0_206 = arith.constant 0 : index
    %c0_207 = arith.constant 0 : index
    %166 = vector.load %arg9[%c0_206, %c0_207] : memref<48x1280xf32, #tpu.memory_space<vmem>>, vector<48x1280xf32>
    %167 = arith.addf %166, %165 : vector<48x1280xf32>
    %c0_208 = arith.constant 0 : index
    %c0_209 = arith.constant 0 : index
    %168 = vector.load %arg9[%c0_208, %c0_209] : memref<48x1280xf32, #tpu.memory_space<vmem>>, vector<48x1280xf32>
    tpu.vector_store %arg9[%c0_208, %c0_209], %167 {strides = array<i32>} : memref<48x1280xf32, #tpu.memory_space<vmem>>, vector<48x1280xf32>,
    %c10_210 = arith.constant 10 : index
    %c0_211 = arith.constant 0 : index
    %c0_212 = arith.constant 0 : index
    %169 = vector.load %arg3[%c10_210, %c0_211, %c0_212] : memref<11x48x32xbf16, #tpu.memory_space<vmem>>, vector<1x48x32xbf16>
    %170 = vector.shape_cast %169 : vector<1x48x32xbf16> to vector<48x32xbf16>
    %c0_213 = arith.constant 0 : index
    %c1280_214 = arith.constant 1280 : index
    %171 = vector.load %arg8[%c0_213, %c1280_214] : memref<32x2560xbf16, #tpu.memory_space<vmem>>, vector<32x1280xbf16>
    %cst_215 = arith.constant dense<0.000000e+00> : vector<48x1280xf32>
    %172 = tpu.matmul %170, %171, %cst_215 {dimension_numbers = #tpu.dot_dimension_numbers<[1], [0], [0], [1], [0, 0, 1, 1], [], []>} : vector<48x32xbf16>, vector<32x1280xbf16>, vector<48x1280xf32> -> vector<48x1280xf32>
    %c0_216 = arith.constant 0 : index
    %c0_217 = arith.constant 0 : index
    %173 = vector.load %arg9[%c0_216, %c0_217] : memref<48x1280xf32, #tpu.memory_space<vmem>>, vector<48x1280xf32>
    %174 = arith.addf %173, %172 : vector<48x1280xf32>
    %c0_218 = arith.constant 0 : index
    %c0_219 = arith.constant 0 : index
    %175 = vector.load %arg9[%c0_218, %c0_219] : memref<48x1280xf32, #tpu.memory_space<vmem>>, vector<48x1280xf32>
    tpu.vector_store %arg9[%c0_218, %c0_219], %174 {strides = array<i32>} : memref<48x1280xf32, #tpu.memory_space<vmem>>, vector<48x1280xf32>,
    %c0_220 = arith.constant 0 : index
    %c0_221 = arith.constant 0 : index
    %176 = vector.load %arg9[%c0_220, %c0_221] : memref<48x1280xf32, #tpu.memory_space<vmem>>, vector<48x1280xf32>
    %177 = vector.broadcast %1 : vector<48x1xf32> to vector<48x1280xf32>
    %178 = arith.addf %176, %177 : vector<48x1280xf32>
    %cst_222 = arith.constant 0.000000e+00 : f32
    %179 = vector.broadcast %cst_222 : f32 to vector<48x1280xf32>
    %180 = arith.cmpf oge, %178, %179 : vector<48x1280xf32>
    %181 = vector.broadcast %4 : vector<48x1xf32> to vector<48x1280xf32>
    %182 = arith.mulf %181, %178 : vector<48x1280xf32>
    %183 = arith.select %180, %178, %182 : vector<48x1280xi1>, vector<48x1280xf32>
    %184 = arith.truncf %183 : vector<48x1280xf32> to vector<48x1280xbf16>
    %c0_223 = arith.constant 0 : index
    %c0_224 = arith.constant 0 : index
    %185 = vector.load %arg10[%c0_223, %c0_224] : memref<48x1280xbf16, #tpu.memory_space<vmem>>, vector<48x1280xbf16>
    tpu.vector_store %arg10[%c0_223, %c0_224], %184 {strides = array<i32>} : memref<48x1280xbf16, #tpu.memory_space<vmem>>, vector<48x1280xbf16>,
    %cst_225 = arith.constant 0.000000e+00 : f32
    %186 = vector.broadcast %cst_225 : f32 to vector<48x128xf32>
    %c0_226 = arith.constant 0 : index
    %c0_227 = arith.constant 0 : index
    %c0_228 = arith.constant 0 : index
    %187 = vector.load %arg4[%c0_226, %c0_227, %c0_228] : memref<9x48x48xbf16, #tpu.memory_space<vmem>>, vector<1x48x48xbf16>
    %188 = vector.shape_cast %187 : vector<1x48x48xbf16> to vector<48x48xbf16>
    %c0_229 = arith.constant 0 : index
    %c0_230 = arith.constant 0 : index
    %189 = vector.load %arg10[%c0_229, %c0_230] : memref<48x1280xbf16, #tpu.memory_space<vmem>>, vector<48x128xbf16>
    %cst_231 = arith.constant dense<0.000000e+00> : vector<48x128xf32>
    %190 = tpu.matmul %188, %189, %cst_231 {dimension_numbers = #tpu.dot_dimension_numbers<[1], [0], [0], [1], [0, 0, 1, 1], [], []>} : vector<48x48xbf16>, vector<48x128xbf16>, vector<48x128xf32> -> vector<48x128xf32>
    %191 = arith.addf %186, %190 : vector<48x128xf32>
    %c1_232 = arith.constant 1 : index
    %c0_233 = arith.constant 0 : index
    %c0_234 = arith.constant 0 : index
    %192 = vector.load %arg4[%c1_232, %c0_233, %c0_234] : memref<9x48x48xbf16, #tpu.memory_space<vmem>>, vector<1x48x48xbf16>
    %193 = vector.shape_cast %192 : vector<1x48x48xbf16> to vector<48x48xbf16>
    %c0_235 = arith.constant 0 : index
    %c128_236 = arith.constant 128 : index
    %194 = vector.load %arg10[%c0_235, %c128_236] : memref<48x1280xbf16, #tpu.memory_space<vmem>>, vector<48x128xbf16>
    %cst_237 = arith.constant dense<0.000000e+00> : vector<48x128xf32>
    %195 = tpu.matmul %193, %194, %cst_237 {dimension_numbers = #tpu.dot_dimension_numbers<[1], [0], [0], [1], [0, 0, 1, 1], [], []>} : vector<48x48xbf16>, vector<48x128xbf16>, vector<48x128xf32> -> vector<48x128xf32>
    %196 = arith.addf %191, %195 : vector<48x128xf32>
    %c2_238 = arith.constant 2 : index
    %c0_239 = arith.constant 0 : index
    %c0_240 = arith.constant 0 : index
    %197 = vector.load %arg4[%c2_238, %c0_239, %c0_240] : memref<9x48x48xbf16, #tpu.memory_space<vmem>>, vector<1x48x48xbf16>
    %198 = vector.shape_cast %197 : vector<1x48x48xbf16> to vector<48x48xbf16>
    %c0_241 = arith.constant 0 : index
    %c256_242 = arith.constant 256 : index
    %199 = vector.load %arg10[%c0_241, %c256_242] : memref<48x1280xbf16, #tpu.memory_space<vmem>>, vector<48x128xbf16>
    %cst_243 = arith.constant dense<0.000000e+00> : vector<48x128xf32>
    %200 = tpu.matmul %198, %199, %cst_243 {dimension_numbers = #tpu.dot_dimension_numbers<[1], [0], [0], [1], [0, 0, 1, 1], [], []>} : vector<48x48xbf16>, vector<48x128xbf16>, vector<48x128xf32> -> vector<48x128xf32>
    %201 = arith.addf %196, %200 : vector<48x128xf32>
    %c3_244 = arith.constant 3 : index
    %c0_245 = arith.constant 0 : index
    %c0_246 = arith.constant 0 : index
    %202 = vector.load %arg4[%c3_244, %c0_245, %c0_246] : memref<9x48x48xbf16, #tpu.memory_space<vmem>>, vector<1x48x48xbf16>
    %203 = vector.shape_cast %202 : vector<1x48x48xbf16> to vector<48x48xbf16>
    %c0_247 = arith.constant 0 : index
    %c384_248 = arith.constant 384 : index
    %204 = vector.load %arg10[%c0_247, %c384_248] : memref<48x1280xbf16, #tpu.memory_space<vmem>>, vector<48x128xbf16>
    %cst_249 = arith.constant dense<0.000000e+00> : vector<48x128xf32>
    %205 = tpu.matmul %203, %204, %cst_249 {dimension_numbers = #tpu.dot_dimension_numbers<[1], [0], [0], [1], [0, 0, 1, 1], [], []>} : vector<48x48xbf16>, vector<48x128xbf16>, vector<48x128xf32> -> vector<48x128xf32>
    %206 = arith.addf %201, %205 : vector<48x128xf32>
    %c4_250 = arith.constant 4 : index
    %c0_251 = arith.constant 0 : index
    %c0_252 = arith.constant 0 : index
    %207 = vector.load %arg4[%c4_250, %c0_251, %c0_252] : memref<9x48x48xbf16, #tpu.memory_space<vmem>>, vector<1x48x48xbf16>
    %208 = vector.shape_cast %207 : vector<1x48x48xbf16> to vector<48x48xbf16>
    %c0_253 = arith.constant 0 : index
    %c512_254 = arith.constant 512 : index
    %209 = vector.load %arg10[%c0_253, %c512_254] : memref<48x1280xbf16, #tpu.memory_space<vmem>>, vector<48x128xbf16>
    %cst_255 = arith.constant dense<0.000000e+00> : vector<48x128xf32>
    %210 = tpu.matmul %208, %209, %cst_255 {dimension_numbers = #tpu.dot_dimension_numbers<[1], [0], [0], [1], [0, 0, 1, 1], [], []>} : vector<48x48xbf16>, vector<48x128xbf16>, vector<48x128xf32> -> vector<48x128xf32>
    %211 = arith.addf %206, %210 : vector<48x128xf32>
    %c5_256 = arith.constant 5 : index
    %c0_257 = arith.constant 0 : index
    %c0_258 = arith.constant 0 : index
    %212 = vector.load %arg4[%c5_256, %c0_257, %c0_258] : memref<9x48x48xbf16, #tpu.memory_space<vmem>>, vector<1x48x48xbf16>
    %213 = vector.shape_cast %212 : vector<1x48x48xbf16> to vector<48x48xbf16>
    %c0_259 = arith.constant 0 : index
    %c640_260 = arith.constant 640 : index
    %214 = vector.load %arg10[%c0_259, %c640_260] : memref<48x1280xbf16, #tpu.memory_space<vmem>>, vector<48x128xbf16>
    %cst_261 = arith.constant dense<0.000000e+00> : vector<48x128xf32>
    %215 = tpu.matmul %213, %214, %cst_261 {dimension_numbers = #tpu.dot_dimension_numbers<[1], [0], [0], [1], [0, 0, 1, 1], [], []>} : vector<48x48xbf16>, vector<48x128xbf16>, vector<48x128xf32> -> vector<48x128xf32>
    %216 = arith.addf %211, %215 : vector<48x128xf32>
    %c6_262 = arith.constant 6 : index
    %c0_263 = arith.constant 0 : index
    %c0_264 = arith.constant 0 : index
    %217 = vector.load %arg4[%c6_262, %c0_263, %c0_264] : memref<9x48x48xbf16, #tpu.memory_space<vmem>>, vector<1x48x48xbf16>
    %218 = vector.shape_cast %217 : vector<1x48x48xbf16> to vector<48x48xbf16>
    %c0_265 = arith.constant 0 : index
    %c768_266 = arith.constant 768 : index
    %219 = vector.load %arg10[%c0_265, %c768_266] : memref<48x1280xbf16, #tpu.memory_space<vmem>>, vector<48x128xbf16>
    %cst_267 = arith.constant dense<0.000000e+00> : vector<48x128xf32>
    %220 = tpu.matmul %218, %219, %cst_267 {dimension_numbers = #tpu.dot_dimension_numbers<[1], [0], [0], [1], [0, 0, 1, 1], [], []>} : vector<48x48xbf16>, vector<48x128xbf16>, vector<48x128xf32> -> vector<48x128xf32>
    %221 = arith.addf %216, %220 : vector<48x128xf32>
    %c7_268 = arith.constant 7 : index
    %c0_269 = arith.constant 0 : index
    %c0_270 = arith.constant 0 : index
    %222 = vector.load %arg4[%c7_268, %c0_269, %c0_270] : memref<9x48x48xbf16, #tpu.memory_space<vmem>>, vector<1x48x48xbf16>
    %223 = vector.shape_cast %222 : vector<1x48x48xbf16> to vector<48x48xbf16>
    %c0_271 = arith.constant 0 : index
    %c896_272 = arith.constant 896 : index
    %224 = vector.load %arg10[%c0_271, %c896_272] : memref<48x1280xbf16, #tpu.memory_space<vmem>>, vector<48x128xbf16>
    %cst_273 = arith.constant dense<0.000000e+00> : vector<48x128xf32>
    %225 = tpu.matmul %223, %224, %cst_273 {dimension_numbers = #tpu.dot_dimension_numbers<[1], [0], [0], [1], [0, 0, 1, 1], [], []>} : vector<48x48xbf16>, vector<48x128xbf16>, vector<48x128xf32> -> vector<48x128xf32>
    %226 = arith.addf %221, %225 : vector<48x128xf32>
    %c8_274 = arith.constant 8 : index
    %c0_275 = arith.constant 0 : index
    %c0_276 = arith.constant 0 : index
    %227 = vector.load %arg4[%c8_274, %c0_275, %c0_276] : memref<9x48x48xbf16, #tpu.memory_space<vmem>>, vector<1x48x48xbf16>
    %228 = vector.shape_cast %227 : vector<1x48x48xbf16> to vector<48x48xbf16>
    %c0_277 = arith.constant 0 : index
    %c1024_278 = arith.constant 1024 : index
    %229 = vector.load %arg10[%c0_277, %c1024_278] : memref<48x1280xbf16, #tpu.memory_space<vmem>>, vector<48x128xbf16>
    %cst_279 = arith.constant dense<0.000000e+00> : vector<48x128xf32>
    %230 = tpu.matmul %228, %229, %cst_279 {dimension_numbers = #tpu.dot_dimension_numbers<[1], [0], [0], [1], [0, 0, 1, 1], [], []>} : vector<48x48xbf16>, vector<48x128xbf16>, vector<48x128xf32> -> vector<48x128xf32>
    %231 = arith.addf %226, %230 : vector<48x128xf32>
    %232 = vector.broadcast %2 : vector<48x1xf32> to vector<48x128xf32>
    %233 = arith.addf %231, %232 : vector<48x128xf32>
    %c0_280 = arith.constant 0 : index
    %c0_281 = arith.constant 0 : index
    %c0_282 = arith.constant 0 : index
    %234 = vector.load %arg6[%c0_280, %c0_281, %c0_282] : memref<2x48x128xf32, #tpu.memory_space<vmem>>, vector<1x48x128xf32>
    %235 = vector.shape_cast %234 : vector<1x48x128xf32> to vector<48x128xf32>
    %236 = vector.shape_cast %233 : vector<48x128xf32> to vector<1x48x128xf32>
    tpu.vector_store %arg6[%c0_280, %c0_281, %c0_282], %236 {strides = array<i32>} : memref<2x48x128xf32, #tpu.memory_space<vmem>>, vector<1x48x128xf32>,
    %c0_283 = arith.constant 0 : index
    %c0_284 = arith.constant 0 : index
    %c0_285 = arith.constant 0 : index
    %237 = vector.load %arg2[%c0_283, %c0_284, %c0_285] : memref<11x32x16xbf16, #tpu.memory_space<vmem>>, vector<1x32x16xbf16>
    %238 = vector.shape_cast %237 : vector<1x32x16xbf16> to vector<32x16xbf16>
    %c1_286 = arith.constant 1 : index
    %c0_287 = arith.constant 0 : index
    %c0_288 = arith.constant 0 : index
    %239 = vector.load %arg1[%c1_286, %c0_287, %c0_288] : memref<2x16x3840xbf16, #tpu.memory_space<vmem>>, vector<1x16x2560xbf16>
    %240 = vector.shape_cast %239 : vector<1x16x2560xbf16> to vector<16x2560xbf16>
    %cst_289 = arith.constant dense<0.000000e+00> : vector<32x2560xf32>
    %241 = tpu.matmul %238, %240, %cst_289 {dimension_numbers = #tpu.dot_dimension_numbers<[1], [0], [0], [1], [0, 0, 1, 1], [], []>} : vector<32x16xbf16>, vector<16x2560xbf16>, vector<32x2560xf32> -> vector<32x2560xf32>
    %c0_290 = arith.constant 0 : index
    %c0_291 = arith.constant 0 : index
    %242 = vector.load %arg7[%c0_290, %c0_291] : memref<32x2560xf32, #tpu.memory_space<vmem>>, vector<32x2560xf32>
    tpu.vector_store %arg7[%c0_290, %c0_291], %241 {strides = array<i32>} : memref<32x2560xf32, #tpu.memory_space<vmem>>, vector<32x2560xf32>,
    %c1_292 = arith.constant 1 : index
    %c0_293 = arith.constant 0 : index
    %c0_294 = arith.constant 0 : index
    %243 = vector.load %arg2[%c1_292, %c0_293, %c0_294] : memref<11x32x16xbf16, #tpu.memory_space<vmem>>, vector<1x32x16xbf16>
    %244 = vector.shape_cast %243 : vector<1x32x16xbf16> to vector<32x16xbf16>
    %c1_295 = arith.constant 1 : index
    %c0_296 = arith.constant 0 : index
    %c128_297 = arith.constant 128 : index
    %245 = vector.load %arg1[%c1_295, %c0_296, %c128_297] : memref<2x16x3840xbf16, #tpu.memory_space<vmem>>, vector<1x16x2560xbf16>
    %246 = vector.shape_cast %245 : vector<1x16x2560xbf16> to vector<16x2560xbf16>
    %cst_298 = arith.constant dense<0.000000e+00> : vector<32x2560xf32>
    %247 = tpu.matmul %244, %246, %cst_298 {dimension_numbers = #tpu.dot_dimension_numbers<[1], [0], [0], [1], [0, 0, 1, 1], [], []>} : vector<32x16xbf16>, vector<16x2560xbf16>, vector<32x2560xf32> -> vector<32x2560xf32>
    %c0_299 = arith.constant 0 : index
    %c0_300 = arith.constant 0 : index
    %248 = vector.load %arg7[%c0_299, %c0_300] : memref<32x2560xf32, #tpu.memory_space<vmem>>, vector<32x2560xf32>
    %249 = arith.addf %248, %247 : vector<32x2560xf32>
    %c0_301 = arith.constant 0 : index
    %c0_302 = arith.constant 0 : index
    %250 = vector.load %arg7[%c0_301, %c0_302] : memref<32x2560xf32, #tpu.memory_space<vmem>>, vector<32x2560xf32>
    tpu.vector_store %arg7[%c0_301, %c0_302], %249 {strides = array<i32>} : memref<32x2560xf32, #tpu.memory_space<vmem>>, vector<32x2560xf32>,
    %c2_303 = arith.constant 2 : index
    %c0_304 = arith.constant 0 : index
    %c0_305 = arith.constant 0 : index
    %251 = vector.load %arg2[%c2_303, %c0_304, %c0_305] : memref<11x32x16xbf16, #tpu.memory_space<vmem>>, vector<1x32x16xbf16>
    %252 = vector.shape_cast %251 : vector<1x32x16xbf16> to vector<32x16xbf16>
    %c1_306 = arith.constant 1 : index
    %c0_307 = arith.constant 0 : index
    %c256_308 = arith.constant 256 : index
    %253 = vector.load %arg1[%c1_306, %c0_307, %c256_308] : memref<2x16x3840xbf16, #tpu.memory_space<vmem>>, vector<1x16x2560xbf16>
    %254 = vector.shape_cast %253 : vector<1x16x2560xbf16> to vector<16x2560xbf16>
    %cst_309 = arith.constant dense<0.000000e+00> : vector<32x2560xf32>
    %255 = tpu.matmul %252, %254, %cst_309 {dimension_numbers = #tpu.dot_dimension_numbers<[1], [0], [0], [1], [0, 0, 1, 1], [], []>} : vector<32x16xbf16>, vector<16x2560xbf16>, vector<32x2560xf32> -> vector<32x2560xf32>
    %c0_310 = arith.constant 0 : index
    %c0_311 = arith.constant 0 : index
    %256 = vector.load %arg7[%c0_310, %c0_311] : memref<32x2560xf32, #tpu.memory_space<vmem>>, vector<32x2560xf32>
    %257 = arith.addf %256, %255 : vector<32x2560xf32>
    %c0_312 = arith.constant 0 : index
    %c0_313 = arith.constant 0 : index
    %258 = vector.load %arg7[%c0_312, %c0_313] : memref<32x2560xf32, #tpu.memory_space<vmem>>, vector<32x2560xf32>
    tpu.vector_store %arg7[%c0_312, %c0_313], %257 {strides = array<i32>} : memref<32x2560xf32, #tpu.memory_space<vmem>>, vector<32x2560xf32>,
    %c3_314 = arith.constant 3 : index
    %c0_315 = arith.constant 0 : index
    %c0_316 = arith.constant 0 : index
    %259 = vector.load %arg2[%c3_314, %c0_315, %c0_316] : memref<11x32x16xbf16, #tpu.memory_space<vmem>>, vector<1x32x16xbf16>
    %260 = vector.shape_cast %259 : vector<1x32x16xbf16> to vector<32x16xbf16>
    %c1_317 = arith.constant 1 : index
    %c0_318 = arith.constant 0 : index
    %c384_319 = arith.constant 384 : index
    %261 = vector.load %arg1[%c1_317, %c0_318, %c384_319] : memref<2x16x3840xbf16, #tpu.memory_space<vmem>>, vector<1x16x2560xbf16>
    %262 = vector.shape_cast %261 : vector<1x16x2560xbf16> to vector<16x2560xbf16>
    %cst_320 = arith.constant dense<0.000000e+00> : vector<32x2560xf32>
    %263 = tpu.matmul %260, %262, %cst_320 {dimension_numbers = #tpu.dot_dimension_numbers<[1], [0], [0], [1], [0, 0, 1, 1], [], []>} : vector<32x16xbf16>, vector<16x2560xbf16>, vector<32x2560xf32> -> vector<32x2560xf32>
    %c0_321 = arith.constant 0 : index
    %c0_322 = arith.constant 0 : index
    %264 = vector.load %arg7[%c0_321, %c0_322] : memref<32x2560xf32, #tpu.memory_space<vmem>>, vector<32x2560xf32>
    %265 = arith.addf %264, %263 : vector<32x2560xf32>
    %c0_323 = arith.constant 0 : index
    %c0_324 = arith.constant 0 : index
    %266 = vector.load %arg7[%c0_323, %c0_324] : memref<32x2560xf32, #tpu.memory_space<vmem>>, vector<32x2560xf32>
    tpu.vector_store %arg7[%c0_323, %c0_324], %265 {strides = array<i32>} : memref<32x2560xf32, #tpu.memory_space<vmem>>, vector<32x2560xf32>,
    %c4_325 = arith.constant 4 : index
    %c0_326 = arith.constant 0 : index
    %c0_327 = arith.constant 0 : index
    %267 = vector.load %arg2[%c4_325, %c0_326, %c0_327] : memref<11x32x16xbf16, #tpu.memory_space<vmem>>, vector<1x32x16xbf16>
    %268 = vector.shape_cast %267 : vector<1x32x16xbf16> to vector<32x16xbf16>
    %c1_328 = arith.constant 1 : index
    %c0_329 = arith.constant 0 : index
    %c512_330 = arith.constant 512 : index
    %269 = vector.load %arg1[%c1_328, %c0_329, %c512_330] : memref<2x16x3840xbf16, #tpu.memory_space<vmem>>, vector<1x16x2560xbf16>
    %270 = vector.shape_cast %269 : vector<1x16x2560xbf16> to vector<16x2560xbf16>
    %cst_331 = arith.constant dense<0.000000e+00> : vector<32x2560xf32>
    %271 = tpu.matmul %268, %270, %cst_331 {dimension_numbers = #tpu.dot_dimension_numbers<[1], [0], [0], [1], [0, 0, 1, 1], [], []>} : vector<32x16xbf16>, vector<16x2560xbf16>, vector<32x2560xf32> -> vector<32x2560xf32>
    %c0_332 = arith.constant 0 : index
    %c0_333 = arith.constant 0 : index
    %272 = vector.load %arg7[%c0_332, %c0_333] : memref<32x2560xf32, #tpu.memory_space<vmem>>, vector<32x2560xf32>
    %273 = arith.addf %272, %271 : vector<32x2560xf32>
    %c0_334 = arith.constant 0 : index
    %c0_335 = arith.constant 0 : index
    %274 = vector.load %arg7[%c0_334, %c0_335] : memref<32x2560xf32, #tpu.memory_space<vmem>>, vector<32x2560xf32>
    tpu.vector_store %arg7[%c0_334, %c0_335], %273 {strides = array<i32>} : memref<32x2560xf32, #tpu.memory_space<vmem>>, vector<32x2560xf32>,
    %c5_336 = arith.constant 5 : index
    %c0_337 = arith.constant 0 : index
    %c0_338 = arith.constant 0 : index
    %275 = vector.load %arg2[%c5_336, %c0_337, %c0_338] : memref<11x32x16xbf16, #tpu.memory_space<vmem>>, vector<1x32x16xbf16>
    %276 = vector.shape_cast %275 : vector<1x32x16xbf16> to vector<32x16xbf16>
    %c1_339 = arith.constant 1 : index
    %c0_340 = arith.constant 0 : index
    %c640_341 = arith.constant 640 : index
    %277 = vector.load %arg1[%c1_339, %c0_340, %c640_341] : memref<2x16x3840xbf16, #tpu.memory_space<vmem>>, vector<1x16x2560xbf16>
    %278 = vector.shape_cast %277 : vector<1x16x2560xbf16> to vector<16x2560xbf16>
    %cst_342 = arith.constant dense<0.000000e+00> : vector<32x2560xf32>
    %279 = tpu.matmul %276, %278, %cst_342 {dimension_numbers = #tpu.dot_dimension_numbers<[1], [0], [0], [1], [0, 0, 1, 1], [], []>} : vector<32x16xbf16>, vector<16x2560xbf16>, vector<32x2560xf32> -> vector<32x2560xf32>
    %c0_343 = arith.constant 0 : index
    %c0_344 = arith.constant 0 : index
    %280 = vector.load %arg7[%c0_343, %c0_344] : memref<32x2560xf32, #tpu.memory_space<vmem>>, vector<32x2560xf32>
    %281 = arith.addf %280, %279 : vector<32x2560xf32>
    %c0_345 = arith.constant 0 : index
    %c0_346 = arith.constant 0 : index
    %282 = vector.load %arg7[%c0_345, %c0_346] : memref<32x2560xf32, #tpu.memory_space<vmem>>, vector<32x2560xf32>
    tpu.vector_store %arg7[%c0_345, %c0_346], %281 {strides = array<i32>} : memref<32x2560xf32, #tpu.memory_space<vmem>>, vector<32x2560xf32>,
    %c6_347 = arith.constant 6 : index
    %c0_348 = arith.constant 0 : index
    %c0_349 = arith.constant 0 : index
    %283 = vector.load %arg2[%c6_347, %c0_348, %c0_349] : memref<11x32x16xbf16, #tpu.memory_space<vmem>>, vector<1x32x16xbf16>
    %284 = vector.shape_cast %283 : vector<1x32x16xbf16> to vector<32x16xbf16>
    %c1_350 = arith.constant 1 : index
    %c0_351 = arith.constant 0 : index
    %c768_352 = arith.constant 768 : index
    %285 = vector.load %arg1[%c1_350, %c0_351, %c768_352] : memref<2x16x3840xbf16, #tpu.memory_space<vmem>>, vector<1x16x2560xbf16>
    %286 = vector.shape_cast %285 : vector<1x16x2560xbf16> to vector<16x2560xbf16>
    %cst_353 = arith.constant dense<0.000000e+00> : vector<32x2560xf32>
    %287 = tpu.matmul %284, %286, %cst_353 {dimension_numbers = #tpu.dot_dimension_numbers<[1], [0], [0], [1], [0, 0, 1, 1], [], []>} : vector<32x16xbf16>, vector<16x2560xbf16>, vector<32x2560xf32> -> vector<32x2560xf32>
    %c0_354 = arith.constant 0 : index
    %c0_355 = arith.constant 0 : index
    %288 = vector.load %arg7[%c0_354, %c0_355] : memref<32x2560xf32, #tpu.memory_space<vmem>>, vector<32x2560xf32>
    %289 = arith.addf %288, %287 : vector<32x2560xf32>
    %c0_356 = arith.constant 0 : index
    %c0_357 = arith.constant 0 : index
    %290 = vector.load %arg7[%c0_356, %c0_357] : memref<32x2560xf32, #tpu.memory_space<vmem>>, vector<32x2560xf32>
    tpu.vector_store %arg7[%c0_356, %c0_357], %289 {strides = array<i32>} : memref<32x2560xf32, #tpu.memory_space<vmem>>, vector<32x2560xf32>,
    %c7_358 = arith.constant 7 : index
    %c0_359 = arith.constant 0 : index
    %c0_360 = arith.constant 0 : index
    %291 = vector.load %arg2[%c7_358, %c0_359, %c0_360] : memref<11x32x16xbf16, #tpu.memory_space<vmem>>, vector<1x32x16xbf16>
    %292 = vector.shape_cast %291 : vector<1x32x16xbf16> to vector<32x16xbf16>
    %c1_361 = arith.constant 1 : index
    %c0_362 = arith.constant 0 : index
    %c896_363 = arith.constant 896 : index
    %293 = vector.load %arg1[%c1_361, %c0_362, %c896_363] : memref<2x16x3840xbf16, #tpu.memory_space<vmem>>, vector<1x16x2560xbf16>
    %294 = vector.shape_cast %293 : vector<1x16x2560xbf16> to vector<16x2560xbf16>
    %cst_364 = arith.constant dense<0.000000e+00> : vector<32x2560xf32>
    %295 = tpu.matmul %292, %294, %cst_364 {dimension_numbers = #tpu.dot_dimension_numbers<[1], [0], [0], [1], [0, 0, 1, 1], [], []>} : vector<32x16xbf16>, vector<16x2560xbf16>, vector<32x2560xf32> -> vector<32x2560xf32>
    %c0_365 = arith.constant 0 : index
    %c0_366 = arith.constant 0 : index
    %296 = vector.load %arg7[%c0_365, %c0_366] : memref<32x2560xf32, #tpu.memory_space<vmem>>, vector<32x2560xf32>
    %297 = arith.addf %296, %295 : vector<32x2560xf32>
    %c0_367 = arith.constant 0 : index
    %c0_368 = arith.constant 0 : index
    %298 = vector.load %arg7[%c0_367, %c0_368] : memref<32x2560xf32, #tpu.memory_space<vmem>>, vector<32x2560xf32>
    tpu.vector_store %arg7[%c0_367, %c0_368], %297 {strides = array<i32>} : memref<32x2560xf32, #tpu.memory_space<vmem>>, vector<32x2560xf32>,
    %c8_369 = arith.constant 8 : index
    %c0_370 = arith.constant 0 : index
    %c0_371 = arith.constant 0 : index
    %299 = vector.load %arg2[%c8_369, %c0_370, %c0_371] : memref<11x32x16xbf16, #tpu.memory_space<vmem>>, vector<1x32x16xbf16>
    %300 = vector.shape_cast %299 : vector<1x32x16xbf16> to vector<32x16xbf16>
    %c1_372 = arith.constant 1 : index
    %c0_373 = arith.constant 0 : index
    %c1024_374 = arith.constant 1024 : index
    %301 = vector.load %arg1[%c1_372, %c0_373, %c1024_374] : memref<2x16x3840xbf16, #tpu.memory_space<vmem>>, vector<1x16x2560xbf16>
    %302 = vector.shape_cast %301 : vector<1x16x2560xbf16> to vector<16x2560xbf16>
    %cst_375 = arith.constant dense<0.000000e+00> : vector<32x2560xf32>
    %303 = tpu.matmul %300, %302, %cst_375 {dimension_numbers = #tpu.dot_dimension_numbers<[1], [0], [0], [1], [0, 0, 1, 1], [], []>} : vector<32x16xbf16>, vector<16x2560xbf16>, vector<32x2560xf32> -> vector<32x2560xf32>
    %c0_376 = arith.constant 0 : index
    %c0_377 = arith.constant 0 : index
    %304 = vector.load %arg7[%c0_376, %c0_377] : memref<32x2560xf32, #tpu.memory_space<vmem>>, vector<32x2560xf32>
    %305 = arith.addf %304, %303 : vector<32x2560xf32>
    %c0_378 = arith.constant 0 : index
    %c0_379 = arith.constant 0 : index
    %306 = vector.load %arg7[%c0_378, %c0_379] : memref<32x2560xf32, #tpu.memory_space<vmem>>, vector<32x2560xf32>
    tpu.vector_store %arg7[%c0_378, %c0_379], %305 {strides = array<i32>} : memref<32x2560xf32, #tpu.memory_space<vmem>>, vector<32x2560xf32>,
    %c9_380 = arith.constant 9 : index
    %c0_381 = arith.constant 0 : index
    %c0_382 = arith.constant 0 : index
    %307 = vector.load %arg2[%c9_380, %c0_381, %c0_382] : memref<11x32x16xbf16, #tpu.memory_space<vmem>>, vector<1x32x16xbf16>
    %308 = vector.shape_cast %307 : vector<1x32x16xbf16> to vector<32x16xbf16>
    %c1_383 = arith.constant 1 : index
    %c0_384 = arith.constant 0 : index
    %c1152_385 = arith.constant 1152 : index
    %309 = vector.load %arg1[%c1_383, %c0_384, %c1152_385] : memref<2x16x3840xbf16, #tpu.memory_space<vmem>>, vector<1x16x2560xbf16>
    %310 = vector.shape_cast %309 : vector<1x16x2560xbf16> to vector<16x2560xbf16>
    %cst_386 = arith.constant dense<0.000000e+00> : vector<32x2560xf32>
    %311 = tpu.matmul %308, %310, %cst_386 {dimension_numbers = #tpu.dot_dimension_numbers<[1], [0], [0], [1], [0, 0, 1, 1], [], []>} : vector<32x16xbf16>, vector<16x2560xbf16>, vector<32x2560xf32> -> vector<32x2560xf32>
    %c0_387 = arith.constant 0 : index
    %c0_388 = arith.constant 0 : index
    %312 = vector.load %arg7[%c0_387, %c0_388] : memref<32x2560xf32, #tpu.memory_space<vmem>>, vector<32x2560xf32>
    %313 = arith.addf %312, %311 : vector<32x2560xf32>
    %c0_389 = arith.constant 0 : index
    %c0_390 = arith.constant 0 : index
    %314 = vector.load %arg7[%c0_389, %c0_390] : memref<32x2560xf32, #tpu.memory_space<vmem>>, vector<32x2560xf32>
    tpu.vector_store %arg7[%c0_389, %c0_390], %313 {strides = array<i32>} : memref<32x2560xf32, #tpu.memory_space<vmem>>, vector<32x2560xf32>,
    %c10_391 = arith.constant 10 : index
    %c0_392 = arith.constant 0 : index
    %c0_393 = arith.constant 0 : index
    %315 = vector.load %arg2[%c10_391, %c0_392, %c0_393] : memref<11x32x16xbf16, #tpu.memory_space<vmem>>, vector<1x32x16xbf16>
    %316 = vector.shape_cast %315 : vector<1x32x16xbf16> to vector<32x16xbf16>
    %c1_394 = arith.constant 1 : index
    %c0_395 = arith.constant 0 : index
    %c1280_396 = arith.constant 1280 : index
    %317 = vector.load %arg1[%c1_394, %c0_395, %c1280_396] : memref<2x16x3840xbf16, #tpu.memory_space<vmem>>, vector<1x16x2560xbf16>
    %318 = vector.shape_cast %317 : vector<1x16x2560xbf16> to vector<16x2560xbf16>
    %cst_397 = arith.constant dense<0.000000e+00> : vector<32x2560xf32>
    %319 = tpu.matmul %316, %318, %cst_397 {dimension_numbers = #tpu.dot_dimension_numbers<[1], [0], [0], [1], [0, 0, 1, 1], [], []>} : vector<32x16xbf16>, vector<16x2560xbf16>, vector<32x2560xf32> -> vector<32x2560xf32>
    %c0_398 = arith.constant 0 : index
    %c0_399 = arith.constant 0 : index
    %320 = vector.load %arg7[%c0_398, %c0_399] : memref<32x2560xf32, #tpu.memory_space<vmem>>, vector<32x2560xf32>
    %321 = arith.addf %320, %319 : vector<32x2560xf32>
    %c0_400 = arith.constant 0 : index
    %c0_401 = arith.constant 0 : index
    %322 = vector.load %arg7[%c0_400, %c0_401] : memref<32x2560xf32, #tpu.memory_space<vmem>>, vector<32x2560xf32>
    tpu.vector_store %arg7[%c0_400, %c0_401], %321 {strides = array<i32>} : memref<32x2560xf32, #tpu.memory_space<vmem>>, vector<32x2560xf32>,
    %c0_402 = arith.constant 0 : index
    %c0_403 = arith.constant 0 : index
    %323 = vector.load %arg7[%c0_402, %c0_403] : memref<32x2560xf32, #tpu.memory_space<vmem>>, vector<32x2560xf32>
    %324 = vector.broadcast %0 : vector<32x1xf32> to vector<32x2560xf32>
    %325 = arith.addf %323, %324 : vector<32x2560xf32>
    %cst_404 = arith.constant 0.000000e+00 : f32
    %326 = vector.broadcast %cst_404 : f32 to vector<32x2560xf32>
    %327 = arith.cmpf oge, %325, %326 : vector<32x2560xf32>
    %328 = vector.broadcast %3 : vector<32x1xf32> to vector<32x2560xf32>
    %329 = arith.mulf %328, %325 : vector<32x2560xf32>
    %330 = arith.select %327, %325, %329 : vector<32x2560xi1>, vector<32x2560xf32>
    %331 = arith.truncf %330 : vector<32x2560xf32> to vector<32x2560xbf16>
    %c0_405 = arith.constant 0 : index
    %c0_406 = arith.constant 0 : index
    %332 = vector.load %arg8[%c0_405, %c0_406] : memref<32x2560xbf16, #tpu.memory_space<vmem>>, vector<32x2560xbf16>
    tpu.vector_store %arg8[%c0_405, %c0_406], %331 {strides = array<i32>} : memref<32x2560xbf16, #tpu.memory_space<vmem>>, vector<32x2560xbf16>,
    %c0_407 = arith.constant 0 : index
    %c0_408 = arith.constant 0 : index
    %c0_409 = arith.constant 0 : index
    %333 = vector.load %arg3[%c0_407, %c0_408, %c0_409] : memref<11x48x32xbf16, #tpu.memory_space<vmem>>, vector<1x48x32xbf16>
    %334 = vector.shape_cast %333 : vector<1x48x32xbf16> to vector<48x32xbf16>
    %c0_410 = arith.constant 0 : index
    %c0_411 = arith.constant 0 : index
    %335 = vector.load %arg8[%c0_410, %c0_411] : memref<32x2560xbf16, #tpu.memory_space<vmem>>, vector<32x1280xbf16>
    %cst_412 = arith.constant dense<0.000000e+00> : vector<48x1280xf32>
    %336 = tpu.matmul %334, %335, %cst_412 {dimension_numbers = #tpu.dot_dimension_numbers<[1], [0], [0], [1], [0, 0, 1, 1], [], []>} : vector<48x32xbf16>, vector<32x1280xbf16>, vector<48x1280xf32> -> vector<48x1280xf32>
    %c0_413 = arith.constant 0 : index
    %c0_414 = arith.constant 0 : index
    %337 = vector.load %arg9[%c0_413, %c0_414] : memref<48x1280xf32, #tpu.memory_space<vmem>>, vector<48x1280xf32>
    tpu.vector_store %arg9[%c0_413, %c0_414], %336 {strides = array<i32>} : memref<48x1280xf32, #tpu.memory_space<vmem>>, vector<48x1280xf32>,
    %c1_415 = arith.constant 1 : index
    %c0_416 = arith.constant 0 : index
    %c0_417 = arith.constant 0 : index
    %338 = vector.load %arg3[%c1_415, %c0_416, %c0_417] : memref<11x48x32xbf16, #tpu.memory_space<vmem>>, vector<1x48x32xbf16>
    %339 = vector.shape_cast %338 : vector<1x48x32xbf16> to vector<48x32xbf16>
    %c0_418 = arith.constant 0 : index
    %c128_419 = arith.constant 128 : index
    %340 = vector.load %arg8[%c0_418, %c128_419] : memref<32x2560xbf16, #tpu.memory_space<vmem>>, vector<32x1280xbf16>
    %cst_420 = arith.constant dense<0.000000e+00> : vector<48x1280xf32>
    %341 = tpu.matmul %339, %340, %cst_420 {dimension_numbers = #tpu.dot_dimension_numbers<[1], [0], [0], [1], [0, 0, 1, 1], [], []>} : vector<48x32xbf16>, vector<32x1280xbf16>, vector<48x1280xf32> -> vector<48x1280xf32>
    %c0_421 = arith.constant 0 : index
    %c0_422 = arith.constant 0 : index
    %342 = vector.load %arg9[%c0_421, %c0_422] : memref<48x1280xf32, #tpu.memory_space<vmem>>, vector<48x1280xf32>
    %343 = arith.addf %342, %341 : vector<48x1280xf32>
    %c0_423 = arith.constant 0 : index
    %c0_424 = arith.constant 0 : index
    %344 = vector.load %arg9[%c0_423, %c0_424] : memref<48x1280xf32, #tpu.memory_space<vmem>>, vector<48x1280xf32>
    tpu.vector_store %arg9[%c0_423, %c0_424], %343 {strides = array<i32>} : memref<48x1280xf32, #tpu.memory_space<vmem>>, vector<48x1280xf32>,
    %c2_425 = arith.constant 2 : index
    %c0_426 = arith.constant 0 : index
    %c0_427 = arith.constant 0 : index
    %345 = vector.load %arg3[%c2_425, %c0_426, %c0_427] : memref<11x48x32xbf16, #tpu.memory_space<vmem>>, vector<1x48x32xbf16>
    %346 = vector.shape_cast %345 : vector<1x48x32xbf16> to vector<48x32xbf16>
    %c0_428 = arith.constant 0 : index
    %c256_429 = arith.constant 256 : index
    %347 = vector.load %arg8[%c0_428, %c256_429] : memref<32x2560xbf16, #tpu.memory_space<vmem>>, vector<32x1280xbf16>
    %cst_430 = arith.constant dense<0.000000e+00> : vector<48x1280xf32>
    %348 = tpu.matmul %346, %347, %cst_430 {dimension_numbers = #tpu.dot_dimension_numbers<[1], [0], [0], [1], [0, 0, 1, 1], [], []>} : vector<48x32xbf16>, vector<32x1280xbf16>, vector<48x1280xf32> -> vector<48x1280xf32>
    %c0_431 = arith.constant 0 : index
    %c0_432 = arith.constant 0 : index
    %349 = vector.load %arg9[%c0_431, %c0_432] : memref<48x1280xf32, #tpu.memory_space<vmem>>, vector<48x1280xf32>
    %350 = arith.addf %349, %348 : vector<48x1280xf32>
    %c0_433 = arith.constant 0 : index
    %c0_434 = arith.constant 0 : index
    %351 = vector.load %arg9[%c0_433, %c0_434] : memref<48x1280xf32, #tpu.memory_space<vmem>>, vector<48x1280xf32>
    tpu.vector_store %arg9[%c0_433, %c0_434], %350 {strides = array<i32>} : memref<48x1280xf32, #tpu.memory_space<vmem>>, vector<48x1280xf32>,
    %c3_435 = arith.constant 3 : index
    %c0_436 = arith.constant 0 : index
    %c0_437 = arith.constant 0 : index
    %352 = vector.load %arg3[%c3_435, %c0_436, %c0_437] : memref<11x48x32xbf16, #tpu.memory_space<vmem>>, vector<1x48x32xbf16>
    %353 = vector.shape_cast %352 : vector<1x48x32xbf16> to vector<48x32xbf16>
    %c0_438 = arith.constant 0 : index
    %c384_439 = arith.constant 384 : index
    %354 = vector.load %arg8[%c0_438, %c384_439] : memref<32x2560xbf16, #tpu.memory_space<vmem>>, vector<32x1280xbf16>
    %cst_440 = arith.constant dense<0.000000e+00> : vector<48x1280xf32>
    %355 = tpu.matmul %353, %354, %cst_440 {dimension_numbers = #tpu.dot_dimension_numbers<[1], [0], [0], [1], [0, 0, 1, 1], [], []>} : vector<48x32xbf16>, vector<32x1280xbf16>, vector<48x1280xf32> -> vector<48x1280xf32>
    %c0_441 = arith.constant 0 : index
    %c0_442 = arith.constant 0 : index
    %356 = vector.load %arg9[%c0_441, %c0_442] : memref<48x1280xf32, #tpu.memory_space<vmem>>, vector<48x1280xf32>
    %357 = arith.addf %356, %355 : vector<48x1280xf32>
    %c0_443 = arith.constant 0 : index
    %c0_444 = arith.constant 0 : index
    %358 = vector.load %arg9[%c0_443, %c0_444] : memref<48x1280xf32, #tpu.memory_space<vmem>>, vector<48x1280xf32>
    tpu.vector_store %arg9[%c0_443, %c0_444], %357 {strides = array<i32>} : memref<48x1280xf32, #tpu.memory_space<vmem>>, vector<48x1280xf32>,
    %c4_445 = arith.constant 4 : index
    %c0_446 = arith.constant 0 : index
    %c0_447 = arith.constant 0 : index
    %359 = vector.load %arg3[%c4_445, %c0_446, %c0_447] : memref<11x48x32xbf16, #tpu.memory_space<vmem>>, vector<1x48x32xbf16>
    %360 = vector.shape_cast %359 : vector<1x48x32xbf16> to vector<48x32xbf16>
    %c0_448 = arith.constant 0 : index
    %c512_449 = arith.constant 512 : index
    %361 = vector.load %arg8[%c0_448, %c512_449] : memref<32x2560xbf16, #tpu.memory_space<vmem>>, vector<32x1280xbf16>
    %cst_450 = arith.constant dense<0.000000e+00> : vector<48x1280xf32>
    %362 = tpu.matmul %360, %361, %cst_450 {dimension_numbers = #tpu.dot_dimension_numbers<[1], [0], [0], [1], [0, 0, 1, 1], [], []>} : vector<48x32xbf16>, vector<32x1280xbf16>, vector<48x1280xf32> -> vector<48x1280xf32>
    %c0_451 = arith.constant 0 : index
    %c0_452 = arith.constant 0 : index
    %363 = vector.load %arg9[%c0_451, %c0_452] : memref<48x1280xf32, #tpu.memory_space<vmem>>, vector<48x1280xf32>
    %364 = arith.addf %363, %362 : vector<48x1280xf32>
    %c0_453 = arith.constant 0 : index
    %c0_454 = arith.constant 0 : index
    %365 = vector.load %arg9[%c0_453, %c0_454] : memref<48x1280xf32, #tpu.memory_space<vmem>>, vector<48x1280xf32>
    tpu.vector_store %arg9[%c0_453, %c0_454], %364 {strides = array<i32>} : memref<48x1280xf32, #tpu.memory_space<vmem>>, vector<48x1280xf32>,
    %c5_455 = arith.constant 5 : index
    %c0_456 = arith.constant 0 : index
    %c0_457 = arith.constant 0 : index
    %366 = vector.load %arg3[%c5_455, %c0_456, %c0_457] : memref<11x48x32xbf16, #tpu.memory_space<vmem>>, vector<1x48x32xbf16>
    %367 = vector.shape_cast %366 : vector<1x48x32xbf16> to vector<48x32xbf16>
    %c0_458 = arith.constant 0 : index
    %c640_459 = arith.constant 640 : index
    %368 = vector.load %arg8[%c0_458, %c640_459] : memref<32x2560xbf16, #tpu.memory_space<vmem>>, vector<32x1280xbf16>
    %cst_460 = arith.constant dense<0.000000e+00> : vector<48x1280xf32>
    %369 = tpu.matmul %367, %368, %cst_460 {dimension_numbers = #tpu.dot_dimension_numbers<[1], [0], [0], [1], [0, 0, 1, 1], [], []>} : vector<48x32xbf16>, vector<32x1280xbf16>, vector<48x1280xf32> -> vector<48x1280xf32>
    %c0_461 = arith.constant 0 : index
    %c0_462 = arith.constant 0 : index
    %370 = vector.load %arg9[%c0_461, %c0_462] : memref<48x1280xf32, #tpu.memory_space<vmem>>, vector<48x1280xf32>
    %371 = arith.addf %370, %369 : vector<48x1280xf32>
    %c0_463 = arith.constant 0 : index
    %c0_464 = arith.constant 0 : index
    %372 = vector.load %arg9[%c0_463, %c0_464] : memref<48x1280xf32, #tpu.memory_space<vmem>>, vector<48x1280xf32>
    tpu.vector_store %arg9[%c0_463, %c0_464], %371 {strides = array<i32>} : memref<48x1280xf32, #tpu.memory_space<vmem>>, vector<48x1280xf32>,
    %c6_465 = arith.constant 6 : index
    %c0_466 = arith.constant 0 : index
    %c0_467 = arith.constant 0 : index
    %373 = vector.load %arg3[%c6_465, %c0_466, %c0_467] : memref<11x48x32xbf16, #tpu.memory_space<vmem>>, vector<1x48x32xbf16>
    %374 = vector.shape_cast %373 : vector<1x48x32xbf16> to vector<48x32xbf16>
    %c0_468 = arith.constant 0 : index
    %c768_469 = arith.constant 768 : index
    %375 = vector.load %arg8[%c0_468, %c768_469] : memref<32x2560xbf16, #tpu.memory_space<vmem>>, vector<32x1280xbf16>
    %cst_470 = arith.constant dense<0.000000e+00> : vector<48x1280xf32>
    %376 = tpu.matmul %374, %375, %cst_470 {dimension_numbers = #tpu.dot_dimension_numbers<[1], [0], [0], [1], [0, 0, 1, 1], [], []>} : vector<48x32xbf16>, vector<32x1280xbf16>, vector<48x1280xf32> -> vector<48x1280xf32>
    %c0_471 = arith.constant 0 : index
    %c0_472 = arith.constant 0 : index
    %377 = vector.load %arg9[%c0_471, %c0_472] : memref<48x1280xf32, #tpu.memory_space<vmem>>, vector<48x1280xf32>
    %378 = arith.addf %377, %376 : vector<48x1280xf32>
    %c0_473 = arith.constant 0 : index
    %c0_474 = arith.constant 0 : index
    %379 = vector.load %arg9[%c0_473, %c0_474] : memref<48x1280xf32, #tpu.memory_space<vmem>>, vector<48x1280xf32>
    tpu.vector_store %arg9[%c0_473, %c0_474], %378 {strides = array<i32>} : memref<48x1280xf32, #tpu.memory_space<vmem>>, vector<48x1280xf32>,
    %c7_475 = arith.constant 7 : index
    %c0_476 = arith.constant 0 : index
    %c0_477 = arith.constant 0 : index
    %380 = vector.load %arg3[%c7_475, %c0_476, %c0_477] : memref<11x48x32xbf16, #tpu.memory_space<vmem>>, vector<1x48x32xbf16>
    %381 = vector.shape_cast %380 : vector<1x48x32xbf16> to vector<48x32xbf16>
    %c0_478 = arith.constant 0 : index
    %c896_479 = arith.constant 896 : index
    %382 = vector.load %arg8[%c0_478, %c896_479] : memref<32x2560xbf16, #tpu.memory_space<vmem>>, vector<32x1280xbf16>
    %cst_480 = arith.constant dense<0.000000e+00> : vector<48x1280xf32>
    %383 = tpu.matmul %381, %382, %cst_480 {dimension_numbers = #tpu.dot_dimension_numbers<[1], [0], [0], [1], [0, 0, 1, 1], [], []>} : vector<48x32xbf16>, vector<32x1280xbf16>, vector<48x1280xf32> -> vector<48x1280xf32>
    %c0_481 = arith.constant 0 : index
    %c0_482 = arith.constant 0 : index
    %384 = vector.load %arg9[%c0_481, %c0_482] : memref<48x1280xf32, #tpu.memory_space<vmem>>, vector<48x1280xf32>
    %385 = arith.addf %384, %383 : vector<48x1280xf32>
    %c0_483 = arith.constant 0 : index
    %c0_484 = arith.constant 0 : index
    %386 = vector.load %arg9[%c0_483, %c0_484] : memref<48x1280xf32, #tpu.memory_space<vmem>>, vector<48x1280xf32>
    tpu.vector_store %arg9[%c0_483, %c0_484], %385 {strides = array<i32>} : memref<48x1280xf32, #tpu.memory_space<vmem>>, vector<48x1280xf32>,
    %c8_485 = arith.constant 8 : index
    %c0_486 = arith.constant 0 : index
    %c0_487 = arith.constant 0 : index
    %387 = vector.load %arg3[%c8_485, %c0_486, %c0_487] : memref<11x48x32xbf16, #tpu.memory_space<vmem>>, vector<1x48x32xbf16>
    %388 = vector.shape_cast %387 : vector<1x48x32xbf16> to vector<48x32xbf16>
    %c0_488 = arith.constant 0 : index
    %c1024_489 = arith.constant 1024 : index
    %389 = vector.load %arg8[%c0_488, %c1024_489] : memref<32x2560xbf16, #tpu.memory_space<vmem>>, vector<32x1280xbf16>
    %cst_490 = arith.constant dense<0.000000e+00> : vector<48x1280xf32>
    %390 = tpu.matmul %388, %389, %cst_490 {dimension_numbers = #tpu.dot_dimension_numbers<[1], [0], [0], [1], [0, 0, 1, 1], [], []>} : vector<48x32xbf16>, vector<32x1280xbf16>, vector<48x1280xf32> -> vector<48x1280xf32>
    %c0_491 = arith.constant 0 : index
    %c0_492 = arith.constant 0 : index
    %391 = vector.load %arg9[%c0_491, %c0_492] : memref<48x1280xf32, #tpu.memory_space<vmem>>, vector<48x1280xf32>
    %392 = arith.addf %391, %390 : vector<48x1280xf32>
    %c0_493 = arith.constant 0 : index
    %c0_494 = arith.constant 0 : index
    %393 = vector.load %arg9[%c0_493, %c0_494] : memref<48x1280xf32, #tpu.memory_space<vmem>>, vector<48x1280xf32>
    tpu.vector_store %arg9[%c0_493, %c0_494], %392 {strides = array<i32>} : memref<48x1280xf32, #tpu.memory_space<vmem>>, vector<48x1280xf32>,
    %c9_495 = arith.constant 9 : index
    %c0_496 = arith.constant 0 : index
    %c0_497 = arith.constant 0 : index
    %394 = vector.load %arg3[%c9_495, %c0_496, %c0_497] : memref<11x48x32xbf16, #tpu.memory_space<vmem>>, vector<1x48x32xbf16>
    %395 = vector.shape_cast %394 : vector<1x48x32xbf16> to vector<48x32xbf16>
    %c0_498 = arith.constant 0 : index
    %c1152_499 = arith.constant 1152 : index
    %396 = vector.load %arg8[%c0_498, %c1152_499] : memref<32x2560xbf16, #tpu.memory_space<vmem>>, vector<32x1280xbf16>
    %cst_500 = arith.constant dense<0.000000e+00> : vector<48x1280xf32>
    %397 = tpu.matmul %395, %396, %cst_500 {dimension_numbers = #tpu.dot_dimension_numbers<[1], [0], [0], [1], [0, 0, 1, 1], [], []>} : vector<48x32xbf16>, vector<32x1280xbf16>, vector<48x1280xf32> -> vector<48x1280xf32>
    %c0_501 = arith.constant 0 : index
    %c0_502 = arith.constant 0 : index
    %398 = vector.load %arg9[%c0_501, %c0_502] : memref<48x1280xf32, #tpu.memory_space<vmem>>, vector<48x1280xf32>
    %399 = arith.addf %398, %397 : vector<48x1280xf32>
    %c0_503 = arith.constant 0 : index
    %c0_504 = arith.constant 0 : index
    %400 = vector.load %arg9[%c0_503, %c0_504] : memref<48x1280xf32, #tpu.memory_space<vmem>>, vector<48x1280xf32>
    tpu.vector_store %arg9[%c0_503, %c0_504], %399 {strides = array<i32>} : memref<48x1280xf32, #tpu.memory_space<vmem>>, vector<48x1280xf32>,
    %c10_505 = arith.constant 10 : index
    %c0_506 = arith.constant 0 : index
    %c0_507 = arith.constant 0 : index
    %401 = vector.load %arg3[%c10_505, %c0_506, %c0_507] : memref<11x48x32xbf16, #tpu.memory_space<vmem>>, vector<1x48x32xbf16>
    %402 = vector.shape_cast %401 : vector<1x48x32xbf16> to vector<48x32xbf16>
    %c0_508 = arith.constant 0 : index
    %c1280_509 = arith.constant 1280 : index
    %403 = vector.load %arg8[%c0_508, %c1280_509] : memref<32x2560xbf16, #tpu.memory_space<vmem>>, vector<32x1280xbf16>
    %cst_510 = arith.constant dense<0.000000e+00> : vector<48x1280xf32>
    %404 = tpu.matmul %402, %403, %cst_510 {dimension_numbers = #tpu.dot_dimension_numbers<[1], [0], [0], [1], [0, 0, 1, 1], [], []>} : vector<48x32xbf16>, vector<32x1280xbf16>, vector<48x1280xf32> -> vector<48x1280xf32>
    %c0_511 = arith.constant 0 : index
    %c0_512 = arith.constant 0 : index
    %405 = vector.load %arg9[%c0_511, %c0_512] : memref<48x1280xf32, #tpu.memory_space<vmem>>, vector<48x1280xf32>
    %406 = arith.addf %405, %404 : vector<48x1280xf32>
    %c0_513 = arith.constant 0 : index
    %c0_514 = arith.constant 0 : index
    %407 = vector.load %arg9[%c0_513, %c0_514] : memref<48x1280xf32, #tpu.memory_space<vmem>>, vector<48x1280xf32>
    tpu.vector_store %arg9[%c0_513, %c0_514], %406 {strides = array<i32>} : memref<48x1280xf32, #tpu.memory_space<vmem>>, vector<48x1280xf32>,
    %c0_515 = arith.constant 0 : index
    %c0_516 = arith.constant 0 : index
    %408 = vector.load %arg9[%c0_515, %c0_516] : memref<48x1280xf32, #tpu.memory_space<vmem>>, vector<48x1280xf32>
    %409 = vector.broadcast %1 : vector<48x1xf32> to vector<48x1280xf32>
    %410 = arith.addf %408, %409 : vector<48x1280xf32>
    %cst_517 = arith.constant 0.000000e+00 : f32
    %411 = vector.broadcast %cst_517 : f32 to vector<48x1280xf32>
    %412 = arith.cmpf oge, %410, %411 : vector<48x1280xf32>
    %413 = vector.broadcast %4 : vector<48x1xf32> to vector<48x1280xf32>
    %414 = arith.mulf %413, %410 : vector<48x1280xf32>
    %415 = arith.select %412, %410, %414 : vector<48x1280xi1>, vector<48x1280xf32>
    %416 = arith.truncf %415 : vector<48x1280xf32> to vector<48x1280xbf16>
    %c0_518 = arith.constant 0 : index
    %c0_519 = arith.constant 0 : index
    %417 = vector.load %arg10[%c0_518, %c0_519] : memref<48x1280xbf16, #tpu.memory_space<vmem>>, vector<48x1280xbf16>
    tpu.vector_store %arg10[%c0_518, %c0_519], %416 {strides = array<i32>} : memref<48x1280xbf16, #tpu.memory_space<vmem>>, vector<48x1280xbf16>,
    %cst_520 = arith.constant 0.000000e+00 : f32
    %418 = vector.broadcast %cst_520 : f32 to vector<48x128xf32>
    %c0_521 = arith.constant 0 : index
    %c0_522 = arith.constant 0 : index
    %c0_523 = arith.constant 0 : index
    %419 = vector.load %arg4[%c0_521, %c0_522, %c0_523] : memref<9x48x48xbf16, #tpu.memory_space<vmem>>, vector<1x48x48xbf16>
    %420 = vector.shape_cast %419 : vector<1x48x48xbf16> to vector<48x48xbf16>
    %c0_524 = arith.constant 0 : index
    %c0_525 = arith.constant 0 : index
    %421 = vector.load %arg10[%c0_524, %c0_525] : memref<48x1280xbf16, #tpu.memory_space<vmem>>, vector<48x128xbf16>
    %cst_526 = arith.constant dense<0.000000e+00> : vector<48x128xf32>
    %422 = tpu.matmul %420, %421, %cst_526 {dimension_numbers = #tpu.dot_dimension_numbers<[1], [0], [0], [1], [0, 0, 1, 1], [], []>} : vector<48x48xbf16>, vector<48x128xbf16>, vector<48x128xf32> -> vector<48x128xf32>
    %423 = arith.addf %418, %422 : vector<48x128xf32>
    %c1_527 = arith.constant 1 : index
    %c0_528 = arith.constant 0 : index
    %c0_529 = arith.constant 0 : index
    %424 = vector.load %arg4[%c1_527, %c0_528, %c0_529] : memref<9x48x48xbf16, #tpu.memory_space<vmem>>, vector<1x48x48xbf16>
    %425 = vector.shape_cast %424 : vector<1x48x48xbf16> to vector<48x48xbf16>
    %c0_530 = arith.constant 0 : index
    %c128_531 = arith.constant 128 : index
    %426 = vector.load %arg10[%c0_530, %c128_531] : memref<48x1280xbf16, #tpu.memory_space<vmem>>, vector<48x128xbf16>
    %cst_532 = arith.constant dense<0.000000e+00> : vector<48x128xf32>
    %427 = tpu.matmul %425, %426, %cst_532 {dimension_numbers = #tpu.dot_dimension_numbers<[1], [0], [0], [1], [0, 0, 1, 1], [], []>} : vector<48x48xbf16>, vector<48x128xbf16>, vector<48x128xf32> -> vector<48x128xf32>
    %428 = arith.addf %423, %427 : vector<48x128xf32>
    %c2_533 = arith.constant 2 : index
    %c0_534 = arith.constant 0 : index
    %c0_535 = arith.constant 0 : index
    %429 = vector.load %arg4[%c2_533, %c0_534, %c0_535] : memref<9x48x48xbf16, #tpu.memory_space<vmem>>, vector<1x48x48xbf16>
    %430 = vector.shape_cast %429 : vector<1x48x48xbf16> to vector<48x48xbf16>
    %c0_536 = arith.constant 0 : index
    %c256_537 = arith.constant 256 : index
    %431 = vector.load %arg10[%c0_536, %c256_537] : memref<48x1280xbf16, #tpu.memory_space<vmem>>, vector<48x128xbf16>
    %cst_538 = arith.constant dense<0.000000e+00> : vector<48x128xf32>
    %432 = tpu.matmul %430, %431, %cst_538 {dimension_numbers = #tpu.dot_dimension_numbers<[1], [0], [0], [1], [0, 0, 1, 1], [], []>} : vector<48x48xbf16>, vector<48x128xbf16>, vector<48x128xf32> -> vector<48x128xf32>
    %433 = arith.addf %428, %432 : vector<48x128xf32>
    %c3_539 = arith.constant 3 : index
    %c0_540 = arith.constant 0 : index
    %c0_541 = arith.constant 0 : index
    %434 = vector.load %arg4[%c3_539, %c0_540, %c0_541] : memref<9x48x48xbf16, #tpu.memory_space<vmem>>, vector<1x48x48xbf16>
    %435 = vector.shape_cast %434 : vector<1x48x48xbf16> to vector<48x48xbf16>
    %c0_542 = arith.constant 0 : index
    %c384_543 = arith.constant 384 : index
    %436 = vector.load %arg10[%c0_542, %c384_543] : memref<48x1280xbf16, #tpu.memory_space<vmem>>, vector<48x128xbf16>
    %cst_544 = arith.constant dense<0.000000e+00> : vector<48x128xf32>
    %437 = tpu.matmul %435, %436, %cst_544 {dimension_numbers = #tpu.dot_dimension_numbers<[1], [0], [0], [1], [0, 0, 1, 1], [], []>} : vector<48x48xbf16>, vector<48x128xbf16>, vector<48x128xf32> -> vector<48x128xf32>
    %438 = arith.addf %433, %437 : vector<48x128xf32>
    %c4_545 = arith.constant 4 : index
    %c0_546 = arith.constant 0 : index
    %c0_547 = arith.constant 0 : index
    %439 = vector.load %arg4[%c4_545, %c0_546, %c0_547] : memref<9x48x48xbf16, #tpu.memory_space<vmem>>, vector<1x48x48xbf16>
    %440 = vector.shape_cast %439 : vector<1x48x48xbf16> to vector<48x48xbf16>
    %c0_548 = arith.constant 0 : index
    %c512_549 = arith.constant 512 : index
    %441 = vector.load %arg10[%c0_548, %c512_549] : memref<48x1280xbf16, #tpu.memory_space<vmem>>, vector<48x128xbf16>
    %cst_550 = arith.constant dense<0.000000e+00> : vector<48x128xf32>
    %442 = tpu.matmul %440, %441, %cst_550 {dimension_numbers = #tpu.dot_dimension_numbers<[1], [0], [0], [1], [0, 0, 1, 1], [], []>} : vector<48x48xbf16>, vector<48x128xbf16>, vector<48x128xf32> -> vector<48x128xf32>
    %443 = arith.addf %438, %442 : vector<48x128xf32>
    %c5_551 = arith.constant 5 : index
    %c0_552 = arith.constant 0 : index
    %c0_553 = arith.constant 0 : index
    %444 = vector.load %arg4[%c5_551, %c0_552, %c0_553] : memref<9x48x48xbf16, #tpu.memory_space<vmem>>, vector<1x48x48xbf16>
    %445 = vector.shape_cast %444 : vector<1x48x48xbf16> to vector<48x48xbf16>
    %c0_554 = arith.constant 0 : index
    %c640_555 = arith.constant 640 : index
    %446 = vector.load %arg10[%c0_554, %c640_555] : memref<48x1280xbf16, #tpu.memory_space<vmem>>, vector<48x128xbf16>
    %cst_556 = arith.constant dense<0.000000e+00> : vector<48x128xf32>
    %447 = tpu.matmul %445, %446, %cst_556 {dimension_numbers = #tpu.dot_dimension_numbers<[1], [0], [0], [1], [0, 0, 1, 1], [], []>} : vector<48x48xbf16>, vector<48x128xbf16>, vector<48x128xf32> -> vector<48x128xf32>
    %448 = arith.addf %443, %447 : vector<48x128xf32>
    %c6_557 = arith.constant 6 : index
    %c0_558 = arith.constant 0 : index
    %c0_559 = arith.constant 0 : index
    %449 = vector.load %arg4[%c6_557, %c0_558, %c0_559] : memref<9x48x48xbf16, #tpu.memory_space<vmem>>, vector<1x48x48xbf16>
    %450 = vector.shape_cast %449 : vector<1x48x48xbf16> to vector<48x48xbf16>
    %c0_560 = arith.constant 0 : index
    %c768_561 = arith.constant 768 : index
    %451 = vector.load %arg10[%c0_560, %c768_561] : memref<48x1280xbf16, #tpu.memory_space<vmem>>, vector<48x128xbf16>
    %cst_562 = arith.constant dense<0.000000e+00> : vector<48x128xf32>
    %452 = tpu.matmul %450, %451, %cst_562 {dimension_numbers = #tpu.dot_dimension_numbers<[1], [0], [0], [1], [0, 0, 1, 1], [], []>} : vector<48x48xbf16>, vector<48x128xbf16>, vector<48x128xf32> -> vector<48x128xf32>
    %453 = arith.addf %448, %452 : vector<48x128xf32>
    %c7_563 = arith.constant 7 : index
    %c0_564 = arith.constant 0 : index
    %c0_565 = arith.constant 0 : index
    %454 = vector.load %arg4[%c7_563, %c0_564, %c0_565] : memref<9x48x48xbf16, #tpu.memory_space<vmem>>, vector<1x48x48xbf16>
    %455 = vector.shape_cast %454 : vector<1x48x48xbf16> to vector<48x48xbf16>
    %c0_566 = arith.constant 0 : index
    %c896_567 = arith.constant 896 : index
    %456 = vector.load %arg10[%c0_566, %c896_567] : memref<48x1280xbf16, #tpu.memory_space<vmem>>, vector<48x128xbf16>
    %cst_568 = arith.constant dense<0.000000e+00> : vector<48x128xf32>
    %457 = tpu.matmul %455, %456, %cst_568 {dimension_numbers = #tpu.dot_dimension_numbers<[1], [0], [0], [1], [0, 0, 1, 1], [], []>} : vector<48x48xbf16>, vector<48x128xbf16>, vector<48x128xf32> -> vector<48x128xf32>
    %458 = arith.addf %453, %457 : vector<48x128xf32>
    %c8_569 = arith.constant 8 : index
    %c0_570 = arith.constant 0 : index
    %c0_571 = arith.constant 0 : index
    %459 = vector.load %arg4[%c8_569, %c0_570, %c0_571] : memref<9x48x48xbf16, #tpu.memory_space<vmem>>, vector<1x48x48xbf16>
    %460 = vector.shape_cast %459 : vector<1x48x48xbf16> to vector<48x48xbf16>
    %c0_572 = arith.constant 0 : index
    %c1024_573 = arith.constant 1024 : index
    %461 = vector.load %arg10[%c0_572, %c1024_573] : memref<48x1280xbf16, #tpu.memory_space<vmem>>, vector<48x128xbf16>
    %cst_574 = arith.constant dense<0.000000e+00> : vector<48x128xf32>
    %462 = tpu.matmul %460, %461, %cst_574 {dimension_numbers = #tpu.dot_dimension_numbers<[1], [0], [0], [1], [0, 0, 1, 1], [], []>} : vector<48x48xbf16>, vector<48x128xbf16>, vector<48x128xf32> -> vector<48x128xf32>
    %463 = arith.addf %458, %462 : vector<48x128xf32>
    %464 = vector.broadcast %2 : vector<48x1xf32> to vector<48x128xf32>
    %465 = arith.addf %463, %464 : vector<48x128xf32>
    %c1_575 = arith.constant 1 : index
    %c0_576 = arith.constant 0 : index
    %c0_577 = arith.constant 0 : index
    %466 = vector.load %arg6[%c1_575, %c0_576, %c0_577] : memref<2x48x128xf32, #tpu.memory_space<vmem>>, vector<1x48x128xf32>
    %467 = vector.shape_cast %466 : vector<1x48x128xf32> to vector<48x128xf32>
    %468 = vector.shape_cast %465 : vector<48x128xf32> to vector<1x48x128xf32>
    tpu.vector_store %arg6[%c1_575, %c0_576, %c0_577], %468 {strides = array<i32>} : memref<2x48x128xf32, #tpu.memory_space<vmem>>, vector<1x48x128xf32>,
    return
  }
  func.func @transform_0(%arg0: i32) -> (i32, i32, i32) {
    %c0_i32 = arith.constant 0 : i32
    %c0_i32_0 = arith.constant 0 : i32
    %c0_i32_1 = arith.constant 0 : i32
    return %arg0, %c0_i32, %c0_i32_0 : i32, i32, i32
  }
  func.func @transform_1(%arg0: i32) -> (i32, i32, i32) {
    %c0_i32 = arith.constant 0 : i32
    %c0_i32_0 = arith.constant 0 : i32
    %c0_i32_1 = arith.constant 0 : i32
    %c0_i32_2 = arith.constant 0 : i32
    return %c0_i32, %c0_i32_0, %c0_i32_1 : i32, i32, i32
  }
  func.func @transform_2(%arg0: i32) -> (i32, i32, i32) {
    %c0_i32 = arith.constant 0 : i32
    %c0_i32_0 = arith.constant 0 : i32
    %c0_i32_1 = arith.constant 0 : i32
    %c0_i32_2 = arith.constant 0 : i32
    return %c0_i32, %c0_i32_0, %c0_i32_1 : i32, i32, i32
  }
  func.func @transform_3(%arg0: i32) -> (i32, i32, i32) {
    %c0_i32 = arith.constant 0 : i32
    %c0_i32_0 = arith.constant 0 : i32
    %c0_i32_1 = arith.constant 0 : i32
    %c0_i32_2 = arith.constant 0 : i32
    return %c0_i32, %c0_i32_0, %c0_i32_1 : i32, i32, i32
  }
  func.func @transform_4(%arg0: i32) -> (i32, i32) {
    %c0_i32 = arith.constant 0 : i32
    %c0_i32_0 = arith.constant 0 : i32
    %c0_i32_1 = arith.constant 0 : i32
    return %c0_i32, %c0_i32_0 : i32, i32
  }
  func.func @transform_5(%arg0: i32) -> (i32, i32, i32) {
    %c0_i32 = arith.constant 0 : i32
    %c0_i32_0 = arith.constant 0 : i32
    %c0_i32_1 = arith.constant 0 : i32
    return %arg0, %c0_i32, %c0_i32_0 : i32, i32, i32
  }
}

</mosaic_0001>

<bundles_post_ra>
// kernel: cae3d_forward.1
= control target key start
LH: loop header
LB: loop body
LE: loop exit
PB: predicated region body
PF: predicated region fallthrough
CT: control target
= control target key end

     0   :  { %s40825_s18 = smov 0   ;;  %s46466_s0 = inlined_call_operand.vmem [shape: bf16[8,16,3840], index: 0, kind: input, shape index: {}]   ;;  %s46467_s1 = inlined_call_operand.vmem [shape: bf16[11,32,16], index: 1, kind: input, shape index: {}]   ;;  %s46468_s2 = inlined_call_operand.vmem [shape: bf16[11,48,32], index: 2, kind: input, shape index: {}]   ;;  %s46469_s3 = inlined_call_operand.vmem [shape: bf16[9,48,48], index: 3, kind: input, shape index: {}]   ;;  %s46470_s4 = inlined_call_operand.vmem [shape: f32[48,5], index: 4, kind: input, shape index: {}]   ;;  %s46471_s5 = inlined_call_operand.vmem [shape: f32[8,48,128], index: 5, kind: output, shape index: {}]  }
   0x1 LB: > { %s35299_s19 = sadd.s32 4294967295, %s40786_s18   ;;  %p35303_p0 = scmp.ge.s32.totalorder %s40786_s18, 1  ;;  %s40786_s18 = sphi %s40825_s18, %s15_s18  }
   0x2   : > { %p189_p1 = scmp.lt.s32.totalorder %s40786_s18, 5 }
   0x4   : > { %p190_p2 = pnand %p35303_p0, %p189_p1 }
   0x6   : > { %193 = sbr.rel (%p190_p2) target bundleno = 4226 (0x1082), region = 40 }
   0xd   : > { %s35304_s20 = sshll.u32 %s35299_s19, 1  ;;  %v46474_v0 = vmov 0   ;;  %v40851_v5 = vld [vmem:[%s46467_s1] sm:$0xff]   ;;  %vm374_vm0 = vcmask 130048   ;;  %v40871_v12 = vld [vmem:[%s46467_s1 + $0x8] sm:$0xff]   ;;  %v40955_v29 = vld [vmem:[%s46467_s1 + $0x10] sm:$0xff]  }
   0xe   : > { %p220_p3 = scmp.lt.s32.totalorder %s35304_s20, 7  ;;  %413 = vmatprep.mubr.bf16.mxu0 %v46474_v0  ;;  %466 = vmatprep.mubr.bf16.mxu1 %v46474_v0  ;;  %v40979_v34 = vld [vmem:[%s46467_s1 + $0x18] sm:$0xff]   ;;  %v41096_v50 = vld [vmem:[%s46467_s1 + $0x20] sm:$0xff]   ;;  %v41111_v52 = vld [vmem:[%s46467_s1 + $0x28] sm:$0xff]  }
   0xf   : > { %40269 = vset.pattern.permute.xlu0 %v46474_v0 }
  0x10   : > { %s46582_s20 = smov (!%p220_p3, %s35304_s20), 7 }
  0x11   : > { %s40252_s21 = smul.u32 240, %s46582_s20 }
  0x12   : > { %s40253_s10 = smul.u32 48, %s46582_s20 }
  0x13   : > { %s40842_s24 = scalar_lea.vmem %s46466_s0, %s40252_s21 }
  0x14   : > { %v40284_v1 = vld [vmem:[%s40842_s24 + $0x4] ss:$120 sps:$4 sm:$0xff]   ;;  %v40288_v3 = vld [vmem:[%s40842_s24] ss:$120 sps:$4 sm:$0xff]   ;;  %v40854_v6 = vld [vmem:[%s40842_s24 + $0x14] ss:$120 sps:$4 sm:$0xff]   ;;  %s43994_s13 = scalar_lea.vmem %s46471_s5, %s40253_s10 }
  0x15   : > { %v40286_v2 = vld [vmem:[%s40842_s24 + $0xc] ss:$120 sps:$4 sm:$0xff]   ;;  %381 = vmatprep.subr.bf16.mxu0 %v40284_v1  ;;  %v40289_v4 = vld [vmem:[%s40842_s24 + $0x8] ss:$120 sps:$4 sm:$0xff]   ;;  %v40297_v8 = vld [vmem:[%s40842_s24 + $0x1c] ss:$120 sps:$4 sm:$0xff]  }
  0x16   : > { %434 = vmatprep.subr.bf16.mxu1 %v40286_v2  ;;  %382 = vmatpush1.bf16.msra.mxu0 %v40288_v3  ;;  %v40291_v7 = vld [vmem:[%s40842_s24 + $0x10] ss:$120 sps:$4 sm:$0xff]   ;;  %v40300_v10 = vld [vmem:[%s40842_s24 + $0x24] ss:$120 sps:$4 sm:$0xff]   ;;  %v40298_v13 = vld [vmem:[%s40842_s24 + $0x20] ss:$120 sps:$4 sm:$0xff]  }
  0x17   : > { %435 = vmatpush1.bf16.msra.mxu1 %v40289_v4  ;;  %487 = vmatprep.subr.bf16.mxu0 %v40854_v6  ;;  %v40295_v9 = vld [vmem:[%s40842_s24 + $0x18] ss:$120 sps:$4 sm:$0xff]   ;;  %v40303_v11 = vld [vmem:[%s40842_s24 + $0x2c] ss:$120 sps:$4 sm:$0xff]   ;;  %v40301_v14 = vld [vmem:[%s40842_s24 + $0x28] ss:$120 sps:$4 sm:$0xff]  }
  0x18   : > { %540 = vmatprep.subr.bf16.mxu1 %v40297_v8  ;;  %v40306_v15 = vld [vmem:[%s40842_s24 + $0x34] ss:$120 sps:$4 sm:$0xff]   ;;  %v40304_v17 = vld [vmem:[%s40842_s24 + $0x30] ss:$120 sps:$4 sm:$0xff]   ;;  %v40312_v19 = vld [vmem:[%s40842_s24 + $0x44] ss:$120 sps:$4 sm:$0xff]  }
  0x19   : > { %35330 = vmatmul.mubr.msk.bf16.vlgmr.msra.gmra.mrb[0].mxu0 %vm374_vm0, %v40851_v5  ;;  %v40309_v16 = vld [vmem:[%s40842_s24 + $0x3c] ss:$120 sps:$4 sm:$0xff]   ;;  %v40307_v18 = vld [vmem:[%s40842_s24 + $0x38] ss:$120 sps:$4 sm:$0xff]   ;;  %v40315_v20 = vld [vmem:[%s40842_s24 + $0x4c] ss:$120 sps:$4 sm:$0xff]  }
  0x1a   : > { %35332 = vmatmul.mubr.msk.bf16.vlgmr.msra.gmra.mrb[0].mxu1 %vm374_vm0, %v40851_v5  ;;  %488 = vmatpush1.bf16.msra.mxu0 %v40291_v7  ;;  %v40310_v21 = vld [vmem:[%s40842_s24 + $0x40] ss:$120 sps:$4 sm:$0xff]   ;;  %v40321_v24 = vld [vmem:[%s40842_s24 + $0x10] ss:$120 sps:$4 sm:$0xff]   ;;  %v40316_v25 = vld [vmem:[%s40842_s24 + $0x4] ss:$120 sps:$4 sm:$0xff]  }
  0x1b   : > { %423 = vmatprep.mubr.bf16.mxu0 %v46474_v0  ;;  %476 = vmatprep.mubr.bf16.mxu1 %v46474_v0  ;;  %v40313_v22 = vld [vmem:[%s40842_s24 + $0x48] ss:$120 sps:$4 sm:$0xff]   ;;  %v40929_v26 = vld [vmem:[%s40842_s24 + $0xc] ss:$120 sps:$4 sm:$0xff]   ;;  %v40932_v27 = vld [vmem:[%s40842_s24 + $0x18] ss:$120 sps:$4 sm:$0xff]  }
  0x1c   : > { %541 = vmatpush1.bf16.msra.mxu1 %v40295_v9  ;;  %593 = vmatprep.subr.bf16.mxu0 %v40300_v10  ;;  %v40318_v23 = vld [vmem:[%s40842_s24 + $0x8] ss:$120 sps:$4 sm:$0xff]   ;;  %v40958_v30 = vld [vmem:[%s40842_s24 + $0x14] ss:$120 sps:$4 sm:$0xff]   ;;  %v40991_v35 = vld [vmem:[%s40842_s24 + $0x24] ss:$120 sps:$4 sm:$0xff]  }
  0x1d   : > { %646 = vmatprep.subr.bf16.mxu1 %v40303_v11  ;;  %v40935_v28 = vld [vmem:[%s40842_s24 + $0x20] ss:$120 sps:$4 sm:$0xff]   ;;  %v40961_v31 = vld [vmem:[%s40842_s24 + $0x1c] ss:$120 sps:$4 sm:$0xff]   ;;  %v40967_v33 = vld [vmem:[%s40842_s24 + $0x30] ss:$120 sps:$4 sm:$0xff]  }
  0x1e   : > { %v40964_v32 = vld [vmem:[%s40842_s24 + $0x28] ss:$120 sps:$4 sm:$0xff]   ;;  %v40994_v36 = vld [vmem:[%s40842_s24 + $0x2c] ss:$120 sps:$4 sm:$0xff]   ;;  %v40997_v37 = vld [vmem:[%s40842_s24 + $0x38] ss:$120 sps:$4 sm:$0xff]  }
  0x1f   : > { %v41000_v38 = vld [vmem:[%s40842_s24 + $0x40] ss:$120 sps:$4 sm:$0xff]   ;;  %v41019_v39 = vld [vmem:[%s40842_s24 + $0x34] ss:$120 sps:$4 sm:$0xff]   ;;  %v41028_v42 = vld [vmem:[%s40842_s24 + $0x50] ss:$120 sps:$4 sm:$0xff]  }
  0x20   : > { %v41022_v40 = vld [vmem:[%s40842_s24 + $0x3c] ss:$120 sps:$4 sm:$0xff]   ;;  %v41025_v41 = vld [vmem:[%s40842_s24 + $0x48] ss:$120 sps:$4 sm:$0xff]   ;;  %v41050_v44 = vld [vmem:[%s40842_s24 + $0x4c] ss:$120 sps:$4 sm:$0xff]  }
  0x21   : > { %35331 = vmatmul.mubr.msk.bf16.gmra.mrb[4].mxu0 %vm374_vm0, %v40871_v12  ;;  %v41047_v43 = vld [vmem:[%s40842_s24 + $0x44] ss:$120 sps:$4 sm:$0xff]   ;;  %v40746_v46 = vld [vmem:[%s40842_s24 + $0x8] ss:$120 sps:$4 sm:$0xff]   ;;  %v41103_v51 = vld [vmem:[%s40842_s24 + $0x18] ss:$120 sps:$4 sm:$0xff]  }
  0x22   : > { %35333 = vmatmul.mubr.msk.bf16.gmra.mrb[4].mxu1 %vm374_vm0, %v40871_v12  ;;  %519 = vmatprep.mubr.bf16.mxu0 %v46474_v0  ;;  %v40745_v45 = vld [vmem:[%s40842_s24 + $0xc] ss:$120 sps:$4 sm:$0xff]   ;;  %v41076_v47 = vld [vmem:[%s40842_s24 + $0x10] ss:$120 sps:$4 sm:$0xff]   ;;  %v41080_v48 = vld [vmem:[%s40842_s24 + $0x1c] ss:$120 sps:$4 sm:$0xff]  }
  0x23   : > { %572 = vmatprep.mubr.bf16.mxu1 %v46474_v0  ;;  %v41084_v49 = vld [vmem:[%s40842_s24 + $0x24] ss:$120 sps:$4 sm:$0xff]   ;;  %v41114_v53 = vld [vmem:[%s40842_s24 + $0x20] ss:$120 sps:$4 sm:$0xff]   ;;  %v41122_v55 = vld [vmem:[%s40842_s24 + $0x34] ss:$120 sps:$4 sm:$0xff]  }
  0x24   : > { %v41118_v54 = vld [vmem:[%s40842_s24 + $0x2c] ss:$120 sps:$4 sm:$0xff]   ;;  %v41136_v56 = vld [vmem:[%s40842_s24 + $0x28] ss:$120 sps:$4 sm:$0xff]   ;;  %v41146_v58 = vld [vmem:[%s40842_s24 + $0x3c] ss:$120 sps:$4 sm:$0xff]  }
  0x25   : > { %v41142_v57 = vld [vmem:[%s40842_s24 + $0x30] ss:$120 sps:$4 sm:$0xff]   ;;  %v41150_v59 = vld [vmem:[%s40842_s24 + $0x44] ss:$120 sps:$4 sm:$0xff]   ;;  %v41160_v60 = vld [vmem:[%s40842_s24 + $0x54] ss:$120 sps:$4 sm:$0xff]  }
  0x26   : > { %v41167_v61 = vld [vmem:[%s40842_s24 + $0x38] ss:$120 sps:$4 sm:$0xff]   ;;  %v41177_v63 = vld [vmem:[%s40842_s24 + $0x4c] ss:$120 sps:$4 sm:$0xff]   ;;  %v41195_v2 = vld [vmem:[%s40842_s24 + $0x48] ss:$120 sps:$4 sm:$0xff]  }
  0x27   : > { %v41173_v62 = vld [vmem:[%s40842_s24 + $0x40] ss:$120 sps:$4 sm:$0xff]   ;;  %v41188_v1 = vld [vmem:[%s40842_s24 + $0x50] ss:$120 sps:$4 sm:$0xff]   ;;  %v41271_v7 = vld [vmem:[%s40842_s24 + $0x54] ss:$120 sps:$4 sm:$0xff]  }
  0x28   : > { %v40762_v3 = vld [vmem:[%s40842_s24 + $0x10] ss:$120 sps:$4 sm:$0xff]   ;;  %v40763_v8 = vld [vmem:[%s40842_s24 + $0x14] ss:$120 sps:$4 sm:$0xff]   ;;  %v40358_v9 = vld [vmem:[%s46467_s1 + $0x40] sm:$0xff]  }
  0x29   : > { %35334 = vmatmul.mubr.msk.bf16.vlgmr.msra.gmra.mrb[8].mxu0 %vm374_vm0, %v40851_v5  ;;  %v40353_v4 = vld [vmem:[%s46467_s1 + $0x30] sm:$0xff]   ;;  %v40359_v10 = vld [vmem:[%s46467_s1 + $0x48] sm:$0xff]  }
  0x2a   : > { %35336 = vmatmul.mubr.msk.bf16.vlgmr.msra.gmra.mrb[8].mxu1 %vm374_vm0, %v40851_v5  ;;  %594 = vmatpush1.bf16.msra.mxu0 %v40298_v13  ;;  %v41328_v11 = vld [vmem:[%s40842_s24 + $0x5c] ss:$120 sps:$4 sm:$0xff]   ;;  %v40764_v13 = vld [vmem:[%s40842_s24 + $0x18] ss:$120 sps:$4 sm:$0xff]  }
  0x2b   : > { %529 = vmatprep.mubr.bf16.mxu0 %v46474_v0  ;;  %582 = vmatprep.mubr.bf16.mxu1 %v46474_v0 }
  0x2c   : > { %647 = vmatpush1.bf16.msra.mxu1 %v40301_v14  ;;  %699 = vmatprep.subr.bf16.mxu0 %v40306_v15  ;;  %v40765_v14 = vld [vmem:[%s40842_s24 + $0x20] ss:$120 sps:$4 sm:$0xff]   ;;  %v40766_v15 = vld [vmem:[%s40842_s24 + $0x14] ss:$120 sps:$4 sm:$0xff]  }
  0x2d   : > { %752 = vmatprep.subr.bf16.mxu1 %v40309_v16  ;;  %v40767_v16 = vld [vmem:[%s40842_s24 + $0x1c] ss:$120 sps:$4 sm:$0xff]  }
  0x31   : > { %35335 = vmatmul.mubr.msk.bf16.gmra.mrb[12].mxu0 %vm374_vm0, %v40871_v12 }
  0x32   : > { %35337 = vmatmul.mubr.msk.bf16.gmra.mrb[12].mxu1 %vm374_vm0, %v40871_v12  ;;  %625 = vmatprep.mubr.bf16.mxu0 %v46474_v0 }
  0x33   : > { %678 = vmatprep.mubr.bf16.mxu1 %v46474_v0 }
  0x39   : > { %35338 = vmatmul.mubr.msk.bf16.vlgmr.msra.gmra.mrb[16].mxu0 %vm374_vm0, %v40851_v5 }
  0x3a   : > { %35340 = vmatmul.mubr.msk.bf16.vlgmr.msra.gmra.mrb[16].mxu1 %vm374_vm0, %v40851_v5  ;;  %700 = vmatpush1.bf16.msra.mxu0 %v40304_v17  ;;  %v40768_v17 = vld [vmem:[%s40842_s24 + $0x28] ss:$120 sps:$4 sm:$0xff]  }
  0x3b   : > { %635 = vmatprep.mubr.bf16.mxu0 %v46474_v0  ;;  %688 = vmatprep.mubr.bf16.mxu1 %v46474_v0 }
  0x3c   : > { %753 = vmatpush1.bf16.msra.mxu1 %v40307_v18  ;;  %805 = vmatprep.subr.bf16.mxu0 %v40312_v19  ;;  %v40769_v18 = vld [vmem:[%s40842_s24 + $0x30] ss:$120 sps:$4 sm:$0xff]  }
  0x3d   : > { %858 = vmatprep.subr.bf16.mxu1 %v40315_v20  ;;  %v40363_v19 = vld [vmem:[%s46467_s1 + $0x50] sm:$0xff]   ;;  %v40364_v20 = vld [vmem:[%s46467_s1 + $0x58] sm:$0xff]  }
  0x41   : > { %35339 = vmatmul.mubr.msk.bf16.gmra.mrb[20].mxu0 %vm374_vm0, %v40871_v12 }
  0x42   : > { %35341 = vmatmul.mubr.msk.bf16.gmra.mrb[20].mxu1 %vm374_vm0, %v40871_v12  ;;  %731 = vmatprep.mubr.bf16.mxu0 %v46474_v0 }
  0x43   : > { %784 = vmatprep.mubr.bf16.mxu1 %v46474_v0 }
  0x49   : > { %35342 = vmatmul.mubr.msk.bf16.vlgmr.msra.gmra.mrb[24].mxu0 %vm374_vm0, %v40851_v5 }
  0x4a   : > { %35344 = vmatmul.mubr.msk.bf16.vlgmr.msra.gmra.mrb[24].mxu1 %vm374_vm0, %v40851_v5  ;;  %806 = vmatpush1.bf16.msra.mxu0 %v40310_v21  ;;  %v41400_v21 = vld [vmem:[%s40842_s24 + $0x60] ss:$120 sps:$4 sm:$0xff]  }
  0x4b   : > { %741 = vmatprep.mubr.bf16.mxu0 %v46474_v0  ;;  %794 = vmatprep.mubr.bf16.mxu1 %v46474_v0 }
  0x4c   : > { %859 = vmatpush1.bf16.msra.mxu1 %v40313_v22  ;;  %1132 = vmatprep.subr.bf16.mxu0 %v40318_v23  ;;  %v41415_v22 = vld [vmem:[%s40842_s24 + $0x5c] ss:$120 sps:$4 sm:$0xff]  }
  0x4d   : > { %1185 = vmatprep.subr.bf16.mxu1 %v40321_v24  ;;  %v40370_v23 = vld [vmem:[%s40842_s24 + $0x1c] ss:$120 sps:$4 sm:$0xff]  }
  0x4e   : > { %v41419_v24 = vld [vmem:[%s40842_s24 + $0x24] ss:$120 sps:$4 sm:$0xff]  }
  0x51   : > { %35343 = vmatmul.mubr.msk.bf16.gmra.mrb[28].mxu0 %vm374_vm0, %v40871_v12 }
  0x52   : > { %35345 = vmatmul.mubr.msk.bf16.gmra.mrb[28].mxu1 %vm374_vm0, %v40871_v12  ;;  %837 = vmatprep.mubr.bf16.mxu0 %v46474_v0 }
  0x53   : > { %890 = vmatprep.mubr.bf16.mxu1 %v46474_v0 }
  0x59   : > { %35346 = vmatmul.mubr.msk.bf16.vlgmr.msra.gmra.mrb[32].mxu0 %vm374_vm0, %v40851_v5 }
  0x5a   : > { %35348 = vmatmul.mubr.msk.bf16.vlgmr.msra.gmra.mrb[32].mxu1 %vm374_vm0, %v40851_v5  ;;  %1133 = vmatpush1.bf16.msra.mxu0 %v40316_v25  ;;  %v40354_v5 = vld [vmem:[%s46467_s1 + $0x38] sm:$0xff]  }
  0x5b   : > { %847 = vmatprep.mubr.bf16.mxu0 %v46474_v0  ;;  %900 = vmatprep.mubr.bf16.mxu1 %v46474_v0  ;;  %v40368_v25 = vld [vmem:[%s40842_s24 + $0x18] ss:$120 sps:$4 sm:$0xff]  }
  0x5c   : > { %1186 = vmatpush1.bf16.msra.mxu1 %v40929_v26  ;;  %1238 = vmatprep.subr.bf16.mxu0 %v40932_v27 }
  0x5d   : > { %1291 = vmatprep.subr.bf16.mxu1 %v40935_v28 }
  0x61   : > { %35347 = vmatmul.mubr.msk.bf16.gmra.mrb[36].mxu0 %vm374_vm0, %v40871_v12 }
  0x62   : > { %35349 = vmatmul.mubr.msk.bf16.gmra.mrb[36].mxu1 %vm374_vm0, %v40871_v12  ;;  %1164 = vmatprep.mubr.bf16.mxu0 %v46474_v0  ;;  %v41343_v12 = vld [vmem:[%s40842_s24 + $0x58] ss:$120 sps:$4 sm:$0xff]  }
  0x63   : > { %1217 = vmatprep.mubr.bf16.mxu1 %v46474_v0 }
  0x69   : > { %35376 = vmatmul.mubr.msk.bf16.vlgmr.msra.gmra.mrb[0].mxu0 %vm374_vm0, %v40955_v29 }
  0x6a   : > { %35378 = vmatmul.mubr.msk.bf16.vlgmr.msra.gmra.mrb[0].mxu1 %vm374_vm0, %v40955_v29  ;;  %1239 = vmatpush1.bf16.msra.mxu0 %v40958_v30 }
  0x6b   : > { %1174 = vmatprep.mubr.bf16.mxu0 %v46474_v0  ;;  %1227 = vmatprep.mubr.bf16.mxu1 %v46474_v0 }
  0x6c   : > { %1292 = vmatpush1.bf16.msra.mxu1 %v40961_v31  ;;  %1344 = vmatprep.subr.bf16.mxu0 %v40964_v32 }
  0x6d   : > { %1397 = vmatprep.subr.bf16.mxu1 %v40967_v33 }
  0x71   : > { %35377 = vmatmul.mubr.msk.bf16.gmra.mrb[4].mxu0 %vm374_vm0, %v40979_v34 }
  0x72   : > { %35379 = vmatmul.mubr.msk.bf16.gmra.mrb[4].mxu1 %vm374_vm0, %v40979_v34  ;;  %1270 = vmatprep.mubr.bf16.mxu0 %v46474_v0 }
  0x73   : > { %1323 = vmatprep.mubr.bf16.mxu1 %v46474_v0 }
  0x79   : > { %35380 = vmatmul.mubr.msk.bf16.vlgmr.msra.gmra.mrb[8].mxu0 %vm374_vm0, %v40955_v29 }
  0x7a   : > { %35382 = vmatmul.mubr.msk.bf16.vlgmr.msra.gmra.mrb[8].mxu1 %vm374_vm0, %v40955_v29  ;;  %1345 = vmatpush1.bf16.msra.mxu0 %v40991_v35 }
  0x7b   : > { %1280 = vmatprep.mubr.bf16.mxu0 %v46474_v0  ;;  %1333 = vmatprep.mubr.bf16.mxu1 %v46474_v0 }
  0x7c   : > { %1398 = vmatpush1.bf16.msra.mxu1 %v40994_v36  ;;  %1450 = vmatprep.subr.bf16.mxu0 %v40997_v37 }
  0x7d   : > { %1503 = vmatprep.subr.bf16.mxu1 %v41000_v38 }
  0x81   : > { %35381 = vmatmul.mubr.msk.bf16.gmra.mrb[12].mxu0 %vm374_vm0, %v40979_v34 }
  0x82   : > { %35383 = vmatmul.mubr.msk.bf16.gmra.mrb[12].mxu1 %vm374_vm0, %v40979_v34  ;;  %1376 = vmatprep.mubr.bf16.mxu0 %v46474_v0 }
  0x83   : > { %1429 = vmatprep.mubr.bf16.mxu1 %v46474_v0 }
  0x89   : > { %35384 = vmatmul.mubr.msk.bf16.vlgmr.msra.gmra.mrb[16].mxu0 %vm374_vm0, %v40955_v29 }
  0x8a   : > { %35386 = vmatmul.mubr.msk.bf16.vlgmr.msra.gmra.mrb[16].mxu1 %vm374_vm0, %v40955_v29  ;;  %1451 = vmatpush1.bf16.msra.mxu0 %v41019_v39 }
  0x8b   : > { %1386 = vmatprep.mubr.bf16.mxu0 %v46474_v0  ;;  %1439 = vmatprep.mubr.bf16.mxu1 %v46474_v0 }
  0x8c   : > { %1504 = vmatpush1.bf16.msra.mxu1 %v41022_v40  ;;  %1556 = vmatprep.subr.bf16.mxu0 %v41025_v41 }
  0x8d   : > { %1609 = vmatprep.subr.bf16.mxu1 %v41028_v42 }
  0x91   : > { %35385 = vmatmul.mubr.msk.bf16.gmra.mrb[20].mxu0 %vm374_vm0, %v40979_v34 }
  0x92   : > { %35387 = vmatmul.mubr.msk.bf16.gmra.mrb[20].mxu1 %vm374_vm0, %v40979_v34  ;;  %1482 = vmatprep.mubr.bf16.mxu0 %v46474_v0 }
  0x93   : > { %1535 = vmatprep.mubr.bf16.mxu1 %v46474_v0 }
  0x99   : > { %35388 = vmatmul.mubr.msk.bf16.vlgmr.msra.gmra.mrb[24].mxu0 %vm374_vm0, %v40955_v29 }
  0x9a   : > { %35390 = vmatmul.mubr.msk.bf16.vlgmr.msra.gmra.mrb[24].mxu1 %vm374_vm0, %v40955_v29  ;;  %1557 = vmatpush1.bf16.msra.mxu0 %v41047_v43 }
  0x9b   : > { %1492 = vmatprep.mubr.bf16.mxu0 %v46474_v0  ;;  %1545 = vmatprep.mubr.bf16.mxu1 %v46474_v0 }
  0x9c   : > { %1610 = vmatpush1.bf16.msra.mxu1 %v41050_v44  ;;  %2043 = vmatprep.subr.bf16.mxu0 %v40745_v45  ;;  %v41555_v45 = vld [vmem:[%s40842_s24 + $0x30] ss:$120 sps:$4 sm:$0xff]  }
  0x9d   : > { %2096 = vmatprep.subr.bf16.mxu1 %v40854_v6  ;;  %v41256_v6 = vld [vmem:[%s40842_s24 + $0x58] ss:$120 sps:$4 sm:$0xff]  }
  0xa1   : > { %35389 = vmatmul.mubr.msk.bf16.gmra.mrb[28].mxu0 %vm374_vm0, %v40979_v34 }
  0xa2   : > { %35391 = vmatmul.mubr.msk.bf16.gmra.mrb[28].mxu1 %vm374_vm0, %v40979_v34  ;;  %1588 = vmatprep.mubr.bf16.mxu0 %v46474_v0 }
  0xa3   : > { %1641 = vmatprep.mubr.bf16.mxu1 %v46474_v0 }
  0xa9   : > { %35392 = vmatmul.mubr.msk.bf16.vlgmr.msra.gmra.mrb[32].mxu0 %vm374_vm0, %v40955_v29 }
  0xaa   : > { %35394 = vmatmul.mubr.msk.bf16.vlgmr.msra.gmra.mrb[32].mxu1 %vm374_vm0, %v40955_v29  ;;  %2044 = vmatpush1.bf16.msra.mxu0 %v40746_v46  ;;  %v41456_v29 = vld [vmem:[%s46467_s1 + $0x60] sm:$0xff]   ;;  %v41558_v46 = vld [vmem:[%s40842_s24 + $0x38] ss:$120 sps:$4 sm:$0xff]  }
  0xab   : > { %1598 = vmatprep.mubr.bf16.mxu0 %v46474_v0  ;;  %1651 = vmatprep.mubr.bf16.mxu1 %v46474_v0 }
  0xac   : > { %2097 = vmatpush1.bf16.msra.mxu1 %v41076_v47  ;;  %2149 = vmatprep.subr.bf16.mxu0 %v41080_v48 }
  0xad   : > { %2202 = vmatprep.subr.bf16.mxu1 %v41084_v49 }
  0xb1   : > { %35393 = vmatmul.mubr.msk.bf16.gmra.mrb[36].mxu0 %vm374_vm0, %v40979_v34 }
  0xb2   : > { %35395 = vmatmul.mubr.msk.bf16.gmra.mrb[36].mxu1 %vm374_vm0, %v40979_v34  ;;  %2075 = vmatprep.mubr.bf16.mxu0 %v46474_v0  ;;  %v40378_v34 = vld [vmem:[%s46467_s1 + $0x68] sm:$0xff]  }
  0xb3   : > { %2128 = vmatprep.mubr.bf16.mxu1 %v46474_v0 }
  0xb9   : > { %35422 = vmatmul.mubr.msk.bf16.vlgmr.msra.gmra.mrb[0].mxu0 %vm374_vm0, %v41096_v50 }
  0xba   : > { %35424 = vmatmul.mubr.msk.bf16.vlgmr.msra.gmra.mrb[0].mxu1 %vm374_vm0, %v41096_v50  ;;  %2150 = vmatpush1.bf16.msra.mxu0 %v41103_v51 }
  0xbb   : > { %2085 = vmatprep.mubr.bf16.mxu0 %v46474_v0  ;;  %2138 = vmatprep.mubr.bf16.mxu1 %v46474_v0 }
  0xbc   : > { %2203 = vmatpush1.bf16.msra.mxu1 %v41114_v53  ;;  %2255 = vmatprep.subr.bf16.mxu0 %v41118_v54 }
  0xbd   : > { %2308 = vmatprep.subr.bf16.mxu1 %v41122_v55 }
  0xc1   : > { %35423 = vmatmul.mubr.msk.bf16.gmra.mrb[4].mxu0 %vm374_vm0, %v41111_v52 }
  0xc2   : > { %35425 = vmatmul.mubr.msk.bf16.gmra.mrb[4].mxu1 %vm374_vm0, %v41111_v52  ;;  %2181 = vmatprep.mubr.bf16.mxu0 %v46474_v0 }
  0xc3   : > { %2234 = vmatprep.mubr.bf16.mxu1 %v46474_v0 }
  0xc9   : > { %35426 = vmatmul.mubr.msk.bf16.vlgmr.msra.gmra.mrb[8].mxu0 %vm374_vm0, %v41096_v50 }
  0xca   : > { %35428 = vmatmul.mubr.msk.bf16.vlgmr.msra.gmra.mrb[8].mxu1 %vm374_vm0, %v41096_v50  ;;  %2256 = vmatpush1.bf16.msra.mxu0 %v41136_v56 }
  0xcb   : > { %2191 = vmatprep.mubr.bf16.mxu0 %v46474_v0  ;;  %2244 = vmatprep.mubr.bf16.mxu1 %v46474_v0 }
  0xcc   : > { %2309 = vmatpush1.bf16.msra.mxu1 %v41142_v57  ;;  %2361 = vmatprep.subr.bf16.mxu0 %v41146_v58 }
  0xcd   : > { %2414 = vmatprep.subr.bf16.mxu1 %v41150_v59 }
  0xd1   : > { %35427 = vmatmul.mubr.msk.bf16.gmra.mrb[12].mxu0 %vm374_vm0, %v41111_v52 }
  0xd2   : > { %35429 = vmatmul.mubr.msk.bf16.gmra.mrb[12].mxu1 %vm374_vm0, %v41111_v52  ;;  %2287 = vmatprep.mubr.bf16.mxu0 %v46474_v0 }
  0xd3   : > { %2340 = vmatprep.mubr.bf16.mxu1 %v46474_v0 }
  0xd9   : > { %35430 = vmatmul.mubr.msk.bf16.vlgmr.msra.gmra.mrb[16].mxu0 %vm374_vm0, %v41096_v50 }
  0xda   : > { %35432 = vmatmul.mubr.msk.bf16.vlgmr.msra.gmra.mrb[16].mxu1 %vm374_vm0, %v41096_v50  ;;  %2362 = vmatpush1.bf16.msra.mxu0 %v41167_v61 }
  0xdb   : > { %2297 = vmatprep.mubr.bf16.mxu0 %v46474_v0  ;;  %2350 = vmatprep.mubr.bf16.mxu1 %v46474_v0 }
  0xdc   : > { %2415 = vmatpush1.bf16.msra.mxu1 %v41173_v62  ;;  %2467 = vmatprep.subr.bf16.mxu0 %v41177_v63 }
  0xdd   : > { %2520 = vmatprep.subr.bf16.mxu1 %v41160_v60 }
  0xe1   : > { %35431 = vmatmul.mubr.msk.bf16.gmra.mrb[20].mxu0 %vm374_vm0, %v41111_v52 }
  0xe2   : > { %35433 = vmatmul.mubr.msk.bf16.gmra.mrb[20].mxu1 %vm374_vm0, %v41111_v52  ;;  %2393 = vmatprep.mubr.bf16.mxu0 %v46474_v0 }
  0xe3   : > { %2446 = vmatprep.mubr.bf16.mxu1 %v46474_v0 }
  0xe9   : > { %35434 = vmatmul.mubr.msk.bf16.vlgmr.msra.gmra.mrb[24].mxu0 %vm374_vm0, %v41096_v50 }
  0xea   : > { %35436 = vmatmul.mubr.msk.bf16.vlgmr.msra.gmra.mrb[24].mxu1 %vm374_vm0, %v41096_v50  ;;  %2468 = vmatpush1.bf16.msra.mxu0 %v41195_v2 }
  0xeb   : > { %2403 = vmatprep.mubr.bf16.mxu0 %v46474_v0  ;;  %2456 = vmatprep.mubr.bf16.mxu1 %v46474_v0 }
  0xec   : > { %2521 = vmatpush1.bf16.msra.mxu1 %v41188_v1  ;;  %2954 = vmatprep.subr.bf16.mxu0 %v40762_v3  ;;  %v41765_v3 = vld [vmem:[%s46467_s1 + $0x98] sm:$0xff]  }
  0xed   : > { %3007 = vmatprep.subr.bf16.mxu1 %v40932_v27  ;;  %v41437_v27 = vld [vmem:[%s40842_s24 + $0x2c] ss:$120 sps:$4 sm:$0xff]  }
  0xf1   : > { %35435 = vmatmul.mubr.msk.bf16.gmra.mrb[28].mxu0 %vm374_vm0, %v41111_v52 }
  0xf2   : > { %35437 = vmatmul.mubr.msk.bf16.gmra.mrb[28].mxu1 %vm374_vm0, %v41111_v52  ;;  %2499 = vmatprep.mubr.bf16.mxu0 %v46474_v0 }
  0xf3   : > { %2552 = vmatprep.mubr.bf16.mxu1 %v46474_v0 }
  0xf9   : > { %35438 = vmatmul.mubr.msk.bf16.vlgmr.msra.gmra.mrb[32].mxu0 %vm374_vm0, %v41096_v50 }
  0xfa   : > { %35440 = vmatmul.mubr.msk.bf16.vlgmr.msra.gmra.mrb[32].mxu1 %vm374_vm0, %v41096_v50  ;;  %2955 = vmatpush1.bf16.msra.mxu0 %v40929_v26  ;;  %v41434_v26 = vld [vmem:[%s40842_s24 + $0x20] ss:$120 sps:$4 sm:$0xff]  }
  0xfb   : > { %2509 = vmatprep.mubr.bf16.mxu0 %v46474_v0  ;;  %2562 = vmatprep.mubr.bf16.mxu1 %v46474_v0  ;;  %v41583_v50 = vld [vmem:[%s40842_s24 + $0x40] ss:$120 sps:$4 sm:$0xff]  }
  0xfc   : > { %3008 = vmatpush1.bf16.msra.mxu1 %v40958_v30  ;;  %3060 = vmatprep.subr.bf16.mxu0 %v40935_v28  ;;  %v41440_v28 = vld [vmem:[%s40842_s24 + $0x34] ss:$120 sps:$4 sm:$0xff]   ;;  %v41459_v30 = vld [vmem:[%s40842_s24 + $0x28] ss:$120 sps:$4 sm:$0xff]  }
  0xfd   : > { %3113 = vmatprep.subr.bf16.mxu1 %v40964_v32  ;;  %v41465_v32 = vld [vmem:[%s40842_s24 + $0x3c] ss:$120 sps:$4 sm:$0xff]  }
 0x101   : > { %35439 = vmatmul.mubr.msk.bf16.gmra.mrb[36].mxu0 %vm374_vm0, %v41111_v52 }
 0x102   : > { %35441 = vmatmul.mubr.msk.bf16.gmra.mrb[36].mxu1 %vm374_vm0, %v41111_v52  ;;  %2986 = vmatprep.mubr.bf16.mxu0 %v46474_v0  ;;  %v40404_v52 = vld [vmem:[%s46467_s1 + $0x78] sm:$0xff]  }
 0x103   : > { %3039 = vmatprep.mubr.bf16.mxu1 %v46474_v0 }
 0x109   : > { %35468 = vmatmul.mubr.msk.bf16.vlgmr.msra.gmra.mrb[0].mxu0 %vm374_vm0, %v40353_v4 }
 0x10a   : > { %35470 = vmatmul.mubr.msk.bf16.vlgmr.msra.gmra.mrb[0].mxu1 %vm374_vm0, %v40353_v4  ;;  %3061 = vmatpush1.bf16.msra.mxu0 %v40961_v31  ;;  %v41462_v31 = vld [vmem:[%s40842_s24 + $0x30] ss:$120 sps:$4 sm:$0xff]  }
 0x10b   : > { %2996 = vmatprep.mubr.bf16.mxu0 %v46474_v0  ;;  %3049 = vmatprep.mubr.bf16.mxu1 %v46474_v0 }
 0x10c   : > { %3114 = vmatpush1.bf16.msra.mxu1 %v40991_v35  ;;  %3166 = vmatprep.subr.bf16.mxu0 %v40967_v33  ;;  %v41468_v33 = vld [vmem:[%s40842_s24 + $0x44] ss:$120 sps:$4 sm:$0xff]  }
 0x10d   : > { %3219 = vmatprep.subr.bf16.mxu1 %v40997_v37 }
 0x111   : > { %35469 = vmatmul.mubr.msk.bf16.gmra.mrb[4].mxu0 %vm374_vm0, %v40354_v5 }
 0x112   : > { %35471 = vmatmul.mubr.msk.bf16.gmra.mrb[4].mxu1 %vm374_vm0, %v40354_v5  ;;  %3092 = vmatprep.mubr.bf16.mxu0 %v46474_v0 }
 0x113   : > { %3145 = vmatprep.mubr.bf16.mxu1 %v46474_v0 }
 0x119   : > { %35472 = vmatmul.mubr.msk.bf16.vlgmr.msra.gmra.mrb[8].mxu0 %vm374_vm0, %v40353_v4 }
 0x11a   : > { %35474 = vmatmul.mubr.msk.bf16.vlgmr.msra.gmra.mrb[8].mxu1 %vm374_vm0, %v40353_v4  ;;  %3167 = vmatpush1.bf16.msra.mxu0 %v40994_v36 }
 0x11b   : > { %3102 = vmatprep.mubr.bf16.mxu0 %v46474_v0  ;;  %3155 = vmatprep.mubr.bf16.mxu1 %v46474_v0 }
 0x11c   : > { %3220 = vmatpush1.bf16.msra.mxu1 %v41019_v39  ;;  %3272 = vmatprep.subr.bf16.mxu0 %v41000_v38 }
 0x11d   : > { %3325 = vmatprep.subr.bf16.mxu1 %v41025_v41 }
 0x121   : > { %35473 = vmatmul.mubr.msk.bf16.gmra.mrb[12].mxu0 %vm374_vm0, %v40354_v5 }
 0x122   : > { %35475 = vmatmul.mubr.msk.bf16.gmra.mrb[12].mxu1 %vm374_vm0, %v40354_v5  ;;  %3198 = vmatprep.mubr.bf16.mxu0 %v46474_v0 }
 0x123   : > { %3251 = vmatprep.mubr.bf16.mxu1 %v46474_v0 }
 0x129   : > { %35476 = vmatmul.mubr.msk.bf16.vlgmr.msra.gmra.mrb[16].mxu0 %vm374_vm0, %v40353_v4 }
 0x12a   : > { %35478 = vmatmul.mubr.msk.bf16.vlgmr.msra.gmra.mrb[16].mxu1 %vm374_vm0, %v40353_v4  ;;  %3273 = vmatpush1.bf16.msra.mxu0 %v41022_v40 }
 0x12b   : > { %3208 = vmatprep.mubr.bf16.mxu0 %v46474_v0  ;;  %3261 = vmatprep.mubr.bf16.mxu1 %v46474_v0 }
 0x12c   : > { %3326 = vmatpush1.bf16.msra.mxu1 %v41047_v43  ;;  %3378 = vmatprep.subr.bf16.mxu0 %v41028_v42 }
 0x12d   : > { %3431 = vmatprep.subr.bf16.mxu1 %v41256_v6 }
 0x131   : > { %35477 = vmatmul.mubr.msk.bf16.gmra.mrb[20].mxu0 %vm374_vm0, %v40354_v5 }
 0x132   : > { %35479 = vmatmul.mubr.msk.bf16.gmra.mrb[20].mxu1 %vm374_vm0, %v40354_v5  ;;  %3304 = vmatprep.mubr.bf16.mxu0 %v46474_v0 }
 0x133   : > { %3357 = vmatprep.mubr.bf16.mxu1 %v46474_v0 }
 0x139   : > { %35480 = vmatmul.mubr.msk.bf16.vlgmr.msra.gmra.mrb[24].mxu0 %vm374_vm0, %v40353_v4 }
 0x13a   : > { %35482 = vmatmul.mubr.msk.bf16.vlgmr.msra.gmra.mrb[24].mxu1 %vm374_vm0, %v40353_v4  ;;  %3379 = vmatpush1.bf16.msra.mxu0 %v41050_v44 }
 0x13b   : > { %3314 = vmatprep.mubr.bf16.mxu0 %v46474_v0  ;;  %3367 = vmatprep.mubr.bf16.mxu1 %v46474_v0 }
 0x13c   : > { %3432 = vmatpush1.bf16.msra.mxu1 %v41271_v7  ;;  %3865 = vmatprep.subr.bf16.mxu0 %v40763_v8  ;;  %v40430_v8 = vld [vmem:[%s40842_s24 + $0x54] ss:$120 sps:$4 sm:$0xff]  }
 0x13d   : > { %3918 = vmatprep.subr.bf16.mxu1 %v41080_v48  ;;  %v41577_v48 = vld [vmem:[%s40842_s24 + $0x2c] ss:$120 sps:$4 sm:$0xff]  }
 0x141   : > { %35481 = vmatmul.mubr.msk.bf16.gmra.mrb[28].mxu0 %vm374_vm0, %v40354_v5 }
 0x142   : > { %35483 = vmatmul.mubr.msk.bf16.gmra.mrb[28].mxu1 %vm374_vm0, %v40354_v5  ;;  %3410 = vmatprep.mubr.bf16.mxu0 %v46474_v0 }
 0x143   : > { %3463 = vmatprep.mubr.bf16.mxu1 %v46474_v0 }
 0x149   : > { %35484 = vmatmul.mubr.msk.bf16.vlgmr.msra.gmra.mrb[32].mxu0 %vm374_vm0, %v40353_v4 }
 0x14a   : > { %35486 = vmatmul.mubr.msk.bf16.vlgmr.msra.gmra.mrb[32].mxu1 %vm374_vm0, %v40353_v4  ;;  %3866 = vmatpush1.bf16.msra.mxu0 %v41076_v47  ;;  %v40400_v47 = vld [vmem:[%s46467_s1 + $0x70] sm:$0xff]  }
 0x14b   : > { %3420 = vmatprep.mubr.bf16.mxu0 %v46474_v0  ;;  %3473 = vmatprep.mubr.bf16.mxu1 %v46474_v0  ;;  %v40432_v4 = vld [vmem:[%s40842_s24 + $0x58] ss:$120 sps:$4 sm:$0xff]  }
 0x14c   : > { %3919 = vmatpush1.bf16.msra.mxu1 %v41103_v51  ;;  %3971 = vmatprep.subr.bf16.mxu0 %v41084_v49  ;;  %v41580_v49 = vld [vmem:[%s40842_s24 + $0x34] ss:$120 sps:$4 sm:$0xff]   ;;  %v41586_v51 = vld [vmem:[%s40842_s24 + $0x48] ss:$120 sps:$4 sm:$0xff]  }
 0x14d   : > { %4024 = vmatprep.subr.bf16.mxu1 %v41118_v54  ;;  %v41607_v54 = vld [vmem:[%s40842_s24 + $0x44] ss:$120 sps:$4 sm:$0xff]  }
 0x151   : > { %35485 = vmatmul.mubr.msk.bf16.gmra.mrb[36].mxu0 %vm374_vm0, %v40354_v5 }
 0x152   : > { %35487 = vmatmul.mubr.msk.bf16.gmra.mrb[36].mxu1 %vm374_vm0, %v40354_v5  ;;  %3897 = vmatprep.mubr.bf16.mxu0 %v46474_v0  ;;  %v234_v5 = vld [vmem:[%s46470_s4] sm:$0xff] }
 0x153   : > { %3950 = vmatprep.mubr.bf16.mxu1 %v46474_v0  ;;  %10183 = vperm.xlu0 %40269, %v234_v5  }
 0x159   : > { %35514 = vmatmul.mubr.msk.bf16.vlgmr.msra.gmra.mrb[0].mxu0 %vm374_vm0, %v40358_v9 }
 0x15a   : > { %35516 = vmatmul.mubr.msk.bf16.vlgmr.msra.gmra.mrb[0].mxu1 %vm374_vm0, %v40358_v9  ;;  %3972 = vmatpush1.bf16.msra.mxu0 %v41114_v53  ;;  %v41604_v53 = vld [vmem:[%s40842_s24 + $0x3c] ss:$120 sps:$4 sm:$0xff]  }
 0x15b   : > { %3907 = vmatprep.mubr.bf16.mxu0 %v46474_v0  ;;  %3960 = vmatprep.mubr.bf16.mxu1 %v46474_v0 }
 0x15c   : > { %4025 = vmatpush1.bf16.msra.mxu1 %v41136_v56  ;;  %4077 = vmatprep.subr.bf16.mxu0 %v41122_v55  ;;  %v41610_v55 = vld [vmem:[%s40842_s24 + $0x50] ss:$120 sps:$4 sm:$0xff]   ;;  %v41625_v56 = vld [vmem:[%s40842_s24 + $0x4c] ss:$120 sps:$4 sm:$0xff]  }
 0x15d   : > { %4130 = vmatprep.subr.bf16.mxu1 %v41146_v58  ;;  %v41643_v58 = vld [vmem:[%s40842_s24 + $0x64] ss:$120 sps:$4 sm:$0xff]  }
 0x161   : > { %35515 = vmatmul.mubr.msk.bf16.gmra.mrb[4].mxu0 %vm374_vm0, %v40359_v10 }
 0x162   : > { %35517 = vmatmul.mubr.msk.bf16.gmra.mrb[4].mxu1 %vm374_vm0, %v40359_v10  ;;  %4003 = vmatprep.mubr.bf16.mxu0 %v46474_v0 }
 0x163   : > { %4056 = vmatprep.mubr.bf16.mxu1 %v46474_v0 }
 0x169   : > { %35518 = vmatmul.mubr.msk.bf16.vlgmr.msra.gmra.mrb[8].mxu0 %vm374_vm0, %v40358_v9 }
 0x16a   : > { %35520 = vmatmul.mubr.msk.bf16.vlgmr.msra.gmra.mrb[8].mxu1 %vm374_vm0, %v40358_v9  ;;  %4078 = vmatpush1.bf16.msra.mxu0 %v41142_v57  ;;  %v41628_v57 = vld [vmem:[%s40842_s24 + $0x68] ss:$120 sps:$4 sm:$0xff]  }
 0x16b   : > { %4013 = vmatprep.mubr.bf16.mxu0 %v46474_v0  ;;  %4066 = vmatprep.mubr.bf16.mxu1 %v46474_v0 }
 0x16c   : > { %4131 = vmatpush1.bf16.msra.mxu1 %v41167_v61  ;;  %4183 = vmatprep.subr.bf16.mxu0 %v41150_v59  ;;  %v40420_v59 = vld [vmem:[%s46467_s1 + $0x80] sm:$0xff]   ;;  %v41688_v61 = vld [vmem:[%s40842_s24 + $0x54] ss:$120 sps:$4 sm:$0xff]  }
 0x16d   : > { %4236 = vmatprep.subr.bf16.mxu1 %v41177_v63  ;;  %v41706_v63 = vld [vmem:[%s40842_s24 + $0x6c] ss:$120 sps:$4 sm:$0xff]  }
 0x171   : > { %35519 = vmatmul.mubr.msk.bf16.gmra.mrb[12].mxu0 %vm374_vm0, %v40359_v10 }
 0x172   : > { %35521 = vmatmul.mubr.msk.bf16.gmra.mrb[12].mxu1 %vm374_vm0, %v40359_v10  ;;  %4109 = vmatprep.mubr.bf16.mxu0 %v46474_v0 }
 0x173   : > { %4162 = vmatprep.mubr.bf16.mxu1 %v46474_v0 }
 0x179   : > { %35522 = vmatmul.mubr.msk.bf16.vlgmr.msra.gmra.mrb[16].mxu0 %vm374_vm0, %v40358_v9 }
 0x17a   : > { %35524 = vmatmul.mubr.msk.bf16.vlgmr.msra.gmra.mrb[16].mxu1 %vm374_vm0, %v40358_v9  ;;  %4184 = vmatpush1.bf16.msra.mxu0 %v41173_v62  ;;  %v41703_v62 = vld [vmem:[%s40842_s24 + $0x50] ss:$120 sps:$4 sm:$0xff]  }
 0x17b   : > { %4119 = vmatprep.mubr.bf16.mxu0 %v46474_v0  ;;  %4172 = vmatprep.mubr.bf16.mxu1 %v46474_v0 }
 0x17c   : > { %4237 = vmatpush1.bf16.msra.mxu1 %v41195_v2  ;;  %4289 = vmatprep.subr.bf16.mxu0 %v41160_v60  ;;  %v41750_v2 = vld [vmem:[%s46467_s1 + $0x90] sm:$0xff]  }
 0x17d   : > { %4342 = vmatprep.subr.bf16.mxu1 %v41328_v11 }
 0x181   : > { %35523 = vmatmul.mubr.msk.bf16.gmra.mrb[20].mxu0 %vm374_vm0, %v40359_v10 }
 0x182   : > { %35525 = vmatmul.mubr.msk.bf16.gmra.mrb[20].mxu1 %vm374_vm0, %v40359_v10  ;;  %4215 = vmatprep.mubr.bf16.mxu0 %v46474_v0 }
 0x183   : > { %4268 = vmatprep.mubr.bf16.mxu1 %v46474_v0 }
 0x189   : > { %35526 = vmatmul.mubr.msk.bf16.vlgmr.msra.gmra.mrb[24].mxu0 %vm374_vm0, %v40358_v9 }
 0x18a   : > { %35528 = vmatmul.mubr.msk.bf16.vlgmr.msra.gmra.mrb[24].mxu1 %vm374_vm0, %v40358_v9  ;;  %4290 = vmatpush1.bf16.msra.mxu0 %v41188_v1 }
 0x18b   : > { %4225 = vmatprep.mubr.bf16.mxu0 %v46474_v0  ;;  %4278 = vmatprep.mubr.bf16.mxu1 %v46474_v0 }
 0x18c   : > { %4343 = vmatpush1.bf16.msra.mxu1 %v41343_v12  ;;  %4776 = vmatprep.subr.bf16.mxu0 %v40764_v13  ;;  %v40436_v13 = vld [vmem:[%s46467_s1 + $0xa0] sm:$0xff]  }
 0x18d   : > { %4829 = vmatprep.subr.bf16.mxu1 %v40765_v14  ;;  %v40437_v14 = vld [vmem:[%s46467_s1 + $0xa8] sm:$0xff]  }
 0x191   : > { %35527 = vmatmul.mubr.msk.bf16.gmra.mrb[28].mxu0 %vm374_vm0, %v40359_v10 }
 0x192   : > { %35529 = vmatmul.mubr.msk.bf16.gmra.mrb[28].mxu1 %vm374_vm0, %v40359_v10  ;;  %4321 = vmatprep.mubr.bf16.mxu0 %v46474_v0 }
 0x193   : > { %4374 = vmatprep.mubr.bf16.mxu1 %v46474_v0 }
 0x199   : > { %35530 = vmatmul.mubr.msk.bf16.vlgmr.msra.gmra.mrb[32].mxu0 %vm374_vm0, %v40358_v9 }
 0x19a   : > { %35532 = vmatmul.mubr.msk.bf16.vlgmr.msra.gmra.mrb[32].mxu1 %vm374_vm0, %v40358_v9  ;;  %4777 = vmatpush1.bf16.msra.mxu0 %v40766_v15  ;;  %v40435_v9 = vld [vmem:[%s40842_s24 + $0x70] ss:$120 sps:$4 sm:$0xff]   ;;  %v40440_v15 = vld [vmem:[%s40842_s24 + $0x5c] ss:$120 sps:$4 sm:$0xff]  }
 0x19b   : > { %4331 = vmatprep.mubr.bf16.mxu0 %v46474_v0  ;;  %4384 = vmatprep.mubr.bf16.mxu1 %v46474_v0 }
 0x19c   : > { %4830 = vmatpush1.bf16.msra.mxu1 %v40767_v16  ;;  %4882 = vmatprep.subr.bf16.mxu0 %v40768_v17  ;;  %v40438_v16 = vld [vmem:[%s40842_s24 + $0x58] ss:$120 sps:$4 sm:$0xff]   ;;  %v40443_v17 = vld [vmem:[%s40842_s24 + $0x74] ss:$120 sps:$4 sm:$0xff]  }
 0x19d   : > { %4935 = vmatprep.subr.bf16.mxu1 %v40769_v18  ;;  %v40441_v18 = vld [vmem:[%s40842_s24 + $0x70] ss:$120 sps:$4 sm:$0xff]  }
 0x1a1   : > { %35531 = vmatmul.mubr.msk.bf16.gmra.mrb[36].mxu0 %vm374_vm0, %v40359_v10 }
 0x1a2   : > { %35533 = vmatmul.mubr.msk.bf16.gmra.mrb[36].mxu1 %vm374_vm0, %v40359_v10  ;;  %4808 = vmatprep.mubr.bf16.mxu0 %v46474_v0  ;;  %v236_v10 = vld [vmem:[%s46470_s4 + $0x10] sm:$0xff] }
 0x1a3   : > { %4861 = vmatprep.mubr.bf16.mxu1 %v46474_v0 }
 0x1a9   : > { %35560 = vmatmul.mubr.msk.bf16.vlgmr.msra.gmra.mrb[0].mxu0 %vm374_vm0, %v40363_v19 }
 0x1aa   : > { %35562 = vmatmul.mubr.msk.bf16.vlgmr.msra.gmra.mrb[0].mxu1 %vm374_vm0, %v40363_v19  ;;  %4883 = vmatpush1.bf16.msra.mxu0 %v40991_v35  ;;  %v41488_v35 = vld [vmem:[%s40842_s24 + $0x38] ss:$120 sps:$4 sm:$0xff]  }
 0x1ab   : > { %4818 = vmatprep.mubr.bf16.mxu0 %v46474_v0  ;;  %4871 = vmatprep.mubr.bf16.mxu1 %v46474_v0 }
 0x1ac   : > { %4936 = vmatpush1.bf16.msra.mxu1 %v40994_v36  ;;  %4988 = vmatprep.subr.bf16.mxu0 %v40997_v37  ;;  %v41491_v36 = vld [vmem:[%s40842_s24 + $0x40] ss:$120 sps:$4 sm:$0xff]   ;;  %v41494_v37 = vld [vmem:[%s40842_s24 + $0x4c] ss:$120 sps:$4 sm:$0xff]  }
 0x1ad   : > { %5041 = vmatprep.subr.bf16.mxu1 %v41000_v38  ;;  %v41511_v38 = vld [vmem:[%s40842_s24 + $0x48] ss:$120 sps:$4 sm:$0xff]  }
 0x1b1   : > { %35561 = vmatmul.mubr.msk.bf16.gmra.mrb[4].mxu0 %vm374_vm0, %v40364_v20 }
 0x1b2   : > { %35563 = vmatmul.mubr.msk.bf16.gmra.mrb[4].mxu1 %vm374_vm0, %v40364_v20  ;;  %4914 = vmatprep.mubr.bf16.mxu0 %v46474_v0 }
 0x1b3   : > { %4967 = vmatprep.mubr.bf16.mxu1 %v46474_v0 }
 0x1b9   : > { %35564 = vmatmul.mubr.msk.bf16.vlgmr.msra.gmra.mrb[8].mxu0 %vm374_vm0, %v40363_v19 }
 0x1ba   : > { %35566 = vmatmul.mubr.msk.bf16.vlgmr.msra.gmra.mrb[8].mxu1 %vm374_vm0, %v40363_v19  ;;  %4989 = vmatpush1.bf16.msra.mxu0 %v41019_v39  ;;  %v41514_v39 = vld [vmem:[%s40842_s24 + $0x64] ss:$120 sps:$4 sm:$0xff]  }
 0x1bb   : > { %4924 = vmatprep.mubr.bf16.mxu0 %v46474_v0  ;;  %4977 = vmatprep.mubr.bf16.mxu1 %v46474_v0 }
 0x1bc   : > { %5042 = vmatpush1.bf16.msra.mxu1 %v41022_v40  ;;  %5094 = vmatprep.subr.bf16.mxu0 %v41025_v41  ;;  %v41531_v40 = vld [vmem:[%s40842_s24 + $0x60] ss:$120 sps:$4 sm:$0xff]  }
 0x1bd   : > { %5147 = vmatprep.subr.bf16.mxu1 %v41028_v42  ;;  %v40396_v41 = vld [vmem:[%s40842_s24 + $0x20] ss:$120 sps:$4 sm:$0xff]  }
 0x1be   : > { %v41535_v42 = vld [vmem:[%s40842_s24 + $0x28] ss:$120 sps:$4 sm:$0xff]  }
 0x1c1   : > { %35565 = vmatmul.mubr.msk.bf16.gmra.mrb[12].mxu0 %vm374_vm0, %v40364_v20 }
 0x1c2   : > { %35567 = vmatmul.mubr.msk.bf16.gmra.mrb[12].mxu1 %vm374_vm0, %v40364_v20  ;;  %5020 = vmatprep.mubr.bf16.mxu0 %v46474_v0 }
 0x1c3   : > { %5073 = vmatprep.mubr.bf16.mxu1 %v46474_v0 }
 0x1c9   : > { %35568 = vmatmul.mubr.msk.bf16.vlgmr.msra.gmra.mrb[16].mxu0 %vm374_vm0, %v40363_v19 }
 0x1ca   : > { %35570 = vmatmul.mubr.msk.bf16.vlgmr.msra.gmra.mrb[16].mxu1 %vm374_vm0, %v40363_v19  ;;  %5095 = vmatpush1.bf16.msra.mxu0 %v41047_v43  ;;  %v40394_v43 = vld [vmem:[%s40842_s24 + $0x1c] ss:$120 sps:$4 sm:$0xff]  }
 0x1cb   : > { %5030 = vmatprep.mubr.bf16.mxu0 %v46474_v0  ;;  %5083 = vmatprep.mubr.bf16.mxu1 %v46474_v0 }
 0x1cc   : > { %5148 = vmatpush1.bf16.msra.mxu1 %v41050_v44  ;;  %5200 = vmatprep.subr.bf16.mxu0 %v41256_v6  ;;  %v41552_v44 = vld [vmem:[%s40842_s24 + $0x24] ss:$120 sps:$4 sm:$0xff]  }
 0x1cd   : > { %5253 = vmatprep.subr.bf16.mxu1 %v41400_v21 }
 0x1d1   : > { %35569 = vmatmul.mubr.msk.bf16.gmra.mrb[20].mxu0 %vm374_vm0, %v40364_v20 }
 0x1d2   : > { %35571 = vmatmul.mubr.msk.bf16.gmra.mrb[20].mxu1 %vm374_vm0, %v40364_v20  ;;  %5126 = vmatprep.mubr.bf16.mxu0 %v46474_v0 }
 0x1d3   : > { %5179 = vmatprep.mubr.bf16.mxu1 %v46474_v0 }
 0x1d9   : > { %35572 = vmatmul.mubr.msk.bf16.vlgmr.msra.gmra.mrb[24].mxu0 %vm374_vm0, %v40363_v19 }
 0x1da   : > { %35574 = vmatmul.mubr.msk.bf16.vlgmr.msra.gmra.mrb[24].mxu1 %vm374_vm0, %v40363_v19  ;;  %5201 = vmatpush1.bf16.msra.mxu0 %v41271_v7 }
 0x1db   : > { %5136 = vmatprep.mubr.bf16.mxu0 %v46474_v0  ;;  %5189 = vmatprep.mubr.bf16.mxu1 %v46474_v0 }
 0x1dc   : > { %5254 = vmatpush1.bf16.msra.mxu1 %v41415_v22  ;;  %5687 = vmatprep.subr.bf16.mxu0 %v40370_v23 }
 0x1dd   : > { %5740 = vmatprep.subr.bf16.mxu1 %v41419_v24 }
 0x1e1   : > { %35573 = vmatmul.mubr.msk.bf16.gmra.mrb[28].mxu0 %vm374_vm0, %v40364_v20 }
 0x1e2   : > { %35575 = vmatmul.mubr.msk.bf16.gmra.mrb[28].mxu1 %vm374_vm0, %v40364_v20  ;;  %5232 = vmatprep.mubr.bf16.mxu0 %v46474_v0 }
 0x1e3   : > { %5285 = vmatprep.mubr.bf16.mxu1 %v46474_v0 }
 0x1e9   : > { %35576 = vmatmul.mubr.msk.bf16.vlgmr.msra.gmra.mrb[32].mxu0 %vm374_vm0, %v40363_v19 }
 0x1ea   : > { %35578 = vmatmul.mubr.msk.bf16.vlgmr.msra.gmra.mrb[32].mxu1 %vm374_vm0, %v40363_v19  ;;  %5688 = vmatpush1.bf16.msra.mxu0 %v40368_v25  ;;  %v41910_v19 = vpop.permute.xlu0 %10183 }
 0x1eb   : > { %5242 = vmatprep.mubr.bf16.mxu0 %v46474_v0  ;;  %5295 = vmatprep.mubr.bf16.mxu1 %v46474_v0  ;;  %46517 = vst [vmem:[#allocation6_spill] sm:$0xff] %v41910_v19 }
 0x1ec   : > { %5741 = vmatpush1.bf16.msra.mxu1 %v41434_v26  ;;  %5793 = vmatprep.subr.bf16.mxu0 %v41437_v27 }
 0x1ed   : > { %5846 = vmatprep.subr.bf16.mxu1 %v41440_v28 }
 0x1f1   : > { %35577 = vmatmul.mubr.msk.bf16.gmra.mrb[36].mxu0 %vm374_vm0, %v40364_v20 }
 0x1f2   : > { %35579 = vmatmul.mubr.msk.bf16.gmra.mrb[36].mxu1 %vm374_vm0, %v40364_v20  ;;  %5719 = vmatprep.mubr.bf16.mxu0 %v46474_v0 }
 0x1f3   : > { %5772 = vmatprep.mubr.bf16.mxu1 %v46474_v0 }
 0x1f9   : > { %35606 = vmatmul.mubr.msk.bf16.vlgmr.msra.gmra.mrb[0].mxu0 %vm374_vm0, %v41456_v29 }
 0x1fa   : > { %35608 = vmatmul.mubr.msk.bf16.vlgmr.msra.gmra.mrb[0].mxu1 %vm374_vm0, %v41456_v29  ;;  %5794 = vmatpush1.bf16.msra.mxu0 %v41459_v30 }
 0x1fb   : > { %5729 = vmatprep.mubr.bf16.mxu0 %v46474_v0  ;;  %5782 = vmatprep.mubr.bf16.mxu1 %v46474_v0 }
 0x1fc   : > { %5847 = vmatpush1.bf16.msra.mxu1 %v41462_v31  ;;  %5899 = vmatprep.subr.bf16.mxu0 %v41465_v32 }
 0x1fd   : > { %5952 = vmatprep.subr.bf16.mxu1 %v41468_v33 }
 0x201   : > { %35607 = vmatmul.mubr.msk.bf16.gmra.mrb[4].mxu0 %vm374_vm0, %v40378_v34 }
 0x202   : > { %35609 = vmatmul.mubr.msk.bf16.gmra.mrb[4].mxu1 %vm374_vm0, %v40378_v34  ;;  %5825 = vmatprep.mubr.bf16.mxu0 %v46474_v0 }
 0x203   : > { %5878 = vmatprep.mubr.bf16.mxu1 %v46474_v0 }
 0x209   : > { %35610 = vmatmul.mubr.msk.bf16.vlgmr.msra.gmra.mrb[8].mxu0 %vm374_vm0, %v41456_v29 }
 0x20a   : > { %35612 = vmatmul.mubr.msk.bf16.vlgmr.msra.gmra.mrb[8].mxu1 %vm374_vm0, %v41456_v29  ;;  %5900 = vmatpush1.bf16.msra.mxu0 %v41488_v35 }
 0x20b   : > { %5835 = vmatprep.mubr.bf16.mxu0 %v46474_v0  ;;  %5888 = vmatprep.mubr.bf16.mxu1 %v46474_v0 }
 0x20c   : > { %5953 = vmatpush1.bf16.msra.mxu1 %v41491_v36  ;;  %6005 = vmatprep.subr.bf16.mxu0 %v41494_v37 }
 0x20d   : > { %6058 = vmatprep.subr.bf16.mxu1 %v41160_v60  ;;  %v40421_v60 = vld [vmem:[%s46467_s1 + $0x88] sm:$0xff]  }
 0x211   : > { %35611 = vmatmul.mubr.msk.bf16.gmra.mrb[12].mxu0 %vm374_vm0, %v40378_v34 }
 0x212   : > { %35613 = vmatmul.mubr.msk.bf16.gmra.mrb[12].mxu1 %vm374_vm0, %v40378_v34  ;;  %5931 = vmatprep.mubr.bf16.mxu0 %v46474_v0 }
 0x213   : > { %5984 = vmatprep.mubr.bf16.mxu1 %v46474_v0 }
 0x219   : > { %35614 = vmatmul.mubr.msk.bf16.vlgmr.msra.gmra.mrb[16].mxu0 %vm374_vm0, %v41456_v29 }
 0x21a   : > { %35616 = vmatmul.mubr.msk.bf16.vlgmr.msra.gmra.mrb[16].mxu1 %vm374_vm0, %v41456_v29  ;;  %6006 = vmatpush1.bf16.msra.mxu0 %v41511_v38 }
 0x21b   : > { %5941 = vmatprep.mubr.bf16.mxu0 %v46474_v0  ;;  %5994 = vmatprep.mubr.bf16.mxu1 %v46474_v0 }
 0x21c   : > { %6059 = vmatpush1.bf16.msra.mxu1 %v41188_v1  ;;  %6111 = vmatprep.subr.bf16.mxu0 %v41328_v11  ;;  %v41721_v1 = vld [vmem:[%s40842_s24 + $0x68] ss:$120 sps:$4 sm:$0xff]  }
 0x21d   : > { %6164 = vmatprep.subr.bf16.mxu1 %v41514_v39 }
 0x221   : > { %35615 = vmatmul.mubr.msk.bf16.gmra.mrb[20].mxu0 %vm374_vm0, %v40378_v34 }
 0x222   : > { %35617 = vmatmul.mubr.msk.bf16.gmra.mrb[20].mxu1 %vm374_vm0, %v40378_v34  ;;  %6037 = vmatprep.mubr.bf16.mxu0 %v46474_v0 }
 0x223   : > { %6090 = vmatprep.mubr.bf16.mxu1 %v46474_v0 }
 0x229   : > { %35618 = vmatmul.mubr.msk.bf16.vlgmr.msra.gmra.mrb[24].mxu0 %vm374_vm0, %v41456_v29 }
 0x22a   : > { %35620 = vmatmul.mubr.msk.bf16.vlgmr.msra.gmra.mrb[24].mxu1 %vm374_vm0, %v41456_v29  ;;  %6112 = vmatpush1.bf16.msra.mxu0 %v41343_v12 }
 0x22b   : > { %6047 = vmatprep.mubr.bf16.mxu0 %v46474_v0  ;;  %6100 = vmatprep.mubr.bf16.mxu1 %v46474_v0 }
 0x22c   : > { %6165 = vmatpush1.bf16.msra.mxu1 %v41531_v40  ;;  %6598 = vmatprep.subr.bf16.mxu0 %v40396_v41 }
 0x22d   : > { %6651 = vmatprep.subr.bf16.mxu1 %v41535_v42 }
 0x231   : > { %35619 = vmatmul.mubr.msk.bf16.gmra.mrb[28].mxu0 %vm374_vm0, %v40378_v34 }
 0x232   : > { %35621 = vmatmul.mubr.msk.bf16.gmra.mrb[28].mxu1 %vm374_vm0, %v40378_v34  ;;  %6143 = vmatprep.mubr.bf16.mxu0 %v46474_v0 }
 0x233   : > { %6196 = vmatprep.mubr.bf16.mxu1 %v46474_v0 }
 0x239   : > { %35622 = vmatmul.mubr.msk.bf16.vlgmr.msra.gmra.mrb[32].mxu0 %vm374_vm0, %v41456_v29 }
 0x23a   : > { %35624 = vmatmul.mubr.msk.bf16.vlgmr.msra.gmra.mrb[32].mxu1 %vm374_vm0, %v41456_v29  ;;  %6599 = vmatpush1.bf16.msra.mxu0 %v40394_v43 }
 0x23b   : > { %6153 = vmatprep.mubr.bf16.mxu0 %v46474_v0  ;;  %6206 = vmatprep.mubr.bf16.mxu1 %v46474_v0 }
 0x23c   : > { %6652 = vmatpush1.bf16.msra.mxu1 %v41552_v44  ;;  %6704 = vmatprep.subr.bf16.mxu0 %v41555_v45 }
 0x23d   : > { %6757 = vmatprep.subr.bf16.mxu1 %v41558_v46 }
 0x241   : > { %35623 = vmatmul.mubr.msk.bf16.gmra.mrb[36].mxu0 %vm374_vm0, %v40378_v34 }
 0x242   : > { %35625 = vmatmul.mubr.msk.bf16.gmra.mrb[36].mxu1 %vm374_vm0, %v40378_v34  ;;  %6630 = vmatprep.mubr.bf16.mxu0 %v46474_v0 }
 0x243   : > { %6683 = vmatprep.mubr.bf16.mxu1 %v46474_v0 }
 0x249   : > { %35652 = vmatmul.mubr.msk.bf16.vlgmr.msra.gmra.mrb[0].mxu0 %vm374_vm0, %v40400_v47 }
 0x24a   : > { %35654 = vmatmul.mubr.msk.bf16.vlgmr.msra.gmra.mrb[0].mxu1 %vm374_vm0, %v40400_v47  ;;  %6705 = vmatpush1.bf16.msra.mxu0 %v41577_v48 }
 0x24b   : > { %6640 = vmatprep.mubr.bf16.mxu0 %v46474_v0  ;;  %6693 = vmatprep.mubr.bf16.mxu1 %v46474_v0 }
 0x24c   : > { %6758 = vmatpush1.bf16.msra.mxu1 %v41580_v49  ;;  %6810 = vmatprep.subr.bf16.mxu0 %v41583_v50 }
 0x24d   : > { %6863 = vmatprep.subr.bf16.mxu1 %v41586_v51 }
 0x251   : > { %35653 = vmatmul.mubr.msk.bf16.gmra.mrb[4].mxu0 %vm374_vm0, %v40404_v52 }
 0x252   : > { %35655 = vmatmul.mubr.msk.bf16.gmra.mrb[4].mxu1 %vm374_vm0, %v40404_v52  ;;  %6736 = vmatprep.mubr.bf16.mxu0 %v46474_v0 }
 0x253   : > { %6789 = vmatprep.mubr.bf16.mxu1 %v46474_v0 }
 0x259   : > { %35656 = vmatmul.mubr.msk.bf16.vlgmr.msra.gmra.mrb[8].mxu0 %vm374_vm0, %v40400_v47 }
 0x25a   : > { %35658 = vmatmul.mubr.msk.bf16.vlgmr.msra.gmra.mrb[8].mxu1 %vm374_vm0, %v40400_v47  ;;  %6811 = vmatpush1.bf16.msra.mxu0 %v41604_v53 }
 0x25b   : > { %6746 = vmatprep.mubr.bf16.mxu0 %v46474_v0  ;;  %6799 = vmatprep.mubr.bf16.mxu1 %v46474_v0 }
 0x25c   : > { %6864 = vmatpush1.bf16.msra.mxu1 %v41607_v54  ;;  %6916 = vmatprep.subr.bf16.mxu0 %v41610_v55 }
 0x25d   : > { %6969 = vmatprep.subr.bf16.mxu1 %v41256_v6  ;;  %v40789_v6 = vmov 3  }
 0x25e   : > { %40270 = vset.pattern.permute.xlu1 %v40789_v6 }
 0x25f   : > { %10362 = vperm.xlu1 %40270, %v234_v5  }
 0x261   : > { %35657 = vmatmul.mubr.msk.bf16.gmra.mrb[12].mxu0 %vm374_vm0, %v40404_v52 }
 0x262   : > { %35659 = vmatmul.mubr.msk.bf16.gmra.mrb[12].mxu1 %vm374_vm0, %v40404_v52  ;;  %6842 = vmatprep.mubr.bf16.mxu0 %v46474_v0 }
 0x263   : > { %6895 = vmatprep.mubr.bf16.mxu1 %v46474_v0 }
 0x269   : > { %35660 = vmatmul.mubr.msk.bf16.vlgmr.msra.gmra.mrb[16].mxu0 %vm374_vm0, %v40400_v47 }
 0x26a   : > { %35662 = vmatmul.mubr.msk.bf16.vlgmr.msra.gmra.mrb[16].mxu1 %vm374_vm0, %v40400_v47  ;;  %6917 = vmatpush1.bf16.msra.mxu0 %v41625_v56 }
 0x26b   : > { %6852 = vmatprep.mubr.bf16.mxu0 %v46474_v0  ;;  %6905 = vmatprep.mubr.bf16.mxu1 %v46474_v0 }
 0x26c   : > { %6970 = vmatpush1.bf16.msra.mxu1 %v41271_v7  ;;  %7022 = vmatprep.subr.bf16.mxu0 %v41400_v21  ;;  %v235_v7 = vld [vmem:[%s46470_s4 + $0x8] sm:$0xff] }
 0x26d   : > { %7075 = vmatprep.subr.bf16.mxu1 %v41628_v57  ;;  %10188 = vperm.xlu0 %40269, %v235_v7  }
 0x26e   : > { %10366 = vperm.xlu1 %40270, %v235_v7  }
 0x271   : > { %35661 = vmatmul.mubr.msk.bf16.gmra.mrb[20].mxu0 %vm374_vm0, %v40404_v52  ;;  %10193 = vperm.xlu0 %40269, %v236_v10  }
 0x272   : > { %35663 = vmatmul.mubr.msk.bf16.gmra.mrb[20].mxu1 %vm374_vm0, %v40404_v52  ;;  %6948 = vmatprep.mubr.bf16.mxu0 %v46474_v0 }
 0x273   : > { %7001 = vmatprep.mubr.bf16.mxu1 %v46474_v0  ;;  %40271 = vset.pattern.permute.xlu1 %v46474_v0 }
 0x275   : > { %40272 = vset.pattern.permute.xlu0 %v40789_v6 }
 0x276   : > { %10370 = vperm.xlu0 %40272, %v236_v10  }
 0x279   : > { %35664 = vmatmul.mubr.msk.bf16.vlgmr.msra.gmra.mrb[24].mxu0 %vm374_vm0, %v40400_v47 }
 0x27a   : > { %35666 = vmatmul.mubr.msk.bf16.vlgmr.msra.gmra.mrb[24].mxu1 %vm374_vm0, %v40400_v47  ;;  %7023 = vmatpush1.bf16.msra.mxu0 %v41415_v22 }
 0x27b   : > { %6958 = vmatprep.mubr.bf16.mxu0 %v46474_v0  ;;  %7011 = vmatprep.mubr.bf16.mxu1 %v46474_v0 }
 0x27c   : > { %7076 = vmatpush1.bf16.msra.mxu1 %v41643_v58  ;;  %7509 = vmatprep.subr.bf16.mxu0 %v41419_v24 }
 0x27d   : > { %7562 = vmatprep.subr.bf16.mxu1 %v41437_v27 }
 0x281   : > { %35665 = vmatmul.mubr.msk.bf16.gmra.mrb[28].mxu0 %vm374_vm0, %v40404_v52 }
 0x282   : > { %35667 = vmatmul.mubr.msk.bf16.gmra.mrb[28].mxu1 %vm374_vm0, %v40404_v52  ;;  %7054 = vmatprep.mubr.bf16.mxu0 %v46474_v0 }
 0x283   : > { %7107 = vmatprep.mubr.bf16.mxu1 %v46474_v0 }
 0x289   : > { %35668 = vmatmul.mubr.msk.bf16.vlgmr.msra.gmra.mrb[32].mxu0 %vm374_vm0, %v40400_v47 }
 0x28a   : > { %35670 = vmatmul.mubr.msk.bf16.vlgmr.msra.gmra.mrb[32].mxu1 %vm374_vm0, %v40400_v47  ;;  %7510 = vmatpush1.bf16.msra.mxu0 %v41434_v26 }
 0x28b   : > { %7064 = vmatprep.mubr.bf16.mxu0 %v46474_v0  ;;  %7117 = vmatprep.mubr.bf16.mxu1 %v46474_v0 }
 0x28c   : > { %7563 = vmatpush1.bf16.msra.mxu1 %v41459_v30  ;;  %7615 = vmatprep.subr.bf16.mxu0 %v41440_v28 }
 0x28d   : > { %7668 = vmatprep.subr.bf16.mxu1 %v41465_v32 }
 0x291   : > { %35669 = vmatmul.mubr.msk.bf16.gmra.mrb[36].mxu0 %vm374_vm0, %v40404_v52 }
 0x292   : > { %35671 = vmatmul.mubr.msk.bf16.gmra.mrb[36].mxu1 %vm374_vm0, %v40404_v52  ;;  %7541 = vmatprep.mubr.bf16.mxu0 %v46474_v0 }
 0x293   : > { %7594 = vmatprep.mubr.bf16.mxu1 %v46474_v0 }
 0x299   : > { %35698 = vmatmul.mubr.msk.bf16.vlgmr.msra.gmra.mrb[0].mxu0 %vm374_vm0, %v40420_v59 }
 0x29a   : > { %35700 = vmatmul.mubr.msk.bf16.vlgmr.msra.gmra.mrb[0].mxu1 %vm374_vm0, %v40420_v59  ;;  %7616 = vmatpush1.bf16.msra.mxu0 %v41462_v31 }
 0x29b   : > { %7551 = vmatprep.mubr.bf16.mxu0 %v46474_v0  ;;  %7604 = vmatprep.mubr.bf16.mxu1 %v46474_v0 }
 0x29c   : > { %7669 = vmatpush1.bf16.msra.mxu1 %v41488_v35  ;;  %7721 = vmatprep.subr.bf16.mxu0 %v41468_v33 }
 0x29d   : > { %7774 = vmatprep.subr.bf16.mxu1 %v41494_v37 }
 0x2a1   : > { %35699 = vmatmul.mubr.msk.bf16.gmra.mrb[4].mxu0 %vm374_vm0, %v40421_v60 }
 0x2a2   : > { %35701 = vmatmul.mubr.msk.bf16.gmra.mrb[4].mxu1 %vm374_vm0, %v40421_v60  ;;  %7647 = vmatprep.mubr.bf16.mxu0 %v46474_v0 }
 0x2a3   : > { %7700 = vmatprep.mubr.bf16.mxu1 %v46474_v0 }
 0x2a9   : > { %35702 = vmatmul.mubr.msk.bf16.vlgmr.msra.gmra.mrb[8].mxu0 %vm374_vm0, %v40420_v59 }
 0x2aa   : > { %35704 = vmatmul.mubr.msk.bf16.vlgmr.msra.gmra.mrb[8].mxu1 %vm374_vm0, %v40420_v59  ;;  %7722 = vmatpush1.bf16.msra.mxu0 %v41491_v36 }
 0x2ab   : > { %7657 = vmatprep.mubr.bf16.mxu0 %v46474_v0  ;;  %7710 = vmatprep.mubr.bf16.mxu1 %v46474_v0 }
 0x2ac   : > { %7775 = vmatpush1.bf16.msra.mxu1 %v41511_v38  ;;  %7827 = vmatprep.subr.bf16.mxu0 %v41688_v61 }
 0x2ad   : > { %7880 = vmatprep.subr.bf16.mxu1 %v41328_v11  ;;  %v237_v11 = vld [vmem:[%s46470_s4 + $0x18] sm:$0xff] }
 0x2ae   : > { %10198 = vperm.xlu1 %40271, %v237_v11  }
 0x2b1   : > { %35703 = vmatmul.mubr.msk.bf16.gmra.mrb[12].mxu0 %vm374_vm0, %v40421_v60 }
 0x2b2   : > { %35705 = vmatmul.mubr.msk.bf16.gmra.mrb[12].mxu1 %vm374_vm0, %v40421_v60  ;;  %7753 = vmatprep.mubr.bf16.mxu0 %v46474_v0 }
 0x2b3   : > { %7806 = vmatprep.mubr.bf16.mxu1 %v46474_v0  ;;  %40273 = vset.pattern.permute.xlu1 %v40789_v6 }
 0x2b4   : > { %10374 = vperm.xlu1 %40273, %v237_v11  }
 0x2b9   : > { %35706 = vmatmul.mubr.msk.bf16.vlgmr.msra.gmra.mrb[16].mxu0 %vm374_vm0, %v40420_v59 }
 0x2ba   : > { %35708 = vmatmul.mubr.msk.bf16.vlgmr.msra.gmra.mrb[16].mxu1 %vm374_vm0, %v40420_v59  ;;  %7828 = vmatpush1.bf16.msra.mxu0 %v41703_v62 }
 0x2bb   : > { %7763 = vmatprep.mubr.bf16.mxu0 %v46474_v0  ;;  %7816 = vmatprep.mubr.bf16.mxu1 %v46474_v0 }
 0x2bc   : > { %7881 = vmatpush1.bf16.msra.mxu1 %v41343_v12  ;;  %7933 = vmatprep.subr.bf16.mxu0 %v41514_v39  ;;  %v40433_v12 = vld [vmem:[%s40842_s24 + $0x6c] ss:$120 sps:$4 sm:$0xff]  }
 0x2bd   : > { %7986 = vmatprep.subr.bf16.mxu1 %v41706_v63 }
 0x2c1   : > { %35707 = vmatmul.mubr.msk.bf16.gmra.mrb[20].mxu0 %vm374_vm0, %v40421_v60 }
 0x2c2   : > { %35709 = vmatmul.mubr.msk.bf16.gmra.mrb[20].mxu1 %vm374_vm0, %v40421_v60  ;;  %7859 = vmatprep.mubr.bf16.mxu0 %v46474_v0 }
 0x2c3   : > { %7912 = vmatprep.mubr.bf16.mxu1 %v46474_v0 }
 0x2c9   : > { %35710 = vmatmul.mubr.msk.bf16.vlgmr.msra.gmra.mrb[24].mxu0 %vm374_vm0, %v40420_v59 }
 0x2ca   : > { %35712 = vmatmul.mubr.msk.bf16.vlgmr.msra.gmra.mrb[24].mxu1 %vm374_vm0, %v40420_v59  ;;  %7934 = vmatpush1.bf16.msra.mxu0 %v41531_v40 }
 0x2cb   : > { %7869 = vmatprep.mubr.bf16.mxu0 %v46474_v0  ;;  %7922 = vmatprep.mubr.bf16.mxu1 %v46474_v0 }
 0x2cc   : > { %7987 = vmatpush1.bf16.msra.mxu1 %v41721_v1  ;;  %8420 = vmatprep.subr.bf16.mxu0 %v41535_v42 }
 0x2cd   : > { %8473 = vmatprep.subr.bf16.mxu1 %v41555_v45 }
 0x2d1   : > { %35711 = vmatmul.mubr.msk.bf16.gmra.mrb[28].mxu0 %vm374_vm0, %v40421_v60 }
 0x2d2   : > { %35713 = vmatmul.mubr.msk.bf16.gmra.mrb[28].mxu1 %vm374_vm0, %v40421_v60  ;;  %7965 = vmatprep.mubr.bf16.mxu0 %v46474_v0 }
 0x2d3   : > { %8018 = vmatprep.mubr.bf16.mxu1 %v46474_v0 }
 0x2d9   : > { %35714 = vmatmul.mubr.msk.bf16.vlgmr.msra.gmra.mrb[32].mxu0 %vm374_vm0, %v40420_v59 }
 0x2da   : > { %35716 = vmatmul.mubr.msk.bf16.vlgmr.msra.gmra.mrb[32].mxu1 %vm374_vm0, %v40420_v59  ;;  %8421 = vmatpush1.bf16.msra.mxu0 %v41552_v44 }
 0x2db   : > { %7975 = vmatprep.mubr.bf16.mxu0 %v46474_v0  ;;  %8028 = vmatprep.mubr.bf16.mxu1 %v46474_v0 }
 0x2dc   : > { %8474 = vmatpush1.bf16.msra.mxu1 %v41577_v48  ;;  %8526 = vmatprep.subr.bf16.mxu0 %v41558_v46 }
 0x2dd   : > { %8579 = vmatprep.subr.bf16.mxu1 %v41583_v50 }
 0x2de   : > { %v41912_v20 = vpop.permute.xlu1 %10362 }
 0x2df   : > { %46518 = vst [vmem:[#allocation7_spill] sm:$0xff] %v41912_v20 }
 0x2e1   : > { %35715 = vmatmul.mubr.msk.bf16.gmra.mrb[36].mxu0 %vm374_vm0, %v40421_v60 }
 0x2e2   : > { %35717 = vmatmul.mubr.msk.bf16.gmra.mrb[36].mxu1 %vm374_vm0, %v40421_v60  ;;  %8452 = vmatprep.mubr.bf16.mxu0 %v46474_v0 }
 0x2e3   : > { %8505 = vmatprep.mubr.bf16.mxu1 %v46474_v0 }
 0x2e9   : > { %35744 = vmatmul.mubr.msk.bf16.vlgmr.msra.gmra.mrb[0].mxu0 %vm374_vm0, %v41750_v2 }
 0x2ea   : > { %35746 = vmatmul.mubr.msk.bf16.vlgmr.msra.gmra.mrb[0].mxu1 %vm374_vm0, %v41750_v2  ;;  %8527 = vmatpush1.bf16.msra.mxu0 %v41580_v49 }
 0x2eb   : > { %8462 = vmatprep.mubr.bf16.mxu0 %v46474_v0  ;;  %8515 = vmatprep.mubr.bf16.mxu1 %v46474_v0 }
 0x2ec   : > { %8580 = vmatpush1.bf16.msra.mxu1 %v41604_v53  ;;  %8632 = vmatprep.subr.bf16.mxu0 %v41586_v51 }
 0x2ed   : > { %8685 = vmatprep.subr.bf16.mxu1 %v41610_v55 }
 0x2f1   : > { %35745 = vmatmul.mubr.msk.bf16.gmra.mrb[4].mxu0 %vm374_vm0, %v41765_v3 }
 0x2f2   : > { %35747 = vmatmul.mubr.msk.bf16.gmra.mrb[4].mxu1 %vm374_vm0, %v41765_v3  ;;  %8558 = vmatprep.mubr.bf16.mxu0 %v46474_v0 }
 0x2f3   : > { %8611 = vmatprep.mubr.bf16.mxu1 %v46474_v0 }
 0x2f9   : > { %35748 = vmatmul.mubr.msk.bf16.vlgmr.msra.gmra.mrb[8].mxu0 %vm374_vm0, %v41750_v2 }
 0x2fa   : > { %35750 = vmatmul.mubr.msk.bf16.vlgmr.msra.gmra.mrb[8].mxu1 %vm374_vm0, %v41750_v2  ;;  %8633 = vmatpush1.bf16.msra.mxu0 %v41607_v54 }
 0x2fb   : > { %8568 = vmatprep.mubr.bf16.mxu0 %v46474_v0  ;;  %8621 = vmatprep.mubr.bf16.mxu1 %v46474_v0 }
 0x2fc   : > { %8686 = vmatpush1.bf16.msra.mxu1 %v41625_v56  ;;  %8738 = vmatprep.subr.bf16.mxu0 %v40432_v4 }
 0x2fd   : > { %8791 = vmatprep.subr.bf16.mxu1 %v41400_v21  ;;  %v41914_v21 = vpop.permute.xlu0 %10188 }
 0x2fe   : > { %46519 = vst [vmem:[#allocation8_spill] sm:$0xff] %v41914_v21 }
 0x301   : > { %35749 = vmatmul.mubr.msk.bf16.gmra.mrb[12].mxu0 %vm374_vm0, %v41765_v3  ;;  %v41931_v43 = vpop.permute.xlu0 %10193 }
 0x302   : > { %35751 = vmatmul.mubr.msk.bf16.gmra.mrb[12].mxu1 %vm374_vm0, %v41765_v3  ;;  %8664 = vmatprep.mubr.bf16.mxu0 %v46474_v0 }
 0x303   : > { %8717 = vmatprep.mubr.bf16.mxu1 %v46474_v0 }
 0x305   : > { %v41951_v5 = vpop.permute.xlu0 %10370 }
 0x309   : > { %35752 = vmatmul.mubr.msk.bf16.vlgmr.msra.gmra.mrb[16].mxu0 %vm374_vm0, %v41750_v2 }
 0x30a   : > { %35754 = vmatmul.mubr.msk.bf16.vlgmr.msra.gmra.mrb[16].mxu1 %vm374_vm0, %v41750_v2  ;;  %8739 = vmatpush1.bf16.msra.mxu0 %v40430_v8 }
 0x30b   : > { %8674 = vmatprep.mubr.bf16.mxu0 %v46474_v0  ;;  %8727 = vmatprep.mubr.bf16.mxu1 %v46474_v0 }
 0x30c   : > { %8792 = vmatpush1.bf16.msra.mxu1 %v41415_v22  ;;  %8844 = vmatprep.subr.bf16.mxu0 %v41628_v57  ;;  %v41916_v22 = vpop.permute.xlu1 %10366 }
 0x30d   : > { %8897 = vmatprep.subr.bf16.mxu1 %v40435_v9  ;;  %46520 = vst [vmem:[#allocation9_spill] sm:$0xff] %v41916_v22 }
 0x311   : > { %35753 = vmatmul.mubr.msk.bf16.gmra.mrb[20].mxu0 %vm374_vm0, %v41765_v3 }
 0x312   : > { %35755 = vmatmul.mubr.msk.bf16.gmra.mrb[20].mxu1 %vm374_vm0, %v41765_v3  ;;  %8770 = vmatprep.mubr.bf16.mxu0 %v46474_v0 }
 0x313   : > { %8823 = vmatprep.mubr.bf16.mxu1 %v46474_v0 }
 0x319   : > { %35756 = vmatmul.mubr.msk.bf16.vlgmr.msra.gmra.mrb[24].mxu0 %vm374_vm0, %v41750_v2 }
 0x31a   : > { %35758 = vmatmul.mubr.msk.bf16.vlgmr.msra.gmra.mrb[24].mxu1 %vm374_vm0, %v41750_v2  ;;  %8845 = vmatpush1.bf16.msra.mxu0 %v41643_v58 }
 0x31b   : > { %8780 = vmatprep.mubr.bf16.mxu0 %v46474_v0  ;;  %8833 = vmatprep.mubr.bf16.mxu1 %v46474_v0 }
 0x31c   : > { %8898 = vmatpush1.bf16.msra.mxu1 %v40433_v12  ;;  %9331 = vmatprep.subr.bf16.mxu0 %v41437_v27 }
 0x31d   : > { %9384 = vmatprep.subr.bf16.mxu1 %v41440_v28 }
 0x321   : > { %35757 = vmatmul.mubr.msk.bf16.gmra.mrb[28].mxu0 %vm374_vm0, %v41765_v3 }
 0x322   : > { %35759 = vmatmul.mubr.msk.bf16.gmra.mrb[28].mxu1 %vm374_vm0, %v41765_v3  ;;  %8876 = vmatprep.mubr.bf16.mxu0 %v46474_v0 }
 0x323   : > { %8929 = vmatprep.mubr.bf16.mxu1 %v46474_v0 }
 0x329   : > { %35760 = vmatmul.mubr.msk.bf16.vlgmr.msra.gmra.mrb[32].mxu0 %vm374_vm0, %v41750_v2 }
 0x32a   : > { %35762 = vmatmul.mubr.msk.bf16.vlgmr.msra.gmra.mrb[32].mxu1 %vm374_vm0, %v41750_v2  ;;  %9332 = vmatpush1.bf16.msra.mxu0 %v41459_v30 }
 0x32b   : > { %8886 = vmatprep.mubr.bf16.mxu0 %v46474_v0  ;;  %8939 = vmatprep.mubr.bf16.mxu1 %v46474_v0 }
 0x32c   : > { %9385 = vmatpush1.bf16.msra.mxu1 %v41462_v31  ;;  %9437 = vmatprep.subr.bf16.mxu0 %v41465_v32 }
 0x32d   : > { %9490 = vmatprep.subr.bf16.mxu1 %v41468_v33  ;;  %v41929_v42 = vpop.permute.xlu1 %10198 }
 0x331   : > { %35761 = vmatmul.mubr.msk.bf16.gmra.mrb[36].mxu0 %vm374_vm0, %v41765_v3 }
 0x332   : > { %35763 = vmatmul.mubr.msk.bf16.gmra.mrb[36].mxu1 %vm374_vm0, %v41765_v3  ;;  %9363 = vmatprep.mubr.bf16.mxu0 %v46474_v0 }
 0x333   : > { %9416 = vmatprep.mubr.bf16.mxu1 %v46474_v0  ;;  %v41962_v10 = vpop.permute.xlu1 %10374 }
 0x339   : > { %35790 = vmatmul.mubr.msk.bf16.vlgmr.msra.gmra.mrb[0].mxu0 %vm374_vm0, %v40436_v13 }
 0x33a   : > { %35792 = vmatmul.mubr.msk.bf16.vlgmr.msra.gmra.mrb[0].mxu1 %vm374_vm0, %v40436_v13  ;;  %9373 = vmatprep.mubr.bf16.mxu0 %v46474_v0 }
 0x33b   : > { %9426 = vmatprep.mubr.bf16.mxu1 %v46474_v0  ;;  %9438 = vmatpush1.bf16.msra.mxu0 %v41488_v35 }
 0x33c   : > { %9491 = vmatpush1.bf16.msra.mxu1 %v41491_v36  ;;  %9543 = vmatprep.subr.bf16.mxu0 %v41494_v37 }
 0x33d   : > { %9596 = vmatprep.subr.bf16.mxu1 %v41688_v61 }
 0x341   : > { %35791 = vmatmul.mubr.msk.bf16.gmra.mrb[4].mxu0 %vm374_vm0, %v40437_v14 }
 0x342   : > { %35793 = vmatmul.mubr.msk.bf16.gmra.mrb[4].mxu1 %vm374_vm0, %v40437_v14  ;;  %9469 = vmatprep.mubr.bf16.mxu0 %v46474_v0 }
 0x343   : > { %9522 = vmatprep.mubr.bf16.mxu1 %v46474_v0 }
 0x349   : > { %35794 = vmatmul.mubr.msk.bf16.vlgmr.msra.gmra.mrb[8].mxu0 %vm374_vm0, %v40436_v13 }
 0x34a   : > { %35796 = vmatmul.mubr.msk.bf16.vlgmr.msra.gmra.mrb[8].mxu1 %vm374_vm0, %v40436_v13  ;;  %9479 = vmatprep.mubr.bf16.mxu0 %v46474_v0 }
 0x34b   : > { %9532 = vmatprep.mubr.bf16.mxu1 %v46474_v0  ;;  %9544 = vmatpush1.bf16.msra.mxu0 %v41511_v38 }
 0x34c   : > { %9597 = vmatpush1.bf16.msra.mxu1 %v41703_v62  ;;  %9649 = vmatprep.subr.bf16.mxu0 %v40440_v15 }
 0x34d   : > { %9702 = vmatprep.subr.bf16.mxu1 %v41514_v39 }
 0x351   : > { %35795 = vmatmul.mubr.msk.bf16.gmra.mrb[12].mxu0 %vm374_vm0, %v40437_v14 }
 0x352   : > { %35797 = vmatmul.mubr.msk.bf16.gmra.mrb[12].mxu1 %vm374_vm0, %v40437_v14  ;;  %9575 = vmatprep.mubr.bf16.mxu0 %v46474_v0 }
 0x353   : > { %9628 = vmatprep.mubr.bf16.mxu1 %v46474_v0 }
 0x359   : > { %35798 = vmatmul.mubr.msk.bf16.vlgmr.msra.gmra.mrb[16].mxu0 %vm374_vm0, %v40436_v13 }
 0x35a   : > { %35800 = vmatmul.mubr.msk.bf16.vlgmr.msra.gmra.mrb[16].mxu1 %vm374_vm0, %v40436_v13  ;;  %9585 = vmatprep.mubr.bf16.mxu0 %v46474_v0 }
 0x35b   : > { %9638 = vmatprep.mubr.bf16.mxu1 %v46474_v0  ;;  %9650 = vmatpush1.bf16.msra.mxu0 %v40438_v16 }
 0x35c   : > { %9703 = vmatpush1.bf16.msra.mxu1 %v41531_v40  ;;  %9755 = vmatprep.subr.bf16.mxu0 %v41706_v63 }
 0x35d   : > { %9808 = vmatprep.subr.bf16.mxu1 %v40443_v17 }
 0x361   : > { %35799 = vmatmul.mubr.msk.bf16.gmra.mrb[20].mxu0 %vm374_vm0, %v40437_v14 }
 0x362   : > { %35801 = vmatmul.mubr.msk.bf16.gmra.mrb[20].mxu1 %vm374_vm0, %v40437_v14  ;;  %9681 = vmatprep.mubr.bf16.mxu0 %v46474_v0 }
 0x363   : > { %9734 = vmatprep.mubr.bf16.mxu1 %v46474_v0 }
 0x369   : > { %35802 = vmatmul.mubr.msk.bf16.vlgmr.msra.gmra.mrb[24].mxu0 %vm374_vm0, %v40436_v13 }
 0x36a   : > { %35804 = vmatmul.mubr.msk.bf16.vlgmr.msra.gmra.mrb[24].mxu1 %vm374_vm0, %v40436_v13  ;;  %9691 = vmatprep.mubr.bf16.mxu0 %v46474_v0 }
 0x36b   : > { %9744 = vmatprep.mubr.bf16.mxu1 %v46474_v0  ;;  %9756 = vmatpush1.bf16.msra.mxu0 %v41721_v1 }
 0x36c   : > { %9809 = vmatpush1.bf16.msra.mxu1 %v40441_v18 }
 0x371   : > { %35803 = vmatmul.mubr.msk.bf16.gmra.mrb[28].mxu0 %vm374_vm0, %v40437_v14 }
 0x372   : > { %35805 = vmatmul.mubr.msk.bf16.gmra.mrb[28].mxu1 %vm374_vm0, %v40437_v14  ;;  %9787 = vmatprep.mubr.bf16.mxu0 %v46474_v0 }
 0x373   : > { %9840 = vmatprep.mubr.bf16.mxu1 %v46474_v0 }
 0x379   : > { %35806 = vmatmul.mubr.msk.bf16.vlgmr.msra.gmra.mrb[32].mxu0 %vm374_vm0, %v40436_v13 }
 0x37a   : > { %35808 = vmatmul.mubr.msk.bf16.vlgmr.msra.gmra.mrb[32].mxu1 %vm374_vm0, %v40436_v13  ;;  %9797 = vmatprep.mubr.bf16.mxu0 %v46474_v0 }
 0x37b   : > { %9850 = vmatprep.mubr.bf16.mxu1 %v46474_v0 }
 0x381   : > { %35807 = vmatmul.mubr.msk.bf16.gmra.mrb[36].mxu0 %vm374_vm0, %v40437_v14 }
 0x382   : > { %35809 = vmatmul.mubr.msk.bf16.gmra.mrb[36].mxu1 %vm374_vm0, %v40437_v14  ;;  %10700 = vmatprep.mubr.bf16.mxu0 %v46474_v0 }
 0x383   : > { %10763 = vmatprep.mubr.bf16.mxu1 %v46474_v0 }
 0x40c   : > { %v9365_v23 = vpop.f32.mrb[0].mxu0 }
 0x40d   : > { %v9418_v24 = vpop.f32.mrb[0].mxu1  ;;  %v10201_v25 = vadd.f32 %v41910_v19, %v9365_v23  ;;  %v9367_v27 = vpop.f32.mrb[1].mxu0 }
 0x40e   : > { %v10203_v26 = vadd.f32 %v41910_v19, %v9418_v24  ;;  %v9420_v28 = vpop.f32.mrb[1].mxu1  ;;  %v10202_v29 = vadd.f32 %v41910_v19, %v9367_v27  ;;  %v9369_v31 = vpop.f32.mrb[2].mxu0 }
 0x40f   : > { %v10204_v30 = vadd.f32 %v41910_v19, %v9420_v28  ;;  %v9422_v32 = vpop.f32.mrb[2].mxu1  ;;  %v9371_v33 = vpop.f32.mrb[3].mxu0  ;;  %vm10281_vm1 = vcmp.ge.f32.partialorder %v10201_v25, 0.0  ;;  %v10377_v35 = vmul.f32 %v41912_v20, %v10201_v25  ;;  %v10221_v36 = vadd.f32 %v41914_v21, %v9369_v31 }
 0x410   : > { %v9424_v34 = vpop.f32.mrb[3].mxu1  ;;  %vm10283_vm2 = vcmp.ge.f32.partialorder %v10203_v26, 0.0  ;;  %v10378_v37 = vmul.f32 %v41912_v20, %v10202_v29  ;;  %v10223_v38 = vadd.f32 %v41914_v21, %v9422_v32  ;;  %v10222_v39 = vadd.f32 %v41914_v21, %v9371_v33 }
 0x411   : > { %vm10284_vm3 = vcmp.ge.f32.partialorder %v10204_v30, 0.0  ;;  %vm10301_vm4 = vcmp.ge.f32.partialorder %v10221_v36, 0.0  ;;  %v10397_v40 = vmul.f32 %v41916_v22, %v10221_v36  ;;  %v10224_v41 = vadd.f32 %v41914_v21, %v9424_v34 }
 0x412   : > { %v10380_v44 = vmul.f32 %v41912_v20, %v10204_v30  ;;  %vm10303_vm5 = vcmp.ge.f32.partialorder %v10223_v38, 0.0  ;;  %v10399_v45 = vmul.f32 %v41916_v22, %v10223_v38  ;;  %v10398_v46 = vmul.f32 %v41916_v22, %v10222_v39 }
 0x413   : > { %vm10304_vm6 = vcmp.ge.f32.partialorder %v10224_v41, 0.0  ;;  %v10400_v47 = vmul.f32 %v41916_v22, %v10224_v41  ;;  %vm10282_vm7 = vcmp.ge.f32.partialorder %v10202_v29, 0.0  ;;  %vm10302_vm8 = vcmp.ge.f32.partialorder %v10222_v39, 0.0 }
 0x414   : > { %v9375_v48 = vpop.f32.mrb[4].mxu0  ;;  %v10457_v50 = vsel %vm10281_vm1, %v10201_v25, %v10377_v35  ;;  %v10379_v51 = vmul.f32 %v41912_v20, %v10203_v26  ;;  %v10477_v52 = vsel %vm10301_vm4, %v10221_v36, %v10397_v40  ;;  %v10478_v61 = vsel %vm10302_vm8, %v10222_v39, %v10398_v46 }
 0x415   : > { %v9428_v49 = vpop.f32.mrb[4].mxu1  ;;  %v41941_v53 = vadd.f32 %v41931_v43, %v9375_v48  ;;  %v9377_v54 = vpop.f32.mrb[5].mxu0  ;;  %v10480_v56 = vsel %vm10304_vm6, %v10224_v41, %v10400_v47  ;;  %v10460_v62 = vsel %vm10284_vm3, %v10204_v30, %v10380_v44  ;;  %v10479_v63 = vsel %vm10303_vm5, %v10223_v38, %v10399_v45 }
 0x416   : > { %v9430_v55 = vpop.f32.mrb[5].mxu1  ;;  %v10242_v57 = vadd.f32 %v41931_v43, %v9377_v54  ;;  %v9379_v59 = vpop.f32.mrb[6].mxu0  ;;  %v41948_v1 = vadd.f32 %v41931_v43, %v9428_v49  ;;  %v10458_v4 = vsel %vm10282_vm7, %v10202_v29, %v10378_v37  ;;  %v10459_v11 = vsel %vm10283_vm2, %v10203_v26, %v10379_v51 }
 0x417   : > { %v10244_v58 = vadd.f32 %v41931_v43, %v9430_v55  ;;  %v9432_v60 = vpop.f32.mrb[6].mxu1  ;;  %v9381_v2 = vpop.f32.mrb[7].mxu0  ;;  %v41954_v6 = vadd.f32 %v41929_v42, %v9379_v59  ;;  %v41960_v9 = vpack.c.bf16 %v10478_v61, %v10458_v4  ;;  %v41968_v13 = vpack.c.bf16 %v10480_v56, %v10460_v62 }
 0x418   : > { %v9434_v3 = vpop.f32.mrb[7].mxu1  ;;  %v10262_v7 = vadd.f32 %v41929_v42, %v9381_v2  ;;  %v41966_v12 = vadd.f32 %v41929_v42, %v9432_v60  ;;  %v10537_v14 = vpack.c.bf16 %v10477_v52, %v10457_v50  ;;  %vm10321_vm9 = vcmp.ge.f32.partialorder %v41941_v53, 0.0 }
 0x419   : > { %v41958_v8 = vadd.f32 %v41929_v42, %v9434_v3  ;;  %vm10324_vm10 = vcmp.ge.f32.partialorder %v10244_v58, 0.0  ;;  %10668 = vmatprep.subr.bf16.mxu0 %v41960_v9  ;;  %v41972_v15 = vpack.c.bf16 %v10479_v63, %v10459_v11  ;;  %vm10322_vm11 = vcmp.ge.f32.partialorder %v10242_v57, 0.0  ;;  %10731 = vmatprep.subr.bf16.mxu1 %v41968_v13 }
 0x41a   : > { %vm10342_vm12 = vcmp.ge.f32.partialorder %v10262_v7, 0.0  ;;  %10669 = vmatpush1.bf16.msra.mxu0 %v10537_v14  ;;  %v10418_v16 = vmul.f32 %v41951_v5, %v10242_v57  ;;  %v10438_v17 = vmul.f32 %v41962_v10, %v10262_v7  ;;  %v10420_v18 = vmul.f32 %v41951_v5, %v10244_v58 }
 0x41b   : > { %vm10344_vm13 = vcmp.ge.f32.partialorder %v41958_v8, 0.0  ;;  %vm10341_vm14 = vcmp.ge.f32.partialorder %v41954_v6, 0.0  ;;  %10732 = vmatpush1.bf16.msra.mxu1 %v41972_v15  ;;  %v10440_v25 = vmul.f32 %v41962_v10, %v41958_v8  ;;  %v10417_v26 = vmul.f32 %v41951_v5, %v41941_v53 }
 0x41c   : > { %v9471_v23 = vpop.f32.mrb[8].mxu0  ;;  %v10437_v27 = vmul.f32 %v41962_v10, %v41954_v6  ;;  %v41989_v28 = vmul.f32 %v41951_v5, %v41948_v1  ;;  %vm10323_vm15 = vcmp.ge.f32.partialorder %v41948_v1, 0.0  ;;  %v10498_v33 = vsel %vm10322_vm11, %v10242_v57, %v10418_v16 }
 0x41d   : > { %v9524_v24 = vpop.f32.mrb[8].mxu1  ;;  %v10205_v29 = vadd.f32 %v41910_v19, %v9471_v23  ;;  %v9473_v31 = vpop.f32.mrb[9].mxu0  ;;  %v10518_v34 = vsel %vm10342_vm12, %v10262_v7, %v10438_v17  ;;  %v10500_v40 = vsel %vm10324_vm10, %v10244_v58, %v10420_v18  ;;  %vm10343_vm1 = vcmp.ge.f32.partialorder %v41966_v12, 0.0 }
 0x41e   : > { %v10207_v30 = vadd.f32 %v41910_v19, %v9524_v24  ;;  %v9526_v32 = vpop.f32.mrb[9].mxu1  ;;  %v10206_v35 = vadd.f32 %v41910_v19, %v9473_v31  ;;  %v9475_v37 = vpop.f32.mrb[10].mxu0  ;;  %v41998_v39 = vpack.c.bf16 %v10518_v34, %v10498_v33  ;;  %vm10658_vm6 = vcmask 261120  }
 0x41f   : > { %v10208_v36 = vadd.f32 %v41910_v19, %v9526_v32  ;;  %v9528_v38 = vpop.f32.mrb[10].mxu1  ;;  %vm10285_vm2 = vcmp.ge.f32.partialorder %v10205_v29, 0.0  ;;  %v10381_v41 = vmul.f32 %v41912_v20, %v10205_v29  ;;  %v9477_v45 = vpop.f32.mrb[11].mxu0  ;;  %v10225_v51 = vadd.f32 %v41914_v21, %v9475_v37 }
 0x420   : > { %vm10287_vm3 = vcmp.ge.f32.partialorder %v10207_v30, 0.0  ;;  %v10383_v44 = vmul.f32 %v41912_v20, %v10207_v30  ;;  %v9530_v46 = vpop.f32.mrb[11].mxu1  ;;  %vm10286_vm4 = vcmp.ge.f32.partialorder %v10206_v35, 0.0  ;;  %v10382_v47 = vmul.f32 %v41912_v20, %v10206_v35  ;;  %10670 = vmatprep.subr.bf16.mxu0 %v41998_v39 }
 0x421   : > { %vm10288_vm5 = vcmp.ge.f32.partialorder %v10208_v36, 0.0  ;;  %v10384_v48 = vmul.f32 %v41912_v20, %v10208_v36  ;;  %v10461_v49 = vsel %vm10285_vm2, %v10205_v29, %v10381_v41  ;;  %v10227_v52 = vadd.f32 %v41914_v21, %v9528_v38 }
 0x422   : > { %v10463_v50 = vsel %vm10287_vm3, %v10207_v30, %v10383_v44  ;;  %v10462_v54 = vsel %vm10286_vm4, %v10206_v35, %v10382_v47  ;;  %v10226_v56 = vadd.f32 %v41914_v21, %v9477_v45  ;;  %v10228_v57 = vadd.f32 %v41914_v21, %v9530_v46 }
 0x423   : > { %v10464_v55 = vsel %vm10288_vm5, %v10208_v36, %v10384_v48  ;;  %vm10305_vm7 = vcmp.ge.f32.partialorder %v10225_v51, 0.0  ;;  %v10401_v58 = vmul.f32 %v41916_v22, %v10225_v51  ;;  %vm10307_vm8 = vcmp.ge.f32.partialorder %v10227_v52, 0.0  ;;  %v42045_v36 = vld [vmem:[%s46468_s2] sm:$0xff]  }
 0x424   : > { %v10403_v59 = vmul.f32 %v41916_v22, %v10227_v52  ;;  %vm10306_vm10 = vcmp.ge.f32.partialorder %v10226_v56, 0.0  ;;  %v10402_v60 = vmul.f32 %v41916_v22, %v10226_v56  ;;  %vm10308_vm11 = vcmp.ge.f32.partialorder %v10228_v57, 0.0  ;;  %v9481_v62 = vpop.f32.mrb[12].mxu0 }
 0x425   : > { %v10404_v61 = vmul.f32 %v41916_v22, %v10228_v57  ;;  %v9534_v63 = vpop.f32.mrb[12].mxu1  ;;  %v10481_v2 = vsel %vm10305_vm7, %v10225_v51, %v10401_v58  ;;  %v10520_v4 = vsel %vm10344_vm13, %v41958_v8, %v10440_v25  ;;  %v10497_v7 = vsel %vm10321_vm9, %v41941_v53, %v10417_v26  ;;  %v9483_v11 = vpop.f32.mrb[13].mxu0 }
 0x426   : > { %v10483_v3 = vsel %vm10307_vm8, %v10227_v52, %v10403_v59  ;;  %v9536_v14 = vpop.f32.mrb[13].mxu1  ;;  %v42021_v16 = vpack.c.bf16 %v10481_v2, %v10461_v49  ;;  %v10482_v18 = vsel %vm10306_vm10, %v10226_v56, %v10402_v60  ;;  %v9485_v24 = vpop.f32.mrb[14].mxu0  ;;  %v42029_v32 = vpack.c.bf16 %v10520_v4, %v10500_v40 }
 0x427   : > { %v42023_v17 = vpack.c.bf16 %v10483_v3, %v10463_v50  ;;  %v10484_v23 = vsel %vm10308_vm11, %v10228_v57, %v10404_v61  ;;  %v9538_v29 = vpop.f32.mrb[14].mxu1  ;;  %v42025_v30 = vpack.c.bf16 %v10482_v18, %v10462_v54  ;;  %v10517_v53 = vsel %vm10341_vm14, %v41954_v6, %v10437_v27  ;;  %v9487_v8 = vpop.f32.mrb[15].mxu0  ;;  %v42088_v18 = vld [vmem:[%s46468_s2 + $0x8] sm:$0xff]  }
 0x428   : > { %v42027_v31 = vpack.c.bf16 %v10484_v23, %v10464_v55  ;;  %v9540_v25 = vpop.f32.mrb[15].mxu1  ;;  %v10557_v26 = vpack.c.bf16 %v10517_v53, %v10497_v7  ;;  %v10439_v33 = vmul.f32 %v41962_v10, %v41966_v12  ;;  %v10499_v34 = vsel %vm10323_vm15, %v41948_v1, %v41989_v28  ;;  %10733 = vmatprep.subr.bf16.mxu1 %v42029_v32 }
 0x429   : > { %v10245_v35 = vadd.f32 %v41931_v43, %v9481_v62  ;;  %v10247_v6 = vadd.f32 %v41931_v43, %v9534_v63  ;;  %v10246_v27 = vadd.f32 %v41931_v43, %v9483_v11  ;;  %v10248_v37 = vadd.f32 %v41931_v43, %v9536_v14 }
 0x42a   : > { %v10265_v38 = vadd.f32 %v41929_v42, %v9485_v24  ;;  %10671 = vmatpush1.bf16.msra.mxu0 %v10557_v26  ;;  %v10519_v1 = vsel %vm10343_vm1, %v41966_v12, %v10439_v33  ;;  %v10267_v40 = vadd.f32 %v41929_v42, %v9538_v29  ;;  %v10266_v57 = vadd.f32 %v41929_v42, %v9487_v8 }
 0x42b   : > { %vm10325_vm9 = vcmp.ge.f32.partialorder %v10245_v35, 0.0  ;;  %v10421_v28 = vmul.f32 %v41951_v5, %v10245_v35  ;;  %v42056_v41 = vpack.c.bf16 %v10519_v1, %v10499_v34  ;;  %vm10327_vm12 = vcmp.ge.f32.partialorder %v10247_v6, 0.0  ;;  %10794 = vmatprep.subr.bf16.mxu0 %v42025_v30 }
 0x42c   : > { %v10423_v44 = vmul.f32 %v41951_v5, %v10247_v6  ;;  %vm10326_vm13 = vcmp.ge.f32.partialorder %v10246_v27, 0.0  ;;  %v10422_v46 = vmul.f32 %v41951_v5, %v10246_v27  ;;  %vm10328_vm14 = vcmp.ge.f32.partialorder %v10248_v37, 0.0  ;;  %v9577_v12 = vpop.f32.mrb[16].mxu0 }
 0x42d   : > { %v10501_v45 = vsel %vm10325_vm9, %v10245_v35, %v10421_v28  ;;  %v10424_v47 = vmul.f32 %v41951_v5, %v10248_v37  ;;  %v9630_v48 = vpop.f32.mrb[16].mxu1  ;;  %10734 = vmatpush1.bf16.msra.mxu1 %v42056_v41  ;;  %35813 = vmatmul.mubr.msk.bf16.vlgmr.msra.gmra.mrb[40].mxu0 %vm10658_vm6, %v42045_v36  ;;  %vm10345_vm15 = vcmp.ge.f32.partialorder %v10265_v38, 0.0  ;;  %v10441_v50 = vmul.f32 %v41962_v10, %v10265_v38  ;;  %v9579_v51 = vpop.f32.mrb[17].mxu0 }
 0x42e   : > { %v10503_v49 = vsel %vm10327_vm12, %v10247_v6, %v10423_v44  ;;  %vm10347_vm1 = vcmp.ge.f32.partialorder %v10267_v40, 0.0  ;;  %v9632_v52 = vpop.f32.mrb[17].mxu1  ;;  %v10502_v54 = vsel %vm10326_vm13, %v10246_v27, %v10422_v46  ;;  %v10443_v56 = vmul.f32 %v41962_v10, %v10267_v40  ;;  %10857 = vmatprep.subr.bf16.mxu1 %v42027_v31  ;;  %v9581_v58 = vpop.f32.mrb[18].mxu0  ;;  %10795 = vmatpush1.bf16.msra.mxu0 %v42021_v16 }
 0x42f   : > { %v10504_v55 = vsel %vm10328_vm14, %v10248_v37, %v10424_v47  ;;  %v9634_v59 = vpop.f32.mrb[18].mxu1  ;;  %v10521_v60 = vsel %vm10345_vm15, %v10265_v38, %v10441_v50  ;;  %v10268_v61 = vadd.f32 %v41929_v42, %v9540_v25  ;;  %10710 = vmatprep.mubr.bf16.mxu0 %v46474_v0  ;;  %v10209_v62 = vadd.f32 %v41910_v19, %v9577_v12  ;;  %v9583_v63 = vpop.f32.mrb[19].mxu0 }
 0x430   : > { %v9636_v2 = vpop.f32.mrb[19].mxu1  ;;  %35816 = vmatmul.mubr.msk.bf16.vlgmr.msra.gmra.mrb[40].mxu1 %vm10658_vm6, %v42045_v36  ;;  %v42076_v3 = vpack.c.bf16 %v10521_v60, %v10501_v45  ;;  %v10523_v4 = vsel %vm10347_vm1, %v10267_v40, %v10443_v56  ;;  %vm10346_vm2 = vcmp.ge.f32.partialorder %v10266_v57, 0.0  ;;  %v10442_v7 = vmul.f32 %v41962_v10, %v10266_v57  ;;  %v42125_v60 = vld [vmem:[%s46468_s2 + $0x10] sm:$0xff]  }
 0x431   : > { %v42080_v11 = vpack.c.bf16 %v10523_v4, %v10503_v49  ;;  %vm10348_vm3 = vcmp.ge.f32.partialorder %v10268_v61, 0.0  ;;  %v10444_v14 = vmul.f32 %v41962_v10, %v10268_v61  ;;  %10858 = vmatpush1.bf16.msra.mxu1 %v42023_v17  ;;  %10773 = vmatprep.mubr.bf16.mxu1 %v46474_v0  ;;  %vm10289_vm4 = vcmp.ge.f32.partialorder %v10209_v62, 0.0 }
 0x432   : > { %v10522_v23 = vsel %vm10346_vm2, %v10266_v57, %v10442_v7  ;;  %v10385_v24 = vmul.f32 %v41912_v20, %v10209_v62  ;;  %v10211_v29 = vadd.f32 %v41910_v19, %v9630_v48  ;;  %v10210_v53 = vadd.f32 %v41910_v19, %v9579_v51 }
 0x433   : > { %v42093_v8 = vpack.c.bf16 %v10522_v23, %v10502_v54  ;;  %v10524_v25 = vsel %vm10348_vm3, %v10268_v61, %v10444_v14  ;;  %v10212_v26 = vadd.f32 %v41910_v19, %v9632_v52  ;;  %v10229_v33 = vadd.f32 %v41914_v21, %v9581_v58 }
 0x434   : > { %v42097_v34 = vpack.c.bf16 %v10524_v25, %v10504_v55  ;;  %v10465_v35 = vsel %vm10289_vm4, %v10209_v62, %v10385_v24  ;;  %vm10291_vm5 = vcmp.ge.f32.partialorder %v10211_v29, 0.0  ;;  %v10387_v6 = vmul.f32 %v41912_v20, %v10211_v29  ;;  %v9587_v27 = vpop.f32.mrb[20].mxu0 }
 0x435   : > { %v9640_v37 = vpop.f32.mrb[20].mxu1  ;;  %35814 = vmatmul.mubr.msk.bf16.gmra.mrb[44].mxu0 %vm10658_vm6, %v42088_v18  ;;  %vm10290_vm7 = vcmp.ge.f32.partialorder %v10210_v53, 0.0  ;;  %v10386_v38 = vmul.f32 %v41912_v20, %v10210_v53  ;;  %vm10292_vm8 = vcmp.ge.f32.partialorder %v10212_v26, 0.0  ;;  %v10388_v1 = vmul.f32 %v41912_v20, %v10212_v26  ;;  %10796 = vmatprep.subr.bf16.mxu0 %v42093_v8  ;;  %v9589_v28 = vpop.f32.mrb[21].mxu0 }
 0x436   : > { %v9642_v40 = vpop.f32.mrb[21].mxu1  ;;  %v10467_v44 = vsel %vm10291_vm5, %v10211_v29, %v10387_v6  ;;  %vm10309_vm10 = vcmp.ge.f32.partialorder %v10229_v33, 0.0  ;;  %v10405_v45 = vmul.f32 %v41916_v22, %v10229_v33  ;;  %v10231_v46 = vadd.f32 %v41914_v21, %v9634_v59  ;;  %10859 = vmatprep.subr.bf16.mxu1 %v42097_v34  ;;  %10797 = vmatpush1.bf16.msra.mxu0 %v42076_v3  ;;  %v9591_v47 = vpop.f32.mrb[22].mxu0 }
 0x437   : > { %v9644_v12 = vpop.f32.mrb[22].mxu1  ;;  %v10466_v48 = vsel %vm10290_vm7, %v10210_v53, %v10386_v38  ;;  %v10468_v49 = vsel %vm10292_vm8, %v10212_v26, %v10388_v1  ;;  %v10230_v50 = vadd.f32 %v41914_v21, %v9583_v63  ;;  %v10232_v51 = vadd.f32 %v41914_v21, %v9636_v2  ;;  %10860 = vmatpush1.bf16.msra.mxu1 %v42080_v11  ;;  %v9593_v52 = vpop.f32.mrb[23].mxu0 }
 0x438   : > { %v9646_v54 = vpop.f32.mrb[23].mxu1  ;;  %35817 = vmatmul.mubr.msk.bf16.gmra.mrb[44].mxu1 %vm10658_vm6, %v42088_v18  ;;  %v10485_v55 = vsel %vm10309_vm10, %v10229_v33, %v10405_v45  ;;  %vm10311_vm11 = vcmp.ge.f32.partialorder %v10231_v46, 0.0  ;;  %v10407_v56 = vmul.f32 %v41916_v22, %v10231_v46  ;;  %11157 = vmatprep.subr.bf16.mxu1 %v42021_v16  ;;  %v10249_v57 = vadd.f32 %v41931_v43, %v9587_v27 }
 0x439   : > { %v42117_v58 = vpack.c.bf16 %v10485_v55, %v10465_v35  ;;  %vm10310_vm9 = vcmp.ge.f32.partialorder %v10230_v50, 0.0  ;;  %v10406_v59 = vmul.f32 %v41916_v22, %v10230_v50  ;;  %vm10312_vm12 = vcmp.ge.f32.partialorder %v10232_v51, 0.0  ;;  %10720 = vmatprep.mubr.bf16.mxu0 %v46474_v0  ;;  %10783 = vmatprep.mubr.bf16.mxu1 %v46474_v0 }
 0x43a   : > { %v10487_v61 = vsel %vm10311_vm11, %v10231_v46, %v10407_v56  ;;  %v10408_v62 = vmul.f32 %v41916_v22, %v10232_v51  ;;  %vm10329_vm13 = vcmp.ge.f32.partialorder %v10249_v57, 0.0  ;;  %v10425_v63 = vmul.f32 %v41951_v5, %v10249_v57 }
 0x43b   : > { %v42129_v2 = vpack.c.bf16 %v10487_v61, %v10467_v44  ;;  %v10486_v4 = vsel %vm10310_vm9, %v10230_v50, %v10406_v59  ;;  %v10251_v7 = vadd.f32 %v41931_v43, %v9640_v37  ;;  %v10250_v14 = vadd.f32 %v41931_v43, %v9589_v28 }
 0x43c   : > { %v42133_v23 = vpack.c.bf16 %v10486_v4, %v10466_v48  ;;  %v10488_v24 = vsel %vm10312_vm12, %v10232_v51, %v10408_v62  ;;  %v10505_v29 = vsel %vm10329_vm13, %v10249_v57, %v10425_v63  ;;  %v10252_v53 = vadd.f32 %v41931_v43, %v9642_v40  ;;  %v9683_v25 = vpop.f32.mrb[24].mxu0 }
 0x43d   : > { %v9736_v26 = vpop.f32.mrb[24].mxu1  ;;  %v42136_v33 = vpack.c.bf16 %v10488_v24, %v10468_v49  ;;  %35815 = vmatmul.mubr.msk.bf16.gmra.mrb[48].mxu0 %vm10658_vm6, %v42125_v60  ;;  %vm10331_vm14 = vcmp.ge.f32.partialorder %v10251_v7, 0.0  ;;  %v10427_v35 = vmul.f32 %v41951_v5, %v10251_v7  ;;  %vm10330_vm15 = vcmp.ge.f32.partialorder %v10250_v14, 0.0  ;;  %v9685_v6 = vpop.f32.mrb[25].mxu0 }
 0x43e   : > { %v9738_v27 = vpop.f32.mrb[25].mxu1  ;;  %v10426_v37 = vmul.f32 %v41951_v5, %v10250_v14  ;;  %vm10332_vm1 = vcmp.ge.f32.partialorder %v10252_v53, 0.0  ;;  %v10428_v38 = vmul.f32 %v41951_v5, %v10252_v53  ;;  %v10269_v1 = vadd.f32 %v41929_v42, %v9591_v47  ;;  %10920 = vmatprep.subr.bf16.mxu0 %v42133_v23  ;;  %10826 = vmatprep.mubr.bf16.mxu0 %v46474_v0  ;;  %v9687_v28 = vpop.f32.mrb[26].mxu0 }
 0x43f   : > { %v9740_v40 = vpop.f32.mrb[26].mxu1  ;;  %v10507_v44 = vsel %vm10331_vm14, %v10251_v7, %v10427_v35  ;;  %v10271_v45 = vadd.f32 %v41929_v42, %v9644_v12  ;;  %v10270_v46 = vadd.f32 %v41929_v42, %v9593_v52  ;;  %v10272_v48 = vadd.f32 %v41929_v42, %v9646_v54  ;;  %v9689_v49 = vpop.f32.mrb[27].mxu0 }
 0x440   : > { %v9742_v50 = vpop.f32.mrb[27].mxu1  ;;  %35818 = vmatmul.mubr.msk.bf16.gmra.mrb[48].mxu1 %vm10658_vm6, %v42125_v60  ;;  %v10506_v47 = vsel %vm10330_vm15, %v10250_v14, %v10426_v37  ;;  %v10508_v51 = vsel %vm10332_vm1, %v10252_v53, %v10428_v38  ;;  %vm10349_vm2 = vcmp.ge.f32.partialorder %v10269_v1, 0.0  ;;  %v10445_v55 = vmul.f32 %v41962_v10, %v10269_v1 }
 0x441   : > { %vm10351_vm3 = vcmp.ge.f32.partialorder %v10271_v45, 0.0  ;;  %v10447_v56 = vmul.f32 %v41962_v10, %v10271_v45  ;;  %vm10350_vm4 = vcmp.ge.f32.partialorder %v10270_v46, 0.0  ;;  %v10446_v12 = vmul.f32 %v41962_v10, %v10270_v46  ;;  %10889 = vmatprep.mubr.bf16.mxu1 %v46474_v0 }
 0x442   : > { %v10525_v52 = vsel %vm10349_vm2, %v10269_v1, %v10445_v55  ;;  %vm10352_vm5 = vcmp.ge.f32.partialorder %v10272_v48, 0.0  ;;  %v10448_v54 = vmul.f32 %v41962_v10, %v10272_v48  ;;  %v10213_v57 = vadd.f32 %v41910_v19, %v9683_v25 }
 0x443   : > { %v42158_v59 = vpack.c.bf16 %v10525_v52, %v10505_v29  ;;  %v10527_v61 = vsel %vm10351_vm3, %v10271_v45, %v10447_v56  ;;  %v10526_v62 = vsel %vm10350_vm4, %v10270_v46, %v10446_v12  ;;  %v10215_v63 = vadd.f32 %v41910_v19, %v9736_v26 }
 0x444   : > { %v42161_v4 = vpack.c.bf16 %v10527_v61, %v10507_v44  ;;  %v42163_v7 = vpack.c.bf16 %v10526_v62, %v10506_v47  ;;  %v10528_v14 = vsel %vm10352_vm5, %v10272_v48, %v10448_v54  ;;  %vm10293_vm7 = vcmp.ge.f32.partialorder %v10213_v57, 0.0  ;;  %v9693_v24 = vpop.f32.mrb[28].mxu0 }
 0x445   : > { %v9746_v53 = vpop.f32.mrb[28].mxu1  ;;  %v42165_v35 = vpack.c.bf16 %v10528_v14, %v10508_v51  ;;  %35819 = vmatmul.mubr.msk.bf16.vlgmr.msra.gmra.mrb[52].mxu0 %vm10658_vm6, %v42045_v36  ;;  %v10389_v29 = vmul.f32 %v41912_v20, %v10213_v57  ;;  %vm10295_vm8 = vcmp.ge.f32.partialorder %v10215_v63, 0.0  ;;  %v10391_v25 = vmul.f32 %v41912_v20, %v10215_v63  ;;  %v9695_v37 = vpop.f32.mrb[29].mxu0 }
 0x446   : > { %v9748_v26 = vpop.f32.mrb[29].mxu1  ;;  %10921 = vmatpush1.bf16.msra.mxu0 %v42117_v58  ;;  %v10214_v38 = vadd.f32 %v41910_v19, %v9685_v6  ;;  %v10216_v1 = vadd.f32 %v41910_v19, %v9738_v27  ;;  %v10233_v44 = vadd.f32 %v41914_v21, %v9687_v28  ;;  %v10235_v45 = vadd.f32 %v41914_v21, %v9740_v40  ;;  %v9697_v46 = vpop.f32.mrb[30].mxu0 }
 0x447   : > { %46521 = vst [vmem:[#allocation10_spill] sm:$0xff] %v42165_v35  ;;  %v9750_v48 = vpop.f32.mrb[30].mxu1  ;;  %v10469_v47 = vsel %vm10293_vm7, %v10213_v57, %v10389_v29  ;;  %v10471_v51 = vsel %vm10295_vm8, %v10215_v63, %v10391_v25  ;;  %v10234_v55 = vadd.f32 %v41914_v21, %v9689_v49  ;;  %v10236_v56 = vadd.f32 %v41914_v21, %v9742_v50  ;;  %v42180_v12 = vpop.f32.mrb[31].mxu0 }
 0x448   : > { %10922 = vmatprep.subr.bf16.mxu0 %v42163_v7  ;;  %v42182_v6 = vpop.f32.mrb[31].mxu1  ;;  %35822 = vmatmul.mubr.msk.bf16.vlgmr.msra.gmra.mrb[52].mxu1 %vm10658_vm6, %v42045_v36  ;;  %vm10294_vm10 = vcmp.ge.f32.partialorder %v10214_v38, 0.0  ;;  %v10390_v27 = vmul.f32 %v41912_v20, %v10214_v38  ;;  %vm10296_vm11 = vcmp.ge.f32.partialorder %v10216_v1, 0.0  ;;  %v10392_v28 = vmul.f32 %v41912_v20, %v10216_v1 }
 0x449   : > { %10836 = vmatprep.mubr.bf16.mxu0 %v46474_v0  ;;  %11158 = vmatpush1.bf16.msra.mxu1 %v41968_v13  ;;  %vm10313_vm9 = vcmp.ge.f32.partialorder %v10233_v44, 0.0  ;;  %v10409_v40 = vmul.f32 %v41916_v22, %v10233_v44  ;;  %vm10315_vm12 = vcmp.ge.f32.partialorder %v10235_v45, 0.0  ;;  %v10411_v49 = vmul.f32 %v41916_v22, %v10235_v45 }
 0x44a   : > { %10899 = vmatprep.mubr.bf16.mxu1 %v46474_v0  ;;  %11159 = vmatprep.subr.bf16.mxu1 %v42076_v3  ;;  %v10470_v50 = vsel %vm10294_vm10, %v10214_v38, %v10390_v27  ;;  %v10472_v52 = vsel %vm10296_vm11, %v10216_v1, %v10392_v28  ;;  %vm10314_vm13 = vcmp.ge.f32.partialorder %v10234_v55, 0.0  ;;  %v10410_v54 = vmul.f32 %v41916_v22, %v10234_v55 }
 0x44b   : > { %10923 = vmatpush1.bf16.msra.mxu0 %v42158_v59  ;;  %v10489_v57 = vsel %vm10313_vm9, %v10233_v44, %v10409_v40  ;;  %v10491_v61 = vsel %vm10315_vm12, %v10235_v45, %v10411_v49  ;;  %vm10316_vm14 = vcmp.ge.f32.partialorder %v10236_v56, 0.0  ;;  %v10412_v62 = vmul.f32 %v41916_v22, %v10236_v56 }
 0x44c   : > { %11094 = vmatprep.subr.bf16.mxu0 %v41972_v15  ;;  %v42198_v63 = vpack.c.bf16 %v10489_v57, %v10469_v47  ;;  %v42200_v14 = vpack.c.bf16 %v10491_v61, %v10471_v51  ;;  %v10490_v29 = vsel %vm10314_vm13, %v10234_v55, %v10410_v54  ;;  %v10253_v25 = vadd.f32 %v41931_v43, %v9693_v24  ;;  %v9789_v38 = vpop.f32.mrb[32].mxu0 }
 0x44d   : > { %v9842_v1 = vpop.f32.mrb[32].mxu1  ;;  %v42203_v27 = vpack.c.bf16 %v10490_v29, %v10470_v50  ;;  %v10492_v28 = vsel %vm10316_vm14, %v10236_v56, %v10412_v62  ;;  %11160 = vmatpush1.bf16.msra.mxu1 %v42029_v32  ;;  %35820 = vmatmul.mubr.msk.bf16.gmra.mrb[56].mxu0 %vm10658_vm6, %v42088_v18  ;;  %v10255_v44 = vadd.f32 %v41931_v43, %v9746_v53  ;;  %v9791_v45 = vpop.f32.mrb[33].mxu0 }
 0x44e   : > { %46522 = vst [vmem:[#allocation11_spill] sm:$0xff] %v42198_v63  ;;  %46523 = vst [vmem:[#allocation12_spill] sm:$0xff] %v42200_v14  ;;  %v9844_v47 = vpop.f32.mrb[33].mxu1  ;;  %v42209_v40 = vpack.c.bf16 %v10492_v28, %v10472_v52  ;;  %11283 = vmatprep.subr.bf16.mxu1 %v42117_v58  ;;  %vm10333_vm15 = vcmp.ge.f32.partialorder %v10253_v25, 0.0  ;;  %v10429_v24 = vmul.f32 %v41951_v5, %v10253_v25  ;;  %10846 = vmatprep.mubr.bf16.mxu0 %v46474_v0  ;;  %v9793_v55 = vpop.f32.mrb[34].mxu0 }
 0x44f   : > { %46524 = vst [vmem:[#allocation13_spill] sm:$0xff] %v42203_v27  ;;  %v10254_v51 = vadd.f32 %v41931_v43, %v9695_v37  ;;  %v9846_v56 = vpop.f32.mrb[34].mxu1  ;;  %vm10335_vm1 = vcmp.ge.f32.partialorder %v10255_v44, 0.0  ;;  %v10431_v49 = vmul.f32 %v41951_v5, %v10255_v44  ;;  %v10256_v53 = vadd.f32 %v41931_v43, %v9748_v26  ;;  %v9795_v52 = vpop.f32.mrb[35].mxu0 }
 0x450   : > { %46525 = vst [vmem:[#allocation14_spill] sm:$0xff] %v42209_v40  ;;  %v10273_v50 = vadd.f32 %v41929_v42, %v9697_v46  ;;  %v9848_v54 = vpop.f32.mrb[35].mxu1  ;;  %35823 = vmatmul.mubr.msk.bf16.gmra.mrb[56].mxu1 %vm10658_vm6, %v42088_v18  ;;  %v10509_v57 = vsel %vm10333_vm15, %v10253_v25, %v10429_v24  ;;  %v10275_v61 = vadd.f32 %v41929_v42, %v9750_v48 }
 0x451   : > { %vm10334_vm2 = vcmp.ge.f32.partialorder %v10254_v51, 0.0  ;;  %v10430_v37 = vmul.f32 %v41951_v5, %v10254_v51  ;;  %v10511_v62 = vsel %vm10335_vm1, %v10255_v44, %v10431_v49  ;;  %vm10336_vm3 = vcmp.ge.f32.partialorder %v10256_v53, 0.0  ;;  %10909 = vmatprep.mubr.bf16.mxu1 %v46474_v0 }
 0x452   : > { %v10432_v29 = vmul.f32 %v41951_v5, %v10256_v53  ;;  %vm10353_vm4 = vcmp.ge.f32.partialorder %v10273_v50, 0.0  ;;  %v10449_v46 = vmul.f32 %v41962_v10, %v10273_v50  ;;  %vm10355_vm5 = vcmp.ge.f32.partialorder %v10275_v61, 0.0 }
 0x453   : > { %v10510_v26 = vsel %vm10334_vm2, %v10254_v51, %v10430_v37  ;;  %v10451_v28 = vmul.f32 %v41962_v10, %v10275_v61  ;;  %v10274_v25 = vadd.f32 %v41929_v42, %v42180_v12  ;;  %v10276_v48 = vadd.f32 %v41929_v42, %v42182_v6 }
 0x454   : > { %v10512_v40 = vsel %vm10336_vm3, %v10256_v53, %v10432_v29  ;;  %v10217_v44 = vadd.f32 %v41910_v19, %v9789_v38  ;;  %v10529_v24 = vsel %vm10353_vm4, %v10273_v50, %v10449_v46  ;;  %v42232_v14 = vadd.f32 %v41910_v19, %v9842_v1  ;;  %v9799_v37 = vpop.f32.mrb[36].mxu0 }
 0x455   : > { %v10531_v49 = vsel %vm10355_vm5, %v10275_v61, %v10451_v28  ;;  %v42235_v51 = vadd.f32 %v41910_v19, %v9791_v45  ;;  %v9852_v0 = vpop.f32.mrb[36].mxu1  ;;  %v42237_v27 = vpack.c.bf16 %v10529_v24, %v10509_v57  ;;  %vm10354_vm7 = vcmp.ge.f32.partialorder %v10274_v25, 0.0  ;;  %35821 = vmatmul.mubr.msk.bf16.gmra.mrb[60].mxu0 %vm10658_vm6, %v42125_v60  ;;  %v9801_v6 = vpop.f32.mrb[37].mxu0 }
 0x456   : > { %v42239_v53 = vpack.c.bf16 %v10531_v49, %v10511_v62  ;;  %v10450_v12 = vmul.f32 %v41962_v10, %v10274_v25  ;;  %v9854_v38 = vpop.f32.mrb[37].mxu1  ;;  %vm10356_vm8 = vcmp.ge.f32.partialorder %v10276_v48, 0.0  ;;  %v10452_v1 = vmul.f32 %v41962_v10, %v10276_v48  ;;  %v9803_v57 = vpop.f32.mrb[38].mxu0 }
 0x457   : > { %46526 = vst [vmem:[#allocation15_spill] sm:$0xff] %v42237_v27  ;;  %vm10297_vm10 = vcmp.ge.f32.partialorder %v10217_v44, 0.0  ;;  %v10393_v45 = vmul.f32 %v41912_v20, %v10217_v44  ;;  %v46528_v50 = vmov 0   ;;  %v9856_v61 = vpop.f32.mrb[38].mxu1  ;;  %v42249_v29 = vmul.f32 %v41912_v20, %v42232_v14  ;;  %v9805_v24 = vpop.f32.mrb[39].mxu0 }
 0x458   : > { %46527 = vst [vmem:[#allocation16_spill] sm:$0xff] %v42239_v53  ;;  %10952 = vmatprep.mubr.bf16.mxu0 %v46528_v50  ;;  %v10530_v62 = vsel %vm10354_vm7, %v10274_v25, %v10450_v12  ;;  %v10394_v46 = vmul.f32 %v41912_v20, %v42235_v51  ;;  %v42254_v28 = vadd.f32 %v41910_v19, %v9844_v47  ;;  %v9858_v49 = vpop.f32.mrb[39].mxu1  ;;  %vm10298_vm13 = vcmp.ge.f32.partialorder %v42235_v51, 0.0 }
 0x459   : > { %v42256_v53 = vpack.c.bf16 %v10530_v62, %v10510_v26  ;;  %v10532_v27 = vsel %vm10356_vm8, %v10276_v48, %v10452_v1  ;;  %35824 = vmatmul.mubr.msk.bf16.gmra.mrb[60].mxu1 %vm10658_vm6, %v42125_v60  ;;  %v10473_v63 = vsel %vm10297_vm10, %v10217_v44, %v10393_v45  ;;  %v10237_v25 = vadd.f32 %v41914_v21, %v9793_v55  ;;  %v42284_v45 = vld [vmem:[%s46468_s2 + $0x18] sm:$0xff]  }
 0x45a   : > { %v42261_v12 = vpack.c.bf16 %v10532_v27, %v10512_v40  ;;  %v42265_v35 = vmul.f32 %v41912_v20, %v42254_v28  ;;  %v10239_v47 = vadd.f32 %v41914_v21, %v9846_v56  ;;  %v10238_v19 = vadd.f32 %v41914_v21, %v9795_v52  ;;  %11189 = vmatprep.mubr.bf16.mxu1 %v46528_v50 }
 0x45b   : > { %vm10317_vm11 = vcmp.ge.f32.partialorder %v10237_v25, 0.0  ;;  %v10413_v26 = vmul.f32 %v41916_v22, %v10237_v25  ;;  %v42272_v48 = vadd.f32 %v41914_v21, %v9848_v54  ;;  %v10257_v55 = vadd.f32 %v41931_v43, %v9799_v37 }
 0x45c   : > { %v10415_v27 = vmul.f32 %v41916_v22, %v10239_v47  ;;  %v10414_v40 = vmul.f32 %v41916_v22, %v10238_v19  ;;  %v10259_v44 = vadd.f32 %v41931_v43, %v9852_v0  ;;  %v10258_v56 = vadd.f32 %v41931_v43, %v9801_v6 }
 0x45d   : > { %v10493_v1 = vsel %vm10317_vm11, %v10237_v25, %v10413_v26  ;;  %v10416_v52 = vmul.f32 %v41916_v22, %v42272_v48  ;;  %vm10337_vm9 = vcmp.ge.f32.partialorder %v10257_v55, 0.0  ;;  %v10433_v54 = vmul.f32 %v41951_v5, %v10257_v55  ;;  %35825 = vmatmul.mubr.msk.bf16.vlgmr.msra.gmra.mrb[64].mxu0 %vm10658_vm6, %v42045_v36 }
 0x45e   : > { %v10435_v37 = vmul.f32 %v41951_v5, %v10259_v44  ;;  %v10434_v0 = vmul.f32 %v41951_v5, %v10258_v56  ;;  %v10260_v6 = vadd.f32 %v41931_v43, %v9854_v38  ;;  %v10277_v62 = vadd.f32 %v41929_v42, %v9803_v57  ;;  %11095 = vmatpush1.bf16.msra.mxu0 %v41960_v9 }
 0x45f   : > { %v10513_v25 = vsel %vm10337_vm9, %v10257_v55, %v10433_v54  ;;  %v10279_v26 = vadd.f32 %v41929_v42, %v9856_v61  ;;  %v10278_v22 = vadd.f32 %v41929_v42, %v9805_v24  ;;  %v10280_v21 = vadd.f32 %v41929_v42, %v9858_v49  ;;  %11096 = vmatprep.subr.bf16.mxu0 %v42056_v41 }
 0x460   : > { %v10436_v36 = vmul.f32 %v41951_v5, %v10260_v6  ;;  %vm10357_vm12 = vcmp.ge.f32.partialorder %v10277_v62, 0.0  ;;  %v10453_v20 = vmul.f32 %v41962_v10, %v10277_v62  ;;  %10962 = vmatprep.mubr.bf16.mxu0 %v46528_v50  ;;  %v42301_v38 = vpack.c.bf16 %v10493_v1, %v10473_v63 }
 0x461   : > { %35840 = vmatmul.mubr.msk.bf16.vlgmr.msra.gmra.mrb[40].mxu1 %vm10658_vm6, %v42284_v45  ;;  %v10455_v9 = vmul.f32 %v41962_v10, %v10279_v26  ;;  %v10454_v57 = vmul.f32 %v41962_v10, %v10278_v22  ;;  %v10456_v61 = vmul.f32 %v41962_v10, %v10280_v21  ;;  %vm10318_vm14 = vcmp.ge.f32.partialorder %v10238_v19, 0.0 }
 0x462   : > { %11284 = vmatpush1.bf16.msra.mxu1 %v42027_v31  ;;  %v10533_v24 = vsel %vm10357_vm12, %v10277_v62, %v10453_v20  ;;  %11199 = vmatprep.mubr.bf16.mxu1 %v46528_v50  ;;  %v10474_v63 = vsel %vm10298_vm13, %v42235_v51, %v10394_v46  ;;  %vm10338_vm15 = vcmp.ge.f32.partialorder %v10258_v56, 0.0  ;;  %v10494_v55 = vsel %vm10318_vm14, %v10238_v19, %v10414_v40  ;;  %v42323_v51 = vld [vmem:[%s46468_s2 + $0x20] sm:$0xff]  }
 0x463   : > { %11285 = vmatprep.subr.bf16.mxu1 %v42158_v59  ;;  %11097 = vmatpush1.bf16.msra.mxu0 %v41998_v39  ;;  %v42314_v49 = vpack.c.bf16 %v10533_v24, %v10513_v25  ;;  %vm10358_vm1 = vcmp.ge.f32.partialorder %v10278_v22, 0.0  ;;  %v10514_v1 = vsel %vm10338_vm15, %v10258_v56, %v10434_v0  ;;  %v42317_v54 = vpack.c.bf16 %v10494_v55, %v10474_v63  ;;  %v40458_v0 = vld [vmem:[%s46468_s2 + $0x70] sm:$0xff]  }
 0x464   : > { %11220 = vmatprep.subr.bf16.mxu0 %v42023_v17  ;;  %v10534_v20 = vsel %vm10358_vm1, %v10278_v22, %v10454_v57  ;;  %vm10299_vm2 = vcmp.ge.f32.partialorder %v42232_v14, 0.0  ;;  %vm10319_vm3 = vcmp.ge.f32.partialorder %v10239_v47, 0.0  ;;  %vm10339_vm4 = vcmp.ge.f32.partialorder %v10259_v44, 0.0 }
 0x465   : > { %v42325_v46 = vpack.c.bf16 %v10534_v20, %v10514_v1  ;;  %v10475_v19 = vsel %vm10299_vm2, %v42232_v14, %v42249_v29  ;;  %v10495_v39 = vsel %vm10319_vm3, %v10239_v47, %v10415_v27  ;;  %35826 = vmatmul.mubr.msk.bf16.gmra.mrb[68].mxu0 %vm10658_vm6, %v42088_v18  ;;  %vm10359_vm5 = vcmp.ge.f32.partialorder %v10279_v26, 0.0  ;;  %v42586_v20 = vld [vmem:[%s46468_s2 + $0x78] sm:$0xff]  }
 0x466   : > { %11286 = vmatpush1.bf16.msra.mxu1 %v42097_v34  ;;  %v42332_v22 = vpack.c.bf16 %v10495_v39, %v10475_v19  ;;  %vm10300_vm7 = vcmp.ge.f32.partialorder %v42254_v28, 0.0  ;;  %10972 = vmatprep.mubr.bf16.mxu0 %v46528_v50  ;;  %v10515_v40 = vsel %vm10339_vm4, %v10259_v44, %v10435_v37  ;;  %v10535_v56 = vsel %vm10359_vm5, %v10279_v26, %v10455_v9  ;;  %v46532_v37 = vld [vmem:[#allocation13_spill] sm:$0xff] }
 0x467   : > { %11346 = vmatprep.subr.bf16.mxu1 %v42129_v2  ;;  %vm10320_vm8 = vcmp.ge.f32.partialorder %v42272_v48, 0.0  ;;  %vm10340_vm10 = vcmp.ge.f32.partialorder %v10260_v6, 0.0  ;;  %v42338_v14 = vpack.c.bf16 %v10535_v56, %v10515_v40  ;;  %v42342_v29 = vsel %vm10300_vm7, %v42254_v28, %v42265_v35  ;;  %v40449_v28 = vld [vmem:[%s46468_s2 + $0x28] sm:$0xff]  }
 0x468   : > { %v42345_v18 = vsel %vm10320_vm8, %v42272_v48, %v10416_v52  ;;  %vm10360_vm11 = vcmp.ge.f32.partialorder %v10280_v21, 0.0  ;;  %v42351_v27 = vsel %vm10340_vm10, %v10260_v6, %v10436_v36  ;;  %v40453_v48 = vld [vmem:[%s46468_s2 + $0x48] sm:$0xff]   ;;  %vm40793_vm9 = vmmov 0  }
 0x469   : > { %35841 = vmatmul.mubr.msk.bf16.gmra.mrb[44].mxu1 %vm10658_vm6, %v42323_v51  ;;  %v10556_v47 = vpack.c.bf16 %v42345_v18, %v42342_v29  ;;  %v42353_v44 = vsel %vm10360_vm11, %v10280_v21, %v10456_v61  ;;  %v40450_v21 = vld [vmem:[%s46468_s2 + $0x30] sm:$0xff]   ;;  %v46530_v52 = vld [vmem:[#allocation11_spill] sm:$0xff] }
 0x46a   : > { %11209 = vmatprep.mubr.bf16.mxu1 %v46528_v50  ;;  %v10576_v35 = vpack.c.bf16 %v42353_v44, %v42351_v27 }
 0x46d   : > { %35827 = vmatmul.mubr.msk.bf16.gmra.mrb[72].mxu0 %vm10658_vm6, %v42125_v60  ;;  %v46529_v60 = vld [vmem:[#allocation10_spill] sm:$0xff] }
 0x46e   : > { %11126 = vmatprep.mubr.bf16.mxu0 %v46528_v50 }
 0x471   : > { %35842 = vmatmul.mubr.msk.bf16.gmra.mrb[48].mxu1 %vm10658_vm6, %v40449_v28 }
 0x472   : > { %11315 = vmatprep.mubr.bf16.mxu1 %v46528_v50 }
 0x475   : > { %35837 = vmatmul.mubr.msk.bf16.vlgmr.msra.gmra.mrb[40].mxu0 %vm10658_vm6, %v42284_v45 }
 0x476   : > { %11221 = vmatpush1.bf16.msra.mxu0 %v42025_v30  ;;  %11136 = vmatprep.mubr.bf16.mxu0 %v46528_v50 }
 0x477   : > { %11222 = vmatprep.subr.bf16.mxu0 %v42080_v11 }
 0x479   : > { %35846 = vmatmul.mubr.msk.bf16.vlgmr.msra.gmra.mrb[52].mxu1 %vm10658_vm6, %v42284_v45 }
 0x47a   : > { %11347 = vmatpush1.bf16.msra.mxu1 %v42133_v23  ;;  %11325 = vmatprep.mubr.bf16.mxu1 %v46528_v50 }
 0x47b   : > { %11348 = vmatprep.subr.bf16.mxu1 %v42161_v4  ;;  %11223 = vmatpush1.bf16.msra.mxu0 %v42093_v8 }
 0x47c   : > { %11640 = vmatprep.subr.bf16.mxu0 %v41968_v13 }
 0x47d   : > { %35838 = vmatmul.mubr.msk.bf16.gmra.mrb[44].mxu0 %vm10658_vm6, %v42323_v51 }
 0x47e   : > { %11349 = vmatpush1.bf16.msra.mxu1 %v42163_v7  ;;  %11146 = vmatprep.mubr.bf16.mxu0 %v46528_v50 }
 0x47f   : > { %11703 = vmatprep.subr.bf16.mxu1 %v42025_v30 }
 0x481   : > { %35847 = vmatmul.mubr.msk.bf16.gmra.mrb[56].mxu1 %vm10658_vm6, %v42323_v51 }
 0x482   : > { %11335 = vmatprep.mubr.bf16.mxu1 %v46528_v50 }
 0x485   : > { %35839 = vmatmul.mubr.msk.bf16.gmra.mrb[48].mxu0 %vm10658_vm6, %v40449_v28 }
 0x486   : > { %11252 = vmatprep.mubr.bf16.mxu0 %v46528_v50 }
 0x489   : > { %35848 = vmatmul.mubr.msk.bf16.gmra.mrb[60].mxu1 %vm10658_vm6, %v40449_v28 }
 0x48a   : > { %11378 = vmatprep.mubr.bf16.mxu1 %v46528_v50 }
 0x48d   : > { %35843 = vmatmul.mubr.msk.bf16.vlgmr.msra.gmra.mrb[52].mxu0 %vm10658_vm6, %v42284_v45 }
 0x48e   : > { %11641 = vmatpush1.bf16.msra.mxu0 %v41972_v15  ;;  %11262 = vmatprep.mubr.bf16.mxu0 %v46528_v50  ;;  %v40451_v15 = vld [vmem:[%s46468_s2 + $0x38] sm:$0xff]  }
 0x48f   : > { %11642 = vmatprep.subr.bf16.mxu0 %v42029_v32 }
 0x491   : > { %35849 = vmatmul.mubr.msk.bf16.vlgmr.msra.gmra.mrb[64].mxu1 %vm10658_vm6, %v42284_v45  ;;  %v46531_v45 = vld [vmem:[#allocation15_spill] sm:$0xff] }
 0x492   : > { %11704 = vmatpush1.bf16.msra.mxu1 %v42021_v16  ;;  %11388 = vmatprep.mubr.bf16.mxu1 %v46528_v50 }
 0x493   : > { %11705 = vmatprep.subr.bf16.mxu1 %v42093_v8  ;;  %11643 = vmatpush1.bf16.msra.mxu0 %v42056_v41  ;;  %v40452_v41 = vld [vmem:[%s46468_s2 + $0x40] sm:$0xff]  }
 0x494   : > { %11766 = vmatprep.subr.bf16.mxu0 %v42027_v31 }
 0x495   : > { %35844 = vmatmul.mubr.msk.bf16.gmra.mrb[56].mxu0 %vm10658_vm6, %v42323_v51 }
 0x496   : > { %11706 = vmatpush1.bf16.msra.mxu1 %v42076_v3  ;;  %11272 = vmatprep.mubr.bf16.mxu0 %v46528_v50 }
 0x497   : > { %11829 = vmatprep.subr.bf16.mxu1 %v42133_v23 }
 0x499   : > { %35850 = vmatmul.mubr.msk.bf16.gmra.mrb[68].mxu1 %vm10658_vm6, %v42323_v51  ;;  %v46533_v51 = vld [vmem:[#allocation12_spill] sm:$0xff] }
 0x49a   : > { %11398 = vmatprep.mubr.bf16.mxu1 %v46528_v50 }
 0x49d   : > { %35845 = vmatmul.mubr.msk.bf16.gmra.mrb[60].mxu0 %vm10658_vm6, %v40449_v28 }
 0x49e   : > { %11672 = vmatprep.mubr.bf16.mxu0 %v46528_v50 }
 0x4a1   : > { %35851 = vmatmul.mubr.msk.bf16.gmra.mrb[72].mxu1 %vm10658_vm6, %v40449_v28 }
 0x4a2   : > { %11735 = vmatprep.mubr.bf16.mxu1 %v46528_v50 }
 0x4a5   : > { %35861 = vmatmul.mubr.msk.bf16.vlgmr.msra.gmra.mrb[40].mxu0 %vm10658_vm6, %v40450_v21 }
 0x4a6   : > { %11767 = vmatpush1.bf16.msra.mxu0 %v42023_v17  ;;  %11682 = vmatprep.mubr.bf16.mxu0 %v46528_v50 }
 0x4a7   : > { %11768 = vmatprep.subr.bf16.mxu0 %v42097_v34 }
 0x4a9   : > { %35864 = vmatmul.mubr.msk.bf16.vlgmr.msra.gmra.mrb[40].mxu1 %vm10658_vm6, %v40450_v21 }
 0x4aa   : > { %11830 = vmatpush1.bf16.msra.mxu1 %v42117_v58  ;;  %11745 = vmatprep.mubr.bf16.mxu1 %v46528_v50 }
 0x4ab   : > { %11831 = vmatprep.subr.bf16.mxu1 %v42163_v7  ;;  %11769 = vmatpush1.bf16.msra.mxu0 %v42080_v11 }
 0x4ac   : > { %11892 = vmatprep.subr.bf16.mxu0 %v42136_v33 }
 0x4ad   : > { %35862 = vmatmul.mubr.msk.bf16.gmra.mrb[44].mxu0 %vm10658_vm6, %v40451_v15 }
 0x4ae   : > { %11832 = vmatpush1.bf16.msra.mxu1 %v42158_v59  ;;  %11692 = vmatprep.mubr.bf16.mxu0 %v46528_v50 }
 0x4af   : > { %12249 = vmatprep.subr.bf16.mxu1 %v42023_v17 }
 0x4b1   : > { %35865 = vmatmul.mubr.msk.bf16.gmra.mrb[44].mxu1 %vm10658_vm6, %v40451_v15 }
 0x4b2   : > { %11755 = vmatprep.mubr.bf16.mxu1 %v46528_v50 }
 0x4b5   : > { %35863 = vmatmul.mubr.msk.bf16.gmra.mrb[48].mxu0 %vm10658_vm6, %v40452_v41 }
 0x4b6   : > { %11798 = vmatprep.mubr.bf16.mxu0 %v46528_v50 }
 0x4b9   : > { %35866 = vmatmul.mubr.msk.bf16.gmra.mrb[48].mxu1 %vm10658_vm6, %v40452_v41 }
 0x4ba   : > { %11861 = vmatprep.mubr.bf16.mxu1 %v46528_v50 }
 0x4bd   : > { %35867 = vmatmul.mubr.msk.bf16.vlgmr.msra.gmra.mrb[52].mxu0 %vm10658_vm6, %v40450_v21 }
 0x4be   : > { %11893 = vmatpush1.bf16.msra.mxu0 %v42129_v2  ;;  %11808 = vmatprep.mubr.bf16.mxu0 %v46528_v50 }
 0x4bf   : > { %11894 = vmatprep.subr.bf16.mxu0 %v46529_v60 }
 0x4c1   : > { %35870 = vmatmul.mubr.msk.bf16.vlgmr.msra.gmra.mrb[52].mxu1 %vm10658_vm6, %v40450_v21 }
 0x4c2   : > { %12250 = vmatpush1.bf16.msra.mxu1 %v42025_v30  ;;  %11871 = vmatprep.mubr.bf16.mxu1 %v46528_v50 }
 0x4c3   : > { %12251 = vmatprep.subr.bf16.mxu1 %v42080_v11  ;;  %11895 = vmatpush1.bf16.msra.mxu0 %v42161_v4 }
 0x4c4   : > { %12186 = vmatprep.subr.bf16.mxu0 %v42021_v16 }
 0x4c5   : > { %35868 = vmatmul.mubr.msk.bf16.gmra.mrb[56].mxu0 %vm10658_vm6, %v40451_v15 }
 0x4c6   : > { %12252 = vmatpush1.bf16.msra.mxu1 %v42093_v8  ;;  %11818 = vmatprep.mubr.bf16.mxu0 %v46528_v50 }
 0x4c7   : > { %12375 = vmatprep.subr.bf16.mxu1 %v42129_v2 }
 0x4c9   : > { %35871 = vmatmul.mubr.msk.bf16.gmra.mrb[56].mxu1 %vm10658_vm6, %v40451_v15 }
 0x4ca   : > { %11881 = vmatprep.mubr.bf16.mxu1 %v46528_v50 }
 0x4cd   : > { %35869 = vmatmul.mubr.msk.bf16.gmra.mrb[60].mxu0 %vm10658_vm6, %v40452_v41 }
 0x4ce   : > { %11924 = vmatprep.mubr.bf16.mxu0 %v46528_v50 }
 0x4d1   : > { %35872 = vmatmul.mubr.msk.bf16.gmra.mrb[60].mxu1 %vm10658_vm6, %v40452_v41 }
 0x4d2   : > { %12281 = vmatprep.mubr.bf16.mxu1 %v46528_v50 }
 0x4d5   : > { %35873 = vmatmul.mubr.msk.bf16.vlgmr.msra.gmra.mrb[76].mxu0 %vm10658_vm6, %v40450_v21 }
 0x4d6   : > { %12187 = vmatpush1.bf16.msra.mxu0 %v41968_v13  ;;  %11934 = vmatprep.mubr.bf16.mxu0 %v46528_v50  ;;  %v40454_v13 = vld [vmem:[%s46468_s2 + $0x50] sm:$0xff]  }
 0x4d7   : > { %12188 = vmatprep.subr.bf16.mxu0 %v42076_v3 }
 0x4d9   : > { %35888 = vmatmul.mubr.msk.bf16.vlgmr.msra.gmra.mrb[40].mxu1 %vm10658_vm6, %v40453_v48 }
 0x4da   : > { %12376 = vmatpush1.bf16.msra.mxu1 %v42133_v23  ;;  %12291 = vmatprep.mubr.bf16.mxu1 %v46528_v50 }
 0x4db   : > { %12377 = vmatprep.subr.bf16.mxu1 %v42161_v4  ;;  %12189 = vmatpush1.bf16.msra.mxu0 %v42029_v32  ;;  %v40455_v32 = vld [vmem:[%s46468_s2 + $0x58] sm:$0xff]  }
 0x4dc   : > { %12312 = vmatprep.subr.bf16.mxu0 %v42117_v58 }
 0x4dd   : > { %35874 = vmatmul.mubr.msk.bf16.gmra.mrb[80].mxu0 %vm10658_vm6, %v40451_v15  ;;  %v46534_v15 = vld [vmem:[#allocation16_spill] sm:$0xff] }
 0x4de   : > { %12378 = vmatpush1.bf16.msra.mxu1 %v42163_v7  ;;  %11944 = vmatprep.mubr.bf16.mxu0 %v46528_v50 }
 0x4df   : > { %12438 = vmatprep.subr.bf16.mxu1 %v46530_v52 }
 0x4e1   : > { %35889 = vmatmul.mubr.msk.bf16.gmra.mrb[44].mxu1 %vm10658_vm6, %v40454_v13 }
 0x4e2   : > { %12301 = vmatprep.mubr.bf16.mxu1 %v46528_v50 }
 0x4e5   : > { %35875 = vmatmul.mubr.msk.bf16.gmra.mrb[84].mxu0 %vm10658_vm6, %v40452_v41 }
 0x4e6   : > { %12218 = vmatprep.mubr.bf16.mxu0 %v46528_v50 }
 0x4e9   : > { %35890 = vmatmul.mubr.msk.bf16.gmra.mrb[48].mxu1 %vm10658_vm6, %v40455_v32 }
 0x4ea   : > { %12407 = vmatprep.mubr.bf16.mxu1 %v46528_v50 }
 0x4ed   : > { %35885 = vmatmul.mubr.msk.bf16.vlgmr.msra.gmra.mrb[40].mxu0 %vm10658_vm6, %v40453_v48 }
 0x4ee   : > { %12313 = vmatpush1.bf16.msra.mxu0 %v42027_v31  ;;  %12228 = vmatprep.mubr.bf16.mxu0 %v46528_v50 }
 0x4ef   : > { %12314 = vmatprep.subr.bf16.mxu0 %v42158_v59 }
 0x4f1   : > { %35894 = vmatmul.mubr.msk.bf16.vlgmr.msra.gmra.mrb[52].mxu1 %vm10658_vm6, %v40453_v48 }
 0x4f2   : > { %12439 = vmatpush1.bf16.msra.mxu1 %v42136_v33  ;;  %12417 = vmatprep.mubr.bf16.mxu1 %v46528_v50 }
 0x4f3   : > { %12440 = vmatprep.subr.bf16.mxu1 %v46531_v45  ;;  %12315 = vmatpush1.bf16.msra.mxu0 %v42097_v34 }
 0x4f4   : > { %12732 = vmatprep.subr.bf16.mxu0 %v42025_v30 }
 0x4f5   : > { %35886 = vmatmul.mubr.msk.bf16.gmra.mrb[44].mxu0 %vm10658_vm6, %v40454_v13 }
 0x4f6   : > { %12441 = vmatpush1.bf16.msra.mxu1 %v46529_v60  ;;  %12238 = vmatprep.mubr.bf16.mxu0 %v46528_v50 }
 0x4f7   : > { %12795 = vmatprep.subr.bf16.mxu1 %v42027_v31 }
 0x4f9   : > { %35895 = vmatmul.mubr.msk.bf16.gmra.mrb[56].mxu1 %vm10658_vm6, %v40454_v13 }
 0x4fa   : > { %12427 = vmatprep.mubr.bf16.mxu1 %v46528_v50 }
 0x4fd   : > { %35887 = vmatmul.mubr.msk.bf16.gmra.mrb[48].mxu0 %vm10658_vm6, %v40455_v32 }
 0x4fe   : > { %12344 = vmatprep.mubr.bf16.mxu0 %v46528_v50 }
 0x501   : > { %35896 = vmatmul.mubr.msk.bf16.gmra.mrb[60].mxu1 %vm10658_vm6, %v40455_v32 }
 0x502   : > { %12470 = vmatprep.mubr.bf16.mxu1 %v46528_v50 }
 0x505   : > { %35891 = vmatmul.mubr.msk.bf16.vlgmr.msra.gmra.mrb[52].mxu0 %vm10658_vm6, %v40453_v48 }
 0x506   : > { %12733 = vmatpush1.bf16.msra.mxu0 %v42021_v16  ;;  %12354 = vmatprep.mubr.bf16.mxu0 %v46528_v50  ;;  %v40456_v16 = vld [vmem:[%s46468_s2 + $0x60] sm:$0xff]  }
 0x507   : > { %12734 = vmatprep.subr.bf16.mxu0 %v42093_v8 }
 0x509   : > { %35897 = vmatmul.mubr.msk.bf16.vlgmr.msra.gmra.mrb[76].mxu1 %vm10658_vm6, %v40453_v48 }
 0x50a   : > { %12796 = vmatpush1.bf16.msra.mxu1 %v42023_v17  ;;  %12480 = vmatprep.mubr.bf16.mxu1 %v46528_v50 }
 0x50b   : > { %12797 = vmatprep.subr.bf16.mxu1 %v42097_v34  ;;  %12735 = vmatpush1.bf16.msra.mxu0 %v42076_v3  ;;  %v40457_v3 = vld [vmem:[%s46468_s2 + $0x68] sm:$0xff]  }
 0x50c   : > { %12858 = vmatprep.subr.bf16.mxu0 %v42133_v23 }
 0x50d   : > { %35892 = vmatmul.mubr.msk.bf16.gmra.mrb[56].mxu0 %vm10658_vm6, %v40454_v13 }
 0x50e   : > { %12798 = vmatpush1.bf16.msra.mxu1 %v42080_v11  ;;  %12364 = vmatprep.mubr.bf16.mxu0 %v46528_v50 }
 0x50f   : > { %12921 = vmatprep.subr.bf16.mxu1 %v42136_v33 }
 0x511   : > { %35898 = vmatmul.mubr.msk.bf16.gmra.mrb[80].mxu1 %vm10658_vm6, %v40454_v13 }
 0x512   : > { %12490 = vmatprep.mubr.bf16.mxu1 %v46528_v50 }
 0x515   : > { %35893 = vmatmul.mubr.msk.bf16.gmra.mrb[60].mxu0 %vm10658_vm6, %v40455_v32 }
 0x516   : > { %12764 = vmatprep.mubr.bf16.mxu0 %v46528_v50 }
 0x519   : > { %35899 = vmatmul.mubr.msk.bf16.gmra.mrb[84].mxu1 %vm10658_vm6, %v40455_v32 }
 0x51a   : > { %12827 = vmatprep.mubr.bf16.mxu1 %v46528_v50 }
 0x51d   : > { %35909 = vmatmul.mubr.msk.bf16.vlgmr.msra.gmra.mrb[40].mxu0 %vm10658_vm6, %v40456_v16 }
 0x51e   : > { %12859 = vmatpush1.bf16.msra.mxu0 %v42117_v58  ;;  %12774 = vmatprep.mubr.bf16.mxu0 %v46528_v50 }
 0x51f   : > { %12860 = vmatprep.subr.bf16.mxu0 %v42163_v7 }
 0x521   : > { %35912 = vmatmul.mubr.msk.bf16.vlgmr.msra.gmra.mrb[40].mxu1 %vm10658_vm6, %v40456_v16 }
 0x522   : > { %12922 = vmatpush1.bf16.msra.mxu1 %v42129_v2  ;;  %12837 = vmatprep.mubr.bf16.mxu1 %v46528_v50 }
 0x523   : > { %12923 = vmatprep.subr.bf16.mxu1 %v46529_v60  ;;  %12861 = vmatpush1.bf16.msra.mxu0 %v42158_v59 }
 0x524   : > { %12984 = vmatprep.subr.bf16.mxu0 %v46532_v37 }
 0x525   : > { %35910 = vmatmul.mubr.msk.bf16.gmra.mrb[44].mxu0 %vm10658_vm6, %v40457_v3 }
 0x526   : > { %12924 = vmatpush1.bf16.msra.mxu1 %v42161_v4  ;;  %12784 = vmatprep.mubr.bf16.mxu0 %v46528_v50 }
 0x527   : > { %13341 = vmatprep.subr.bf16.mxu1 %v42117_v58 }
 0x529   : > { %35913 = vmatmul.mubr.msk.bf16.gmra.mrb[44].mxu1 %vm10658_vm6, %v40457_v3 }
 0x52a   : > { %12847 = vmatprep.mubr.bf16.mxu1 %v46528_v50 }
 0x52d   : > { %35911 = vmatmul.mubr.msk.bf16.gmra.mrb[48].mxu0 %vm10658_vm6, %v40458_v0 }
 0x52e   : > { %12890 = vmatprep.mubr.bf16.mxu0 %v46528_v50 }
 0x530   : > { %v10954_v6 = vpop.f32.mrb[64].mxu0 }
 0x531   : > { %35914 = vmatmul.mubr.msk.bf16.gmra.mrb[48].mxu1 %vm10658_vm6, %v40458_v0  ;;  %v10956_v62 = vpop.f32.mrb[65].mxu0 }
 0x532   : > { %12953 = vmatprep.mubr.bf16.mxu1 %v46528_v50  ;;  %v10958_v25 = vpop.f32.mrb[66].mxu0 }
 0x533   : > { %v10960_v26 = vpop.f32.mrb[67].mxu0 }
 0x535   : > { %35915 = vmatmul.mubr.msk.bf16.vlgmr.msra.gmra.mrb[52].mxu0 %vm10658_vm6, %v40456_v16 }
 0x536   : > { %12985 = vmatpush1.bf16.msra.mxu0 %v46530_v52  ;;  %12900 = vmatprep.mubr.bf16.mxu0 %v46528_v50 }
 0x537   : > { %12986 = vmatprep.subr.bf16.mxu0 %v42256_v53 }
 0x538   : > { %v42566_v36 = vpop.f32.mrb[68].mxu0 }
 0x539   : > { %35918 = vmatmul.mubr.msk.bf16.vlgmr.msra.gmra.mrb[52].mxu1 %vm10658_vm6, %v40456_v16  ;;  %v10966_v9 = vpop.f32.mrb[69].mxu0 }
 0x53a   : > { %13342 = vmatpush1.bf16.msra.mxu1 %v42027_v31  ;;  %12963 = vmatprep.mubr.bf16.mxu1 %v46528_v50  ;;  %v10968_v57 = vpop.f32.mrb[70].mxu0  ;;  %v46535_v9 = vld [vmem:[#allocation14_spill] sm:$0xff] }
 0x53b   : > { %13343 = vmatprep.subr.bf16.mxu1 %v42158_v59  ;;  %12987 = vmatpush1.bf16.msra.mxu0 %v46531_v45  ;;  %v10970_v61 = vpop.f32.mrb[71].mxu0 }
 0x53c   : > { %13278 = vmatprep.subr.bf16.mxu0 %v42023_v17 }
 0x53d   : > { %35916 = vmatmul.mubr.msk.bf16.gmra.mrb[56].mxu0 %vm10658_vm6, %v40457_v3 }
 0x53e   : > { %13344 = vmatpush1.bf16.msra.mxu1 %v42097_v34  ;;  %12910 = vmatprep.mubr.bf16.mxu0 %v46528_v50 }
 0x53f   : > { %13467 = vmatprep.subr.bf16.mxu1 %v46530_v52 }
 0x540   : > { %v10974_v24 = vpop.f32.mrb[72].mxu0 }
 0x541   : > { %35919 = vmatmul.mubr.msk.bf16.gmra.mrb[56].mxu1 %vm10658_vm6, %v40457_v3  ;;  %v10976_v63 = vpop.f32.mrb[73].mxu0 }
 0x542   : > { %12973 = vmatprep.mubr.bf16.mxu1 %v46528_v50  ;;  %v10978_v55 = vpop.f32.mrb[74].mxu0 }
 0x543   : > { %v10980_v1 = vpop.f32.mrb[75].mxu0 }
 0x545   : > { %35917 = vmatmul.mubr.msk.bf16.gmra.mrb[60].mxu0 %vm10658_vm6, %v40458_v0 }
 0x546   : > { %13016 = vmatprep.mubr.bf16.mxu0 %v46528_v50 }
 0x549   : > { %35920 = vmatmul.mubr.msk.bf16.gmra.mrb[60].mxu1 %vm10658_vm6, %v40458_v0 }
 0x54a   : > { %13373 = vmatprep.mubr.bf16.mxu1 %v46528_v50 }
 0x54d   : > { %35921 = vmatmul.mubr.msk.bf16.vlgmr.msra.gmra.mrb[88].mxu0 %vm10658_vm6, %v40456_v16 }
 0x54e   : > { %13279 = vmatpush1.bf16.msra.mxu0 %v42025_v30  ;;  %13026 = vmatprep.mubr.bf16.mxu0 %v46528_v50  ;;  %v42602_v30 = vld [vmem:[%s46468_s2 + $0x80] sm:$0xff]  }
 0x54f   : > { %13280 = vmatprep.subr.bf16.mxu0 %v42080_v11 }
 0x551   : > { %35936 = vmatmul.mubr.msk.bf16.vlgmr.msra.gmra.mrb[40].mxu1 %vm10658_vm6, %v42586_v20 }
 0x552   : > { %13468 = vmatpush1.bf16.msra.mxu1 %v42136_v33  ;;  %13383 = vmatprep.mubr.bf16.mxu1 %v46528_v50 }
 0x553   : > { %13469 = vmatprep.subr.bf16.mxu1 %v46531_v45  ;;  %13281 = vmatpush1.bf16.msra.mxu0 %v42093_v8  ;;  %v40461_v8 = vld [vmem:[%s46468_s2 + $0x88] sm:$0xff]  }
 0x554   : > { %13404 = vmatprep.subr.bf16.mxu0 %v42129_v2 }
 0x555   : > { %35922 = vmatmul.mubr.msk.bf16.gmra.mrb[92].mxu0 %vm10658_vm6, %v40457_v3 }
 0x556   : > { %13470 = vmatpush1.bf16.msra.mxu1 %v46529_v60  ;;  %13036 = vmatprep.mubr.bf16.mxu0 %v46528_v50 }
 0x557   : > { %13530 = vmatprep.subr.bf16.mxu1 %v46533_v51 }
 0x559   : > { %35937 = vmatmul.mubr.msk.bf16.gmra.mrb[44].mxu1 %vm10658_vm6, %v42602_v30 }
 0x55a   : > { %13393 = vmatprep.mubr.bf16.mxu1 %v46528_v50 }
 0x55d   : > { %35923 = vmatmul.mubr.msk.bf16.gmra.mrb[96].mxu0 %vm10658_vm6, %v40458_v0 }
 0x55e   : > { %13310 = vmatprep.mubr.bf16.mxu0 %v46528_v50 }
 0x561   : > { %35938 = vmatmul.mubr.msk.bf16.gmra.mrb[48].mxu1 %vm10658_vm6, %v40461_v8 }
 0x562   : > { %13499 = vmatprep.mubr.bf16.mxu1 %v46528_v50 }
 0x564   : > { %v11380_v19 = vpop.f32.mrb[64].mxu1 }
 0x565   : > { %v42618_v39 = vadd.f32 %v11380_v19, %v10954_v6  ;;  %v11382_v40 = vpop.f32.mrb[65].mxu1  ;;  %35933 = vmatmul.mubr.msk.bf16.vlgmr.msra.gmra.mrb[40].mxu0 %vm10658_vm6, %v42586_v20 }
 0x566   : > { %v11384_v56 = vpop.f32.mrb[66].mxu1  ;;  %13405 = vmatpush1.bf16.msra.mxu0 %v42133_v23  ;;  %13320 = vmatprep.mubr.bf16.mxu0 %v46528_v50 }
 0x567   : > { %v42622_v28 = vadd.f32 %v11384_v56, %v10958_v25  ;;  %v11386_v21 = vpop.f32.mrb[67].mxu1  ;;  %13406 = vmatprep.subr.bf16.mxu0 %v42161_v4 }
 0x569   : > { %35942 = vmatmul.mubr.msk.bf16.vlgmr.msra.gmra.mrb[52].mxu1 %vm10658_vm6, %v42586_v20 }
 0x56a   : > { %13531 = vmatpush1.bf16.msra.mxu1 %v46532_v37  ;;  %13509 = vmatprep.mubr.bf16.mxu1 %v46528_v50 }
 0x56b   : > { %13532 = vmatprep.subr.bf16.mxu1 %v46534_v15  ;;  %13407 = vmatpush1.bf16.msra.mxu0 %v42163_v7 }
 0x56c   : > { %v11390_v41 = vpop.f32.mrb[68].mxu1  ;;  %13824 = vmatprep.subr.bf16.mxu0 %v42027_v31 }
 0x56d   : > { %v42635_v48 = vadd.f32 %v11390_v41, %v42566_v36  ;;  %v11392_v13 = vpop.f32.mrb[69].mxu1  ;;  %35934 = vmatmul.mubr.msk.bf16.gmra.mrb[44].mxu0 %vm10658_vm6, %v42602_v30 }
 0x56e   : > { %13533 = vmatpush1.bf16.msra.mxu1 %v42256_v53  ;;  %v11394_v32 = vpop.f32.mrb[70].mxu1  ;;  %13330 = vmatprep.mubr.bf16.mxu0 %v46528_v50 }
 0x56f   : > { %v42640_v16 = vadd.f32 %v11394_v32, %v10968_v57  ;;  %13887 = vmatprep.subr.bf16.mxu1 %v42133_v23  ;;  %v11396_v3 = vpop.f32.mrb[71].mxu1  ;;  %v40464_v57 = vld [vmem:[%s46468_s2 + $0xa0] sm:$0xff]  }
 0x571   : > { %35943 = vmatmul.mubr.msk.bf16.gmra.mrb[56].mxu1 %vm10658_vm6, %v42602_v30 }
 0x572   : > { %13519 = vmatprep.mubr.bf16.mxu1 %v46528_v50 }
 0x574   : > { %v11400_v0 = vpop.f32.mrb[72].mxu1 }
 0x575   : > { %v42647_v6 = vadd.f32 %v11400_v0, %v10974_v24  ;;  %v11402_v62 = vpop.f32.mrb[73].mxu1  ;;  %35935 = vmatmul.mubr.msk.bf16.gmra.mrb[48].mxu0 %vm10658_vm6, %v40461_v8 }
 0x576   : > { %v11404_v25 = vpop.f32.mrb[74].mxu1  ;;  %13436 = vmatprep.mubr.bf16.mxu0 %v46528_v50 }
 0x577   : > { %v42650_v26 = vadd.f32 %v11404_v25, %v10978_v55  ;;  %v11406_v36 = vpop.f32.mrb[75].mxu1 }
 0x579   : > { %35944 = vmatmul.mubr.msk.bf16.gmra.mrb[60].mxu1 %vm10658_vm6, %v40461_v8 }
 0x57a   : > { %13562 = vmatprep.mubr.bf16.mxu1 %v46528_v50 }
 0x57d   : > { %35939 = vmatmul.mubr.msk.bf16.vlgmr.msra.gmra.mrb[52].mxu0 %vm10658_vm6, %v42586_v20 }
 0x57e   : > { %13825 = vmatpush1.bf16.msra.mxu0 %v42023_v17  ;;  %13446 = vmatprep.mubr.bf16.mxu0 %v46528_v50  ;;  %v40462_v17 = vld [vmem:[%s46468_s2 + $0x90] sm:$0xff]  }
 0x57f   : > { %13826 = vmatprep.subr.bf16.mxu0 %v42097_v34 }
 0x581   : > { %35945 = vmatmul.mubr.msk.bf16.vlgmr.msra.gmra.mrb[88].mxu1 %vm10658_vm6, %v42586_v20 }
 0x582   : > { %13888 = vmatpush1.bf16.msra.mxu1 %v42117_v58  ;;  %13572 = vmatprep.mubr.bf16.mxu1 %v46528_v50 }
 0x583   : > { %13889 = vmatprep.subr.bf16.mxu1 %v42163_v7  ;;  %13827 = vmatpush1.bf16.msra.mxu0 %v42080_v11  ;;  %v42692_v11 = vld [vmem:[%s46468_s2 + $0x98] sm:$0xff]  }
 0x584   : > { %13950 = vmatprep.subr.bf16.mxu0 %v42136_v33 }
 0x585   : > { %35940 = vmatmul.mubr.msk.bf16.gmra.mrb[56].mxu0 %vm10658_vm6, %v42602_v30 }
 0x586   : > { %13890 = vmatpush1.bf16.msra.mxu1 %v42158_v59  ;;  %13456 = vmatprep.mubr.bf16.mxu0 %v46528_v50 }
 0x587   : > { %14013 = vmatprep.subr.bf16.mxu1 %v46532_v37 }
 0x589   : > { %35946 = vmatmul.mubr.msk.bf16.gmra.mrb[92].mxu1 %vm10658_vm6, %v42602_v30 }
 0x58a   : > { %13582 = vmatprep.mubr.bf16.mxu1 %v46528_v50 }
 0x58d   : > { %35941 = vmatmul.mubr.msk.bf16.gmra.mrb[60].mxu0 %vm10658_vm6, %v40461_v8 }
 0x58e   : > { %13856 = vmatprep.mubr.bf16.mxu0 %v46528_v50 }
 0x591   : > { %35947 = vmatmul.mubr.msk.bf16.gmra.mrb[96].mxu1 %vm10658_vm6, %v40461_v8 }
 0x592   : > { %13919 = vmatprep.mubr.bf16.mxu1 %v46528_v50 }
 0x595   : > { %35957 = vmatmul.mubr.msk.bf16.vlgmr.msra.gmra.mrb[40].mxu0 %vm10658_vm6, %v40462_v17 }
 0x596   : > { %13951 = vmatpush1.bf16.msra.mxu0 %v42129_v2  ;;  %13866 = vmatprep.mubr.bf16.mxu0 %v46528_v50 }
 0x597   : > { %13952 = vmatprep.subr.bf16.mxu0 %v46529_v60 }
 0x599   : > { %35960 = vmatmul.mubr.msk.bf16.vlgmr.msra.gmra.mrb[40].mxu1 %vm10658_vm6, %v40462_v17 }
 0x59a   : > { %14014 = vmatpush1.bf16.msra.mxu1 %v46530_v52  ;;  %13929 = vmatprep.mubr.bf16.mxu1 %v46528_v50 }
 0x59b   : > { %14015 = vmatprep.subr.bf16.mxu1 %v42256_v53  ;;  %13953 = vmatpush1.bf16.msra.mxu0 %v42161_v4 }
 0x59c   : > { %14076 = vmatprep.subr.bf16.mxu0 %v46535_v9 }
 0x59d   : > { %35958 = vmatmul.mubr.msk.bf16.gmra.mrb[44].mxu0 %vm10658_vm6, %v42692_v11 }
 0x59e   : > { %14016 = vmatpush1.bf16.msra.mxu1 %v46531_v45  ;;  %13876 = vmatprep.mubr.bf16.mxu0 %v46528_v50 }
 0x59f   : > { %14433 = vmatprep.subr.bf16.mxu1 %v42129_v2 }
 0x5a1   : > { %35961 = vmatmul.mubr.msk.bf16.gmra.mrb[44].mxu1 %vm10658_vm6, %v42692_v11 }
 0x5a2   : > { %13939 = vmatprep.mubr.bf16.mxu1 %v46528_v50 }
 0x5a5   : > { %35959 = vmatmul.mubr.msk.bf16.gmra.mrb[48].mxu0 %vm10658_vm6, %v40464_v57 }
 0x5a6   : > { %13982 = vmatprep.mubr.bf16.mxu0 %v46528_v50 }
 0x5a8   : > { %v11926_v61 = vpop.f32.mrb[76].mxu0 }
 0x5a9   : > { %35962 = vmatmul.mubr.msk.bf16.gmra.mrb[48].mxu1 %vm10658_vm6, %v40464_v57  ;;  %v12023_v24 = vadd.f32 %v11926_v61, %v42618_v39  ;;  %v11928_v63 = vpop.f32.mrb[77].mxu0 }
 0x5aa   : > { %14045 = vmatprep.mubr.bf16.mxu1 %v46528_v50  ;;  %v11930_v55 = vpop.f32.mrb[78].mxu0 }
 0x5ab   : > { %v12033_v1 = vadd.f32 %v11930_v55, %v42622_v28  ;;  %v11932_v20 = vpop.f32.mrb[79].mxu0 }
 0x5ad   : > { %35963 = vmatmul.mubr.msk.bf16.vlgmr.msra.gmra.mrb[52].mxu0 %vm10658_vm6, %v40462_v17 }
 0x5ae   : > { %14077 = vmatpush1.bf16.msra.mxu0 %v46533_v51  ;;  %13992 = vmatprep.mubr.bf16.mxu0 %v46528_v50 }
 0x5af   : > { %14078 = vmatprep.subr.bf16.mxu0 %v42261_v12 }
 0x5b0   : > { %v11936_v30 = vpop.f32.mrb[80].mxu0 }
 0x5b1   : > { %35966 = vmatmul.mubr.msk.bf16.vlgmr.msra.gmra.mrb[52].mxu1 %vm10658_vm6, %v40462_v17  ;;  %v42721_v8 = vadd.f32 %v11936_v30, %v42635_v48  ;;  %v11938_v19 = vpop.f32.mrb[81].mxu0 }
 0x5b2   : > { %14434 = vmatpush1.bf16.msra.mxu1 %v42133_v23  ;;  %14055 = vmatprep.mubr.bf16.mxu1 %v46528_v50  ;;  %v11940_v39 = vpop.f32.mrb[82].mxu0  ;;  %v42871_v19 = vld [vmem:[%s46468_s2 + $0xd0] sm:$0xff]  }
 0x5b3   : > { %14435 = vmatprep.subr.bf16.mxu1 %v42161_v4  ;;  %14079 = vmatpush1.bf16.msra.mxu0 %v46534_v15  ;;  %v42727_v40 = vadd.f32 %v11940_v39, %v42640_v16  ;;  %v11942_v56 = vpop.f32.mrb[83].mxu0  ;;  %v42747_v16 = vld [vmem:[%s46468_s2 + $0xa8] sm:$0xff]  }
 0x5b4   : > { %14370 = vmatprep.subr.bf16.mxu0 %v42117_v58 }
 0x5b5   : > { %35964 = vmatmul.mubr.msk.bf16.gmra.mrb[56].mxu0 %vm10658_vm6, %v42692_v11 }
 0x5b6   : > { %14436 = vmatpush1.bf16.msra.mxu1 %v42163_v7  ;;  %14002 = vmatprep.mubr.bf16.mxu0 %v46528_v50 }
 0x5b7   : > { %14559 = vmatprep.subr.bf16.mxu1 %v46533_v51 }
 0x5b8   : > { %v11946_v28 = vpop.f32.mrb[84].mxu0 }
 0x5b9   : > { %35967 = vmatmul.mubr.msk.bf16.gmra.mrb[56].mxu1 %vm10658_vm6, %v42692_v11  ;;  %v12063_v21 = vadd.f32 %v11946_v28, %v42647_v6  ;;  %v11948_v41 = vpop.f32.mrb[85].mxu0 }
 0x5ba   : > { %14065 = vmatprep.mubr.bf16.mxu1 %v46528_v50  ;;  %v11950_v48 = vpop.f32.mrb[86].mxu0 }
 0x5bb   : > { %v12073_v13 = vadd.f32 %v11950_v48, %v42650_v26  ;;  %v11952_v32 = vpop.f32.mrb[87].mxu0 }
 0x5bd   : > { %35965 = vmatmul.mubr.msk.bf16.gmra.mrb[60].mxu0 %vm10658_vm6, %v40464_v57 }
 0x5be   : > { %14108 = vmatprep.mubr.bf16.mxu0 %v46528_v50 }
 0x5c1   : > { %35968 = vmatmul.mubr.msk.bf16.gmra.mrb[60].mxu1 %vm10658_vm6, %v40464_v57 }
 0x5c2   : > { %14465 = vmatprep.mubr.bf16.mxu1 %v46528_v50 }
 0x5c5   : > { %35969 = vmatmul.mubr.msk.bf16.vlgmr.msra.gmra.mrb[100].mxu0 %vm10658_vm6, %v40462_v17 }
 0x5c6   : > { %14371 = vmatpush1.bf16.msra.mxu0 %v42027_v31  ;;  %14118 = vmatprep.mubr.bf16.mxu0 %v46528_v50  ;;  %v42763_v31 = vld [vmem:[%s46468_s2 + $0xb0] sm:$0xff]  }
 0x5c7   : > { %14372 = vmatprep.subr.bf16.mxu0 %v42158_v59 }
 0x5c9   : > { %35984 = vmatmul.mubr.msk.bf16.vlgmr.msra.gmra.mrb[40].mxu1 %vm10658_vm6, %v42747_v16 }
 0x5ca   : > { %14560 = vmatpush1.bf16.msra.mxu1 %v46532_v37  ;;  %14475 = vmatprep.mubr.bf16.mxu1 %v46528_v50 }
 0x5cb   : > { %14561 = vmatprep.subr.bf16.mxu1 %v46534_v15  ;;  %14373 = vmatpush1.bf16.msra.mxu0 %v42097_v34  ;;  %v40467_v34 = vld [vmem:[%s46468_s2 + $0xb8] sm:$0xff]  }
 0x5cc   : > { %14496 = vmatprep.subr.bf16.mxu0 %v46530_v52 }
 0x5cd   : > { %35970 = vmatmul.mubr.msk.bf16.gmra.mrb[104].mxu0 %vm10658_vm6, %v42692_v11 }
 0x5ce   : > { %14562 = vmatpush1.bf16.msra.mxu1 %v42256_v53  ;;  %14128 = vmatprep.mubr.bf16.mxu0 %v46528_v50 }
 0x5cf   : > { %14622 = vmatprep.subr.bf16.mxu1 %v42301_v38 }
 0x5d1   : > { %35985 = vmatmul.mubr.msk.bf16.gmra.mrb[44].mxu1 %vm10658_vm6, %v42763_v31 }
 0x5d2   : > { %14485 = vmatprep.mubr.bf16.mxu1 %v46528_v50 }
 0x5d5   : > { %35971 = vmatmul.mubr.msk.bf16.gmra.mrb[108].mxu0 %vm10658_vm6, %v40464_v57 }
 0x5d6   : > { %14402 = vmatprep.mubr.bf16.mxu0 %v46528_v50 }
 0x5d9   : > { %35986 = vmatmul.mubr.msk.bf16.gmra.mrb[48].mxu1 %vm10658_vm6, %v40467_v34 }
 0x5da   : > { %14591 = vmatprep.mubr.bf16.mxu1 %v46528_v50 }
 0x5dc   : > { %v12472_v3 = vpop.f32.mrb[76].mxu1 }
 0x5dd   : > { %v42780_v0 = vadd.f32 %v12472_v3, %v12023_v24  ;;  %v12474_v6 = vpop.f32.mrb[77].mxu1  ;;  %35981 = vmatmul.mubr.msk.bf16.vlgmr.msra.gmra.mrb[40].mxu0 %vm10658_vm6, %v42747_v16 }
 0x5de   : > { %v12476_v62 = vpop.f32.mrb[78].mxu1  ;;  %14497 = vmatpush1.bf16.msra.mxu0 %v42136_v33  ;;  %14412 = vmatprep.mubr.bf16.mxu0 %v46528_v50 }
 0x5df   : > { %v42784_v25 = vadd.f32 %v12476_v62, %v12033_v1  ;;  %v12478_v26 = vpop.f32.mrb[79].mxu1  ;;  %14498 = vmatprep.subr.bf16.mxu0 %v46531_v45 }
 0x5e1   : > { %35990 = vmatmul.mubr.msk.bf16.vlgmr.msra.gmra.mrb[52].mxu1 %vm10658_vm6, %v42747_v16 }
 0x5e2   : > { %14623 = vmatpush1.bf16.msra.mxu1 %v46535_v9  ;;  %14601 = vmatprep.mubr.bf16.mxu1 %v46528_v50 }
 0x5e3   : > { %14624 = vmatprep.subr.bf16.mxu1 %v42314_v49  ;;  %14499 = vmatpush1.bf16.msra.mxu0 %v46529_v60 }
 0x5e4   : > { %v12482_v36 = vpop.f32.mrb[80].mxu1  ;;  %14916 = vmatprep.subr.bf16.mxu0 %v42133_v23 }
 0x5e5   : > { %v42797_v17 = vadd.f32 %v12482_v36, %v42721_v8  ;;  %v12484_v11 = vpop.f32.mrb[81].mxu1  ;;  %35982 = vmatmul.mubr.msk.bf16.gmra.mrb[44].mxu0 %vm10658_vm6, %v42763_v31  ;;  %v42924_v36 = vld [vmem:[%s46468_s2 + $0xd8] sm:$0xff]  }
 0x5e6   : > { %14625 = vmatpush1.bf16.msra.mxu1 %v42261_v12  ;;  %v12486_v57 = vpop.f32.mrb[82].mxu1  ;;  %14422 = vmatprep.mubr.bf16.mxu0 %v46528_v50  ;;  %v42956_v11 = vld [vmem:[%s46468_s2 + $0xe8] sm:$0xff]  }
 0x5e7   : > { %v42803_v61 = vadd.f32 %v12486_v57, %v42727_v40  ;;  %14979 = vmatprep.subr.bf16.mxu1 %v42136_v33  ;;  %v12488_v24 = vpop.f32.mrb[83].mxu1  ;;  %v40791_v57 = vmov 4  }
 0x5e8   : > { %40277 = vset.pattern.permute.xlu0 %v40791_v57 }
 0x5e9   : > { %35991 = vmatmul.mubr.msk.bf16.gmra.mrb[56].mxu1 %vm10658_vm6, %v42763_v31 }
 0x5ea   : > { %14611 = vmatprep.mubr.bf16.mxu1 %v46528_v50 }
 0x5ec   : > { %v12492_v63 = vpop.f32.mrb[84].mxu1 }
 0x5ed   : > { %v42810_v55 = vadd.f32 %v12492_v63, %v12063_v21  ;;  %v12494_v1 = vpop.f32.mrb[85].mxu1  ;;  %35983 = vmatmul.mubr.msk.bf16.gmra.mrb[48].mxu0 %vm10658_vm6, %v40467_v34 }
 0x5ee   : > { %v12496_v20 = vpop.f32.mrb[86].mxu1  ;;  %14528 = vmatprep.mubr.bf16.mxu0 %v46528_v50  ;;  %v40772_v1 = vld [vmem:[%s46470_s4 + $0x8] sm:$0xff] }
 0x5ef   : > { %v42813_v30 = vadd.f32 %v12496_v20, %v12073_v13  ;;  %v12498_v8 = vpop.f32.mrb[87].mxu1 }
 0x5f1   : > { %35992 = vmatmul.mubr.msk.bf16.gmra.mrb[60].mxu1 %vm10658_vm6, %v40467_v34 }
 0x5f2   : > { %14654 = vmatprep.mubr.bf16.mxu1 %v46528_v50 }
 0x5f5   : > { %35987 = vmatmul.mubr.msk.bf16.vlgmr.msra.gmra.mrb[52].mxu0 %vm10658_vm6, %v42747_v16 }
 0x5f6   : > { %14917 = vmatpush1.bf16.msra.mxu0 %v42117_v58  ;;  %14538 = vmatprep.mubr.bf16.mxu0 %v46528_v50  ;;  %v40468_v58 = vld [vmem:[%s46468_s2 + $0xc0] sm:$0xff]  }
 0x5f7   : > { %14918 = vmatprep.subr.bf16.mxu0 %v42163_v7 }
 0x5f9   : > { %35993 = vmatmul.mubr.msk.bf16.vlgmr.msra.gmra.mrb[100].mxu1 %vm10658_vm6, %v42747_v16 }
 0x5fa   : > { %14980 = vmatpush1.bf16.msra.mxu1 %v42129_v2  ;;  %14664 = vmatprep.mubr.bf16.mxu1 %v46528_v50 }
 0x5fb   : > { %14981 = vmatprep.subr.bf16.mxu1 %v46529_v60  ;;  %14919 = vmatpush1.bf16.msra.mxu0 %v42158_v59  ;;  %v42855_v59 = vld [vmem:[%s46468_s2 + $0xc8] sm:$0xff]  }
 0x5fc   : > { %15042 = vmatprep.subr.bf16.mxu0 %v46532_v37 }
 0x5fd   : > { %35988 = vmatmul.mubr.msk.bf16.gmra.mrb[56].mxu0 %vm10658_vm6, %v42763_v31 }
 0x5fe   : > { %14982 = vmatpush1.bf16.msra.mxu1 %v42161_v4  ;;  %14548 = vmatprep.mubr.bf16.mxu0 %v46528_v50 }
 0x5ff   : > { %15105 = vmatprep.subr.bf16.mxu1 %v46535_v9 }
 0x601   : > { %35994 = vmatmul.mubr.msk.bf16.gmra.mrb[104].mxu1 %vm10658_vm6, %v42763_v31 }
 0x602   : > { %14674 = vmatprep.mubr.bf16.mxu1 %v46528_v50 }
 0x605   : > { %35989 = vmatmul.mubr.msk.bf16.gmra.mrb[60].mxu0 %vm10658_vm6, %v40467_v34 }
 0x606   : > { %14948 = vmatprep.mubr.bf16.mxu0 %v46528_v50 }
 0x609   : > { %35995 = vmatmul.mubr.msk.bf16.gmra.mrb[108].mxu1 %vm10658_vm6, %v40467_v34 }
 0x60a   : > { %15011 = vmatprep.mubr.bf16.mxu1 %v46528_v50 }
 0x60d   : > { %36005 = vmatmul.mubr.msk.bf16.vlgmr.msra.gmra.mrb[40].mxu0 %vm10658_vm6, %v40468_v58 }
 0x60e   : > { %15043 = vmatpush1.bf16.msra.mxu0 %v46530_v52  ;;  %14958 = vmatprep.mubr.bf16.mxu0 %v46528_v50 }
 0x60f   : > { %15044 = vmatprep.subr.bf16.mxu0 %v42256_v53 }
 0x611   : > { %36008 = vmatmul.mubr.msk.bf16.vlgmr.msra.gmra.mrb[40].mxu1 %vm10658_vm6, %v40468_v58 }
 0x612   : > { %15106 = vmatpush1.bf16.msra.mxu1 %v46533_v51  ;;  %15021 = vmatprep.mubr.bf16.mxu1 %v46528_v50 }
 0x613   : > { %15107 = vmatprep.subr.bf16.mxu1 %v42261_v12  ;;  %15045 = vmatpush1.bf16.msra.mxu0 %v46531_v45 }
 0x614   : > { %15168 = vmatprep.subr.bf16.mxu0 %v42317_v54 }
 0x615   : > { %36006 = vmatmul.mubr.msk.bf16.gmra.mrb[44].mxu0 %vm10658_vm6, %v42855_v59 }
 0x616   : > { %15108 = vmatpush1.bf16.msra.mxu1 %v46534_v15  ;;  %14968 = vmatprep.mubr.bf16.mxu0 %v46528_v50 }
 0x617   : > { %15525 = vmatprep.subr.bf16.mxu1 %v46530_v52 }
 0x619   : > { %36009 = vmatmul.mubr.msk.bf16.gmra.mrb[44].mxu1 %vm10658_vm6, %v42855_v59 }
 0x61a   : > { %15031 = vmatprep.mubr.bf16.mxu1 %v46528_v50 }
 0x61d   : > { %36007 = vmatmul.mubr.msk.bf16.gmra.mrb[48].mxu0 %vm10658_vm6, %v42871_v19 }
 0x61e   : > { %15074 = vmatprep.mubr.bf16.mxu0 %v46528_v50 }
 0x620   : > { %v13018_v39 = vpop.f32.mrb[88].mxu0 }
 0x621   : > { %36010 = vmatmul.mubr.msk.bf16.gmra.mrb[48].mxu1 %vm10658_vm6, %v42871_v19  ;;  %v42879_v40 = vadd.f32 %v13018_v39, %v42780_v0  ;;  %v13020_v56 = vpop.f32.mrb[89].mxu0 }
 0x622   : > { %15137 = vmatprep.mubr.bf16.mxu1 %v46528_v50  ;;  %v13022_v28 = vpop.f32.mrb[90].mxu0 }
 0x623   : > { %v42883_v21 = vadd.f32 %v13022_v28, %v42784_v25  ;;  %v13024_v41 = vpop.f32.mrb[91].mxu0  ;;  %v239_v28 = vld [vmem:[%s46470_s4 + $0x28] sm:$0xff] }
 0x625   : > { %36011 = vmatmul.mubr.msk.bf16.vlgmr.msra.gmra.mrb[52].mxu0 %vm10658_vm6, %v40468_v58 }
 0x626   : > { %15169 = vmatpush1.bf16.msra.mxu0 %v42301_v38  ;;  %15084 = vmatprep.mubr.bf16.mxu0 %v46528_v50 }
 0x627   : > { %15170 = vmatprep.subr.bf16.mxu0 %v42325_v46 }
 0x628   : > { %v13028_v48 = vpop.f32.mrb[92].mxu0 }
 0x629   : > { %36014 = vmatmul.mubr.msk.bf16.vlgmr.msra.gmra.mrb[52].mxu1 %vm10658_vm6, %v40468_v58  ;;  %v42892_v13 = vadd.f32 %v13028_v48, %v42797_v17  ;;  %v13030_v32 = vpop.f32.mrb[93].mxu0  ;;  %v40790_v17 = vmov 1  }
 0x62a   : > { %15526 = vmatpush1.bf16.msra.mxu1 %v42136_v33  ;;  %15147 = vmatprep.mubr.bf16.mxu1 %v46528_v50  ;;  %v13032_v16 = vpop.f32.mrb[94].mxu0 }
 0x62b   : > { %15527 = vmatprep.subr.bf16.mxu1 %v46531_v45  ;;  %15171 = vmatpush1.bf16.msra.mxu0 %v42314_v49  ;;  %v42898_v31 = vadd.f32 %v13032_v16, %v42803_v61  ;;  %v13034_v34 = vpop.f32.mrb[95].mxu0  ;;  %v40771_v61 = vld [vmem:[%s46470_s4 + $0x10] sm:$0xff] }
 0x62c   : > { %15462 = vmatprep.subr.bf16.mxu0 %v42129_v2  ;;  %40274 = vset.pattern.permute.xlu1 %v40790_v17 }
 0x62d   : > { %36012 = vmatmul.mubr.msk.bf16.gmra.mrb[56].mxu0 %vm10658_vm6, %v42855_v59  ;;  %16718 = vperm.xlu0 %40277, %v40771_v61  }
 0x62e   : > { %15528 = vmatpush1.bf16.msra.mxu1 %v46529_v60  ;;  %15094 = vmatprep.mubr.bf16.mxu0 %v46528_v50 }
 0x62f   : > { %15651 = vmatprep.subr.bf16.mxu1 %v42301_v38 }
 0x630   : > { %v13038_v3 = vpop.f32.mrb[96].mxu0 }
 0x631   : > { %36015 = vmatmul.mubr.msk.bf16.gmra.mrb[56].mxu1 %vm10658_vm6, %v42855_v59  ;;  %v42909_v0 = vadd.f32 %v13038_v3, %v42810_v55  ;;  %v13040_v6 = vpop.f32.mrb[97].mxu0  ;;  %40278 = vset.pattern.permute.xlu0 %v40790_v17 }
 0x632   : > { %15157 = vmatprep.mubr.bf16.mxu1 %v46528_v50  ;;  %v13042_v62 = vpop.f32.mrb[98].mxu0  ;;  %16568 = vperm.xlu0 %40278, %v40772_v1  }
 0x633   : > { %v42913_v25 = vadd.f32 %v13042_v62, %v42813_v30  ;;  %v13044_v26 = vpop.f32.mrb[99].mxu0 }
 0x635   : > { %36013 = vmatmul.mubr.msk.bf16.gmra.mrb[60].mxu0 %vm10658_vm6, %v42871_v19 }
 0x636   : > { %15200 = vmatprep.mubr.bf16.mxu0 %v46528_v50  ;;  %16572 = vperm.xlu0 %40278, %v40771_v61  }
 0x639   : > { %36016 = vmatmul.mubr.msk.bf16.gmra.mrb[60].mxu1 %vm10658_vm6, %v42871_v19 }
 0x63a   : > { %15557 = vmatprep.mubr.bf16.mxu1 %v46528_v50  ;;  %16586 = vperm.xlu0 %40278, %v239_v28  }
 0x63d   : > { %36017 = vmatmul.mubr.msk.bf16.vlgmr.msra.gmra.mrb[112].mxu0 %vm10658_vm6, %v40468_v58 }
 0x63e   : > { %15463 = vmatpush1.bf16.msra.mxu0 %v42133_v23  ;;  %15210 = vmatprep.mubr.bf16.mxu0 %v46528_v50  ;;  %v42940_v23 = vld [vmem:[%s46468_s2 + $0xe0] sm:$0xff]  }
 0x63f   : > { %15464 = vmatprep.subr.bf16.mxu0 %v42161_v4 }
 0x641   : > { %36032 = vmatmul.mubr.msk.bf16.vlgmr.msra.gmra.mrb[40].mxu1 %vm10658_vm6, %v42924_v36 }
 0x642   : > { %15652 = vmatpush1.bf16.msra.mxu1 %v46535_v9  ;;  %15567 = vmatprep.mubr.bf16.mxu1 %v46528_v50 }
 0x643   : > { %15653 = vmatprep.subr.bf16.mxu1 %v42314_v49  ;;  %15465 = vmatpush1.bf16.msra.mxu0 %v42163_v7  ;;  %v40770_v7 = vld [vmem:[%s46470_s4] sm:$0xff] }
 0x644   : > { %15588 = vmatprep.subr.bf16.mxu0 %v46533_v51  ;;  %16564 = vperm.xlu1 %40274, %v40770_v7  }
 0x645   : > { %36018 = vmatmul.mubr.msk.bf16.gmra.mrb[116].mxu0 %vm10658_vm6, %v42855_v59  ;;  %v40773_v59 = vld [vmem:[%s46470_s4 + $0x18] sm:$0xff] }
 0x646   : > { %15654 = vmatpush1.bf16.msra.mxu1 %v42261_v12  ;;  %15220 = vmatprep.mubr.bf16.mxu0 %v46528_v50 }
 0x647   : > { %15714 = vmatprep.subr.bf16.mxu1 %v42332_v22 }
 0x648   : > { %40275 = vset.pattern.permute.xlu1 %v40791_v57 }
 0x649   : > { %36033 = vmatmul.mubr.msk.bf16.gmra.mrb[44].mxu1 %vm10658_vm6, %v42940_v23  ;;  %16710 = vperm.xlu1 %40275, %v40770_v7  }
 0x64a   : > { %15577 = vmatprep.mubr.bf16.mxu1 %v46528_v50 }
 0x64d   : > { %36019 = vmatmul.mubr.msk.bf16.gmra.mrb[120].mxu0 %vm10658_vm6, %v42871_v19  ;;  %16714 = vperm.xlu1 %40275, %v40772_v1  }
 0x64e   : > { %15494 = vmatprep.mubr.bf16.mxu0 %v46528_v50 }
 0x651   : > { %36034 = vmatmul.mubr.msk.bf16.gmra.mrb[48].mxu1 %vm10658_vm6, %v42956_v11  ;;  %40276 = vset.pattern.permute.xlu1 %v40790_v17 }
 0x652   : > { %15683 = vmatprep.mubr.bf16.mxu1 %v46528_v50  ;;  %16576 = vperm.xlu1 %40276, %v40773_v59  }
 0x654   : > { %v13564_v24 = vpop.f32.mrb[88].mxu1 }
 0x655   : > { %v42968_v63 = vadd.f32 %v13564_v24, %v42879_v40  ;;  %v13566_v55 = vpop.f32.mrb[89].mxu1  ;;  %36029 = vmatmul.mubr.msk.bf16.vlgmr.msra.gmra.mrb[40].mxu0 %vm10658_vm6, %v42924_v36 }
 0x656   : > { %v13568_v20 = vpop.f32.mrb[90].mxu1  ;;  %15589 = vmatpush1.bf16.msra.mxu0 %v46532_v37  ;;  %15504 = vmatprep.mubr.bf16.mxu0 %v46528_v50  ;;  %v46489_v55 = vmov 0.0  }
 0x657   : > { %v42976_v30 = vadd.f32 %v13568_v20, %v42883_v21  ;;  %v13570_v8 = vpop.f32.mrb[91].mxu1  ;;  %15590 = vmatprep.subr.bf16.mxu0 %v46534_v15  ;;  %40279 = vset.pattern.permute.xlu1 %v40791_v57  ;;  %v238_v21 = vld [vmem:[%s46470_s4 + $0x20] sm:$0xff] }
 0x658   : > { %16722 = vperm.xlu1 %40279, %v40773_v59  }
 0x659   : > { %36038 = vmatmul.mubr.msk.bf16.vlgmr.msra.gmra.mrb[52].mxu1 %vm10658_vm6, %v42924_v36 }
 0x65a   : > { %15715 = vmatpush1.bf16.msra.mxu1 %v42317_v54  ;;  %15693 = vmatprep.mubr.bf16.mxu1 %v46528_v50 }
 0x65b   : > { %15716 = vmatprep.subr.bf16.mxu1 %v42338_v14  ;;  %15591 = vmatpush1.bf16.msra.mxu0 %v42256_v53 }
 0x65c   : > { %v13574_v58 = vpop.f32.mrb[92].mxu1  ;;  %16008 = vmatprep.subr.bf16.mxu0 %v42136_v33  ;;  %40280 = vset.pattern.permute.xlu1 %v40790_v17 }
 0x65d   : > { %v42992_v19 = vadd.f32 %v13574_v58, %v42892_v13  ;;  %v13576_v39 = vpop.f32.mrb[93].mxu1  ;;  %36030 = vmatmul.mubr.msk.bf16.gmra.mrb[44].mxu0 %vm10658_vm6, %v42940_v23  ;;  %16581 = vperm.xlu1 %40280, %v238_v21  }
 0x65e   : > { %15717 = vmatpush1.bf16.msra.mxu1 %v42325_v46  ;;  %v13578_v40 = vpop.f32.mrb[94].mxu1  ;;  %15514 = vmatprep.mubr.bf16.mxu0 %v46528_v50 }
 0x65f   : > { %v42998_v56 = vadd.f32 %v13578_v40, %v42898_v31  ;;  %16071 = vmatprep.subr.bf16.mxu1 %v46532_v37  ;;  %v13580_v33 = vpop.f32.mrb[95].mxu1 }
 0x661   : > { %36039 = vmatmul.mubr.msk.bf16.gmra.mrb[56].mxu1 %vm10658_vm6, %v42940_v23  ;;  %40281 = vset.pattern.permute.xlu1 %v40791_v57 }
 0x662   : > { %15703 = vmatprep.mubr.bf16.mxu1 %v46528_v50  ;;  %16726 = vperm.xlu1 %40281, %v238_v21  }
 0x664   : > { %v13584_v37 = vpop.f32.mrb[96].mxu1 }
 0x665   : > { %v43012_v41 = vadd.f32 %v13584_v37, %v42909_v0  ;;  %v13586_v48 = vpop.f32.mrb[97].mxu1  ;;  %36031 = vmatmul.mubr.msk.bf16.gmra.mrb[48].mxu0 %vm10658_vm6, %v42956_v11 }
 0x666   : > { %v13588_v13 = vpop.f32.mrb[98].mxu1  ;;  %15620 = vmatprep.mubr.bf16.mxu0 %v46528_v50  ;;  %16730 = vperm.xlu1 %40281, %v239_v28  }
 0x667   : > { %v43017_v32 = vadd.f32 %v13588_v13, %v42913_v25  ;;  %v13590_v16 = vpop.f32.mrb[99].mxu1 }
 0x669   : > { %36040 = vmatmul.mubr.msk.bf16.gmra.mrb[60].mxu1 %vm10658_vm6, %v42956_v11 }
 0x66a   : > { %15746 = vmatprep.mubr.bf16.mxu1 %v46528_v50 }
 0x66d   : > { %36035 = vmatmul.mubr.msk.bf16.vlgmr.msra.gmra.mrb[52].mxu0 %vm10658_vm6, %v42924_v36 }
 0x66e   : > { %16009 = vmatpush1.bf16.msra.mxu0 %v42129_v2  ;;  %15630 = vmatprep.mubr.bf16.mxu0 %v46528_v50  ;;  %v40474_v2 = vld [vmem:[%s46468_s2 + $0xf0] sm:$0xff]  }
 0x66f   : > { %16010 = vmatprep.subr.bf16.mxu0 %v46529_v60 }
 0x671   : > { %36041 = vmatmul.mubr.msk.bf16.vlgmr.msra.gmra.mrb[112].mxu1 %vm10658_vm6, %v42924_v36 }
 0x672   : > { %16072 = vmatpush1.bf16.msra.mxu1 %v46530_v52  ;;  %15756 = vmatprep.mubr.bf16.mxu1 %v46528_v50 }
 0x673   : > { %16073 = vmatprep.subr.bf16.mxu1 %v42256_v53  ;;  %16011 = vmatpush1.bf16.msra.mxu0 %v42161_v4  ;;  %v40475_v4 = vld [vmem:[%s46468_s2 + $0xf8] sm:$0xff]   ;;  %v40476_v53 = vld [vmem:[%s46468_s2 + $0x100] sm:$0xff]  }
 0x674   : > { %16134 = vmatprep.subr.bf16.mxu0 %v46535_v9 }
 0x675   : > { %36036 = vmatmul.mubr.msk.bf16.gmra.mrb[56].mxu0 %vm10658_vm6, %v42940_v23 }
 0x676   : > { %16074 = vmatpush1.bf16.msra.mxu1 %v46531_v45  ;;  %15640 = vmatprep.mubr.bf16.mxu0 %v46528_v50 }
 0x677   : > { %16197 = vmatprep.subr.bf16.mxu1 %v42317_v54 }
 0x679   : > { %36042 = vmatmul.mubr.msk.bf16.gmra.mrb[116].mxu1 %vm10658_vm6, %v42940_v23 }
 0x67a   : > { %15766 = vmatprep.mubr.bf16.mxu1 %v46528_v50 }
 0x67d   : > { %36037 = vmatmul.mubr.msk.bf16.gmra.mrb[60].mxu0 %vm10658_vm6, %v42956_v11 }
 0x67e   : > { %16040 = vmatprep.mubr.bf16.mxu0 %v46528_v50 }
 0x681   : > { %36043 = vmatmul.mubr.msk.bf16.gmra.mrb[120].mxu1 %vm10658_vm6, %v42956_v11 }
 0x682   : > { %16103 = vmatprep.mubr.bf16.mxu1 %v46528_v50 }
 0x685   : > { %36053 = vmatmul.mubr.msk.bf16.vlgmr.msra.gmra.mrb[40].mxu0 %vm10658_vm6, %v40474_v2 }
 0x686   : > { %16135 = vmatpush1.bf16.msra.mxu0 %v46533_v51  ;;  %16050 = vmatprep.mubr.bf16.mxu0 %v46528_v50 }
 0x687   : > { %16136 = vmatprep.subr.bf16.mxu0 %v42261_v12 }
 0x689   : > { %36056 = vmatmul.mubr.msk.bf16.vlgmr.msra.gmra.mrb[40].mxu1 %vm10658_vm6, %v40474_v2 }
 0x68a   : > { %16198 = vmatpush1.bf16.msra.mxu1 %v42301_v38  ;;  %16113 = vmatprep.mubr.bf16.mxu1 %v46528_v50 }
 0x68b   : > { %16199 = vmatprep.subr.bf16.mxu1 %v42325_v46  ;;  %16137 = vmatpush1.bf16.msra.mxu0 %v46534_v15 }
 0x68c   : > { %16260 = vmatprep.subr.bf16.mxu0 %v10556_v47 }
 0x68d   : > { %36054 = vmatmul.mubr.msk.bf16.gmra.mrb[44].mxu0 %vm10658_vm6, %v40475_v4 }
 0x68e   : > { %16200 = vmatpush1.bf16.msra.mxu1 %v42314_v49  ;;  %16060 = vmatprep.mubr.bf16.mxu0 %v46528_v50 }
 0x68f   : > { %37368 = vmatprep.subr.bf16.mxu1 %v46489_v55 }
 0x691   : > { %36057 = vmatmul.mubr.msk.bf16.gmra.mrb[44].mxu1 %vm10658_vm6, %v40475_v4 }
 0x692   : > { %16123 = vmatprep.mubr.bf16.mxu1 %v46528_v50 }
 0x695   : > { %36055 = vmatmul.mubr.msk.bf16.gmra.mrb[48].mxu0 %vm10658_vm6, %v40476_v53 }
 0x696   : > { %16166 = vmatprep.mubr.bf16.mxu0 %v46528_v50 }
 0x698   : > { %v14110_v12 = vpop.f32.mrb[100].mxu0 }
 0x699   : > { %36058 = vmatmul.mubr.msk.bf16.gmra.mrb[48].mxu1 %vm10658_vm6, %v40476_v53  ;;  %v14207_v38 = vadd.f32 %v14110_v12, %v42968_v63  ;;  %v14112_v49 = vpop.f32.mrb[101].mxu0 }
 0x69a   : > { %16229 = vmatprep.mubr.bf16.mxu1 %v46528_v50  ;;  %v14114_v54 = vpop.f32.mrb[102].mxu0 }
 0x69b   : > { %v14217_v46 = vadd.f32 %v14114_v54, %v42976_v30  ;;  %v14116_v29 = vpop.f32.mrb[103].mxu0 }
 0x69d   : > { %36059 = vmatmul.mubr.msk.bf16.vlgmr.msra.gmra.mrb[52].mxu0 %vm10658_vm6, %v40474_v2 }
 0x69e   : > { %16261 = vmatpush1.bf16.msra.mxu0 %v42332_v22  ;;  %16176 = vmatprep.mubr.bf16.mxu0 %v46528_v50 }
 0x69f   : > { %16262 = vmatprep.subr.bf16.mxu0 %v10576_v35 }
 0x6a0   : > { %v14120_v18 = vpop.f32.mrb[104].mxu0 }
 0x6a1   : > { %36062 = vmatmul.mubr.msk.bf16.vlgmr.msra.gmra.mrb[52].mxu1 %vm10658_vm6, %v40474_v2  ;;  %v14227_v47 = vadd.f32 %v14120_v18, %v42992_v19  ;;  %v14122_v60 = vpop.f32.mrb[105].mxu0 }
 0x6a2   : > { %16239 = vmatprep.mubr.bf16.mxu1 %v46528_v50  ;;  %16263 = vmatpush1.bf16.msra.mxu0 %v42338_v14  ;;  %v14124_v52 = vpop.f32.mrb[106].mxu0 }
 0x6a3   : > { %v14237_v45 = vadd.f32 %v14124_v52, %v42998_v56  ;;  %v14126_v22 = vpop.f32.mrb[107].mxu0  ;;  %37386 = vmatprep.subr.bf16.mxu0 %v46489_v55 }
 0x6a5   : > { %36060 = vmatmul.mubr.msk.bf16.gmra.mrb[56].mxu0 %vm10658_vm6, %v40475_v4 }
 0x6a6   : > { %16186 = vmatprep.mubr.bf16.mxu0 %v46528_v50 }
 0x6a8   : > { %v14130_v27 = vpop.f32.mrb[108].mxu0 }
 0x6a9   : > { %36063 = vmatmul.mubr.msk.bf16.gmra.mrb[56].mxu1 %vm10658_vm6, %v40475_v4  ;;  %v14247_v44 = vadd.f32 %v14130_v27, %v43012_v41  ;;  %v14132_v35 = vpop.f32.mrb[109].mxu0 }
 0x6aa   : > { %16249 = vmatprep.mubr.bf16.mxu1 %v46528_v50  ;;  %v14134_v51 = vpop.f32.mrb[110].mxu0 }
 0x6ab   : > { %v14257_v15 = vadd.f32 %v14134_v51, %v43017_v32  ;;  %v14136_v14 = vpop.f32.mrb[111].mxu0 }
 0x6ad   : > { %36061 = vmatmul.mubr.msk.bf16.gmra.mrb[60].mxu0 %vm10658_vm6, %v40476_v53 }
 0x6ae   : > { %16292 = vmatprep.mubr.bf16.mxu0 %v46528_v50 }
 0x6b1   : > { %36064 = vmatmul.mubr.msk.bf16.gmra.mrb[60].mxu1 %vm10658_vm6, %v40476_v53 }
 0x6b2   : > { %37374 = vmatprep.mubr.msk.bf16.mxu1 %vm40793_vm9, %v46489_v55 }
 0x6b5   : > { %36065 = vmatmul.mubr.msk.bf16.vlgmr.msra.gmra.mrb[124].mxu0 %vm10658_vm6, %v40474_v2 }
 0x6b6   : > { %16302 = vmatprep.mubr.bf16.mxu0 %v46528_v50 }
 0x6bd   : > { %36066 = vmatmul.mubr.msk.bf16.gmra.mrb[128].mxu0 %vm10658_vm6, %v40475_v4 }
 0x6be   : > { %16312 = vmatprep.mubr.bf16.mxu0 %v46528_v50 }
 0x6c5   : > { %36067 = vmatmul.mubr.msk.bf16.gmra.mrb[132].mxu0 %vm10658_vm6, %v40476_v53 }
 0x6c6   : > { %37392 = vmatprep.mubr.msk.bf16.mxu0 %vm40793_vm9, %v46489_v55 }
 0x6cc   : > { %v14656_v9 = vpop.f32.mrb[100].mxu1 }
 0x6cd   : > { %v14753_v31 = vadd.f32 %v14656_v9, %v14207_v38  ;;  %v14658_v34 = vpop.f32.mrb[101].mxu1  ;;  %v43114_v38 = vpop.permute.xlu1 %16564 }
 0x6ce   : > { %v14660_v3 = vpop.f32.mrb[102].mxu1 }
 0x6cf   : > { %v14763_v0 = vadd.f32 %v14660_v3, %v14217_v46  ;;  %v14662_v6 = vpop.f32.mrb[103].mxu1 }
 0x6d1   : > { %v43118_v29 = vpop.permute.xlu1 %16710 }
 0x6d4   : > { %v14666_v62 = vpop.f32.mrb[104].mxu1 }
 0x6d5   : > { %v14773_v25 = vadd.f32 %v14666_v62, %v14227_v47  ;;  %v14668_v26 = vpop.f32.mrb[105].mxu1  ;;  %v43126_v22 = vpop.permute.xlu1 %16714 }
 0x6d6   : > { %v14670_v36 = vpop.f32.mrb[106].mxu1  ;;  %46537 = vst [vmem:[#allocation11_spill] sm:$0xff] %v43126_v22 }
 0x6d7   : > { %v14783_v23 = vadd.f32 %v14670_v36, %v14237_v45  ;;  %v14672_v17 = vpop.f32.mrb[107].mxu1  ;;  %v43124_v45 = vpop.permute.xlu0 %16718 }
 0x6d8   : > { %46536 = vst [vmem:[#allocation10_spill] sm:$0xff] %v43124_v45 }
 0x6d9   : > { %v43130_v14 = vpop.permute.xlu1 %16576 }
 0x6da   : > { %46538 = vst [vmem:[#allocation15_spill] sm:$0xff] %v43130_v14 }
 0x6dc   : > { %v14676_v7 = vpop.f32.mrb[108].mxu1 }
 0x6dd   : > { %v14793_v11 = vadd.f32 %v14676_v7, %v14247_v44  ;;  %v14678_v57 = vpop.f32.mrb[109].mxu1 }
 0x6de   : > { %v14680_v61 = vpop.f32.mrb[110].mxu1 }
 0x6df   : > { %v14803_v24 = vadd.f32 %v14680_v61, %v14257_v15  ;;  %v14682_v63 = vpop.f32.mrb[111].mxu1  ;;  %v43143_v61 = vpop.permute.xlu1 %16722 }
 0x6e0   : > { %46540 = vst [vmem:[#allocation12_spill] sm:$0xff] %v43143_v61 }
 0x710   : > { %v15202_v1 = vpop.f32.mrb[112].mxu0 }
 0x711   : > { %v15299_v20 = vadd.f32 %v15202_v1, %v14753_v31  ;;  %v15204_v30 = vpop.f32.mrb[113].mxu0  ;;  %v43134_v31 = vpop.permute.xlu0 %16568 }
 0x712   : > { %v15206_v8 = vpop.f32.mrb[114].mxu0  ;;  %46539 = vst [vmem:[#allocation13_spill] sm:$0xff] %v43134_v31 }
 0x713   : > { %v15309_v58 = vadd.f32 %v15206_v8, %v14763_v0  ;;  %v15208_v59 = vpop.f32.mrb[115].mxu0 }
 0x718   : > { %v15212_v19 = vpop.f32.mrb[116].mxu0 }
 0x719   : > { %v15319_v39 = vadd.f32 %v15212_v19, %v14773_v25  ;;  %v15214_v40 = vpop.f32.mrb[117].mxu0 }
 0x71a   : > { %v15216_v56 = vpop.f32.mrb[118].mxu0 }
 0x71b   : > { %v15329_v33 = vadd.f32 %v15216_v56, %v14783_v23  ;;  %v15218_v28 = vpop.f32.mrb[119].mxu0 }
 0x720   : > { %v15222_v21 = vpop.f32.mrb[120].mxu0 }
 0x721   : > { %v15339_v37 = vadd.f32 %v15222_v21, %v14793_v11  ;;  %v15224_v41 = vpop.f32.mrb[121].mxu0 }
 0x722   : > { %v15226_v48 = vpop.f32.mrb[122].mxu0 }
 0x723   : > { %v15349_v13 = vadd.f32 %v15226_v48, %v14803_v24  ;;  %v15228_v32 = vpop.f32.mrb[123].mxu0 }
 0x744   : > { %v15748_v16 = vpop.f32.mrb[112].mxu1 }
 0x745   : > { %v15750_v2 = vpop.f32.mrb[113].mxu1  ;;  %v43112_v4 = vadd.f32 %v15748_v16, %v15299_v20 }
 0x746   : > { %v15752_v53 = vpop.f32.mrb[114].mxu1 }
 0x747   : > { %v15754_v12 = vpop.f32.mrb[115].mxu1  ;;  %v43116_v49 = vadd.f32 %v15752_v53, %v15309_v58  ;;  %v43164_v53 = vpop.permute.xlu1 %16581 }
 0x748   : > { %46542 = vst [vmem:[#allocation14_spill] sm:$0xff] %v43164_v53 }
 0x74c   : > { %v15758_v54 = vpop.f32.mrb[116].mxu1 }
 0x74d   : > { %v15760_v46 = vpop.f32.mrb[117].mxu1  ;;  %v43120_v18 = vadd.f32 %v15758_v54, %v15319_v39  ;;  %v43150_v39 = vpop.permute.xlu0 %16572 }
 0x74e   : > { %v15762_v47 = vpop.f32.mrb[118].mxu1  ;;  %46541 = vst [vmem:[#allocation16_spill] sm:$0xff] %v43150_v39 }
 0x74f   : > { %v15764_v60 = vpop.f32.mrb[119].mxu1  ;;  %v43122_v52 = vadd.f32 %v15762_v47, %v15329_v33 }
 0x754   : > { %v15768_v27 = vpop.f32.mrb[120].mxu1 }
 0x755   : > { %v15770_v44 = vpop.f32.mrb[121].mxu1  ;;  %v43128_v35 = vadd.f32 %v15768_v27, %v15339_v37 }
 0x756   : > { %v15772_v51 = vpop.f32.mrb[122].mxu1 }
 0x757   : > { %v15774_v15 = vpop.f32.mrb[123].mxu1  ;;  %v43132_v9 = vadd.f32 %v15772_v51, %v15349_v13 }
 0x758   : > { %v16042_v34 = vpop.f32.mrb[40].mxu0 }
 0x759   : > { %v16589_v3 = vadd.f32 %v43114_v38, %v16042_v34  ;;  %v16044_v0 = vpop.f32.mrb[41].mxu0 }
 0x75a   : > { %v16590_v6 = vadd.f32 %v43114_v38, %v16044_v0  ;;  %v16046_v62 = vpop.f32.mrb[42].mxu0 }
 0x75b   : > { %vm16649_vm12 = vcmp.ge.f32.partialorder %v16589_v3, 0.0  ;;  %v16733_v25 = vmul.f32 %v43118_v29, %v16589_v3  ;;  %v16599_v36 = vadd.f32 %v43134_v31, %v16046_v62  ;;  %v16048_v23 = vpop.f32.mrb[43].mxu0 }
 0x75c   : > { %v16105_v26 = vpop.f32.mrb[40].mxu1  ;;  %v16734_v7 = vmul.f32 %v43118_v29, %v16590_v6  ;;  %v16600_v57 = vadd.f32 %v43134_v31, %v16048_v23  ;;  %vm16650_vm13 = vcmp.ge.f32.partialorder %v16590_v6, 0.0 }
 0x75d   : > { %v16591_v17 = vadd.f32 %v43114_v38, %v16105_v26  ;;  %v16107_v11 = vpop.f32.mrb[41].mxu1  ;;  %vm16659_vm14 = vcmp.ge.f32.partialorder %v16599_v36, 0.0  ;;  %v16743_v63 = vmul.f32 %v43126_v22, %v16599_v36  ;;  %v16793_v20 = vsel %vm16649_vm12, %v16589_v3, %v16733_v25 }
 0x75e   : > { %v16592_v24 = vadd.f32 %v43114_v38, %v16107_v11  ;;  %v16109_v1 = vpop.f32.mrb[42].mxu1  ;;  %vm16660_vm2 = vcmp.ge.f32.partialorder %v16600_v57, 0.0  ;;  %v43152_v40 = vsel %vm16650_vm13, %v16590_v6, %v16734_v7  ;;  %v16744_v33 = vmul.f32 %v43126_v22, %v16600_v57 }
 0x75f   : > { %vm16651_vm15 = vcmp.ge.f32.partialorder %v16591_v17, 0.0  ;;  %v16735_v30 = vmul.f32 %v43118_v29, %v16591_v17  ;;  %v16601_v8 = vadd.f32 %v43134_v31, %v16109_v1  ;;  %v16111_v58 = vpop.f32.mrb[43].mxu1  ;;  %v16803_v19 = vsel %vm16659_vm14, %v16599_v36, %v16743_v63  ;;  %v43187_v1 = vpop.permute.xlu1 %16726 }
 0x760   : > { %vm16652_vm1 = vcmp.ge.f32.partialorder %v16592_v24, 0.0  ;;  %v16736_v59 = vmul.f32 %v43118_v29, %v16592_v24  ;;  %v16052_v28 = vpop.f32.mrb[44].mxu0  ;;  %v16602_v37 = vadd.f32 %v43134_v31, %v16111_v58  ;;  %v16853_v13 = vpack.c.bf16 %v16803_v19, %v16793_v20  ;;  %46543 = vst [vmem:[#allocation17_spill] sm:$0xff] %v43187_v1  ;;  %v43192_v19 = vpop.permute.xlu0 %16586 }
 0x761   : > { %vm16661_vm3 = vcmp.ge.f32.partialorder %v16601_v8, 0.0  ;;  %v16745_v56 = vmul.f32 %v43126_v22, %v16601_v8  ;;  %v43156_v21 = vsel %vm16651_vm15, %v16591_v17, %v16735_v30  ;;  %v16609_v41 = vadd.f32 %v43150_v39, %v16052_v28  ;;  %v16054_v48 = vpop.f32.mrb[45].mxu0  ;;  %46544 = vst [vmem:[#allocation18_spill] sm:$0xff] %v43192_v19 }
 0x762   : > { %v43160_v32 = vsel %vm16652_vm1, %v16592_v24, %v16736_v59  ;;  %v16804_v2 = vsel %vm16660_vm2, %v16600_v57, %v16744_v33  ;;  %v16610_v12 = vadd.f32 %v43150_v39, %v16054_v48  ;;  %v16056_v54 = vpop.f32.mrb[46].mxu0  ;;  %vm16662_vm4 = vcmp.ge.f32.partialorder %v16602_v37, 0.0  ;;  %37387 = vmatpush3.bf16.msra.mxu0 %v16853_v13 }
 0x763   : > { %v43162_v16 = vsel %vm16661_vm3, %v16601_v8, %v16745_v56  ;;  %v16746_v46 = vmul.f32 %v43126_v22, %v16602_v37  ;;  %vm16669_vm5 = vcmp.ge.f32.partialorder %v16609_v41, 0.0  ;;  %v16753_v47 = vmul.f32 %v43124_v45, %v16609_v41  ;;  %v16058_v27 = vpop.f32.mrb[47].mxu0  ;;  %37388 = vmatprep.subr.bf16.mxu0 %v46489_v55 }
 0x764   : > { %v16115_v60 = vpop.f32.mrb[44].mxu1  ;;  %vm16670_vm7 = vcmp.ge.f32.partialorder %v16610_v12, 0.0  ;;  %v16754_v51 = vmul.f32 %v43124_v45, %v16610_v12  ;;  %v16619_v34 = vadd.f32 %v43130_v14, %v16056_v54  ;;  %v16620_v25 = vadd.f32 %v43130_v14, %v16058_v27 }
 0x765   : > { %v16611_v44 = vadd.f32 %v43150_v39, %v16115_v60  ;;  %v16117_v15 = vpop.f32.mrb[45].mxu1  ;;  %v43173_v3 = vsel %vm16662_vm4, %v16602_v37, %v16746_v46  ;;  %v16813_v0 = vsel %vm16669_vm5, %v16609_v41, %v16753_v47  ;;  %v16854_v28 = vpack.c.bf16 %v16804_v2, %v43152_v40 }
 0x766   : > { %v16612_v6 = vadd.f32 %v43150_v39, %v16117_v15  ;;  %v16119_v62 = vpop.f32.mrb[46].mxu1  ;;  %v43178_v36 = vsel %vm16670_vm7, %v16610_v12, %v16754_v51  ;;  %vm16679_vm10 = vcmp.ge.f32.partialorder %v16619_v34, 0.0  ;;  %v16763_v7 = vmul.f32 %v43143_v61, %v16619_v34 }
 0x767   : > { %vm16671_vm8 = vcmp.ge.f32.partialorder %v16611_v44, 0.0  ;;  %v16755_v26 = vmul.f32 %v43124_v45, %v16611_v44  ;;  %v16121_v23 = vpop.f32.mrb[47].mxu1  ;;  %v16621_v11 = vadd.f32 %v43130_v14, %v16119_v62  ;;  %vm16680_vm12 = vcmp.ge.f32.partialorder %v16620_v25, 0.0  ;;  %37369 = vmatpush3.bf16.msra.mxu1 %v16854_v28 }
 0x768   : > { %vm16672_vm11 = vcmp.ge.f32.partialorder %v16612_v6, 0.0  ;;  %v16756_v17 = vmul.f32 %v43124_v45, %v16612_v6  ;;  %v16764_v24 = vmul.f32 %v43143_v61, %v16620_v25  ;;  %v16622_v63 = vadd.f32 %v43130_v14, %v16121_v23  ;;  %v16062_v20 = vpop.f32.mrb[48].mxu0  ;;  %37370 = vmatprep.subr.bf16.mxu1 %v46489_v55 }
 0x769   : > { %v43183_v57 = vsel %vm16671_vm8, %v16611_v44, %v16755_v26  ;;  %v16823_v8 = vsel %vm16679_vm10, %v16619_v34, %v16763_v7  ;;  %vm16681_vm13 = vcmp.ge.f32.partialorder %v16621_v11, 0.0  ;;  %v16765_v58 = vmul.f32 %v43143_v61, %v16621_v11  ;;  %v16064_v59 = vpop.f32.mrb[49].mxu0  ;;  %v43208_v34 = vpop.permute.xlu1 %16730 }
 0x76a   : > { %v43189_v30 = vsel %vm16672_vm11, %v16612_v6, %v16756_v17  ;;  %v16824_v56 = vsel %vm16680_vm12, %v16620_v25, %v16764_v24  ;;  %vm16682_vm14 = vcmp.ge.f32.partialorder %v16622_v63, 0.0  ;;  %v16766_v33 = vmul.f32 %v43143_v61, %v16622_v63  ;;  %v16066_v37 = vpop.f32.mrb[50].mxu0  ;;  %46545 = vst [vmem:[#allocation19_spill] sm:$0xff] %v43208_v34 }
 0x76b   : > { %v43196_v41 = vsel %vm16681_vm13, %v16621_v11, %v16765_v58  ;;  %v16629_v48 = vadd.f32 %v43164_v53, %v16062_v20  ;;  %v16630_v12 = vadd.f32 %v43164_v53, %v16064_v59  ;;  %v16639_v54 = vadd.f32 %v43192_v19, %v16066_v37  ;;  %v16068_v46 = vpop.f32.mrb[51].mxu0 }
 0x76c   : > { %v16125_v13 = vpop.f32.mrb[48].mxu1  ;;  %v43201_v47 = vsel %vm16682_vm14, %v16622_v63, %v16766_v33  ;;  %v16863_v44 = vpack.c.bf16 %v16823_v8, %v16813_v0  ;;  %v16640_v40 = vadd.f32 %v43192_v19, %v16068_v46  ;;  %v16864_v28 = vpack.c.bf16 %v16824_v56, %v43178_v36 }
 0x76d   : > { %v16631_v60 = vadd.f32 %v43164_v53, %v16125_v13  ;;  %v16127_v27 = vpop.f32.mrb[49].mxu1  ;;  %vm16689_vm15 = vcmp.ge.f32.partialorder %v16629_v48, 0.0  ;;  %v16773_v2 = vmul.f32 %v43187_v1, %v16629_v48  ;;  %vm16690_vm1 = vcmp.ge.f32.partialorder %v16630_v12, 0.0 }
 0x76e   : > { %v16774_v51 = vmul.f32 %v43187_v1, %v16630_v12  ;;  %v16129_v15 = vpop.f32.mrb[50].mxu1  ;;  %v16632_v62 = vadd.f32 %v43164_v53, %v16127_v27  ;;  %vm16699_vm3 = vcmp.ge.f32.partialorder %v16639_v54, 0.0  ;;  %37389 = vmatpush3.bf16.msra.mxu0 %v16863_v44  ;;  %v16783_v23 = vmul.f32 %v43208_v34, %v16639_v54  ;;  %37371 = vmatpush3.bf16.msra.mxu1 %v16864_v28 }
 0x76f   : > { %vm16691_vm2 = vcmp.ge.f32.partialorder %v16631_v60, 0.0  ;;  %v16775_v6 = vmul.f32 %v43187_v1, %v16631_v60  ;;  %v16131_v0 = vpop.f32.mrb[51].mxu1  ;;  %v16833_v25 = vsel %vm16689_vm15, %v16629_v48, %v16773_v2  ;;  %v16641_v17 = vadd.f32 %v43192_v19, %v16129_v15  ;;  %37390 = vmatprep.subr.bf16.mxu0 %v46489_v55  ;;  %37372 = vmatprep.subr.bf16.mxu1 %v46489_v55 }
 0x770   : > { %v43212_v26 = vsel %vm16690_vm1, %v16630_v12, %v16774_v51  ;;  %vm16692_vm4 = vcmp.ge.f32.partialorder %v16632_v62, 0.0  ;;  %v16776_v11 = vmul.f32 %v43187_v1, %v16632_v62  ;;  %vm16700_vm5 = vcmp.ge.f32.partialorder %v16640_v40, 0.0  ;;  %v16168_v24 = vpop.f32.mrb[52].mxu0 }
 0x771   : > { %v43217_v7 = vsel %vm16691_vm2, %v16631_v60, %v16775_v6  ;;  %v16843_v63 = vsel %vm16699_vm3, %v16639_v54, %v16783_v23  ;;  %vm16701_vm7 = vcmp.ge.f32.partialorder %v16641_v17, 0.0  ;;  %v16785_v20 = vmul.f32 %v43208_v34, %v16641_v17  ;;  %v16170_v58 = vpop.f32.mrb[53].mxu0 }
 0x772   : > { %v16784_v8 = vmul.f32 %v43208_v34, %v16640_v40  ;;  %v43222_v59 = vsel %vm16692_vm4, %v16632_v62, %v16776_v11  ;;  %v16642_v33 = vadd.f32 %v43192_v19, %v16131_v0  ;;  %v16593_v37 = vadd.f32 %v43114_v38, %v16168_v24  ;;  %v16172_v48 = vpop.f32.mrb[54].mxu0 }
 0x773   : > { %vm16947_vm8 = vcmask 392192   ;;  %v43227_v13 = vsel %vm16701_vm7, %v16641_v17, %v16785_v20  ;;  %v16594_v46 = vadd.f32 %v43114_v38, %v16170_v58  ;;  %v16603_v60 = vadd.f32 %v43134_v31, %v16172_v48  ;;  %v16174_v27 = vpop.f32.mrb[55].mxu0 }
 0x774   : > { %v16844_v12 = vsel %vm16700_vm5, %v16640_v40, %v16784_v8  ;;  %v16231_v54 = vpop.f32.mrb[52].mxu1  ;;  %vm16702_vm10 = vcmp.ge.f32.partialorder %v16642_v33, 0.0  ;;  %v16786_v44 = vmul.f32 %v43208_v34, %v16642_v33  ;;  %vm16653_vm11 = vcmp.ge.f32.partialorder %v16593_v37, 0.0 }
 0x775   : > { %v16737_v36 = vmul.f32 %v43118_v29, %v16593_v37  ;;  %v16233_v56 = vpop.f32.mrb[53].mxu1  ;;  %v16595_v2 = vadd.f32 %v43114_v38, %v16231_v54  ;;  %vm16654_vm12 = vcmp.ge.f32.partialorder %v16594_v46, 0.0  ;;  %v16738_v51 = vmul.f32 %v43118_v29, %v16594_v46 }
 0x776   : > { %v16596_v40 = vadd.f32 %v43114_v38, %v16233_v56  ;;  %v16235_v15 = vpop.f32.mrb[54].mxu1  ;;  %v43237_v6 = vsel %vm16702_vm10, %v16642_v33, %v16786_v44  ;;  %vm16663_vm13 = vcmp.ge.f32.partialorder %v16603_v60, 0.0  ;;  %v16747_v0 = vmul.f32 %v43126_v22, %v16603_v60 }
 0x777   : > { %v43239_v62 = vsel %vm16653_vm11, %v16593_v37, %v16737_v36  ;;  %v16237_v23 = vpop.f32.mrb[55].mxu1  ;;  %vm16655_vm14 = vcmp.ge.f32.partialorder %v16595_v2, 0.0  ;;  %v16739_v17 = vmul.f32 %v43118_v29, %v16595_v2  ;;  %v43243_v11 = vsel %vm16654_vm12, %v16594_v46, %v16738_v51  ;;  %v40477_v46 = vld [vmem:[%s46469_s3] sm:$0xff]  }
 0x778   : > { %vm16656_vm15 = vcmp.ge.f32.partialorder %v16596_v40, 0.0  ;;  %v16740_v24 = vmul.f32 %v43118_v29, %v16596_v40  ;;  %v43246_v20 = vsel %vm16663_vm13, %v16603_v60, %v16747_v0  ;;  %v16605_v8 = vadd.f32 %v43134_v31, %v16235_v15  ;;  %v16178_v33 = vpop.f32.mrb[56].mxu0 }
 0x779   : > { %v16873_v58 = vpack.c.bf16 %v16843_v63, %v16833_v25  ;;  %v43249_v28 = vsel %vm16655_vm14, %v16595_v2, %v16739_v17  ;;  %v16604_v48 = vadd.f32 %v43134_v31, %v16174_v27  ;;  %v16606_v54 = vadd.f32 %v43134_v31, %v16237_v23  ;;  %v16180_v44 = vpop.f32.mrb[57].mxu0  ;;  %v40478_v2 = vld [vmem:[%s46469_s3 + $0x18] sm:$0xff]  }
 0x77a   : > { %v43258_v60 = vsel %vm16656_vm15, %v16596_v40, %v16740_v24  ;;  %vm16665_vm1 = vcmp.ge.f32.partialorder %v16605_v8, 0.0  ;;  %v16749_v25 = vmul.f32 %v43126_v22, %v16605_v8  ;;  %v16874_v63 = vpack.c.bf16 %v16844_v12, %v43212_v26  ;;  %v16182_v36 = vpop.f32.mrb[58].mxu0 }
 0x77b   : > { %37391 = vmatpush3.bf16.msra.mxu0 %v16873_v58  ;;  %vm16664_vm2 = vcmp.ge.f32.partialorder %v16604_v48, 0.0  ;;  %v16748_v56 = vmul.f32 %v43126_v22, %v16604_v48  ;;  %vm16666_vm3 = vcmp.ge.f32.partialorder %v16606_v54, 0.0  ;;  %v16750_v27 = vmul.f32 %v43126_v22, %v16606_v54  ;;  %v16184_v40 = vpop.f32.mrb[59].mxu0 }
 0x77c   : > { %37422 = vmatprep.subr.bf16.mxu0 %v46489_v55  ;;  %v16241_v51 = vpop.f32.mrb[56].mxu1  ;;  %v43268_v15 = vsel %vm16665_vm1, %v16605_v8, %v16749_v25  ;;  %37373 = vmatpush3.bf16.msra.mxu1 %v16874_v63  ;;  %v16856_v26 = vpack.c.bf16 %v43173_v3, %v43160_v32  ;;  %v16855_v12 = vpack.c.bf16 %v43162_v16, %v43156_v21 }
 0x77d   : > { %v16613_v0 = vadd.f32 %v43150_v39, %v16178_v33  ;;  %v16243_v23 = vpop.f32.mrb[57].mxu1  ;;  %v43277_v24 = vsel %vm16664_vm2, %v16604_v48, %v16748_v56  ;;  %v43279_v58 = vsel %vm16666_vm3, %v16606_v54, %v16750_v27  ;;  %37404 = vmatprep.subr.bf16.mxu1 %v46489_v55  ;;  %v16615_v33 = vadd.f32 %v43150_v39, %v16241_v51 }
 0x77e   : > { %37393 = vmatmul.mubr.msk.bf16.vlgmr.msra.gmra.mrb[136].mxu0 %vm16947_vm8, %v40477_v46  ;;  %v16245_v8 = vpop.f32.mrb[58].mxu1  ;;  %v16614_v48 = vadd.f32 %v43150_v39, %v16180_v44  ;;  %v16616_v54 = vadd.f32 %v43150_v39, %v16243_v23  ;;  %v16623_v25 = vadd.f32 %v43130_v14, %v16182_v36  ;;  %v16866_v56 = vpack.c.bf16 %v43201_v47, %v43189_v30  ;;  %v40479_v36 = vld [vmem:[%s46469_s3 + $0x8] sm:$0xff]  }
 0x77f   : > { %37423 = vmatpush3.bf16.msra.mxu0 %v16856_v26  ;;  %vm16673_vm4 = vcmp.ge.f32.partialorder %v16613_v0, 0.0  ;;  %v16757_v16 = vmul.f32 %v43124_v45, %v16613_v0  ;;  %v16247_v3 = vpop.f32.mrb[59].mxu1  ;;  %37396 = vmatprep.mubr.msk.bf16.mxu0 %vm40793_vm9, %v46489_v55  ;;  %v16625_v63 = vadd.f32 %v43130_v14, %v16245_v8  ;;  %vm16675_vm5 = vcmp.ge.f32.partialorder %v16615_v33, 0.0 }
 0x780   : > { %37375 = vmatmul.mubr.msk.bf16.vlgmr.msra.gmra.mrb[124].mxu1 %vm16947_vm8, %v40478_v2  ;;  %37424 = vmatprep.subr.bf16.mxu0 %v46489_v55  ;;  %v16188_v27 = vpop.f32.mrb[60].mxu0  ;;  %v16759_v2 = vmul.f32 %v43124_v45, %v16615_v33  ;;  %vm16674_vm7 = vcmp.ge.f32.partialorder %v16614_v48, 0.0  ;;  %v16758_v44 = vmul.f32 %v43124_v45, %v16614_v48  ;;  %vm16676_vm10 = vcmp.ge.f32.partialorder %v16616_v54, 0.0 }
 0x781   : > { %37405 = vmatpush3.bf16.msra.mxu1 %v16855_v12  ;;  %v43295_v46 = vsel %vm16673_vm4, %v16613_v0, %v16757_v16  ;;  %37378 = vmatprep.mubr.msk.bf16.mxu1 %vm40793_vm9, %v46489_v55  ;;  %v16190_v51 = vpop.f32.mrb[61].mxu0  ;;  %v16760_v30 = vmul.f32 %v43124_v45, %v16616_v54  ;;  %vm16683_vm11 = vcmp.ge.f32.partialorder %v16623_v25, 0.0  ;;  %v16767_v47 = vmul.f32 %v43143_v61, %v16623_v25 }
 0x782   : > { %37406 = vmatprep.subr.bf16.mxu1 %v46489_v55  ;;  %v16192_v26 = vpop.f32.mrb[62].mxu0  ;;  %v43311_v12 = vsel %vm16675_vm5, %v16615_v33, %v16759_v2  ;;  %v43313_v0 = vsel %vm16674_vm7, %v16614_v48, %v16758_v44  ;;  %vm16685_vm12 = vcmp.ge.f32.partialorder %v16625_v63, 0.0  ;;  %v16769_v23 = vmul.f32 %v43143_v61, %v16625_v63  ;;  %v40480_v33 = vld [vmem:[%s46469_s3 + $0x20] sm:$0xff]  }
 0x783   : > { %37425 = vmatpush3.bf16.msra.mxu0 %v16866_v56  ;;  %v16194_v16 = vpop.f32.mrb[63].mxu0  ;;  %v43317_v17 = vsel %vm16676_vm10, %v16616_v54, %v16760_v30  ;;  %v43319_v21 = vsel %vm16683_vm11, %v16623_v25, %v16767_v47  ;;  %v16624_v37 = vadd.f32 %v43130_v14, %v16184_v40  ;;  %v16626_v56 = vadd.f32 %v43130_v14, %v16247_v3 }
 0x784   : > { %37426 = vmatprep.subr.bf16.mxu0 %v46489_v55  ;;  %v16251_v8 = vpop.f32.mrb[60].mxu1  ;;  %v43328_v44 = vsel %vm16685_vm12, %v16625_v63, %v16769_v23  ;;  %v16865_v54 = vpack.c.bf16 %v43196_v41, %v43183_v57  ;;  %v16876_v40 = vpack.c.bf16 %v43237_v6, %v43222_v59  ;;  %v16875_v57 = vpack.c.bf16 %v43227_v13, %v43217_v7  ;;  %v40481_v13 = vld [vmem:[%s46469_s3 + $0x10] sm:$0xff]  }
 0x785   : > { %v16253_v48 = vpop.f32.mrb[61].mxu1  ;;  %vm16684_vm13 = vcmp.ge.f32.partialorder %v16624_v37, 0.0  ;;  %v16768_v30 = vmul.f32 %v43143_v61, %v16624_v37  ;;  %vm16686_vm14 = vcmp.ge.f32.partialorder %v16626_v56, 0.0  ;;  %v16770_v63 = vmul.f32 %v43143_v61, %v16626_v56 }
 0x786   : > { %37397 = vmatmul.mubr.msk.bf16.gmra.mrb[140].mxu0 %vm16947_vm8, %v40479_v36  ;;  %v16255_v25 = vpop.f32.mrb[62].mxu1  ;;  %37407 = vmatpush3.bf16.msra.mxu1 %v16865_v54  ;;  %v16633_v41 = vadd.f32 %v43164_v53, %v16188_v27  ;;  %v16635_v6 = vadd.f32 %v43164_v53, %v16251_v8  ;;  %v16634_v36 = vadd.f32 %v43164_v53, %v16190_v51 }
 0x787   : > { %v16257_v47 = vpop.f32.mrb[63].mxu1  ;;  %37400 = vmatprep.mubr.msk.bf16.mxu0 %vm40793_vm9, %v46489_v55  ;;  %37427 = vmatpush3.bf16.msra.mxu0 %v16876_v40  ;;  %v43344_v59 = vsel %vm16684_vm13, %v16624_v37, %v16768_v30  ;;  %v43352_v40 = vsel %vm16686_vm14, %v16626_v56, %v16770_v63  ;;  %v16636_v30 = vadd.f32 %v43164_v53, %v16253_v48 }
 0x788   : > { %37379 = vmatmul.mubr.msk.bf16.gmra.mrb[128].mxu1 %vm16947_vm8, %v40480_v33  ;;  %37408 = vmatprep.subr.bf16.mxu1 %v46489_v55  ;;  %v16294_v23 = vpop.f32.mrb[124].mxu0  ;;  %vm16693_vm15 = vcmp.ge.f32.partialorder %v16633_v41, 0.0  ;;  %v16777_v7 = vmul.f32 %v43187_v1, %v16633_v41  ;;  %vm16695_vm1 = vcmp.ge.f32.partialorder %v16635_v6, 0.0  ;;  %v16779_v51 = vmul.f32 %v43187_v1, %v16635_v6 }
 0x789   : > { %37382 = vmatprep.mubr.msk.bf16.mxu1 %vm40793_vm9, %v46489_v55  ;;  %v16296_v37 = vpop.f32.mrb[125].mxu0  ;;  %37458 = vmatprep.subr.bf16.mxu0 %v46489_v55  ;;  %vm16694_vm2 = vcmp.ge.f32.partialorder %v16634_v36, 0.0  ;;  %v16778_v33 = vmul.f32 %v43187_v1, %v16634_v36  ;;  %v16643_v63 = vadd.f32 %v43192_v19, %v16192_v26  ;;  %v16645_v2 = vadd.f32 %v43192_v19, %v16255_v25 }
 0x78a   : > { %v16298_v8 = vpop.f32.mrb[126].mxu0  ;;  %37409 = vmatpush3.bf16.msra.mxu1 %v16875_v57  ;;  %v43364_v56 = vsel %vm16693_vm15, %v16633_v41, %v16777_v7  ;;  %v43369_v3 = vsel %vm16695_vm1, %v16635_v6, %v16779_v51  ;;  %v16644_v27 = vadd.f32 %v43192_v19, %v16194_v16  ;;  %v16646_v54 = vadd.f32 %v43192_v19, %v16257_v47  ;;  %v40482_v57 = vld [vmem:[%s46469_s3 + $0x28] sm:$0xff]  }
 0x78b   : > { %v16300_v37 = vpop.f32.mrb[127].mxu0  ;;  %37440 = vmatprep.subr.bf16.mxu1 %v46489_v55  ;;  %v43378_v41 = vsel %vm16694_vm2, %v16634_v36, %v16778_v33  ;;  %vm16696_vm3 = vcmp.ge.f32.partialorder %v16636_v30, 0.0  ;;  %v16780_v26 = vmul.f32 %v43187_v1, %v16636_v30  ;;  %vm16703_vm4 = vcmp.ge.f32.partialorder %v16643_v63, 0.0 }
 0x78c   : > { %v16787_v48 = vmul.f32 %v43208_v34, %v16643_v63  ;;  %vm16705_vm5 = vcmp.ge.f32.partialorder %v16645_v2, 0.0  ;;  %v16789_v16 = vmul.f32 %v43208_v34, %v16645_v2  ;;  %vm16704_vm7 = vcmp.ge.f32.partialorder %v16644_v27, 0.0 }
 0x78d   : > { %v43386_v25 = vsel %vm16696_vm3, %v16636_v30, %v16780_v26  ;;  %v16788_v47 = vmul.f32 %v43208_v34, %v16644_v27  ;;  %vm16706_vm10 = vcmp.ge.f32.partialorder %v16646_v54, 0.0  ;;  %v16790_v6 = vmul.f32 %v43208_v34, %v16646_v54 }
 0x78e   : > { %37401 = vmatmul.mubr.msk.bf16.gmra.mrb[144].mxu0 %vm16947_vm8, %v40481_v13  ;;  %v43390_v36 = vsel %vm16703_vm4, %v16643_v63, %v16787_v48  ;;  %v43392_v7 = vsel %vm16705_vm5, %v16645_v2, %v16789_v16  ;;  %v16391_v13 = vadd.f32 %v16294_v23, %v43112_v4  ;;  %v16401_v51 = vadd.f32 %v16298_v8, %v43116_v49  ;;  %v40483_v2 = vld [vmem:[%s46469_s3 + $0x48] sm:$0xff]  }
 0x78f   : > { %37428 = vmatprep.mubr.msk.bf16.mxu0 %vm40793_vm9, %v46489_v55  ;;  %v16877_v30 = vpack.c.bf16 %v43390_v36, %v43364_v56  ;;  %v16879_v37 = vpack.c.bf16 %v43392_v7, %v43369_v3  ;;  %v16848_v26 = vsel %vm16704_vm7, %v16644_v27, %v16788_v47  ;;  %v43401_v32 = vsel %vm16706_vm10, %v16646_v54, %v16790_v6  ;;  %v40488_v56 = vld [vmem:[%s46469_s3 + $0x40] sm:$0xff]   ;;  %v40489_v36 = vld [vmem:[%s46469_s3 + $0x78] sm:$0xff]   ;;  %v40777_v3 = vld [vmem:[%s46470_s4 + $0x10] sm:$0xff] }
 0x790   : > { %37383 = vmatmul.mubr.msk.bf16.gmra.mrb[132].mxu1 %vm16947_vm8, %v40482_v57  ;;  %v16304_v33 = vpop.f32.mrb[128].mxu0  ;;  %v16878_v49 = vpack.c.bf16 %v16848_v26, %v43378_v41  ;;  %v16880_v23 = vpack.c.bf16 %v43401_v32, %v43386_v25  ;;  %v16597_v8 = vadd.f32 %v43114_v38, %v16391_v13  ;;  %v16607_v63 = vadd.f32 %v43134_v31, %v16401_v51  ;;  %v40484_v41 = vld [vmem:[%s46469_s3 + $0x30] sm:$0xff]   ;;  %v40493_v32 = vld [vmem:[%s46469_s3 + $0x88] sm:$0xff]   ;;  %v40779_v25 = vld [vmem:[%s46470_s4 + $0x20] sm:$0xff] }
 0x791   : > { %37410 = vmatprep.mubr.msk.bf16.mxu1 %vm40793_vm9, %v46489_v55  ;;  %v16306_v4 = vpop.f32.mrb[129].mxu0  ;;  %v16411_v54 = vadd.f32 %v16304_v33, %v43120_v18  ;;  %v46546_v51 = vpack.c.bf16 %v43277_v24, %v43243_v11  ;;  %v46547_v11 = vpack.c.bf16 %v43246_v20, %v43239_v62  ;;  %v46548_v62 = vpack.c.bf16 %v43344_v59, %v43313_v0  ;;  %v40495_v7 = vld [vmem:[%s46469_s3 + $0xa8] sm:$0xff]  }
 0x792   : > { %v16308_v27 = vpop.f32.mrb[130].mxu0  ;;  %vm16657_vm11 = vcmp.ge.f32.partialorder %v16597_v8, 0.0  ;;  %v16741_v16 = vmul.f32 %v43118_v29, %v16597_v8  ;;  %vm16667_vm12 = vcmp.ge.f32.partialorder %v16607_v63, 0.0  ;;  %v16751_v47 = vmul.f32 %v43126_v22, %v16607_v63 }
 0x793   : > { %v16421_v57 = vadd.f32 %v16308_v27, %v43122_v52  ;;  %v16310_v48 = vpop.f32.mrb[131].mxu0  ;;  %v16617_v6 = vadd.f32 %v43150_v39, %v16411_v54 }
 0x794   : > { %v43423_v18 = vsel %vm16657_vm11, %v16597_v8, %v16741_v16  ;;  %v43425_v52 = vsel %vm16667_vm12, %v16607_v63, %v16751_v47  ;;  %v40485_v63 = vld [vmem:[%s46469_s3 + $0x50] sm:$0xff]  }
 0x795   : > { %v16627_v13 = vadd.f32 %v43130_v14, %v16421_v57  ;;  %vm16677_vm13 = vcmp.ge.f32.partialorder %v16617_v6, 0.0  ;;  %v16761_v33 = vmul.f32 %v43124_v45, %v16617_v6  ;;  %v16861_v4 = vpack.c.bf16 %v43425_v52, %v43423_v18  ;;  %v43612_v18 = vld [vmem:[%s40842_s24 + $0xfc] ss:$120 sps:$4 sm:$0xff]  }
 0x796   : > { %37429 = vmatmul.mubr.msk.bf16.vlgmr.msra.gmra.mrb[148].mxu0 %vm16947_vm8, %v40483_v2  ;;  %v40502_v52 = vld [vmem:[%s46469_s3 + $0xb8] sm:$0xff]  }
 0x797   : > { %37459 = vmatpush3.bf16.msra.mxu0 %v46546_v51  ;;  %37432 = vmatprep.mubr.msk.bf16.mxu0 %vm40793_vm9, %v46489_v55  ;;  %vm16687_vm14 = vcmp.ge.f32.partialorder %v16627_v13, 0.0  ;;  %v16771_v26 = vmul.f32 %v43143_v61, %v16627_v13  ;;  %v43441_v24 = vsel %vm16677_vm13, %v16617_v6, %v16761_v33  ;;  %v46551_v51 = vpack.c.bf16 %v43268_v15, %v43249_v28  ;;  %v40491_v33 = vld [vmem:[%s46469_s3 + $0x80] sm:$0xff]   ;;  %v40492_v28 = vld [vmem:[%s46469_s3 + $0x68] sm:$0xff]  }
 0x798   : > { %37460 = vmatprep.subr.bf16.mxu0 %v46489_v55  ;;  %37411 = vmatmul.mubr.msk.bf16.vlgmr.msra.gmra.mrb[136].mxu1 %vm16947_vm8, %v40484_v41  ;;  %v16314_v2 = vpop.f32.mrb[132].mxu0  ;;  %v46549_v41 = vpack.c.bf16 %v43319_v21, %v43295_v46  ;;  %v40774_v15 = vld [vmem:[%s46470_s4] sm:$0xff] }
 0x799   : > { %37441 = vmatpush3.bf16.msra.mxu1 %v46547_v11  ;;  %v43443_v8 = vsel %vm16687_vm14, %v16627_v13, %v16771_v26  ;;  %37414 = vmatprep.mubr.msk.bf16.mxu1 %vm40793_vm9, %v46489_v55  ;;  %v16431_v27 = vadd.f32 %v16314_v2, %v43128_v35  ;;  %v16316_v54 = vpop.f32.mrb[133].mxu0  ;;  %v40486_v35 = vld [vmem:[%s46469_s3 + $0x38] sm:$0xff]   ;;  %v46550_v13 = vpack.c.bf16 %v43279_v58, %v43258_v60  ;;  %v40499_v58 = vld [vmem:[%s40842_s24 + $0xf4] ss:$120 sps:$4 sm:$0xff]   ;;  %v40794_v26 = vmov 2  }
 0x79a   : > { %37442 = vmatprep.subr.bf16.mxu1 %v46489_v55  ;;  %v16318_v20 = vpop.f32.mrb[134].mxu0  ;;  %v16871_v57 = vpack.c.bf16 %v43443_v8, %v43441_v24  ;;  %v46552_v60 = vpack.c.bf16 %v43352_v40, %v43317_v17  ;;  %40282 = vset.pattern.permute.xlu0 %v40794_v26  ;;  %v46553_v2 = vpack.c.bf16 %v43328_v44, %v43311_v12  ;;  %v40775_v17 = vld [vmem:[%s46470_s4 + $0x8] sm:$0xff]  ;;  %v40776_v12 = vld [vmem:[%s46470_s4 + $0x18] sm:$0xff]  ;;  %v40494_v44 = vld [vmem:[%s46469_s3 + $0x70] sm:$0xff]  }
 0x79b   : > { %37461 = vmatpush3.bf16.msra.mxu0 %v46548_v62  ;;  %v16637_v48 = vadd.f32 %v43164_v53, %v16431_v27  ;;  %v16441_v16 = vadd.f32 %v16318_v20, %v43132_v9  ;;  %v16320_v47 = vpop.f32.mrb[135].mxu0  ;;  %17775 = vperm.xlu0 %40282, %v40774_v15   ;;  %v40778_v40 = vld [vmem:[%s46470_s4 + $0x28] sm:$0xff]  ;;  %v40496_v11 = vld [vmem:[%s46469_s3 + $0x90] sm:$0xff]   ;;  %v40501_v27 = vld [vmem:[%s46469_s3 + $0x98] sm:$0xff]  }
 0x79c   : > { %37462 = vmatprep.subr.bf16.mxu0 %v46489_v55  ;;  %40283 = vset.pattern.permute.xlu1 %v40794_v26  ;;  %v43635_v24 = vld [vmem:[%s46467_s1] sm:$0xff]   ;;  %v43641_v54 = vld [vmem:[%s40842_s24 + $0x114] ss:$120 sps:$4 sm:$0xff]   ;;  %v43649_v20 = vld [vmem:[%s40842_s24 + $0xf8] ss:$120 sps:$4 sm:$0xff]  }
 0x79d   : > { %37443 = vmatpush3.bf16.msra.mxu1 %v46549_v41  ;;  %v16781_v0 = vmul.f32 %v43187_v1, %v16637_v48  ;;  %v16647_v59 = vadd.f32 %v43192_v19, %v16441_v16  ;;  %vm16697_vm15 = vcmp.ge.f32.partialorder %v16637_v48, 0.0  ;;  %17779 = vperm.xlu1 %40283, %v40775_v17   ;;  %v43638_v8 = vld [vmem:[%s40842_s24 + $0x100] ss:$120 sps:$4 sm:$0xff]   ;;  %v40513_v16 = vld [vmem:[%s46469_s3 + $0xc8] sm:$0xff]   ;;  %v40514_v41 = vld [vmem:[%s46469_s3 + $0xd0] sm:$0xff]  }
 0x79e   : > { %37433 = vmatmul.mubr.msk.bf16.gmra.mrb[152].mxu0 %vm16947_vm8, %v40485_v63  ;;  %37444 = vmatprep.subr.bf16.mxu1 %v46489_v55  ;;  %v40500_v63 = vld [vmem:[%s46469_s3 + $0xb0] sm:$0xff]   ;;  %v40505_v62 = vld [vmem:[%s46469_s3 + $0xc0] sm:$0xff]   ;;  %v43806_v15 = vld [vmem:[%s46467_s1 + $0x18] sm:$0xff]  }
 0x79f   : > { %37463 = vmatpush3.bf16.msra.mxu0 %v16878_v49  ;;  %vm16707_vm1 = vcmp.ge.f32.partialorder %v16647_v59, 0.0  ;;  %v16791_v9 = vmul.f32 %v43208_v34, %v16647_v59  ;;  %37436 = vmatprep.mubr.msk.bf16.mxu0 %vm40793_vm9, %v46489_v55  ;;  %v43478_v21 = vsel %vm16697_vm15, %v16637_v48, %v16781_v0  ;;  %v40487_v49 = vld [vmem:[%s46469_s3 + $0x58] sm:$0xff]   ;;  %v43664_v48 = vld [vmem:[%s46467_s1 + $0x8] sm:$0xff]  }
 0x7a0   : > { %37494 = vmatprep.subr.bf16.mxu0 %v46489_v55  ;;  %37415 = vmatmul.mubr.msk.bf16.gmra.mrb[140].mxu1 %vm16947_vm8, %v40486_v35  ;;  %v43677_v47 = vld [vmem:[%s40842_s24 + $0x110] ss:$120 sps:$4 sm:$0xff]   ;;  %v43680_v35 = vld [vmem:[%s40842_s24 + $0x124] ss:$120 sps:$4 sm:$0xff]   ;;  %v43896_v1 = vld [vmem:[%s40842_s24 + $0x140] ss:$120 sps:$4 sm:$0xff]  }
 0x7a1   : > { %37445 = vmatpush3.bf16.msra.mxu1 %v16877_v30  ;;  %v43480_v46 = vsel %vm16707_vm1, %v16647_v59, %v16791_v9  ;;  %37418 = vmatprep.mubr.msk.bf16.mxu1 %vm40793_vm9, %v46489_v55  ;;  %v40490_v30 = vld [vmem:[%s46469_s3 + $0x60] sm:$0xff]   ;;  %v43699_v59 = vld [vmem:[%s40842_s24 + $0x11c] ss:$120 sps:$4 sm:$0xff]   ;;  %v43815_v17 = vld [vmem:[%s40842_s24 + $0x110] ss:$120 sps:$4 sm:$0xff]  }
 0x7a2   : > { %37476 = vmatprep.subr.bf16.mxu1 %v46489_v55  ;;  %v16881_v6 = vpack.c.bf16 %v43480_v46, %v43478_v21  ;;  %17787 = vperm.xlu0 %40282, %v40776_v12   ;;  %v43695_v0 = vld [vmem:[%s40842_s24 + $0x108] ss:$120 sps:$4 sm:$0xff]   ;;  %v43710_v21 = vld [vmem:[%s40842_s24 + $0x134] ss:$120 sps:$4 sm:$0xff]   ;;  %v43723_v46 = vld [vmem:[%s40842_s24 + $0x118] ss:$120 sps:$4 sm:$0xff]  }
 0x7a3   : > { %17783 = vperm.xlu1 %40283, %v40777_v3   ;;  %v43706_v9 = vld [vmem:[%s40842_s24 + $0x120] ss:$120 sps:$4 sm:$0xff]   ;;  %v43789_v26 = vld [vmem:[%s40842_s24 + $0x104] ss:$120 sps:$4 sm:$0xff]  }
 0x7a4   : > { %v43826_v12 = vld [vmem:[%s40842_s24 + $0x128] ss:$120 sps:$4 sm:$0xff]   ;;  %v43892_v34 = vld [vmem:[%s40842_s24 + $0x12c] ss:$120 sps:$4 sm:$0xff]  }
 0x7a5   : > { %v43843_v3 = vld [vmem:[%s40842_s24 + $0x120] ss:$120 sps:$4 sm:$0xff]  }
 0x7a6   : > { %37437 = vmatmul.mubr.msk.bf16.gmra.mrb[156].mxu0 %vm16947_vm8, %v40487_v49  ;;  %17795 = vperm.xlu0 %40282, %v40778_v40   ;;  %v43727_v49 = vld [vmem:[%s40842_s24 + $0x12c] ss:$120 sps:$4 sm:$0xff]  }
 0x7a7   : > { %37464 = vmatprep.mubr.msk.bf16.mxu0 %vm40793_vm9, %v46489_v55  ;;  %17791 = vperm.xlu1 %40283, %v40779_v25   ;;  %v43850_v40 = vld [vmem:[%s40842_s24 + $0x124] ss:$120 sps:$4 sm:$0xff]   ;;  %v43854_v25 = vld [vmem:[%s40842_s24 + $0x138] ss:$120 sps:$4 sm:$0xff]  }
 0x7a8   : > { %37419 = vmatmul.mubr.msk.bf16.gmra.mrb[144].mxu1 %vm16947_vm8, %v40488_v56  ;;  %v40535_v56 = vld [vmem:[%s40842_s24 + $0xf8] ss:$120 sps:$4 sm:$0xff]  }
 0x7a9   : > { %37446 = vmatprep.mubr.msk.bf16.mxu1 %vm40793_vm9, %v46489_v55 }
 0x7ae   : > { %37465 = vmatmul.mubr.msk.bf16.vlgmr.msra.gmra.mrb[160].mxu0 %vm16947_vm8, %v40489_v36  ;;  %v43748_v36 = vld [vmem:[%s40842_s24 + $0x128] ss:$120 sps:$4 sm:$0xff]  }
 0x7af   : > { %37495 = vmatpush3.bf16.msra.mxu0 %v46550_v13  ;;  %37468 = vmatprep.mubr.msk.bf16.mxu0 %vm40793_vm9, %v46489_v55  ;;  %v40533_v13 = vld [vmem:[%s40842_s24 + $0xf4] ss:$120 sps:$4 sm:$0xff]  }
 0x7b0   : > { %37496 = vmatprep.subr.bf16.mxu0 %v46489_v55  ;;  %37447 = vmatmul.mubr.msk.bf16.vlgmr.msra.gmra.mrb[148].mxu1 %vm16947_vm8, %v40490_v30  ;;  %v43752_v30 = vld [vmem:[%s40842_s24 + $0x13c] ss:$120 sps:$4 sm:$0xff]  }
 0x7b1   : > { %37477 = vmatpush3.bf16.msra.mxu1 %v46551_v51  ;;  %37450 = vmatprep.mubr.msk.bf16.mxu1 %vm40793_vm9, %v46489_v55  ;;  %v43761_v51 = vld [vmem:[%s40842_s24 + $0x108] ss:$120 sps:$4 sm:$0xff]  }
 0x7b2   : > { %37478 = vmatprep.subr.bf16.mxu1 %v46489_v55 }
 0x7b3   : > { %37497 = vmatpush3.bf16.msra.mxu0 %v46552_v60  ;;  %v43777_v60 = vld [vmem:[%s40842_s24 + $0x100] ss:$120 sps:$4 sm:$0xff]  }
 0x7b4   : > { %37498 = vmatprep.subr.bf16.mxu0 %v46489_v55 }
 0x7b5   : > { %37479 = vmatpush3.bf16.msra.mxu1 %v46553_v2  ;;  %v43811_v2 = vld [vmem:[%s40842_s24 + $0xfc] ss:$120 sps:$4 sm:$0xff]  }
 0x7b6   : > { %37469 = vmatmul.mubr.msk.bf16.gmra.mrb[164].mxu0 %vm16947_vm8, %v40491_v33  ;;  %37480 = vmatprep.subr.bf16.mxu1 %v46489_v55  ;;  %v43773_v33 = vld [vmem:[%s40842_s24 + $0x138] ss:$120 sps:$4 sm:$0xff]  }
 0x7b7   : > { %37499 = vmatpush3.bf16.msra.mxu0 %v16880_v23  ;;  %37472 = vmatprep.mubr.msk.bf16.mxu0 %vm40793_vm9, %v46489_v55  ;;  %v43582_v23 = vld [vmem:[%s40842_s24 + $0x104] ss:$120 sps:$4 sm:$0xff]  }
 0x7b8   : > { %17951 = vmatprep.subr.bf16.mxu0 %v40499_v58  ;;  %37451 = vmatmul.mubr.msk.bf16.gmra.mrb[152].mxu1 %vm16947_vm8, %v40492_v28  ;;  %v43786_v58 = vld [vmem:[%s46467_s1 + $0x10] sm:$0xff]  }
 0x7b9   : > { %37481 = vmatpush3.bf16.msra.mxu1 %v16879_v37  ;;  %37454 = vmatprep.mubr.msk.bf16.mxu1 %vm40793_vm9, %v46489_v55  ;;  %v40497_v37 = vld [vmem:[%s40842_s24 + $0xf0] ss:$120 sps:$4 sm:$0xff]  }
 0x7ba   : > { %37512 = vmatprep.subr.bf16.mxu1 %v46489_v55  ;;  %v43793_v28 = vld [vmem:[%s40842_s24 + $0x118] ss:$120 sps:$4 sm:$0xff]  }
 0x7be   : > { %37473 = vmatmul.mubr.msk.bf16.gmra.mrb[168].mxu0 %vm16947_vm8, %v40493_v32  ;;  %v43822_v32 = vld [vmem:[%s40842_s24 + $0x114] ss:$120 sps:$4 sm:$0xff]  }
 0x7bf   : > { %37500 = vmatprep.mubr.msk.bf16.mxu0 %vm40793_vm9, %v46489_v55 }
 0x7c0   : > { %37455 = vmatmul.mubr.msk.bf16.gmra.mrb[156].mxu1 %vm16947_vm8, %v40494_v44  ;;  %v43839_v44 = vld [vmem:[%s40842_s24 + $0x10c] ss:$120 sps:$4 sm:$0xff]  }
 0x7c1   : > { %37482 = vmatprep.mubr.msk.bf16.mxu1 %vm40793_vm9, %v46489_v55 }
 0x7c6   : > { %37501 = vmatmul.mubr.msk.bf16.vlgmr.msra.gmra.mrb[172].mxu0 %vm16947_vm8, %v40495_v7 }
 0x7c7   : > { %17952 = vmatpush1.bf16.msra.mxu0 %v40497_v37  ;;  %37504 = vmatprep.mubr.msk.bf16.mxu0 %vm40793_vm9, %v46489_v55 }
 0x7c8   : > { %18057 = vmatprep.subr.bf16.mxu0 %v43582_v23  ;;  %37483 = vmatmul.mubr.msk.bf16.vlgmr.msra.gmra.mrb[160].mxu1 %vm16947_vm8, %v40496_v11 }
 0x7c9   : > { %37513 = vmatpush3.bf16.msra.mxu1 %v16861_v4  ;;  %37486 = vmatprep.mubr.msk.bf16.mxu1 %vm40793_vm9, %v46489_v55  ;;  %v40503_v4 = vld [vmem:[%s46469_s3 + $0xa0] sm:$0xff]  }
 0x7ca   : > { %37514 = vmatprep.subr.bf16.mxu1 %v46489_v55 }
 0x7cd   : > { %37515 = vmatpush3.bf16.msra.mxu1 %v16871_v57  ;;  %v43654_v57 = vld [vmem:[%s40842_s24 + $0x10c] ss:$120 sps:$4 sm:$0xff]  }
 0x7ce   : > { %37505 = vmatmul.mubr.msk.bf16.gmra.mrb[176].mxu0 %vm16947_vm8, %v40500_v63  ;;  %37516 = vmatprep.subr.bf16.mxu1 %v46489_v55 }
 0x7cf   : > { %37508 = vmatprep.mubr.msk.bf16.mxu0 %vm40793_vm9, %v46489_v55 }
 0x7d0   : > { %37487 = vmatmul.mubr.msk.bf16.gmra.mrb[164].mxu1 %vm16947_vm8, %v40501_v27 }
 0x7d1   : > { %37517 = vmatpush3.bf16.msra.mxu1 %v16881_v6  ;;  %37490 = vmatprep.mubr.msk.bf16.mxu1 %vm40793_vm9, %v46489_v55  ;;  %v43734_v6 = vld [vmem:[%s40842_s24 + $0x130] ss:$120 sps:$4 sm:$0xff]  }
 0x7d2   : > { %18004 = vmatprep.subr.bf16.mxu1 %v43612_v18 }
 0x7d6   : > { %37509 = vmatmul.mubr.msk.bf16.gmra.mrb[180].mxu0 %vm16947_vm8, %v40502_v52 }
 0x7d7   : > { %17983 = vmatprep.mubr.bf16.mxu0 %v46528_v50 }
 0x7d8   : > { %37491 = vmatmul.mubr.msk.bf16.gmra.mrb[168].mxu1 %vm16947_vm8, %v40503_v4 }
 0x7d9   : > { %37518 = vmatprep.mubr.msk.bf16.mxu1 %vm40793_vm9, %v46489_v55 }
 0x7de   : > { %36212 = vmatmul.mubr.msk.bf16.vlgmr.msra.gmra.mrb[184].mxu0 %vm374_vm0, %v43635_v24 }
 0x7df   : > { %18058 = vmatpush1.bf16.msra.mxu0 %v43638_v8  ;;  %17993 = vmatprep.mubr.bf16.mxu0 %v46528_v50 }
 0x7e0   : > { %18163 = vmatprep.subr.bf16.mxu0 %v43641_v54  ;;  %37519 = vmatmul.mubr.msk.bf16.vlgmr.msra.gmra.mrb[172].mxu1 %vm16947_vm8, %v40505_v62 }
 0x7e1   : > { %18005 = vmatpush1.bf16.msra.mxu1 %v43649_v20  ;;  %37522 = vmatprep.mubr.msk.bf16.mxu1 %vm40793_vm9, %v46489_v55 }
 0x7e2   : > { %18110 = vmatprep.subr.bf16.mxu1 %v43654_v57 }
 0x7e6   : > { %36213 = vmatmul.mubr.msk.bf16.gmra.mrb[188].mxu0 %vm374_vm0, %v43664_v48 }
 0x7e7   : > { %18089 = vmatprep.mubr.bf16.mxu0 %v46528_v50 }
 0x7e8   : > { %37523 = vmatmul.mubr.msk.bf16.gmra.mrb[176].mxu1 %vm16947_vm8, %v40513_v16  ;;  %v43867_v16 = vld [vmem:[%s40842_s24 + $0x11c] ss:$120 sps:$4 sm:$0xff]  }
 0x7e9   : > { %37526 = vmatprep.mubr.msk.bf16.mxu1 %vm40793_vm9, %v46489_v55 }
 0x7ee   : > { %36216 = vmatmul.mubr.msk.bf16.vlgmr.msra.gmra.mrb[192].mxu0 %vm374_vm0, %v43635_v24 }
 0x7ef   : > { %18164 = vmatpush1.bf16.msra.mxu0 %v43677_v47  ;;  %18099 = vmatprep.mubr.bf16.mxu0 %v46528_v50 }
 0x7f0   : > { %18269 = vmatprep.subr.bf16.mxu0 %v43680_v35  ;;  %37527 = vmatmul.mubr.msk.bf16.gmra.mrb[180].mxu1 %vm16947_vm8, %v40514_v41  ;;  %v43871_v41 = vld [vmem:[%s40842_s24 + $0x130] ss:$120 sps:$4 sm:$0xff]  }
 0x7f1   : > { %18036 = vmatprep.mubr.bf16.mxu1 %v46528_v50 }
 0x7f6   : > { %36217 = vmatmul.mubr.msk.bf16.gmra.mrb[196].mxu0 %vm374_vm0, %v43664_v48 }
 0x7f7   : > { %18195 = vmatprep.mubr.bf16.mxu0 %v46528_v50 }
 0x7f8   : > { %36214 = vmatmul.mubr.msk.bf16.vlgmr.msra.gmra.mrb[184].mxu1 %vm374_vm0, %v43635_v24 }
 0x7f9   : > { %18111 = vmatpush1.bf16.msra.mxu1 %v43695_v0  ;;  %18046 = vmatprep.mubr.bf16.mxu1 %v46528_v50 }
 0x7fa   : > { %18216 = vmatprep.subr.bf16.mxu1 %v43699_v59 }
 0x7fe   : > { %36220 = vmatmul.mubr.msk.bf16.vlgmr.msra.gmra.mrb[200].mxu0 %vm374_vm0, %v43635_v24 }
 0x7ff   : > { %18270 = vmatpush1.bf16.msra.mxu0 %v43706_v9  ;;  %18205 = vmatprep.mubr.bf16.mxu0 %v46528_v50 }
 0x800   : > { %18375 = vmatprep.subr.bf16.mxu0 %v43710_v21  ;;  %36215 = vmatmul.mubr.msk.bf16.gmra.mrb[188].mxu1 %vm374_vm0, %v43664_v48 }
 0x801   : > { %18142 = vmatprep.mubr.bf16.mxu1 %v46528_v50 }
 0x806   : > { %36221 = vmatmul.mubr.msk.bf16.gmra.mrb[204].mxu0 %vm374_vm0, %v43664_v48 }
 0x807   : > { %18301 = vmatprep.mubr.bf16.mxu0 %v46528_v50 }
 0x808   : > { %36218 = vmatmul.mubr.msk.bf16.vlgmr.msra.gmra.mrb[192].mxu1 %vm374_vm0, %v43635_v24 }
 0x809   : > { %18217 = vmatpush1.bf16.msra.mxu1 %v43723_v46  ;;  %18152 = vmatprep.mubr.bf16.mxu1 %v46528_v50 }
 0x80a   : > { %18322 = vmatprep.subr.bf16.mxu1 %v43727_v49 }
 0x80e   : > { %36224 = vmatmul.mubr.msk.bf16.vlgmr.msra.gmra.mrb[208].mxu0 %vm374_vm0, %v43635_v24 }
 0x80f   : > { %18376 = vmatpush1.bf16.msra.mxu0 %v43734_v6  ;;  %18311 = vmatprep.mubr.bf16.mxu0 %v46528_v50 }
 0x810   : > { %18701 = vmatprep.subr.bf16.mxu0 %v40535_v56  ;;  %36219 = vmatmul.mubr.msk.bf16.gmra.mrb[196].mxu1 %vm374_vm0, %v43664_v48 }
 0x811   : > { %18248 = vmatprep.mubr.bf16.mxu1 %v46528_v50 }
 0x816   : > { %36225 = vmatmul.mubr.msk.bf16.gmra.mrb[212].mxu0 %vm374_vm0, %v43664_v48 }
 0x817   : > { %18407 = vmatprep.mubr.bf16.mxu0 %v46528_v50 }
 0x818   : > { %36222 = vmatmul.mubr.msk.bf16.vlgmr.msra.gmra.mrb[200].mxu1 %vm374_vm0, %v43635_v24 }
 0x819   : > { %18323 = vmatpush1.bf16.msra.mxu1 %v43748_v36  ;;  %18258 = vmatprep.mubr.bf16.mxu1 %v46528_v50 }
 0x81a   : > { %18428 = vmatprep.subr.bf16.mxu1 %v43752_v30 }
 0x81e   : > { %36228 = vmatmul.mubr.msk.bf16.vlgmr.msra.gmra.mrb[216].mxu0 %vm374_vm0, %v43635_v24 }
 0x81f   : > { %18702 = vmatpush1.bf16.msra.mxu0 %v40533_v13  ;;  %18417 = vmatprep.mubr.bf16.mxu0 %v46528_v50 }
 0x820   : > { %18807 = vmatprep.subr.bf16.mxu0 %v43761_v51  ;;  %36223 = vmatmul.mubr.msk.bf16.gmra.mrb[204].mxu1 %vm374_vm0, %v43664_v48 }
 0x821   : > { %18354 = vmatprep.mubr.bf16.mxu1 %v46528_v50 }
 0x826   : > { %36229 = vmatmul.mubr.msk.bf16.gmra.mrb[220].mxu0 %vm374_vm0, %v43664_v48 }
 0x827   : > { %18733 = vmatprep.mubr.bf16.mxu0 %v46528_v50 }
 0x828   : > { %36226 = vmatmul.mubr.msk.bf16.vlgmr.msra.gmra.mrb[208].mxu1 %vm374_vm0, %v43635_v24 }
 0x829   : > { %18429 = vmatpush1.bf16.msra.mxu1 %v43773_v33  ;;  %18364 = vmatprep.mubr.bf16.mxu1 %v46528_v50 }
 0x82a   : > { %18754 = vmatprep.subr.bf16.mxu1 %v43777_v60 }
 0x82e   : > { %36278 = vmatmul.mubr.msk.bf16.vlgmr.msra.gmra.mrb[184].mxu0 %vm374_vm0, %v43786_v58 }
 0x82f   : > { %18808 = vmatpush1.bf16.msra.mxu0 %v43789_v26  ;;  %18743 = vmatprep.mubr.bf16.mxu0 %v46528_v50 }
 0x830   : > { %18913 = vmatprep.subr.bf16.mxu0 %v43793_v28  ;;  %36227 = vmatmul.mubr.msk.bf16.gmra.mrb[212].mxu1 %vm374_vm0, %v43664_v48 }
 0x831   : > { %18460 = vmatprep.mubr.bf16.mxu1 %v46528_v50 }
 0x836   : > { %36279 = vmatmul.mubr.msk.bf16.gmra.mrb[188].mxu0 %vm374_vm0, %v43806_v15 }
 0x837   : > { %18839 = vmatprep.mubr.bf16.mxu0 %v46528_v50 }
 0x838   : > { %36230 = vmatmul.mubr.msk.bf16.vlgmr.msra.gmra.mrb[216].mxu1 %vm374_vm0, %v43635_v24 }
 0x839   : > { %18755 = vmatpush1.bf16.msra.mxu1 %v43811_v2  ;;  %18470 = vmatprep.mubr.bf16.mxu1 %v46528_v50 }
 0x83a   : > { %18860 = vmatprep.subr.bf16.mxu1 %v43815_v17 }
 0x83e   : > { %36282 = vmatmul.mubr.msk.bf16.vlgmr.msra.gmra.mrb[192].mxu0 %vm374_vm0, %v43786_v58 }
 0x83f   : > { %18914 = vmatpush1.bf16.msra.mxu0 %v43822_v32  ;;  %18849 = vmatprep.mubr.bf16.mxu0 %v46528_v50 }
 0x840   : > { %19019 = vmatprep.subr.bf16.mxu0 %v43826_v12  ;;  %36231 = vmatmul.mubr.msk.bf16.gmra.mrb[220].mxu1 %vm374_vm0, %v43664_v48 }
 0x841   : > { %18786 = vmatprep.mubr.bf16.mxu1 %v46528_v50 }
 0x846   : > { %36283 = vmatmul.mubr.msk.bf16.gmra.mrb[196].mxu0 %vm374_vm0, %v43806_v15 }
 0x847   : > { %18945 = vmatprep.mubr.bf16.mxu0 %v46528_v50 }
 0x848   : > { %36280 = vmatmul.mubr.msk.bf16.vlgmr.msra.gmra.mrb[184].mxu1 %vm374_vm0, %v43786_v58 }
 0x849   : > { %18861 = vmatpush1.bf16.msra.mxu1 %v43839_v44  ;;  %18796 = vmatprep.mubr.bf16.mxu1 %v46528_v50 }
 0x84a   : > { %18966 = vmatprep.subr.bf16.mxu1 %v43843_v3 }
 0x84e   : > { %36286 = vmatmul.mubr.msk.bf16.vlgmr.msra.gmra.mrb[200].mxu0 %vm374_vm0, %v43786_v58 }
 0x84f   : > { %19020 = vmatpush1.bf16.msra.mxu0 %v43850_v40  ;;  %18955 = vmatprep.mubr.bf16.mxu0 %v46528_v50 }
 0x850   : > { %19125 = vmatprep.subr.bf16.mxu0 %v43854_v25  ;;  %36281 = vmatmul.mubr.msk.bf16.gmra.mrb[188].mxu1 %vm374_vm0, %v43806_v15 }
 0x851   : > { %v17072_v7 = vpop.f32.mrb[136].mxu0  ;;  %18892 = vmatprep.mubr.bf16.mxu1 %v46528_v50 }
 0x852   : > { %v37394_v37 = vpop.f32.mrb[137].mxu0 }
 0x853   : > { %v16991_v11 = vpop.f32.mrb[124].mxu1  ;;  %v17075_v63 = vpop.f32.mrb[138].mxu0  ;;  %v43878_v37 = vld [vmem:[%s40842_s24 + $0x134] ss:$120 sps:$4 sm:$0xff]  }
 0x854   : > { %v17073_v27 = vadd.f32 %v17072_v7, %v16991_v11  ;;  %v37376_v52 = vpop.f32.mrb[125].mxu1  ;;  %v37395_v4 = vpop.f32.mrb[139].mxu0 }
 0x855   : > { %v16994_v24 = vpop.f32.mrb[126].mxu1 }
 0x856   : > { %v17076_v62 = vadd.f32 %v17075_v63, %v16994_v24  ;;  %v37377_v48 = vpop.f32.mrb[127].mxu1  ;;  %36287 = vmatmul.mubr.msk.bf16.gmra.mrb[204].mxu0 %vm374_vm0, %v43806_v15 }
 0x857   : > { %19051 = vmatprep.mubr.bf16.mxu0 %v46528_v50 }
 0x858   : > { %36284 = vmatmul.mubr.msk.bf16.vlgmr.msra.gmra.mrb[192].mxu1 %vm374_vm0, %v43786_v58 }
 0x859   : > { %v17080_v56 = vpop.f32.mrb[140].mxu0  ;;  %18967 = vmatpush1.bf16.msra.mxu1 %v43867_v16  ;;  %18902 = vmatprep.mubr.bf16.mxu1 %v46528_v50 }
 0x85a   : > { %v37398_v13 = vpop.f32.mrb[141].mxu0  ;;  %19072 = vmatprep.subr.bf16.mxu1 %v43871_v41 }
 0x85b   : > { %v17083_v7 = vpop.f32.mrb[142].mxu0  ;;  %v16999_v11 = vpop.f32.mrb[128].mxu1 }
 0x85c   : > { %v37399_v63 = vpop.f32.mrb[143].mxu0  ;;  %v17081_v52 = vadd.f32 %v17080_v56, %v16999_v11  ;;  %v37380_v4 = vpop.f32.mrb[129].mxu1 }
 0x85d   : > { %v17002_v24 = vpop.f32.mrb[130].mxu1 }
 0x85e   : > { %36290 = vmatmul.mubr.msk.bf16.vlgmr.msra.gmra.mrb[208].mxu0 %vm374_vm0, %v43786_v58  ;;  %v17084_v48 = vadd.f32 %v17083_v7, %v17002_v24  ;;  %v37381_v13 = vpop.f32.mrb[131].mxu1 }
 0x85f   : > { %19126 = vmatpush1.bf16.msra.mxu0 %v43878_v37  ;;  %19061 = vmatprep.mubr.bf16.mxu0 %v46528_v50 }
 0x860   : > { %19611 = vmatprep.subr.bf16.mxu0 %v43612_v18  ;;  %36285 = vmatmul.mubr.msk.bf16.gmra.mrb[196].mxu1 %vm374_vm0, %v43806_v15 }
 0x861   : > { %v17088_v63 = vpop.f32.mrb[144].mxu0  ;;  %18998 = vmatprep.mubr.bf16.mxu1 %v46528_v50 }
 0x862   : > { %v37402_v56 = vpop.f32.mrb[145].mxu0 }
 0x863   : > { %v17091_v11 = vpop.f32.mrb[146].mxu0  ;;  %v17007_v4 = vpop.f32.mrb[132].mxu1 }
 0x864   : > { %v37403_v55 = vpop.f32.mrb[147].mxu0  ;;  %v17089_v7 = vadd.f32 %v17088_v63, %v17007_v4  ;;  %v37384_v24 = vpop.f32.mrb[133].mxu1 }
 0x865   : > { %v17010_v13 = vpop.f32.mrb[134].mxu1 }
 0x866   : > { %36291 = vmatmul.mubr.msk.bf16.gmra.mrb[212].mxu0 %vm374_vm0, %v43806_v15  ;;  %v17092_v18 = vadd.f32 %v17091_v11, %v17010_v13  ;;  %v37385_v19 = vpop.f32.mrb[135].mxu1 }
 0x867   : > { %19157 = vmatprep.mubr.bf16.mxu0 %v46528_v50 }
 0x868   : > { %36288 = vmatmul.mubr.msk.bf16.vlgmr.msra.gmra.mrb[200].mxu1 %vm374_vm0, %v43786_v58 }
 0x869   : > { %v17260_v56 = vpop.f32.mrb[148].mxu0  ;;  %19073 = vmatpush1.bf16.msra.mxu1 %v43892_v34  ;;  %19008 = vmatprep.mubr.bf16.mxu1 %v46528_v50 }
 0x86a   : > { %v37430_v53 = vpop.f32.mrb[149].mxu0  ;;  %19178 = vmatprep.subr.bf16.mxu1 %v43896_v1 }
 0x86b   : > { %v17263_v55 = vpop.f32.mrb[150].mxu0  ;;  %v17163_v63 = vpop.f32.mrb[136].mxu1 }
 0x86c   : > { %v37431_v4 = vpop.f32.mrb[151].mxu0  ;;  %v17186_v11 = vadd.f32 %v17163_v63, %v17073_v27  ;;  %v37412_v19 = vpop.f32.mrb[137].mxu1 }
 0x86d   : > { %v17166_v24 = vpop.f32.mrb[138].mxu1 }
 0x86e   : > { %36294 = vmatmul.mubr.msk.bf16.vlgmr.msra.gmra.mrb[216].mxu0 %vm374_vm0, %v43786_v58  ;;  %v17187_v13 = vadd.f32 %v17166_v24, %v17076_v62  ;;  %v37413_v61 = vpop.f32.mrb[139].mxu1  ;;  %v17283_v53 = vadd.f32 %v17260_v56, %v17186_v11  ;;  %v43914_v56 = vld [vmem:[%s40842_s24 + $0x13c] ss:$120 sps:$4 sm:$0xff]  }
 0x86f   : > { %19612 = vmatpush1.bf16.msra.mxu0 %v43649_v20  ;;  %19167 = vmatprep.mubr.bf16.mxu0 %v46528_v50 }
 0x870   : > { %19717 = vmatprep.subr.bf16.mxu0 %v43654_v57  ;;  %36289 = vmatmul.mubr.msk.bf16.gmra.mrb[204].mxu1 %vm374_vm0, %v43806_v15  ;;  %v17284_v27 = vadd.f32 %v17263_v55, %v17187_v13 }
 0x871   : > { %v17268_v4 = vpop.f32.mrb[152].mxu0  ;;  %19104 = vmatprep.mubr.bf16.mxu1 %v46528_v50 }
 0x872   : > { %v37434_v63 = vpop.f32.mrb[153].mxu0 }
 0x873   : > { %v17271_v19 = vpop.f32.mrb[154].mxu0  ;;  %v17171_v14 = vpop.f32.mrb[140].mxu1 }
 0x874   : > { %v37435_v62 = vpop.f32.mrb[155].mxu0  ;;  %v17188_v61 = vadd.f32 %v17171_v14, %v17081_v52  ;;  %v37416_v24 = vpop.f32.mrb[141].mxu1  ;;  %v43924_v14 = vld [vmem:[%s46467_s1 + $0x20] sm:$0xff]  }
 0x875   : > { %v17174_v20 = vpop.f32.mrb[142].mxu1 }
 0x876   : > { %36295 = vmatmul.mubr.msk.bf16.gmra.mrb[220].mxu0 %vm374_vm0, %v43806_v15  ;;  %v17189_v57 = vadd.f32 %v17174_v20, %v17084_v48  ;;  %v37417_v11 = vpop.f32.mrb[143].mxu1  ;;  %v17285_v45 = vadd.f32 %v17268_v4, %v17188_v61 }
 0x877   : > { %19643 = vmatprep.mubr.bf16.mxu0 %v46528_v50 }
 0x878   : > { %36292 = vmatmul.mubr.msk.bf16.vlgmr.msra.gmra.mrb[208].mxu1 %vm374_vm0, %v43786_v58  ;;  %v17286_v13 = vadd.f32 %v17271_v19, %v17189_v57 }
 0x879   : > { %v17276_v55 = vpop.f32.mrb[156].mxu0  ;;  %19179 = vmatpush1.bf16.msra.mxu1 %v43914_v56  ;;  %19114 = vmatprep.mubr.bf16.mxu1 %v46528_v50 }
 0x87a   : > { %v37438_v63 = vpop.f32.mrb[157].mxu0  ;;  %19664 = vmatprep.subr.bf16.mxu1 %v43582_v23 }
 0x87b   : > { %v17279_v52 = vpop.f32.mrb[158].mxu0  ;;  %v17179_v48 = vpop.f32.mrb[144].mxu1 }
 0x87c   : > { %v37439_v4 = vpop.f32.mrb[159].mxu0  ;;  %v17190_v62 = vadd.f32 %v17179_v48, %v17089_v7  ;;  %v37420_v61 = vpop.f32.mrb[145].mxu1 }
 0x87d   : > { %v17182_v24 = vpop.f32.mrb[146].mxu1 }
 0x87e   : > { %36344 = vmatmul.mubr.msk.bf16.vlgmr.msra.gmra.mrb[184].mxu0 %vm374_vm0, %v43924_v14  ;;  %v17191_v19 = vadd.f32 %v17182_v24, %v17092_v18  ;;  %v37421_v20 = vpop.f32.mrb[147].mxu1  ;;  %v17287_v57 = vadd.f32 %v17276_v55, %v17190_v62  ;;  %v43938_v18 = vld [vmem:[%s46467_s1 + $0x28] sm:$0xff]  }
 0x87f   : > { %19718 = vmatpush1.bf16.msra.mxu0 %v43695_v0  ;;  %19653 = vmatprep.mubr.bf16.mxu0 %v46528_v50 }
 0x880   : > { %19823 = vmatprep.subr.bf16.mxu0 %v43699_v59  ;;  %36293 = vmatmul.mubr.msk.bf16.gmra.mrb[212].mxu1 %vm374_vm0, %v43806_v15  ;;  %v17288_v11 = vadd.f32 %v17279_v52, %v17191_v19 }
 0x881   : > { %v17454_v23 = vpop.f32.mrb[160].mxu0  ;;  %19210 = vmatprep.mubr.bf16.mxu1 %v46528_v50 }
 0x882   : > { %v37466_v7 = vpop.f32.mrb[161].mxu0 }
 0x883   : > { %v17457_v63 = vpop.f32.mrb[162].mxu0  ;;  %v17357_v0 = vpop.f32.mrb[148].mxu1 }
 0x884   : > { %v37467_v48 = vpop.f32.mrb[163].mxu0  ;;  %v17380_v4 = vadd.f32 %v17357_v0, %v17283_v53  ;;  %v37448_v55 = vpop.f32.mrb[149].mxu1 }
 0x885   : > { %v17360_v62 = vpop.f32.mrb[150].mxu1 }
 0x886   : > { %36345 = vmatmul.mubr.msk.bf16.gmra.mrb[188].mxu0 %vm374_vm0, %v43938_v18  ;;  %v17381_v59 = vadd.f32 %v17360_v62, %v17284_v27  ;;  %v37449_v61 = vpop.f32.mrb[151].mxu1  ;;  %v17477_v52 = vadd.f32 %v17454_v23, %v17380_v4 }
 0x887   : > { %19749 = vmatprep.mubr.bf16.mxu0 %v46528_v50 }
 0x888   : > { %36296 = vmatmul.mubr.msk.bf16.vlgmr.msra.gmra.mrb[216].mxu1 %vm374_vm0, %v43786_v58  ;;  %v17478_v19 = vadd.f32 %v17457_v63, %v17381_v59 }
 0x889   : > { %v17462_v24 = vpop.f32.mrb[164].mxu0  ;;  %19665 = vmatpush1.bf16.msra.mxu1 %v43638_v8  ;;  %19220 = vmatprep.mubr.bf16.mxu1 %v46528_v50 }
 0x88a   : > { %v37470_v20 = vpop.f32.mrb[165].mxu0  ;;  %19770 = vmatprep.subr.bf16.mxu1 %v43641_v54 }
 0x88b   : > { %v17465_v53 = vpop.f32.mrb[166].mxu0  ;;  %v17365_v7 = vpop.f32.mrb[152].mxu1 }
 0x88c   : > { %v37471_v0 = vpop.f32.mrb[167].mxu0  ;;  %v17382_v27 = vadd.f32 %v17365_v7, %v17285_v45  ;;  %v37452_v48 = vpop.f32.mrb[153].mxu1 }
 0x88d   : > { %v17368_v55 = vpop.f32.mrb[154].mxu1 }
 0x88e   : > { %36348 = vmatmul.mubr.msk.bf16.vlgmr.msra.gmra.mrb[192].mxu0 %vm374_vm0, %v43924_v14  ;;  %v17383_v23 = vadd.f32 %v17368_v55, %v17286_v13  ;;  %v37453_v58 = vpop.f32.mrb[155].mxu1  ;;  %v17479_v8 = vadd.f32 %v17462_v24, %v17382_v27 }
 0x88f   : > { %19824 = vmatpush1.bf16.msra.mxu0 %v43723_v46  ;;  %19759 = vmatprep.mubr.bf16.mxu0 %v46528_v50 }
 0x890   : > { %19929 = vmatprep.subr.bf16.mxu0 %v43727_v49  ;;  %36297 = vmatmul.mubr.msk.bf16.gmra.mrb[220].mxu1 %vm374_vm0, %v43806_v15  ;;  %v17480_v63 = vadd.f32 %v17465_v53, %v17383_v23 }
 0x891   : > { %v17470_v54 = vpop.f32.mrb[168].mxu0  ;;  %19696 = vmatprep.mubr.bf16.mxu1 %v46528_v50 }
 0x892   : > { %v37474_v45 = vpop.f32.mrb[169].mxu0 }
 0x893   : > { %v17473_v4 = vpop.f32.mrb[170].mxu0  ;;  %v17373_v62 = vpop.f32.mrb[156].mxu1 }
 0x894   : > { %v37475_v59 = vpop.f32.mrb[171].mxu0  ;;  %v17384_v13 = vadd.f32 %v17373_v62, %v17287_v57  ;;  %v37456_v61 = vpop.f32.mrb[157].mxu1 }
 0x895   : > { %v17376_v20 = vpop.f32.mrb[158].mxu1 }
 0x896   : > { %36349 = vmatmul.mubr.msk.bf16.gmra.mrb[196].mxu0 %vm374_vm0, %v43938_v18  ;;  %v17385_v46 = vadd.f32 %v17376_v20, %v17288_v11  ;;  %v37457_v24 = vpop.f32.mrb[159].mxu1  ;;  %v17481_v49 = vadd.f32 %v17470_v54, %v17384_v13 }
 0x897   : > { %19855 = vmatprep.mubr.bf16.mxu0 %v46528_v50 }
 0x898   : > { %36346 = vmatmul.mubr.msk.bf16.vlgmr.msra.gmra.mrb[184].mxu1 %vm374_vm0, %v43924_v14  ;;  %v17482_v53 = vadd.f32 %v17473_v4, %v17385_v46 }
 0x899   : > { %v17648_v15 = vpop.f32.mrb[172].mxu0  ;;  %19771 = vmatpush1.bf16.msra.mxu1 %v43677_v47  ;;  %19706 = vmatprep.mubr.bf16.mxu1 %v46528_v50 }
 0x89a   : > { %v37502_v7 = vpop.f32.mrb[173].mxu0  ;;  %19876 = vmatprep.subr.bf16.mxu1 %v43680_v35 }
 0x89b   : > { %v17651_v57 = vpop.f32.mrb[174].mxu0  ;;  %v17551_v0 = vpop.f32.mrb[160].mxu1 }
 0x89c   : > { %v37503_v27 = vpop.f32.mrb[175].mxu0  ;;  %v17574_v11 = vadd.f32 %v17551_v0, %v17477_v52  ;;  %v37484_v48 = vpop.f32.mrb[161].mxu1 }
 0x89d   : > { %v17554_v55 = vpop.f32.mrb[162].mxu1  ;;  %v43989_v48 = vpop.permute.xlu0 %17775 }
 0x89e   : > { %36352 = vmatmul.mubr.msk.bf16.vlgmr.msra.gmra.mrb[200].mxu0 %vm374_vm0, %v43924_v14  ;;  %v17575_v23 = vadd.f32 %v17554_v55, %v17478_v19  ;;  %v37485_v58 = vpop.f32.mrb[163].mxu1  ;;  %v17671_v47 = vadd.f32 %v17648_v15, %v17574_v11  ;;  %46554 = vst [vmem:[#allocation20_spill] sm:$0xff] %v43989_v48 }
 0x89f   : > { %19930 = vmatpush1.bf16.msra.mxu0 %v43748_v36  ;;  %19865 = vmatprep.mubr.bf16.mxu0 %v46528_v50 }
 0x8a0   : > { %20035 = vmatprep.subr.bf16.mxu0 %v43752_v30  ;;  %36347 = vmatmul.mubr.msk.bf16.gmra.mrb[188].mxu1 %vm374_vm0, %v43938_v18  ;;  %v17672_v54 = vadd.f32 %v17651_v57, %v17575_v23 }
 0x8a1   : > { %v17656_v35 = vpop.f32.mrb[176].mxu0  ;;  %19802 = vmatprep.mubr.bf16.mxu1 %v46528_v50 }
 0x8a2   : > { %v37506_v52 = vpop.f32.mrb[177].mxu0 }
 0x8a3   : > { %v17659_v45 = vpop.f32.mrb[178].mxu0  ;;  %v17559_v4 = vpop.f32.mrb[164].mxu1 }
 0x8a4   : > { %v37507_v62 = vpop.f32.mrb[179].mxu0  ;;  %v17576_v19 = vadd.f32 %v17559_v4, %v17479_v8  ;;  %v37488_v59 = vpop.f32.mrb[165].mxu1 }
 0x8a5   : > { %v17562_v13 = vpop.f32.mrb[166].mxu1  ;;  %v44015_v59 = vpop.permute.xlu0 %17787 }
 0x8a6   : > { %36353 = vmatmul.mubr.msk.bf16.gmra.mrb[204].mxu0 %vm374_vm0, %v43938_v18  ;;  %v17577_v36 = vadd.f32 %v17562_v13, %v17480_v63  ;;  %v37489_v61 = vpop.f32.mrb[167].mxu1  ;;  %v17673_v30 = vadd.f32 %v17656_v35, %v17576_v19  ;;  %46557 = vst [vmem:[#allocation23_spill] sm:$0xff] %v44015_v59 }
 0x8a7   : > { %19961 = vmatprep.mubr.bf16.mxu0 %v46528_v50 }
 0x8a8   : > { %36350 = vmatmul.mubr.msk.bf16.vlgmr.msra.gmra.mrb[192].mxu1 %vm374_vm0, %v43924_v14  ;;  %v17674_v46 = vadd.f32 %v17659_v45, %v17577_v36 }
 0x8a9   : > { %v17664_v20 = vpop.f32.mrb[180].mxu0  ;;  %19877 = vmatpush1.bf16.msra.mxu1 %v43706_v9  ;;  %19812 = vmatprep.mubr.bf16.mxu1 %v46528_v50 }
 0x8aa   : > { %v37510_v24 = vpop.f32.mrb[181].mxu0  ;;  %19982 = vmatprep.subr.bf16.mxu1 %v43710_v21 }
 0x8ab   : > { %v17667_v8 = vpop.f32.mrb[182].mxu0  ;;  %v17567_v15 = vpop.f32.mrb[168].mxu1 }
 0x8ac   : > { %v37511_v63 = vpop.f32.mrb[183].mxu0  ;;  %v17578_v7 = vadd.f32 %v17567_v15, %v17481_v49  ;;  %v37492_v57 = vpop.f32.mrb[169].mxu1 }
 0x8ad   : > { %v17570_v0 = vpop.f32.mrb[170].mxu1 }
 0x8ae   : > { %36356 = vmatmul.mubr.msk.bf16.vlgmr.msra.gmra.mrb[208].mxu0 %vm374_vm0, %v43924_v14  ;;  %v17579_v27 = vadd.f32 %v17570_v0, %v17482_v53  ;;  %v37493_v11 = vpop.f32.mrb[171].mxu1  ;;  %v17675_v9 = vadd.f32 %v17664_v20, %v17578_v7  ;;  %v44049_v0 = vld [vmem:[%s46467_s1 + $0x30] sm:$0xff]  }
 0x8af   : > { %20036 = vmatpush1.bf16.msra.mxu0 %v43773_v33  ;;  %19971 = vmatprep.mubr.bf16.mxu0 %v46528_v50  ;;  %v44230_v11 = vld [vmem:[%s40842_s24 + $0x128] ss:$120 sps:$4 sm:$0xff]  }
 0x8b0   : > { %20521 = vmatprep.subr.bf16.mxu0 %v43777_v60  ;;  %36351 = vmatmul.mubr.msk.bf16.gmra.mrb[196].mxu1 %vm374_vm0, %v43938_v18  ;;  %v17676_v21 = vadd.f32 %v17667_v8, %v17579_v27  ;;  %v43996_v60 = vpop.permute.xlu1 %17779  ;;  %v44031_v8 = vpop.permute.xlu0 %17795  ;;  %v44064_v27 = vld [vmem:[%s46467_s1 + $0x38] sm:$0xff]  }
 0x8b1   : > { %19908 = vmatprep.mubr.bf16.mxu1 %v46528_v50  ;;  %46555 = vst [vmem:[#allocation21_spill] sm:$0xff] %v43996_v60  ;;  %46559 = vst [vmem:[#allocation25_spill] sm:$0xff] %v44031_v8 }
 0x8b3   : > { %v17745_v49 = vpop.f32.mrb[172].mxu1 }
 0x8b4   : > { %v17768_v53 = vadd.f32 %v17745_v49, %v17671_v47  ;;  %v37520_v55 = vpop.f32.mrb[173].mxu1  ;;  %v44003_v47 = vld [vmem:[%s40842_s24 + $0x144] ss:$120 sps:$4 sm:$0xff]   ;;  %v44013_v45 = vpop.permute.xlu1 %17783  ;;  %v44252_v49 = vld [vmem:[%s40842_s24 + $0x138] ss:$120 sps:$4 sm:$0xff]  }
 0x8b5   : > { %v17748_v33 = vpop.f32.mrb[174].mxu1  ;;  %46556 = vst [vmem:[#allocation22_spill] sm:$0xff] %v44013_v45  ;;  %v40604_v55 = vld [vmem:[%s40842_s24 + $0x104] ss:$120 sps:$4 sm:$0xff]  }
 0x8b6   : > { %36357 = vmatmul.mubr.msk.bf16.gmra.mrb[212].mxu0 %vm374_vm0, %v43938_v18  ;;  %v17798_v23 = vadd.f32 %v43989_v48, %v17768_v53  ;;  %v17769_v58 = vadd.f32 %v17748_v33, %v17672_v54  ;;  %v37521_v35 = vpop.f32.mrb[175].mxu1  ;;  %v44256_v53 = vld [vmem:[%s40842_s24 + $0x14c] ss:$120 sps:$4 sm:$0xff]   ;;  %v44265_v33 = vld [vmem:[%s40842_s24 + $0x118] ss:$120 sps:$4 sm:$0xff]  }
 0x8b7   : > { %20067 = vmatprep.mubr.bf16.mxu0 %v46528_v50  ;;  %v44290_v35 = vld [vmem:[%s46467_s1 + $0x50] sm:$0xff]  }
 0x8b8   : > { %17804 = vst [vmem:[%s43994_s13] sm:$0xff] %v17798_v23  ;;  %v17799_v52 = vadd.f32 %v43996_v60, %v17769_v58  ;;  %36354 = vmatmul.mubr.msk.bf16.vlgmr.msra.gmra.mrb[200].mxu1 %vm374_vm0, %v43924_v14  ;;  %v44029_v20 = vpop.permute.xlu1 %17791  ;;  %v44277_v23 = vld [vmem:[%s40842_s24 + $0x148] ss:$120 sps:$4 sm:$0xff]  }
 0x8b9   : > { %19983 = vmatpush1.bf16.msra.mxu1 %v43734_v6  ;;  %19918 = vmatprep.mubr.bf16.mxu1 %v46528_v50  ;;  %46558 = vst [vmem:[#allocation24_spill] sm:$0xff] %v44029_v20  ;;  %v44281_v58 = vld [vmem:[%s40842_s24 + $0x110] ss:$120 sps:$4 sm:$0xff]  }
 0x8ba   : > { %17805 = vst [vmem:[%s43994_s13 + $0x8] sm:$0xff] %v17799_v52  ;;  %20088 = vmatprep.subr.bf16.mxu1 %v44003_v47  ;;  %v44293_v52 = vld [vmem:[%s40842_s24 + $0x114] ss:$120 sps:$4 sm:$0xff]  }
 0x8bb   : > { %v17753_v54 = vpop.f32.mrb[176].mxu1 }
 0x8bc   : > { %v17770_v4 = vadd.f32 %v17753_v54, %v17673_v30  ;;  %v37524_v62 = vpop.f32.mrb[177].mxu1  ;;  %v44297_v54 = vld [vmem:[%s40842_s24 + $0x128] ss:$120 sps:$4 sm:$0xff]  }
 0x8bd   : > { %v17756_v19 = vpop.f32.mrb[178].mxu1  ;;  %v44315_v62 = vld [vmem:[%s40842_s24 + $0x10c] ss:$120 sps:$4 sm:$0xff]  }
 0x8be   : > { %36360 = vmatmul.mubr.msk.bf16.vlgmr.msra.gmra.mrb[216].mxu0 %vm374_vm0, %v43924_v14  ;;  %v17800_v6 = vadd.f32 %v44013_v45, %v17770_v4  ;;  %v17771_v13 = vadd.f32 %v17756_v19, %v17674_v46  ;;  %v37525_v36 = vpop.f32.mrb[179].mxu1  ;;  %v44310_v4 = vld [vmem:[%s46467_s1 + $0x58] sm:$0xff]  }
 0x8bf   : > { %20522 = vmatpush1.bf16.msra.mxu0 %v43811_v2  ;;  %20077 = vmatprep.mubr.bf16.mxu0 %v46528_v50  ;;  %v44319_v19 = vld [vmem:[%s40842_s24 + $0x120] ss:$120 sps:$4 sm:$0xff]   ;;  %v44343_v36 = vld [vmem:[%s40842_s24 + $0x11c] ss:$120 sps:$4 sm:$0xff]  }
 0x8c0   : > { %20627 = vmatprep.subr.bf16.mxu0 %v43815_v17  ;;  %17806 = vst [vmem:[%s43994_s13 + $0x10] sm:$0xff] %v17800_v6  ;;  %v17801_v61 = vadd.f32 %v44015_v59, %v17771_v13  ;;  %36355 = vmatmul.mubr.msk.bf16.gmra.mrb[204].mxu1 %vm374_vm0, %v43938_v18  ;;  %v44036_v17 = vld [vmem:[%s40842_s24 + $0x140] ss:$120 sps:$4 sm:$0xff]   ;;  %v44326_v6 = vld [vmem:[%s40842_s24 + $0x124] ss:$120 sps:$4 sm:$0xff]  }
 0x8c1   : > { %20014 = vmatprep.mubr.bf16.mxu1 %v46528_v50  ;;  %v44330_v13 = vld [vmem:[%s40842_s24 + $0x138] ss:$120 sps:$4 sm:$0xff]  }
 0x8c2   : > { %17807 = vst [vmem:[%s43994_s13 + $0x18] sm:$0xff] %v17801_v61  ;;  %v44347_v61 = vld [vmem:[%s40842_s24 + $0x130] ss:$120 sps:$4 sm:$0xff]  }
 0x8c3   : > { %v17761_v30 = vpop.f32.mrb[180].mxu1 }
 0x8c4   : > { %v17772_v46 = vadd.f32 %v17761_v30, %v17675_v9  ;;  %v37528_v2 = vpop.f32.mrb[181].mxu1  ;;  %v44234_v9 = vld [vmem:[%s40842_s24 + $0x13c] ss:$120 sps:$4 sm:$0xff]  }
 0x8c5   : > { %v17764_v24 = vpop.f32.mrb[182].mxu1  ;;  %v44354_v30 = vld [vmem:[%s40842_s24 + $0x134] ss:$120 sps:$4 sm:$0xff]   ;;  %v44372_v2 = vld [vmem:[%s40842_s24 + $0x140] ss:$120 sps:$4 sm:$0xff]  }
 0x8c6   : > { %36361 = vmatmul.mubr.msk.bf16.gmra.mrb[220].mxu0 %vm374_vm0, %v43938_v18  ;;  %v17802_v15 = vadd.f32 %v44029_v20, %v17772_v46  ;;  %v17773_v63 = vadd.f32 %v17764_v24, %v17676_v21  ;;  %v37529_v7 = vpop.f32.mrb[183].mxu1  ;;  %v40606_v21 = vld [vmem:[%s40842_s24 + $0x108] ss:$120 sps:$4 sm:$0xff]   ;;  %v44368_v46 = vld [vmem:[%s40842_s24 + $0x12c] ss:$120 sps:$4 sm:$0xff]  }
 0x8c7   : > { %20553 = vmatprep.mubr.bf16.mxu0 %v46528_v50  ;;  %v44390_v24 = vld [vmem:[%s40842_s24 + $0x13c] ss:$120 sps:$4 sm:$0xff]   ;;  %v44422_v7 = vld [vmem:[%s46467_s1 + $0x60] sm:$0xff]  }
 0x8c8   : > { %17808 = vst [vmem:[%s43994_s13 + $0x20] sm:$0xff] %v17802_v15  ;;  %v17803_v57 = vadd.f32 %v44031_v8, %v17773_v63  ;;  %36358 = vmatmul.mubr.msk.bf16.vlgmr.msra.gmra.mrb[208].mxu1 %vm374_vm0, %v43924_v14  ;;  %v44394_v15 = vld [vmem:[%s40842_s24 + $0x150] ss:$120 sps:$4 sm:$0xff]   ;;  %v44412_v63 = vld [vmem:[%s40842_s24 + $0x14c] ss:$120 sps:$4 sm:$0xff]  }
 0x8c9   : > { %20089 = vmatpush1.bf16.msra.mxu1 %v44036_v17  ;;  %20024 = vmatprep.mubr.bf16.mxu1 %v46528_v50 }
 0x8ca   : > { %17809 = vst [vmem:[%s43994_s13 + $0x28] sm:$0xff] %v17803_v57  ;;  %20574 = vmatprep.subr.bf16.mxu1 %v43761_v51  ;;  %v40575_v51 = vld [vmem:[%s40842_s24 + $0x100] ss:$120 sps:$4 sm:$0xff]   ;;  %v44436_v57 = vld [vmem:[%s46467_s1 + $0x68] sm:$0xff]  }
 0x8ce   : > { %36410 = vmatmul.mubr.msk.bf16.vlgmr.msra.gmra.mrb[184].mxu0 %vm374_vm0, %v44049_v0 }
 0x8cf   : > { %20628 = vmatpush1.bf16.msra.mxu0 %v43839_v44  ;;  %20563 = vmatprep.mubr.bf16.mxu0 %v46528_v50  ;;  %v44155_v44 = vld [vmem:[%s40842_s24 + $0x110] ss:$120 sps:$4 sm:$0xff]  }
 0x8d0   : > { %20733 = vmatprep.subr.bf16.mxu0 %v43843_v3  ;;  %36359 = vmatmul.mubr.msk.bf16.gmra.mrb[212].mxu1 %vm374_vm0, %v43938_v18  ;;  %v44159_v3 = vld [vmem:[%s40842_s24 + $0x124] ss:$120 sps:$4 sm:$0xff]  }
 0x8d1   : > { %20120 = vmatprep.mubr.bf16.mxu1 %v46528_v50 }
 0x8d6   : > { %36411 = vmatmul.mubr.msk.bf16.gmra.mrb[188].mxu0 %vm374_vm0, %v44064_v27 }
 0x8d7   : > { %20659 = vmatprep.mubr.bf16.mxu0 %v46528_v50 }
 0x8d8   : > { %36362 = vmatmul.mubr.msk.bf16.vlgmr.msra.gmra.mrb[216].mxu1 %vm374_vm0, %v43924_v14  ;;  %v44209_v14 = vld [vmem:[%s40842_s24 + $0x12c] ss:$120 sps:$4 sm:$0xff]  }
 0x8d9   : > { %20575 = vmatpush1.bf16.msra.mxu1 %v43789_v26  ;;  %20130 = vmatprep.mubr.bf16.mxu1 %v46528_v50  ;;  %v44127_v26 = vld [vmem:[%s40842_s24 + $0x114] ss:$120 sps:$4 sm:$0xff]  }
 0x8da   : > { %20680 = vmatprep.subr.bf16.mxu1 %v43793_v28  ;;  %v44139_v28 = vld [vmem:[%s40842_s24 + $0x144] ss:$120 sps:$4 sm:$0xff]  }
 0x8de   : > { %36414 = vmatmul.mubr.msk.bf16.vlgmr.msra.gmra.mrb[192].mxu0 %vm374_vm0, %v44049_v0 }
 0x8df   : > { %20734 = vmatpush1.bf16.msra.mxu0 %v43867_v16  ;;  %20669 = vmatprep.mubr.bf16.mxu0 %v46528_v50  ;;  %v44181_v16 = vld [vmem:[%s40842_s24 + $0x11c] ss:$120 sps:$4 sm:$0xff]  }
 0x8e0   : > { %20839 = vmatprep.subr.bf16.mxu0 %v43871_v41  ;;  %36363 = vmatmul.mubr.msk.bf16.gmra.mrb[220].mxu1 %vm374_vm0, %v43938_v18  ;;  %v44188_v41 = vld [vmem:[%s40842_s24 + $0x120] ss:$120 sps:$4 sm:$0xff]   ;;  %v44216_v18 = vld [vmem:[%s40842_s24 + $0x130] ss:$120 sps:$4 sm:$0xff]  }
 0x8e1   : > { %20606 = vmatprep.mubr.bf16.mxu1 %v46528_v50 }
 0x8e6   : > { %36415 = vmatmul.mubr.msk.bf16.gmra.mrb[196].mxu0 %vm374_vm0, %v44064_v27 }
 0x8e7   : > { %20765 = vmatprep.mubr.bf16.mxu0 %v46528_v50 }
 0x8e8   : > { %36412 = vmatmul.mubr.msk.bf16.vlgmr.msra.gmra.mrb[184].mxu1 %vm374_vm0, %v44049_v0 }
 0x8e9   : > { %20681 = vmatpush1.bf16.msra.mxu1 %v43822_v32  ;;  %20616 = vmatprep.mubr.bf16.mxu1 %v46528_v50  ;;  %v44143_v32 = vld [vmem:[%s40842_s24 + $0x10c] ss:$120 sps:$4 sm:$0xff]  }
 0x8ea   : > { %20786 = vmatprep.subr.bf16.mxu1 %v43826_v12  ;;  %v44152_v12 = vld [vmem:[%s46467_s1 + $0x40] sm:$0xff]  }
 0x8ee   : > { %36418 = vmatmul.mubr.msk.bf16.vlgmr.msra.gmra.mrb[200].mxu0 %vm374_vm0, %v44049_v0 }
 0x8ef   : > { %20840 = vmatpush1.bf16.msra.mxu0 %v43892_v34  ;;  %20775 = vmatprep.mubr.bf16.mxu0 %v46528_v50  ;;  %v44118_v34 = vld [vmem:[%s40842_s24 + $0x148] ss:$120 sps:$4 sm:$0xff]  }
 0x8f0   : > { %20945 = vmatprep.subr.bf16.mxu0 %v43896_v1  ;;  %36413 = vmatmul.mubr.msk.bf16.gmra.mrb[188].mxu1 %vm374_vm0, %v44064_v27  ;;  %v40577_v1 = vld [vmem:[%s40842_s24 + $0x104] ss:$120 sps:$4 sm:$0xff]  }
 0x8f1   : > { %20712 = vmatprep.mubr.bf16.mxu1 %v46528_v50 }
 0x8f6   : > { %36419 = vmatmul.mubr.msk.bf16.gmra.mrb[204].mxu0 %vm374_vm0, %v44064_v27 }
 0x8f7   : > { %20871 = vmatprep.mubr.bf16.mxu0 %v46528_v50 }
 0x8f8   : > { %36416 = vmatmul.mubr.msk.bf16.vlgmr.msra.gmra.mrb[192].mxu1 %vm374_vm0, %v44049_v0 }
 0x8f9   : > { %20787 = vmatpush1.bf16.msra.mxu1 %v43850_v40  ;;  %20722 = vmatprep.mubr.bf16.mxu1 %v46528_v50  ;;  %v44172_v40 = vld [vmem:[%s46467_s1 + $0x48] sm:$0xff]  }
 0x8fa   : > { %20892 = vmatprep.subr.bf16.mxu1 %v43854_v25  ;;  %v44177_v25 = vld [vmem:[%s40842_s24 + $0x108] ss:$120 sps:$4 sm:$0xff]  }
 0x8fe   : > { %36422 = vmatmul.mubr.msk.bf16.vlgmr.msra.gmra.mrb[208].mxu0 %vm374_vm0, %v44049_v0 }
 0x8ff   : > { %20946 = vmatpush1.bf16.msra.mxu0 %v43914_v56  ;;  %20881 = vmatprep.mubr.bf16.mxu0 %v46528_v50  ;;  %v44205_v56 = vld [vmem:[%s40842_s24 + $0x118] ss:$120 sps:$4 sm:$0xff]  }
 0x900   : > { %21431 = vmatprep.subr.bf16.mxu0 %v40577_v1  ;;  %36417 = vmatmul.mubr.msk.bf16.gmra.mrb[196].mxu1 %vm374_vm0, %v44064_v27  ;;  %v44586_v1 = vld [vmem:[%s40842_s24 + $0x158] ss:$120 sps:$4 sm:$0xff]  }
 0x901   : > { %20818 = vmatprep.mubr.bf16.mxu1 %v46528_v50 }
 0x906   : > { %36423 = vmatmul.mubr.msk.bf16.gmra.mrb[212].mxu0 %vm374_vm0, %v44064_v27 }
 0x907   : > { %20977 = vmatprep.mubr.bf16.mxu0 %v46528_v50 }
 0x908   : > { %36420 = vmatmul.mubr.msk.bf16.vlgmr.msra.gmra.mrb[200].mxu1 %vm374_vm0, %v44049_v0 }
 0x909   : > { %20893 = vmatpush1.bf16.msra.mxu1 %v43878_v37  ;;  %20828 = vmatprep.mubr.bf16.mxu1 %v46528_v50  ;;  %v44192_v37 = vld [vmem:[%s40842_s24 + $0x134] ss:$120 sps:$4 sm:$0xff]  }
 0x90a   : > { %20998 = vmatprep.subr.bf16.mxu1 %v44118_v34 }
 0x90e   : > { %36426 = vmatmul.mubr.msk.bf16.vlgmr.msra.gmra.mrb[216].mxu0 %vm374_vm0, %v44049_v0 }
 0x90f   : > { %21432 = vmatpush1.bf16.msra.mxu0 %v40575_v51  ;;  %20987 = vmatprep.mubr.bf16.mxu0 %v46528_v50  ;;  %v44614_v51 = vld [vmem:[%s46467_s1 + $0x80] sm:$0xff]  }
 0x910   : > { %21537 = vmatprep.subr.bf16.mxu0 %v44127_v26  ;;  %36421 = vmatmul.mubr.msk.bf16.gmra.mrb[204].mxu1 %vm374_vm0, %v44064_v27 }
 0x911   : > { %20924 = vmatprep.mubr.bf16.mxu1 %v46528_v50 }
 0x916   : > { %36427 = vmatmul.mubr.msk.bf16.gmra.mrb[220].mxu0 %vm374_vm0, %v44064_v27 }
 0x917   : > { %21463 = vmatprep.mubr.bf16.mxu0 %v46528_v50 }
 0x918   : > { %36424 = vmatmul.mubr.msk.bf16.vlgmr.msra.gmra.mrb[208].mxu1 %vm374_vm0, %v44049_v0 }
 0x919   : > { %20999 = vmatpush1.bf16.msra.mxu1 %v44139_v28  ;;  %20934 = vmatprep.mubr.bf16.mxu1 %v46528_v50 }
 0x91a   : > { %21484 = vmatprep.subr.bf16.mxu1 %v44143_v32 }
 0x91e   : > { %36476 = vmatmul.mubr.msk.bf16.vlgmr.msra.gmra.mrb[184].mxu0 %vm374_vm0, %v44152_v12 }
 0x91f   : > { %21538 = vmatpush1.bf16.msra.mxu0 %v44155_v44  ;;  %21473 = vmatprep.mubr.bf16.mxu0 %v46528_v50 }
 0x920   : > { %21643 = vmatprep.subr.bf16.mxu0 %v44159_v3  ;;  %36425 = vmatmul.mubr.msk.bf16.gmra.mrb[212].mxu1 %vm374_vm0, %v44064_v27 }
 0x921   : > { %21030 = vmatprep.mubr.bf16.mxu1 %v46528_v50 }
 0x926   : > { %36477 = vmatmul.mubr.msk.bf16.gmra.mrb[188].mxu0 %vm374_vm0, %v44172_v40 }
 0x927   : > { %21569 = vmatprep.mubr.bf16.mxu0 %v46528_v50 }
 0x928   : > { %36428 = vmatmul.mubr.msk.bf16.vlgmr.msra.gmra.mrb[216].mxu1 %vm374_vm0, %v44049_v0  ;;  %v44518_v0 = vld [vmem:[%s46467_s1 + $0x70] sm:$0xff]  }
 0x929   : > { %21485 = vmatpush1.bf16.msra.mxu1 %v44177_v25  ;;  %21040 = vmatprep.mubr.bf16.mxu1 %v46528_v50 }
 0x92a   : > { %21590 = vmatprep.subr.bf16.mxu1 %v44181_v16 }
 0x92e   : > { %36480 = vmatmul.mubr.msk.bf16.vlgmr.msra.gmra.mrb[192].mxu0 %vm374_vm0, %v44152_v12 }
 0x92f   : > { %21644 = vmatpush1.bf16.msra.mxu0 %v44188_v41  ;;  %21579 = vmatprep.mubr.bf16.mxu0 %v46528_v50 }
 0x930   : > { %21749 = vmatprep.subr.bf16.mxu0 %v44192_v37  ;;  %36429 = vmatmul.mubr.msk.bf16.gmra.mrb[220].mxu1 %vm374_vm0, %v44064_v27  ;;  %v44532_v27 = vld [vmem:[%s46467_s1 + $0x78] sm:$0xff]  }
 0x931   : > { %21516 = vmatprep.mubr.bf16.mxu1 %v46528_v50 }
 0x936   : > { %36481 = vmatmul.mubr.msk.bf16.gmra.mrb[196].mxu0 %vm374_vm0, %v44172_v40 }
 0x937   : > { %21675 = vmatprep.mubr.bf16.mxu0 %v46528_v50 }
 0x938   : > { %36478 = vmatmul.mubr.msk.bf16.vlgmr.msra.gmra.mrb[184].mxu1 %vm374_vm0, %v44152_v12 }
 0x939   : > { %21591 = vmatpush1.bf16.msra.mxu1 %v44205_v56  ;;  %21526 = vmatprep.mubr.bf16.mxu1 %v46528_v50 }
 0x93a   : > { %21696 = vmatprep.subr.bf16.mxu1 %v44209_v14 }
 0x93e   : > { %36484 = vmatmul.mubr.msk.bf16.vlgmr.msra.gmra.mrb[200].mxu0 %vm374_vm0, %v44152_v12 }
 0x93f   : > { %21750 = vmatpush1.bf16.msra.mxu0 %v44216_v18  ;;  %21685 = vmatprep.mubr.bf16.mxu0 %v46528_v50 }
 0x940   : > { %21855 = vmatprep.subr.bf16.mxu0 %v44003_v47  ;;  %36479 = vmatmul.mubr.msk.bf16.gmra.mrb[188].mxu1 %vm374_vm0, %v44172_v40 }
 0x941   : > { %21622 = vmatprep.mubr.bf16.mxu1 %v46528_v50 }
 0x946   : > { %36485 = vmatmul.mubr.msk.bf16.gmra.mrb[204].mxu0 %vm374_vm0, %v44172_v40 }
 0x947   : > { %21781 = vmatprep.mubr.bf16.mxu0 %v46528_v50 }
 0x948   : > { %36482 = vmatmul.mubr.msk.bf16.vlgmr.msra.gmra.mrb[192].mxu1 %vm374_vm0, %v44152_v12 }
 0x949   : > { %21697 = vmatpush1.bf16.msra.mxu1 %v44230_v11  ;;  %21632 = vmatprep.mubr.bf16.mxu1 %v46528_v50 }
 0x94a   : > { %21802 = vmatprep.subr.bf16.mxu1 %v44234_v9 }
 0x94e   : > { %36488 = vmatmul.mubr.msk.bf16.vlgmr.msra.gmra.mrb[208].mxu0 %vm374_vm0, %v44152_v12 }
 0x94f   : > { %21856 = vmatpush1.bf16.msra.mxu0 %v44036_v17  ;;  %21791 = vmatprep.mubr.bf16.mxu0 %v46528_v50 }
 0x950   : > { %22341 = vmatprep.subr.bf16.mxu0 %v40606_v21  ;;  %36483 = vmatmul.mubr.msk.bf16.gmra.mrb[196].mxu1 %vm374_vm0, %v44172_v40  ;;  %v40667_v21 = vld [vmem:[%s40842_s24 + $0x128] ss:$120 sps:$4 sm:$0xff]  }
 0x951   : > { %21728 = vmatprep.mubr.bf16.mxu1 %v46528_v50 }
 0x956   : > { %36489 = vmatmul.mubr.msk.bf16.gmra.mrb[212].mxu0 %vm374_vm0, %v44172_v40 }
 0x957   : > { %21887 = vmatprep.mubr.bf16.mxu0 %v46528_v50 }
 0x958   : > { %36486 = vmatmul.mubr.msk.bf16.vlgmr.msra.gmra.mrb[200].mxu1 %vm374_vm0, %v44152_v12 }
 0x959   : > { %21803 = vmatpush1.bf16.msra.mxu1 %v44252_v49  ;;  %21738 = vmatprep.mubr.bf16.mxu1 %v46528_v50 }
 0x95a   : > { %21908 = vmatprep.subr.bf16.mxu1 %v44256_v53 }
 0x95e   : > { %36492 = vmatmul.mubr.msk.bf16.vlgmr.msra.gmra.mrb[216].mxu0 %vm374_vm0, %v44152_v12 }
 0x95f   : > { %22342 = vmatpush1.bf16.msra.mxu0 %v40604_v55  ;;  %21897 = vmatprep.mubr.bf16.mxu0 %v46528_v50  ;;  %v40670_v55 = vld [vmem:[%s40842_s24 + $0x120] ss:$120 sps:$4 sm:$0xff]  }
 0x960   : > { %22447 = vmatprep.subr.bf16.mxu0 %v44265_v33  ;;  %36487 = vmatmul.mubr.msk.bf16.gmra.mrb[204].mxu1 %vm374_vm0, %v44172_v40 }
 0x961   : > { %21834 = vmatprep.mubr.bf16.mxu1 %v46528_v50 }
 0x966   : > { %36493 = vmatmul.mubr.msk.bf16.gmra.mrb[220].mxu0 %vm374_vm0, %v44172_v40 }
 0x967   : > { %22373 = vmatprep.mubr.bf16.mxu0 %v46528_v50 }
 0x968   : > { %36490 = vmatmul.mubr.msk.bf16.vlgmr.msra.gmra.mrb[208].mxu1 %vm374_vm0, %v44152_v12 }
 0x969   : > { %21909 = vmatpush1.bf16.msra.mxu1 %v44277_v23  ;;  %21844 = vmatprep.mubr.bf16.mxu1 %v46528_v50 }
 0x96a   : > { %22394 = vmatprep.subr.bf16.mxu1 %v44281_v58 }
 0x96e   : > { %36542 = vmatmul.mubr.msk.bf16.vlgmr.msra.gmra.mrb[184].mxu0 %vm374_vm0, %v44290_v35 }
 0x96f   : > { %22448 = vmatpush1.bf16.msra.mxu0 %v44293_v52  ;;  %22383 = vmatprep.mubr.bf16.mxu0 %v46528_v50 }
 0x970   : > { %22553 = vmatprep.subr.bf16.mxu0 %v44297_v54  ;;  %36491 = vmatmul.mubr.msk.bf16.gmra.mrb[212].mxu1 %vm374_vm0, %v44172_v40 }
 0x971   : > { %21940 = vmatprep.mubr.bf16.mxu1 %v46528_v50 }
 0x976   : > { %36543 = vmatmul.mubr.msk.bf16.gmra.mrb[188].mxu0 %vm374_vm0, %v44310_v4 }
 0x977   : > { %22479 = vmatprep.mubr.bf16.mxu0 %v46528_v50 }
 0x978   : > { %36494 = vmatmul.mubr.msk.bf16.vlgmr.msra.gmra.mrb[216].mxu1 %vm374_vm0, %v44152_v12  ;;  %v44688_v12 = vld [vmem:[%s40842_s24 + $0x15c] ss:$120 sps:$4 sm:$0xff]  }
 0x979   : > { %22395 = vmatpush1.bf16.msra.mxu1 %v44315_v62  ;;  %21950 = vmatprep.mubr.bf16.mxu1 %v46528_v50 }
 0x97a   : > { %22500 = vmatprep.subr.bf16.mxu1 %v44319_v19 }
 0x97e   : > { %36546 = vmatmul.mubr.msk.bf16.vlgmr.msra.gmra.mrb[192].mxu0 %vm374_vm0, %v44290_v35 }
 0x97f   : > { %22554 = vmatpush1.bf16.msra.mxu0 %v44326_v6  ;;  %22489 = vmatprep.mubr.bf16.mxu0 %v46528_v50 }
 0x980   : > { %22659 = vmatprep.subr.bf16.mxu0 %v44330_v13  ;;  %36495 = vmatmul.mubr.msk.bf16.gmra.mrb[220].mxu1 %vm374_vm0, %v44172_v40  ;;  %v44730_v40 = vld [vmem:[%s46467_s1 + $0x98] sm:$0xff]  }
 0x981   : > { %22426 = vmatprep.mubr.bf16.mxu1 %v46528_v50 }
 0x986   : > { %36547 = vmatmul.mubr.msk.bf16.gmra.mrb[196].mxu0 %vm374_vm0, %v44310_v4 }
 0x987   : > { %22585 = vmatprep.mubr.bf16.mxu0 %v46528_v50 }
 0x988   : > { %36544 = vmatmul.mubr.msk.bf16.vlgmr.msra.gmra.mrb[184].mxu1 %vm374_vm0, %v44290_v35 }
 0x989   : > { %22501 = vmatpush1.bf16.msra.mxu1 %v44343_v36  ;;  %22436 = vmatprep.mubr.bf16.mxu1 %v46528_v50 }
 0x98a   : > { %22606 = vmatprep.subr.bf16.mxu1 %v44347_v61 }
 0x98e   : > { %36550 = vmatmul.mubr.msk.bf16.vlgmr.msra.gmra.mrb[200].mxu0 %vm374_vm0, %v44290_v35 }
 0x98f   : > { %22660 = vmatpush1.bf16.msra.mxu0 %v44354_v30  ;;  %22595 = vmatprep.mubr.bf16.mxu0 %v46528_v50 }
 0x990   : > { %22765 = vmatprep.subr.bf16.mxu0 %v44118_v34  ;;  %36545 = vmatmul.mubr.msk.bf16.gmra.mrb[188].mxu1 %vm374_vm0, %v44310_v4 }
 0x991   : > { %22532 = vmatprep.mubr.bf16.mxu1 %v46528_v50 }
 0x996   : > { %36551 = vmatmul.mubr.msk.bf16.gmra.mrb[204].mxu0 %vm374_vm0, %v44310_v4 }
 0x997   : > { %22691 = vmatprep.mubr.bf16.mxu0 %v46528_v50 }
 0x998   : > { %36548 = vmatmul.mubr.msk.bf16.vlgmr.msra.gmra.mrb[192].mxu1 %vm374_vm0, %v44290_v35 }
 0x999   : > { %22607 = vmatpush1.bf16.msra.mxu1 %v44368_v46  ;;  %22542 = vmatprep.mubr.bf16.mxu1 %v46528_v50 }
 0x99a   : > { %22712 = vmatprep.subr.bf16.mxu1 %v44372_v2 }
 0x99e   : > { %36554 = vmatmul.mubr.msk.bf16.vlgmr.msra.gmra.mrb[208].mxu0 %vm374_vm0, %v44290_v35 }
 0x99f   : > { %22766 = vmatpush1.bf16.msra.mxu0 %v44139_v28  ;;  %22701 = vmatprep.mubr.bf16.mxu0 %v46528_v50 }
 0x9a0   : > { %23251 = vmatprep.subr.bf16.mxu0 %v44143_v32  ;;  %36549 = vmatmul.mubr.msk.bf16.gmra.mrb[196].mxu1 %vm374_vm0, %v44310_v4  ;;  %v44657_v32 = vld [vmem:[%s40842_s24 + $0x140] ss:$120 sps:$4 sm:$0xff]  }
 0x9a1   : > { %22638 = vmatprep.mubr.bf16.mxu1 %v46528_v50 }
 0x9a6   : > { %36555 = vmatmul.mubr.msk.bf16.gmra.mrb[212].mxu0 %vm374_vm0, %v44310_v4 }
 0x9a7   : > { %22797 = vmatprep.mubr.bf16.mxu0 %v46528_v50 }
 0x9a8   : > { %36552 = vmatmul.mubr.msk.bf16.vlgmr.msra.gmra.mrb[200].mxu1 %vm374_vm0, %v44290_v35 }
 0x9a9   : > { %22713 = vmatpush1.bf16.msra.mxu1 %v44390_v24  ;;  %22648 = vmatprep.mubr.bf16.mxu1 %v46528_v50 }
 0x9aa   : > { %22818 = vmatprep.subr.bf16.mxu1 %v44394_v15 }
 0x9ae   : > { %36558 = vmatmul.mubr.msk.bf16.vlgmr.msra.gmra.mrb[216].mxu0 %vm374_vm0, %v44290_v35 }
 0x9af   : > { %23252 = vmatpush1.bf16.msra.mxu0 %v44177_v25  ;;  %22807 = vmatprep.mubr.bf16.mxu0 %v46528_v50  ;;  %v40658_v25 = vld [vmem:[%s40842_s24 + $0x148] ss:$120 sps:$4 sm:$0xff]  }
 0x9b0   : > { %23357 = vmatprep.subr.bf16.mxu0 %v44181_v16  ;;  %36553 = vmatmul.mubr.msk.bf16.gmra.mrb[204].mxu1 %vm374_vm0, %v44310_v4 }
 0x9b1   : > { %22744 = vmatprep.mubr.bf16.mxu1 %v46528_v50 }
 0x9b6   : > { %36559 = vmatmul.mubr.msk.bf16.gmra.mrb[220].mxu0 %vm374_vm0, %v44310_v4 }
 0x9b7   : > { %23283 = vmatprep.mubr.bf16.mxu0 %v46528_v50 }
 0x9b8   : > { %36556 = vmatmul.mubr.msk.bf16.vlgmr.msra.gmra.mrb[208].mxu1 %vm374_vm0, %v44290_v35 }
 0x9b9   : > { %22819 = vmatpush1.bf16.msra.mxu1 %v44412_v63  ;;  %22754 = vmatprep.mubr.bf16.mxu1 %v46528_v50 }
 0x9ba   : > { %23304 = vmatprep.subr.bf16.mxu1 %v44127_v26 }
 0x9be   : > { %36608 = vmatmul.mubr.msk.bf16.vlgmr.msra.gmra.mrb[184].mxu0 %vm374_vm0, %v44422_v7 }
 0x9bf   : > { %23358 = vmatpush1.bf16.msra.mxu0 %v44205_v56  ;;  %23293 = vmatprep.mubr.bf16.mxu0 %v46528_v50 }
 0x9c0   : > { %23463 = vmatprep.subr.bf16.mxu0 %v44209_v14  ;;  %36557 = vmatmul.mubr.msk.bf16.gmra.mrb[212].mxu1 %vm374_vm0, %v44310_v4 }
 0x9c1   : > { %22850 = vmatprep.mubr.bf16.mxu1 %v46528_v50 }
 0x9c6   : > { %36609 = vmatmul.mubr.msk.bf16.gmra.mrb[188].mxu0 %vm374_vm0, %v44436_v57 }
 0x9c7   : > { %23389 = vmatprep.mubr.bf16.mxu0 %v46528_v50 }
 0x9c8   : > { %36560 = vmatmul.mubr.msk.bf16.vlgmr.msra.gmra.mrb[216].mxu1 %vm374_vm0, %v44290_v35  ;;  %v40676_v35 = vld [vmem:[%s40842_s24 + $0x130] ss:$120 sps:$4 sm:$0xff]  }
 0x9c9   : > { %23305 = vmatpush1.bf16.msra.mxu1 %v44155_v44  ;;  %22860 = vmatprep.mubr.bf16.mxu1 %v46528_v50 }
 0x9ca   : > { %23410 = vmatprep.subr.bf16.mxu1 %v44159_v3 }
 0x9ce   : > { %36612 = vmatmul.mubr.msk.bf16.vlgmr.msra.gmra.mrb[192].mxu0 %vm374_vm0, %v44422_v7 }
 0x9cf   : > { %23464 = vmatpush1.bf16.msra.mxu0 %v44230_v11  ;;  %23399 = vmatprep.mubr.bf16.mxu0 %v46528_v50 }
 0x9d0   : > { %23569 = vmatprep.subr.bf16.mxu0 %v44234_v9  ;;  %36561 = vmatmul.mubr.msk.bf16.gmra.mrb[220].mxu1 %vm374_vm0, %v44310_v4  ;;  %v40682_v4 = vld [vmem:[%s40842_s24 + $0x160] ss:$120 sps:$4 sm:$0xff]  }
 0x9d1   : > { %23336 = vmatprep.mubr.bf16.mxu1 %v46528_v50 }
 0x9d6   : > { %36613 = vmatmul.mubr.msk.bf16.gmra.mrb[196].mxu0 %vm374_vm0, %v44436_v57 }
 0x9d7   : > { %23495 = vmatprep.mubr.bf16.mxu0 %v46528_v50 }
 0x9d8   : > { %36610 = vmatmul.mubr.msk.bf16.vlgmr.msra.gmra.mrb[184].mxu1 %vm374_vm0, %v44422_v7 }
 0x9d9   : > { %23411 = vmatpush1.bf16.msra.mxu1 %v44188_v41  ;;  %23346 = vmatprep.mubr.bf16.mxu1 %v46528_v50 }
 0x9da   : > { %23516 = vmatprep.subr.bf16.mxu1 %v44192_v37 }
 0x9de   : > { %36616 = vmatmul.mubr.msk.bf16.vlgmr.msra.gmra.mrb[200].mxu0 %vm374_vm0, %v44422_v7 }
 0x9df   : > { %23570 = vmatpush1.bf16.msra.mxu0 %v44252_v49  ;;  %23505 = vmatprep.mubr.bf16.mxu0 %v46528_v50 }
 0x9e0   : > { %23675 = vmatprep.subr.bf16.mxu0 %v44256_v53  ;;  %36611 = vmatmul.mubr.msk.bf16.gmra.mrb[188].mxu1 %vm374_vm0, %v44436_v57 }
 0x9e1   : > { %23442 = vmatprep.mubr.bf16.mxu1 %v46528_v50 }
 0x9e6   : > { %36617 = vmatmul.mubr.msk.bf16.gmra.mrb[204].mxu0 %vm374_vm0, %v44436_v57 }
 0x9e7   : > { %23601 = vmatprep.mubr.bf16.mxu0 %v46528_v50 }
 0x9e8   : > { %36614 = vmatmul.mubr.msk.bf16.vlgmr.msra.gmra.mrb[192].mxu1 %vm374_vm0, %v44422_v7 }
 0x9e9   : > { %23517 = vmatpush1.bf16.msra.mxu1 %v44216_v18  ;;  %23452 = vmatprep.mubr.bf16.mxu1 %v46528_v50 }
 0x9ea   : > { %23622 = vmatprep.subr.bf16.mxu1 %v44003_v47  ;;  %v44490_v47 = vld [vmem:[%s40842_s24 + $0x154] ss:$120 sps:$4 sm:$0xff]  }
 0x9ee   : > { %36620 = vmatmul.mubr.msk.bf16.vlgmr.msra.gmra.mrb[208].mxu0 %vm374_vm0, %v44422_v7 }
 0x9ef   : > { %23676 = vmatpush1.bf16.msra.mxu0 %v44277_v23  ;;  %23611 = vmatprep.mubr.bf16.mxu0 %v46528_v50 }
 0x9f0   : > { %24161 = vmatprep.subr.bf16.mxu0 %v44281_v58  ;;  %36615 = vmatmul.mubr.msk.bf16.gmra.mrb[196].mxu1 %vm374_vm0, %v44436_v57  ;;  %v40681_v58 = vld [vmem:[%s40842_s24 + $0x14c] ss:$120 sps:$4 sm:$0xff]  }
 0x9f1   : > { %23548 = vmatprep.mubr.bf16.mxu1 %v46528_v50 }
 0x9f6   : > { %36621 = vmatmul.mubr.msk.bf16.gmra.mrb[212].mxu0 %vm374_vm0, %v44436_v57 }
 0x9f7   : > { %23707 = vmatprep.mubr.bf16.mxu0 %v46528_v50 }
 0x9f8   : > { %36618 = vmatmul.mubr.msk.bf16.vlgmr.msra.gmra.mrb[200].mxu1 %vm374_vm0, %v44422_v7 }
 0x9f9   : > { %23623 = vmatpush1.bf16.msra.mxu1 %v44036_v17  ;;  %23558 = vmatprep.mubr.bf16.mxu1 %v46528_v50  ;;  %v44508_v17 = vld [vmem:[%s40842_s24 + $0x150] ss:$120 sps:$4 sm:$0xff]  }
 0x9fa   : > { %23728 = vmatprep.subr.bf16.mxu1 %v44490_v47 }
 0x9fe   : > { %36624 = vmatmul.mubr.msk.bf16.vlgmr.msra.gmra.mrb[216].mxu0 %vm374_vm0, %v44422_v7 }
 0x9ff   : > { %24162 = vmatpush1.bf16.msra.mxu0 %v44315_v62  ;;  %23717 = vmatprep.mubr.bf16.mxu0 %v46528_v50 }
 0xa00   : > { %24267 = vmatprep.subr.bf16.mxu0 %v44319_v19  ;;  %36619 = vmatmul.mubr.msk.bf16.gmra.mrb[204].mxu1 %vm374_vm0, %v44436_v57 }
 0xa01   : > { %23654 = vmatprep.mubr.bf16.mxu1 %v46528_v50 }
 0xa06   : > { %36625 = vmatmul.mubr.msk.bf16.gmra.mrb[220].mxu0 %vm374_vm0, %v44436_v57 }
 0xa07   : > { %24193 = vmatprep.mubr.bf16.mxu0 %v46528_v50 }
 0xa08   : > { %36622 = vmatmul.mubr.msk.bf16.vlgmr.msra.gmra.mrb[208].mxu1 %vm374_vm0, %v44422_v7 }
 0xa09   : > { %23729 = vmatpush1.bf16.msra.mxu1 %v44508_v17  ;;  %23664 = vmatprep.mubr.bf16.mxu1 %v46528_v50 }
 0xa0a   : > { %24214 = vmatprep.subr.bf16.mxu1 %v44265_v33 }
 0xa0e   : > { %36674 = vmatmul.mubr.msk.bf16.vlgmr.msra.gmra.mrb[184].mxu0 %vm374_vm0, %v44518_v0 }
 0xa0f   : > { %24268 = vmatpush1.bf16.msra.mxu0 %v44343_v36  ;;  %24203 = vmatprep.mubr.bf16.mxu0 %v46528_v50 }
 0xa10   : > { %24373 = vmatprep.subr.bf16.mxu0 %v44347_v61  ;;  %36623 = vmatmul.mubr.msk.bf16.gmra.mrb[212].mxu1 %vm374_vm0, %v44436_v57 }
 0xa11   : > { %23760 = vmatprep.mubr.bf16.mxu1 %v46528_v50 }
 0xa16   : > { %36675 = vmatmul.mubr.msk.bf16.gmra.mrb[188].mxu0 %vm374_vm0, %v44532_v27 }
 0xa17   : > { %24299 = vmatprep.mubr.bf16.mxu0 %v46528_v50 }
 0xa18   : > { %36626 = vmatmul.mubr.msk.bf16.vlgmr.msra.gmra.mrb[216].mxu1 %vm374_vm0, %v44422_v7 }
 0xa19   : > { %24215 = vmatpush1.bf16.msra.mxu1 %v44293_v52  ;;  %23770 = vmatprep.mubr.bf16.mxu1 %v46528_v50 }
 0xa1a   : > { %24320 = vmatprep.subr.bf16.mxu1 %v44297_v54 }
 0xa1e   : > { %36678 = vmatmul.mubr.msk.bf16.vlgmr.msra.gmra.mrb[192].mxu0 %vm374_vm0, %v44518_v0 }
 0xa1f   : > { %24374 = vmatpush1.bf16.msra.mxu0 %v44368_v46  ;;  %24309 = vmatprep.mubr.bf16.mxu0 %v46528_v50 }
 0xa20   : > { %24479 = vmatprep.subr.bf16.mxu0 %v44372_v2  ;;  %36627 = vmatmul.mubr.msk.bf16.gmra.mrb[220].mxu1 %vm374_vm0, %v44436_v57  ;;  %v46563_v57 = vld [vmem:[#allocation9_spill] sm:$0xff] }
 0xa21   : > { %24246 = vmatprep.mubr.bf16.mxu1 %v46528_v50 }
 0xa26   : > { %36679 = vmatmul.mubr.msk.bf16.gmra.mrb[196].mxu0 %vm374_vm0, %v44532_v27 }
 0xa27   : > { %24405 = vmatprep.mubr.bf16.mxu0 %v46528_v50 }
 0xa28   : > { %36676 = vmatmul.mubr.msk.bf16.vlgmr.msra.gmra.mrb[184].mxu1 %vm374_vm0, %v44518_v0 }
 0xa29   : > { %24321 = vmatpush1.bf16.msra.mxu1 %v44326_v6  ;;  %24256 = vmatprep.mubr.bf16.mxu1 %v46528_v50 }
 0xa2a   : > { %24426 = vmatprep.subr.bf16.mxu1 %v44330_v13 }
 0xa2e   : > { %36682 = vmatmul.mubr.msk.bf16.vlgmr.msra.gmra.mrb[200].mxu0 %vm374_vm0, %v44518_v0 }
 0xa2f   : > { %24480 = vmatpush1.bf16.msra.mxu0 %v44390_v24  ;;  %24415 = vmatprep.mubr.bf16.mxu0 %v46528_v50 }
 0xa30   : > { %24585 = vmatprep.subr.bf16.mxu0 %v44394_v15  ;;  %36677 = vmatmul.mubr.msk.bf16.gmra.mrb[188].mxu1 %vm374_vm0, %v44532_v27 }
 0xa31   : > { %24352 = vmatprep.mubr.bf16.mxu1 %v46528_v50 }
 0xa36   : > { %36683 = vmatmul.mubr.msk.bf16.gmra.mrb[204].mxu0 %vm374_vm0, %v44532_v27 }
 0xa37   : > { %24511 = vmatprep.mubr.bf16.mxu0 %v46528_v50 }
 0xa38   : > { %36680 = vmatmul.mubr.msk.bf16.vlgmr.msra.gmra.mrb[192].mxu1 %vm374_vm0, %v44518_v0 }
 0xa39   : > { %24427 = vmatpush1.bf16.msra.mxu1 %v44354_v30  ;;  %24362 = vmatprep.mubr.bf16.mxu1 %v46528_v50 }
 0xa3a   : > { %24532 = vmatprep.subr.bf16.mxu1 %v44118_v34  ;;  %v44604_v34 = vld [vmem:[%s40842_s24 + $0x154] ss:$120 sps:$4 sm:$0xff]  }
 0xa3e   : > { %36686 = vmatmul.mubr.msk.bf16.vlgmr.msra.gmra.mrb[208].mxu0 %vm374_vm0, %v44518_v0 }
 0xa3f   : > { %24586 = vmatpush1.bf16.msra.mxu0 %v44412_v63  ;;  %24521 = vmatprep.mubr.bf16.mxu0 %v46528_v50 }
 0xa40   : > { %25071 = vmatprep.subr.bf16.mxu0 %v44127_v26  ;;  %36681 = vmatmul.mubr.msk.bf16.gmra.mrb[196].mxu1 %vm374_vm0, %v44532_v27  ;;  %v44628_v26 = vld [vmem:[%s46467_s1 + $0x88] sm:$0xff]  }
 0xa41   : > { %24458 = vmatprep.mubr.bf16.mxu1 %v46528_v50 }
 0xa46   : > { %36687 = vmatmul.mubr.msk.bf16.gmra.mrb[212].mxu0 %vm374_vm0, %v44532_v27 }
 0xa47   : > { %24617 = vmatprep.mubr.bf16.mxu0 %v46528_v50 }
 0xa48   : > { %36684 = vmatmul.mubr.msk.bf16.vlgmr.msra.gmra.mrb[200].mxu1 %vm374_vm0, %v44518_v0 }
 0xa49   : > { %24533 = vmatpush1.bf16.msra.mxu1 %v44139_v28  ;;  %24468 = vmatprep.mubr.bf16.mxu1 %v46528_v50  ;;  %v44639_v28 = vld [vmem:[%s40842_s24 + $0x144] ss:$120 sps:$4 sm:$0xff]  }
 0xa4a   : > { %24638 = vmatprep.subr.bf16.mxu1 %v44586_v1 }
 0xa4e   : > { %36690 = vmatmul.mubr.msk.bf16.vlgmr.msra.gmra.mrb[216].mxu0 %vm374_vm0, %v44518_v0 }
 0xa4f   : > { %25072 = vmatpush1.bf16.msra.mxu0 %v44155_v44  ;;  %24627 = vmatprep.mubr.bf16.mxu0 %v46528_v50  ;;  %v44706_v44 = vld [vmem:[%s40842_s24 + $0x158] ss:$120 sps:$4 sm:$0xff]  }
 0xa50   : > { %25177 = vmatprep.subr.bf16.mxu0 %v44159_v3  ;;  %36685 = vmatmul.mubr.msk.bf16.gmra.mrb[204].mxu1 %vm374_vm0, %v44532_v27  ;;  %v44716_v3 = vld [vmem:[%s46467_s1 + $0x90] sm:$0xff]  }
 0xa51   : > { %24564 = vmatprep.mubr.bf16.mxu1 %v46528_v50 }
 0xa56   : > { %36691 = vmatmul.mubr.msk.bf16.gmra.mrb[220].mxu0 %vm374_vm0, %v44532_v27 }
 0xa57   : > { %25103 = vmatprep.mubr.bf16.mxu0 %v46528_v50 }
 0xa58   : > { %36688 = vmatmul.mubr.msk.bf16.vlgmr.msra.gmra.mrb[208].mxu1 %vm374_vm0, %v44518_v0 }
 0xa59   : > { %24639 = vmatpush1.bf16.msra.mxu1 %v44604_v34  ;;  %24574 = vmatprep.mubr.bf16.mxu1 %v46528_v50 }
 0xa5a   : > { %25124 = vmatprep.subr.bf16.mxu1 %v44181_v16  ;;  %v40656_v16 = vld [vmem:[%s40842_s24 + $0x144] ss:$120 sps:$4 sm:$0xff]  }
 0xa5e   : > { %36740 = vmatmul.mubr.msk.bf16.vlgmr.msra.gmra.mrb[184].mxu0 %vm374_vm0, %v44614_v51 }
 0xa5f   : > { %25178 = vmatpush1.bf16.msra.mxu0 %v44188_v41  ;;  %25113 = vmatprep.mubr.bf16.mxu0 %v46528_v50  ;;  %v40661_v41 = vld [vmem:[%s40842_s24 + $0x11c] ss:$120 sps:$4 sm:$0xff]  }
 0xa60   : > { %25283 = vmatprep.subr.bf16.mxu0 %v44192_v37  ;;  %36689 = vmatmul.mubr.msk.bf16.gmra.mrb[212].mxu1 %vm374_vm0, %v44532_v27  ;;  %v40664_v37 = vld [vmem:[%s40842_s24 + $0x160] ss:$120 sps:$4 sm:$0xff]  }
 0xa61   : > { %24670 = vmatprep.mubr.bf16.mxu1 %v46528_v50 }
 0xa66   : > { %36741 = vmatmul.mubr.msk.bf16.gmra.mrb[188].mxu0 %vm374_vm0, %v44628_v26 }
 0xa67   : > { %25209 = vmatprep.mubr.bf16.mxu0 %v46528_v50 }
 0xa68   : > { %36692 = vmatmul.mubr.msk.bf16.vlgmr.msra.gmra.mrb[216].mxu1 %vm374_vm0, %v44518_v0 }
 0xa69   : > { %25125 = vmatpush1.bf16.msra.mxu1 %v44205_v56  ;;  %24680 = vmatprep.mubr.bf16.mxu1 %v46528_v50  ;;  %v40659_v56 = vld [vmem:[%s40842_s24 + $0x118] ss:$120 sps:$4 sm:$0xff]  }
 0xa6a   : > { %25230 = vmatprep.subr.bf16.mxu1 %v44209_v14  ;;  %v40669_v14 = vld [vmem:[%s40842_s24 + $0x12c] ss:$120 sps:$4 sm:$0xff]  }
 0xa6e   : > { %36744 = vmatmul.mubr.msk.bf16.vlgmr.msra.gmra.mrb[192].mxu0 %vm374_vm0, %v44614_v51 }
 0xa6f   : > { %25284 = vmatpush1.bf16.msra.mxu0 %v44216_v18  ;;  %25219 = vmatprep.mubr.bf16.mxu0 %v46528_v50  ;;  %v40662_v18 = vld [vmem:[%s40842_s24 + $0x15c] ss:$120 sps:$4 sm:$0xff]  }
 0xa70   : > { %25389 = vmatprep.subr.bf16.mxu0 %v44639_v28  ;;  %36693 = vmatmul.mubr.msk.bf16.gmra.mrb[220].mxu1 %vm374_vm0, %v44532_v27 }
 0xa71   : > { %25156 = vmatprep.mubr.bf16.mxu1 %v46528_v50 }
 0xa76   : > { %36745 = vmatmul.mubr.msk.bf16.gmra.mrb[196].mxu0 %vm374_vm0, %v44628_v26 }
 0xa77   : > { %25315 = vmatprep.mubr.bf16.mxu0 %v46528_v50 }
 0xa78   : > { %36742 = vmatmul.mubr.msk.bf16.vlgmr.msra.gmra.mrb[184].mxu1 %vm374_vm0, %v44614_v51 }
 0xa79   : > { %25231 = vmatpush1.bf16.msra.mxu1 %v44230_v11  ;;  %25166 = vmatprep.mubr.bf16.mxu1 %v46528_v50  ;;  %v40672_v11 = vld [vmem:[%s40842_s24 + $0x124] ss:$120 sps:$4 sm:$0xff]  }
 0xa7a   : > { %25336 = vmatprep.subr.bf16.mxu1 %v44234_v9  ;;  %v44807_v9 = vld [vmem:[%s46467_s1 + $0xa0] sm:$0xff]  }
 0xa7e   : > { %36748 = vmatmul.mubr.msk.bf16.vlgmr.msra.gmra.mrb[200].mxu0 %vm374_vm0, %v44614_v51 }
 0xa7f   : > { %25390 = vmatpush1.bf16.msra.mxu0 %v44657_v32  ;;  %25325 = vmatprep.mubr.bf16.mxu0 %v46528_v50 }
 0xa80   : > { %25495 = vmatprep.subr.bf16.mxu0 %v44490_v47  ;;  %36743 = vmatmul.mubr.msk.bf16.gmra.mrb[188].mxu1 %vm374_vm0, %v44628_v26 }
 0xa81   : > { %25262 = vmatprep.mubr.bf16.mxu1 %v46528_v50 }
 0xa86   : > { %36749 = vmatmul.mubr.msk.bf16.gmra.mrb[204].mxu0 %vm374_vm0, %v44628_v26 }
 0xa87   : > { %25421 = vmatprep.mubr.bf16.mxu0 %v46528_v50 }
 0xa88   : > { %36746 = vmatmul.mubr.msk.bf16.vlgmr.msra.gmra.mrb[192].mxu1 %vm374_vm0, %v44614_v51 }
 0xa89   : > { %25337 = vmatpush1.bf16.msra.mxu1 %v44252_v49  ;;  %25272 = vmatprep.mubr.bf16.mxu1 %v46528_v50  ;;  %v40675_v49 = vld [vmem:[%s40842_s24 + $0x13c] ss:$120 sps:$4 sm:$0xff]  }
 0xa8a   : > { %25442 = vmatprep.subr.bf16.mxu1 %v44256_v53  ;;  %v44820_v53 = vld [vmem:[%s46467_s1 + $0xa8] sm:$0xff]  }
 0xa8e   : > { %36752 = vmatmul.mubr.msk.bf16.vlgmr.msra.gmra.mrb[208].mxu0 %vm374_vm0, %v44614_v51 }
 0xa8f   : > { %25496 = vmatpush1.bf16.msra.mxu0 %v44508_v17  ;;  %25431 = vmatprep.mubr.bf16.mxu0 %v46528_v50 }
 0xa90   : > { %25981 = vmatprep.subr.bf16.mxu0 %v44265_v33  ;;  %36747 = vmatmul.mubr.msk.bf16.gmra.mrb[196].mxu1 %vm374_vm0, %v44628_v26  ;;  %v40678_v33 = vld [vmem:[%s40842_s24 + $0x134] ss:$120 sps:$4 sm:$0xff]  }
 0xa91   : > { %25368 = vmatprep.mubr.bf16.mxu1 %v46528_v50 }
 0xa96   : > { %36753 = vmatmul.mubr.msk.bf16.gmra.mrb[212].mxu0 %vm374_vm0, %v44628_v26 }
 0xa97   : > { %25527 = vmatprep.mubr.bf16.mxu0 %v46528_v50 }
 0xa98   : > { %36750 = vmatmul.mubr.msk.bf16.vlgmr.msra.gmra.mrb[200].mxu1 %vm374_vm0, %v44614_v51 }
 0xa99   : > { %25443 = vmatpush1.bf16.msra.mxu1 %v44277_v23  ;;  %25378 = vmatprep.mubr.bf16.mxu1 %v46528_v50  ;;  %v40673_v23 = vld [vmem:[%s40842_s24 + $0x138] ss:$120 sps:$4 sm:$0xff]  }
 0xa9a   : > { %25548 = vmatprep.subr.bf16.mxu1 %v44688_v12 }
 0xa9e   : > { %36756 = vmatmul.mubr.msk.bf16.vlgmr.msra.gmra.mrb[216].mxu0 %vm374_vm0, %v44614_v51 }
 0xa9f   : > { %25982 = vmatpush1.bf16.msra.mxu0 %v44293_v52  ;;  %25537 = vmatprep.mubr.bf16.mxu0 %v46528_v50  ;;  %v40679_v52 = vld [vmem:[%s40842_s24 + $0x148] ss:$120 sps:$4 sm:$0xff]  }
 0xaa0   : > { %26087 = vmatprep.subr.bf16.mxu0 %v44297_v54  ;;  %36751 = vmatmul.mubr.msk.bf16.gmra.mrb[204].mxu1 %vm374_vm0, %v44628_v26  ;;  %v40684_v54 = vld [vmem:[%s40842_s24 + $0x164] ss:$120 sps:$4 sm:$0xff]  }
 0xaa1   : > { %25474 = vmatprep.mubr.bf16.mxu1 %v46528_v50 }
 0xaa6   : > { %36757 = vmatmul.mubr.msk.bf16.gmra.mrb[220].mxu0 %vm374_vm0, %v44628_v26 }
 0xaa7   : > { %26013 = vmatprep.mubr.bf16.mxu0 %v46528_v50 }
 0xaa8   : > { %36754 = vmatmul.mubr.msk.bf16.vlgmr.msra.gmra.mrb[208].mxu1 %vm374_vm0, %v44614_v51 }
 0xaa9   : > { %25549 = vmatpush1.bf16.msra.mxu1 %v44706_v44  ;;  %25484 = vmatprep.mubr.bf16.mxu1 %v46528_v50 }
 0xaaa   : > { %26034 = vmatprep.subr.bf16.mxu1 %v44319_v19  ;;  %v46560_v19 = vld [vmem:[#allocation6_spill] sm:$0xff] }
 0xaae   : > { %36806 = vmatmul.mubr.msk.bf16.vlgmr.msra.gmra.mrb[184].mxu0 %vm374_vm0, %v44716_v3 }
 0xaaf   : > { %26088 = vmatpush1.bf16.msra.mxu0 %v44326_v6  ;;  %26023 = vmatprep.mubr.bf16.mxu0 %v46528_v50 }
 0xab0   : > { %26193 = vmatprep.subr.bf16.mxu0 %v44330_v13  ;;  %36755 = vmatmul.mubr.msk.bf16.gmra.mrb[212].mxu1 %vm374_vm0, %v44628_v26 }
 0xab1   : > { %25580 = vmatprep.mubr.bf16.mxu1 %v46528_v50 }
 0xab6   : > { %36807 = vmatmul.mubr.msk.bf16.gmra.mrb[188].mxu0 %vm374_vm0, %v44730_v40 }
 0xab7   : > { %26119 = vmatprep.mubr.bf16.mxu0 %v46528_v50 }
 0xab8   : > { %36758 = vmatmul.mubr.msk.bf16.vlgmr.msra.gmra.mrb[216].mxu1 %vm374_vm0, %v44614_v51 }
 0xab9   : > { %26035 = vmatpush1.bf16.msra.mxu1 %v44343_v36  ;;  %25590 = vmatprep.mubr.bf16.mxu1 %v46528_v50 }
 0xaba   : > { %26140 = vmatprep.subr.bf16.mxu1 %v44347_v61 }
 0xabe   : > { %36810 = vmatmul.mubr.msk.bf16.vlgmr.msra.gmra.mrb[192].mxu0 %vm374_vm0, %v44716_v3 }
 0xabf   : > { %26194 = vmatpush1.bf16.msra.mxu0 %v44354_v30  ;;  %26129 = vmatprep.mubr.bf16.mxu0 %v46528_v50  ;;  %v46561_v30 = vld [vmem:[#allocation7_spill] sm:$0xff] }
 0xac0   : > { %26299 = vmatprep.subr.bf16.mxu0 %v40658_v25  ;;  %36759 = vmatmul.mubr.msk.bf16.gmra.mrb[220].mxu1 %vm374_vm0, %v44628_v26 }
 0xac1   : > { %26066 = vmatprep.mubr.bf16.mxu1 %v46528_v50 }
 0xac6   : > { %36811 = vmatmul.mubr.msk.bf16.gmra.mrb[196].mxu0 %vm374_vm0, %v44730_v40 }
 0xac7   : > { %26225 = vmatprep.mubr.bf16.mxu0 %v46528_v50 }
 0xac8   : > { %36808 = vmatmul.mubr.msk.bf16.vlgmr.msra.gmra.mrb[184].mxu1 %vm374_vm0, %v44716_v3 }
 0xac9   : > { %26141 = vmatpush1.bf16.msra.mxu1 %v44368_v46  ;;  %26076 = vmatprep.mubr.bf16.mxu1 %v46528_v50 }
 0xaca   : > { %26246 = vmatprep.subr.bf16.mxu1 %v44372_v2  ;;  %v46562_v2 = vld [vmem:[#allocation8_spill] sm:$0xff] }
 0xace   : > { %36814 = vmatmul.mubr.msk.bf16.vlgmr.msra.gmra.mrb[200].mxu0 %vm374_vm0, %v44716_v3 }
 0xacf   : > { %26300 = vmatpush1.bf16.msra.mxu0 %v40656_v16  ;;  %26235 = vmatprep.mubr.bf16.mxu0 %v46528_v50 }
 0xad0   : > { %26405 = vmatprep.subr.bf16.mxu0 %v44586_v1  ;;  %36809 = vmatmul.mubr.msk.bf16.gmra.mrb[188].mxu1 %vm374_vm0, %v44730_v40 }
 0xad1   : > { %26172 = vmatprep.mubr.bf16.mxu1 %v46528_v50 }
 0xad6   : > { %36815 = vmatmul.mubr.msk.bf16.gmra.mrb[204].mxu0 %vm374_vm0, %v44730_v40 }
 0xad7   : > { %26331 = vmatprep.mubr.bf16.mxu0 %v46528_v50 }
 0xad8   : > { %36812 = vmatmul.mubr.msk.bf16.vlgmr.msra.gmra.mrb[192].mxu1 %vm374_vm0, %v44716_v3 }
 0xad9   : > { %26247 = vmatpush1.bf16.msra.mxu1 %v44390_v24  ;;  %26182 = vmatprep.mubr.bf16.mxu1 %v46528_v50 }
 0xada   : > { %26352 = vmatprep.subr.bf16.mxu1 %v44394_v15 }
 0xade   : > { %36818 = vmatmul.mubr.msk.bf16.vlgmr.msra.gmra.mrb[208].mxu0 %vm374_vm0, %v44716_v3 }
 0xadf   : > { %26406 = vmatpush1.bf16.msra.mxu0 %v44604_v34  ;;  %26341 = vmatprep.mubr.bf16.mxu0 %v46528_v50 }
 0xae0   : > { %26891 = vmatprep.subr.bf16.mxu0 %v40661_v41  ;;  %36813 = vmatmul.mubr.msk.bf16.gmra.mrb[196].mxu1 %vm374_vm0, %v44730_v40 }
 0xae1   : > { %26278 = vmatprep.mubr.bf16.mxu1 %v46528_v50 }
 0xae6   : > { %36819 = vmatmul.mubr.msk.bf16.gmra.mrb[212].mxu0 %vm374_vm0, %v44730_v40 }
 0xae7   : > { %26437 = vmatprep.mubr.bf16.mxu0 %v46528_v50 }
 0xae8   : > { %36816 = vmatmul.mubr.msk.bf16.vlgmr.msra.gmra.mrb[200].mxu1 %vm374_vm0, %v44716_v3 }
 0xae9   : > { %26353 = vmatpush1.bf16.msra.mxu1 %v44412_v63  ;;  %26288 = vmatprep.mubr.bf16.mxu1 %v46528_v50 }
 0xaea   : > { %26458 = vmatprep.subr.bf16.mxu1 %v40664_v37 }
 0xaee   : > { %36822 = vmatmul.mubr.msk.bf16.vlgmr.msra.gmra.mrb[216].mxu0 %vm374_vm0, %v44716_v3 }
 0xaef   : > { %26892 = vmatpush1.bf16.msra.mxu0 %v40659_v56  ;;  %26447 = vmatprep.mubr.bf16.mxu0 %v46528_v50 }
 0xaf0   : > { %26997 = vmatprep.subr.bf16.mxu0 %v40669_v14  ;;  %36817 = vmatmul.mubr.msk.bf16.gmra.mrb[204].mxu1 %vm374_vm0, %v44730_v40 }
 0xaf1   : > { %26384 = vmatprep.mubr.bf16.mxu1 %v46528_v50 }
 0xaf6   : > { %36823 = vmatmul.mubr.msk.bf16.gmra.mrb[220].mxu0 %vm374_vm0, %v44730_v40 }
 0xaf7   : > { %26923 = vmatprep.mubr.bf16.mxu0 %v46528_v50 }
 0xaf8   : > { %36820 = vmatmul.mubr.msk.bf16.vlgmr.msra.gmra.mrb[208].mxu1 %vm374_vm0, %v44716_v3 }
 0xaf9   : > { %26459 = vmatpush1.bf16.msra.mxu1 %v40662_v18  ;;  %26394 = vmatprep.mubr.bf16.mxu1 %v46528_v50 }
 0xafa   : > { %26944 = vmatprep.subr.bf16.mxu1 %v40672_v11 }
 0xafe   : > { %36872 = vmatmul.mubr.msk.bf16.vlgmr.msra.gmra.mrb[184].mxu0 %vm374_vm0, %v44807_v9 }
 0xaff   : > { %26933 = vmatprep.mubr.bf16.mxu0 %v46528_v50  ;;  %26998 = vmatpush1.bf16.msra.mxu0 %v40667_v21 }
 0xb00   : > { %27103 = vmatprep.subr.bf16.mxu0 %v40675_v49  ;;  %36821 = vmatmul.mubr.msk.bf16.gmra.mrb[212].mxu1 %vm374_vm0, %v44730_v40 }
 0xb01   : > { %26490 = vmatprep.mubr.bf16.mxu1 %v46528_v50 }
 0xb06   : > { %36873 = vmatmul.mubr.msk.bf16.gmra.mrb[188].mxu0 %vm374_vm0, %v44820_v53 }
 0xb07   : > { %27029 = vmatprep.mubr.bf16.mxu0 %v46528_v50 }
 0xb08   : > { %36824 = vmatmul.mubr.msk.bf16.vlgmr.msra.gmra.mrb[216].mxu1 %vm374_vm0, %v44716_v3 }
 0xb09   : > { %26945 = vmatpush1.bf16.msra.mxu1 %v40670_v55  ;;  %26500 = vmatprep.mubr.bf16.mxu1 %v46528_v50 }
 0xb0a   : > { %27050 = vmatprep.subr.bf16.mxu1 %v40678_v33 }
 0xb0e   : > { %36876 = vmatmul.mubr.msk.bf16.vlgmr.msra.gmra.mrb[192].mxu0 %vm374_vm0, %v44807_v9 }
 0xb0f   : > { %27039 = vmatprep.mubr.bf16.mxu0 %v46528_v50  ;;  %27104 = vmatpush1.bf16.msra.mxu0 %v40673_v23 }
 0xb10   : > { %27209 = vmatprep.subr.bf16.mxu0 %v40681_v58  ;;  %36825 = vmatmul.mubr.msk.bf16.gmra.mrb[220].mxu1 %vm374_vm0, %v44730_v40 }
 0xb11   : > { %26976 = vmatprep.mubr.bf16.mxu1 %v46528_v50 }
 0xb16   : > { %36877 = vmatmul.mubr.msk.bf16.gmra.mrb[196].mxu0 %vm374_vm0, %v44820_v53 }
 0xb17   : > { %27135 = vmatprep.mubr.bf16.mxu0 %v46528_v50 }
 0xb18   : > { %36874 = vmatmul.mubr.msk.bf16.vlgmr.msra.gmra.mrb[184].mxu1 %vm374_vm0, %v44807_v9 }
 0xb19   : > { %26986 = vmatprep.mubr.bf16.mxu1 %v46528_v50  ;;  %27051 = vmatpush1.bf16.msra.mxu1 %v40676_v35 }
 0xb1a   : > { %27156 = vmatprep.subr.bf16.mxu1 %v44639_v28 }
 0xb1e   : > { %36880 = vmatmul.mubr.msk.bf16.vlgmr.msra.gmra.mrb[200].mxu0 %vm374_vm0, %v44807_v9 }
 0xb1f   : > { %27145 = vmatprep.mubr.bf16.mxu0 %v46528_v50  ;;  %27210 = vmatpush1.bf16.msra.mxu0 %v40679_v52 }
 0xb20   : > { %27315 = vmatprep.subr.bf16.mxu0 %v44688_v12  ;;  %36875 = vmatmul.mubr.msk.bf16.gmra.mrb[188].mxu1 %vm374_vm0, %v44820_v53 }
 0xb21   : > { %27082 = vmatprep.mubr.bf16.mxu1 %v46528_v50 }
 0xb26   : > { %36881 = vmatmul.mubr.msk.bf16.gmra.mrb[204].mxu0 %vm374_vm0, %v44820_v53 }
 0xb27   : > { %27241 = vmatprep.mubr.bf16.mxu0 %v46528_v50 }
 0xb28   : > { %36878 = vmatmul.mubr.msk.bf16.vlgmr.msra.gmra.mrb[192].mxu1 %vm374_vm0, %v44807_v9 }
 0xb29   : > { %27092 = vmatprep.mubr.bf16.mxu1 %v46528_v50  ;;  %27157 = vmatpush1.bf16.msra.mxu1 %v44657_v32 }
 0xb2a   : > { %27262 = vmatprep.subr.bf16.mxu1 %v44490_v47 }
 0xb2e   : > { %36884 = vmatmul.mubr.msk.bf16.vlgmr.msra.gmra.mrb[208].mxu0 %vm374_vm0, %v44807_v9 }
 0xb2f   : > { %27251 = vmatprep.mubr.bf16.mxu0 %v46528_v50  ;;  %27316 = vmatpush1.bf16.msra.mxu0 %v44706_v44 }
 0xb30   : > { %36879 = vmatmul.mubr.msk.bf16.gmra.mrb[196].mxu1 %vm374_vm0, %v44820_v53 }
 0xb31   : > { %27188 = vmatprep.mubr.bf16.mxu1 %v46528_v50 }
 0xb36   : > { %36885 = vmatmul.mubr.msk.bf16.gmra.mrb[212].mxu0 %vm374_vm0, %v44820_v53 }
 0xb37   : > { %27347 = vmatprep.mubr.bf16.mxu0 %v46528_v50 }
 0xb38   : > { %36882 = vmatmul.mubr.msk.bf16.vlgmr.msra.gmra.mrb[200].mxu1 %vm374_vm0, %v44807_v9 }
 0xb39   : > { %27198 = vmatprep.mubr.bf16.mxu1 %v46528_v50  ;;  %27263 = vmatpush1.bf16.msra.mxu1 %v44508_v17 }
 0xb3a   : > { %27368 = vmatprep.subr.bf16.mxu1 %v40684_v54 }
 0xb3e   : > { %36888 = vmatmul.mubr.msk.bf16.vlgmr.msra.gmra.mrb[216].mxu0 %vm374_vm0, %v44807_v9 }
 0xb3f   : > { %27357 = vmatprep.mubr.bf16.mxu0 %v46528_v50 }
 0xb40   : > { %36883 = vmatmul.mubr.msk.bf16.gmra.mrb[204].mxu1 %vm374_vm0, %v44820_v53 }
 0xb41   : > { %27294 = vmatprep.mubr.bf16.mxu1 %v46528_v50 }
 0xb46   : > { %36889 = vmatmul.mubr.msk.bf16.gmra.mrb[220].mxu0 %vm374_vm0, %v44820_v53 }
 0xb47   : > { %28223 = vmatprep.mubr.bf16.mxu0 %v46528_v50 }
 0xb48   : > { %36886 = vmatmul.mubr.msk.bf16.vlgmr.msra.gmra.mrb[208].mxu1 %vm374_vm0, %v44807_v9 }
 0xb49   : > { %27304 = vmatprep.mubr.bf16.mxu1 %v46528_v50  ;;  %27369 = vmatpush1.bf16.msra.mxu1 %v40682_v4 }
 0xb50   : > { %36887 = vmatmul.mubr.msk.bf16.gmra.mrb[212].mxu1 %vm374_vm0, %v44820_v53 }
 0xb51   : > { %27400 = vmatprep.mubr.bf16.mxu1 %v46528_v50 }
 0xb58   : > { %36890 = vmatmul.mubr.msk.bf16.vlgmr.msra.gmra.mrb[216].mxu1 %vm374_vm0, %v44807_v9 }
 0xb59   : > { %27410 = vmatprep.mubr.bf16.mxu1 %v46528_v50 }
 0xb60   : > { %36891 = vmatmul.mubr.msk.bf16.gmra.mrb[220].mxu1 %vm374_vm0, %v44820_v53 }
 0xb61   : > { %28286 = vmatprep.mubr.bf16.mxu1 %v46528_v50 }
 0xbd1   : > { %v26925_v62 = vpop.f32.mrb[184].mxu0 }
 0xbd2   : > { %v27741_v6 = vadd.f32 %v26925_v62, %v46560_v19  ;;  %v26927_v13 = vpop.f32.mrb[185].mxu0  ;;  %v44928_v62 = vld [vmem:[%s46468_s2] sm:$0xff]  }
 0xbd3   : > { %v27742_v36 = vadd.f32 %v26927_v13, %v46560_v19  ;;  %v26929_v61 = vpop.f32.mrb[186].mxu0 }
 0xbd4   : > { %v27901_v46 = vmul.f32 %v27741_v6, %v46561_v30  ;;  %v27761_v24 = vadd.f32 %v26929_v61, %v46562_v2  ;;  %v26931_v15 = vpop.f32.mrb[187].mxu0  ;;  %vm27821_vm2 = vcmp.ge.f32.partialorder %v27741_v6, 0.0 }
 0xbd5   : > { %v27902_v63 = vmul.f32 %v27742_v36, %v46561_v30  ;;  %v27762_v7 = vadd.f32 %v26931_v15, %v46562_v2  ;;  %vm27822_vm0 = vcmp.ge.f32.partialorder %v27742_v36, 0.0 }
 0xbd6   : > { %vm27841_vm3 = vcmp.ge.f32.partialorder %v27761_v24, 0.0  ;;  %v27921_v47 = vmul.f32 %v27761_v24, %v46563_v57  ;;  %v27981_v0 = vsel %vm27821_vm2, %v27741_v6, %v27901_v46 }
 0xbd7   : > { %vm27842_vm4 = vcmp.ge.f32.partialorder %v27762_v7, 0.0  ;;  %v27922_v17 = vmul.f32 %v27762_v7, %v46563_v57  ;;  %v27982_v51 = vsel %vm27822_vm0, %v27742_v36, %v27902_v63 }
 0xbd8   : > { %v28001_v27 = vsel %vm27841_vm3, %v27761_v24, %v27921_v47 }
 0xbd9   : > { %v28061_v1 = vpack.c.bf16 %v28001_v27, %v27981_v0  ;;  %v26935_v34 = vpop.f32.mrb[188].mxu0  ;;  %v28002_v26 = vsel %vm27842_vm4, %v27762_v7, %v27922_v17 }
 0xbda   : > { %v27781_v28 = vadd.f32 %v26935_v34, %v41931_v43  ;;  %v26937_v32 = vpop.f32.mrb[189].mxu0  ;;  %v44908_v12 = vpack.c.bf16 %v28002_v26, %v27982_v51 }
 0xbdb   : > { %v27782_v44 = vadd.f32 %v26937_v32, %v41931_v43  ;;  %v26939_v3 = vpop.f32.mrb[190].mxu0 }
 0xbdc   : > { %v27941_v40 = vmul.f32 %v27781_v28, %v41951_v5  ;;  %v27801_v25 = vadd.f32 %v26939_v3, %v41929_v42  ;;  %v26941_v16 = vpop.f32.mrb[191].mxu0  ;;  %28191 = vmatprep.subr.bf16.mxu0 %v44908_v12  ;;  %vm27861_vm5 = vcmp.ge.f32.partialorder %v27781_v28, 0.0 }
 0xbdd   : > { %v27942_v41 = vmul.f32 %v27782_v44, %v41951_v5  ;;  %v27802_v37 = vadd.f32 %v26941_v16, %v41929_v42  ;;  %28192 = vmatpush1.bf16.msra.mxu0 %v28061_v1  ;;  %vm27862_vm7 = vcmp.ge.f32.partialorder %v27782_v44, 0.0 }
 0xbde   : > { %vm27881_vm10 = vcmp.ge.f32.partialorder %v27801_v25, 0.0  ;;  %v27961_v56 = vmul.f32 %v27801_v25, %v41962_v10  ;;  %v28021_v18 = vsel %vm27861_vm5, %v27781_v28, %v27941_v40 }
 0xbdf   : > { %vm27882_vm11 = vcmp.ge.f32.partialorder %v27802_v37, 0.0  ;;  %v27962_v14 = vmul.f32 %v27802_v37, %v41962_v10  ;;  %v28022_v49 = vsel %vm27862_vm7, %v27782_v44, %v27942_v41  ;;  %v44949_v44 = vld [vmem:[%s46468_s2 + $0x8] sm:$0xff]  }
 0xbe0   : > { %v28041_v11 = vsel %vm27881_vm10, %v27801_v25, %v27961_v56 }
 0xbe1   : > { %v28081_v9 = vpack.c.bf16 %v28041_v11, %v28021_v18  ;;  %v27031_v21 = vpop.f32.mrb[192].mxu0  ;;  %v28042_v53 = vsel %vm27882_vm11, %v27802_v37, %v27962_v14 }
 0xbe2   : > { %v27745_v55 = vadd.f32 %v27031_v21, %v46560_v19  ;;  %v27033_v33 = vpop.f32.mrb[193].mxu0  ;;  %v44919_v23 = vpack.c.bf16 %v28042_v53, %v28022_v49 }
 0xbe3   : > { %v27746_v58 = vadd.f32 %v27033_v33, %v46560_v19  ;;  %v27035_v35 = vpop.f32.mrb[194].mxu0 }
 0xbe4   : > { %v27905_v52 = vmul.f32 %v27745_v55, %v46561_v30  ;;  %v27765_v54 = vadd.f32 %v27035_v35, %v46562_v2  ;;  %v27037_v4 = vpop.f32.mrb[195].mxu0  ;;  %28193 = vmatprep.subr.bf16.mxu0 %v44919_v23  ;;  %vm27825_vm12 = vcmp.ge.f32.partialorder %v27745_v55, 0.0 }
 0xbe5   : > { %v27906_v6 = vmul.f32 %v27746_v58, %v46561_v30  ;;  %v27766_v13 = vadd.f32 %v27037_v4, %v46562_v2  ;;  %28194 = vmatpush1.bf16.msra.mxu0 %v28081_v9  ;;  %vm27826_vm13 = vcmp.ge.f32.partialorder %v27746_v58, 0.0 }
 0xbe6   : > { %vm27845_vm14 = vcmp.ge.f32.partialorder %v27765_v54, 0.0  ;;  %v27925_v36 = vmul.f32 %v27765_v54, %v46563_v57  ;;  %v27985_v46 = vsel %vm27825_vm12, %v27745_v55, %v27905_v52 }
 0xbe7   : > { %vm27846_vm15 = vcmp.ge.f32.partialorder %v27766_v13, 0.0  ;;  %v27926_v61 = vmul.f32 %v27766_v13, %v46563_v57  ;;  %v27986_v15 = vsel %vm27826_vm13, %v27746_v58, %v27906_v6 }
 0xbe8   : > { %v28005_v24 = vsel %vm27845_vm14, %v27765_v54, %v27925_v36  ;;  %36895 = vmatmul.mubr.msk.bf16.vlgmr.msra.gmra.mrb[224].mxu0 %vm10658_vm6, %v44928_v62 }
 0xbe9   : > { %v44936_v63 = vpack.c.bf16 %v28005_v24, %v27985_v46  ;;  %v28006_v7 = vsel %vm27846_vm15, %v27766_v13, %v27926_v61  ;;  %v27041_v47 = vpop.f32.mrb[196].mxu0  ;;  %28233 = vmatprep.mubr.bf16.mxu0 %v46528_v50 }
 0xbea   : > { %v44939_v17 = vpack.c.bf16 %v28006_v7, %v27986_v15  ;;  %v27785_v0 = vadd.f32 %v27041_v47, %v41931_v43  ;;  %v27043_v27 = vpop.f32.mrb[197].mxu0 }
 0xbeb   : > { %v27786_v1 = vadd.f32 %v27043_v27, %v41931_v43  ;;  %v27045_v34 = vpop.f32.mrb[198].mxu0  ;;  %v26978_v26 = vpop.f32.mrb[184].mxu1 }
 0xbec   : > { %vm27865_vm1 = vcmp.ge.f32.partialorder %v27785_v0, 0.0  ;;  %v27945_v51 = vmul.f32 %v27785_v0, %v41951_v5  ;;  %v27805_v28 = vadd.f32 %v27045_v34, %v41929_v42  ;;  %v27047_v32 = vpop.f32.mrb[199].mxu0  ;;  %28317 = vmatprep.subr.bf16.mxu0 %v44939_v17  ;;  %v27743_v3 = vadd.f32 %v26978_v26, %v46560_v19  ;;  %v26980_v40 = vpop.f32.mrb[185].mxu1 }
 0xbed   : > { %v27806_v25 = vadd.f32 %v27047_v32, %v41929_v42  ;;  %28318 = vmatpush1.bf16.msra.mxu0 %v44936_v63  ;;  %v27946_v16 = vmul.f32 %v27786_v1, %v41951_v5  ;;  %v27744_v41 = vadd.f32 %v26980_v40, %v46560_v19  ;;  %v26982_v56 = vpop.f32.mrb[186].mxu1  ;;  %vm27866_vm0 = vcmp.ge.f32.partialorder %v27786_v1, 0.0  ;;  %v44985_v40 = vld [vmem:[%s46468_s2 + $0x10] sm:$0xff]  }
 0xbee   : > { %vm27885_vm2 = vcmp.ge.f32.partialorder %v27805_v28, 0.0  ;;  %v27965_v37 = vmul.f32 %v27805_v28, %v41962_v10  ;;  %v28025_v14 = vsel %vm27865_vm1, %v27785_v0, %v27945_v51  ;;  %v27903_v18 = vmul.f32 %v27743_v3, %v46561_v30  ;;  %v26984_v9 = vpop.f32.mrb[187].mxu1 }
 0xbef   : > { %v27763_v11 = vadd.f32 %v26982_v56, %v46562_v2  ;;  %vm27823_vm3 = vcmp.ge.f32.partialorder %v27743_v3, 0.0  ;;  %vm27824_vm4 = vcmp.ge.f32.partialorder %v27744_v41, 0.0  ;;  %v27904_v21 = vmul.f32 %v27744_v41, %v46561_v30 }
 0xbf0   : > { %v28045_v49 = vsel %vm27885_vm2, %v27805_v28, %v27965_v37  ;;  %36896 = vmatmul.mubr.msk.bf16.gmra.mrb[228].mxu0 %vm10658_vm6, %v44949_v44  ;;  %vm27886_vm7 = vcmp.ge.f32.partialorder %v27806_v25, 0.0  ;;  %v28026_v58 = vsel %vm27866_vm0, %v27786_v1, %v27946_v16  ;;  %v27966_v35 = vmul.f32 %v27806_v25, %v41962_v10 }
 0xbf1   : > { %v44963_v53 = vpack.c.bf16 %v28045_v49, %v28025_v14  ;;  %vm27843_vm5 = vcmp.ge.f32.partialorder %v27763_v11, 0.0  ;;  %v27923_v55 = vmul.f32 %v27763_v11, %v46563_v57  ;;  %v27137_v33 = vpop.f32.mrb[200].mxu0  ;;  %28243 = vmatprep.mubr.bf16.mxu0 %v46528_v50  ;;  %v27764_v52 = vadd.f32 %v26984_v9, %v46562_v2 }
 0xbf2   : > { %v27749_v54 = vadd.f32 %v27137_v33, %v46560_v19  ;;  %v27139_v4 = vpop.f32.mrb[201].mxu0  ;;  %v27983_v6 = vsel %vm27823_vm3, %v27743_v3, %v27903_v18  ;;  %v27984_v13 = vsel %vm27824_vm4, %v27744_v41, %v27904_v21  ;;  %v28046_v15 = vsel %vm27886_vm7, %v27806_v25, %v27966_v35 }
 0xbf3   : > { %v28003_v36 = vsel %vm27843_vm5, %v27763_v11, %v27923_v55  ;;  %v27750_v61 = vadd.f32 %v27139_v4, %v46560_v19  ;;  %v27141_v46 = vpop.f32.mrb[202].mxu0  ;;  %vm27844_vm10 = vcmp.ge.f32.partialorder %v27764_v52, 0.0  ;;  %v27924_v7 = vmul.f32 %v27764_v52, %v46563_v57  ;;  %v26988_v47 = vpop.f32.mrb[188].mxu1 }
 0xbf4   : > { %v44973_v24 = vpack.c.bf16 %v28003_v36, %v27983_v6  ;;  %v27143_v0 = vpop.f32.mrb[203].mxu0  ;;  %v44976_v27 = vpack.c.bf16 %v28046_v15, %v28026_v58  ;;  %vm27829_vm11 = vcmp.ge.f32.partialorder %v27749_v54, 0.0  ;;  %v27909_v1 = vmul.f32 %v27749_v54, %v46561_v30  ;;  %v26990_v51 = vpop.f32.mrb[189].mxu1 }
 0xbf5   : > { %v27783_v34 = vadd.f32 %v26988_v47, %v41931_v43  ;;  %v28004_v26 = vsel %vm27844_vm10, %v27764_v52, %v27924_v7  ;;  %vm27830_vm12 = vcmp.ge.f32.partialorder %v27750_v61, 0.0  ;;  %v27910_v28 = vmul.f32 %v27750_v61, %v46561_v30  ;;  %v26992_v3 = vpop.f32.mrb[190].mxu1 }
 0xbf6   : > { %v27784_v32 = vadd.f32 %v26990_v51, %v41931_v43  ;;  %v44987_v25 = vpack.c.bf16 %v28004_v26, %v27984_v13  ;;  %v27989_v16 = vsel %vm27829_vm11, %v27749_v54, %v27909_v1  ;;  %28319 = vmatprep.subr.bf16.mxu0 %v44976_v27  ;;  %v26994_v37 = vpop.f32.mrb[191].mxu1  ;;  %v27769_v18 = vadd.f32 %v27141_v46, %v46562_v2 }
 0xbf7   : > { %vm27863_vm13 = vcmp.ge.f32.partialorder %v27783_v34, 0.0  ;;  %v27943_v41 = vmul.f32 %v27783_v34, %v41951_v5  ;;  %v27990_v56 = vsel %vm27830_vm12, %v27750_v61, %v27910_v28  ;;  %28320 = vmatpush1.bf16.msra.mxu0 %v44963_v53  ;;  %v27803_v9 = vadd.f32 %v26992_v3, %v41929_v42 }
 0xbf8   : > { %vm27864_vm14 = vcmp.ge.f32.partialorder %v27784_v32, 0.0  ;;  %v27944_v14 = vmul.f32 %v27784_v32, %v41951_v5  ;;  %v27770_v21 = vadd.f32 %v27143_v0, %v46562_v2  ;;  %v27804_v49 = vadd.f32 %v26994_v37, %v41929_v42  ;;  %28254 = vmatprep.subr.bf16.mxu1 %v44987_v25  ;;  %36897 = vmatmul.mubr.msk.bf16.gmra.mrb[232].mxu0 %vm10658_vm6, %v44985_v40 }
 0xbf9   : > { %v28023_v11 = vsel %vm27863_vm13, %v27783_v34, %v27943_v41  ;;  %v27147_v55 = vpop.f32.mrb[204].mxu0  ;;  %vm27849_vm15 = vcmp.ge.f32.partialorder %v27769_v18, 0.0  ;;  %v27929_v58 = vmul.f32 %v27769_v18, %v46563_v57  ;;  %28255 = vmatpush1.bf16.msra.mxu1 %v44973_v24  ;;  %vm27883_vm1 = vcmp.ge.f32.partialorder %v27803_v9, 0.0  ;;  %28349 = vmatprep.mubr.bf16.mxu0 %v46528_v50 }
 0xbfa   : > { %v28024_v33 = vsel %vm27864_vm14, %v27784_v32, %v27944_v14  ;;  %v27789_v35 = vadd.f32 %v27147_v55, %v41931_v43  ;;  %v27149_v52 = vpop.f32.mrb[205].mxu0  ;;  %v27963_v54 = vmul.f32 %v27803_v9, %v41962_v10  ;;  %vm27850_vm2 = vcmp.ge.f32.partialorder %v27770_v21, 0.0 }
 0xbfb   : > { %v27930_v4 = vmul.f32 %v27770_v21, %v46563_v57  ;;  %v27151_v6 = vpop.f32.mrb[206].mxu0  ;;  %v28009_v13 = vsel %vm27849_vm15, %v27769_v18, %v27929_v58  ;;  %vm27884_vm0 = vcmp.ge.f32.partialorder %v27804_v49, 0.0  ;;  %v27964_v36 = vmul.f32 %v27804_v49, %v41962_v10  ;;  %v27084_v61 = vpop.f32.mrb[192].mxu1 }
 0xbfc   : > { %vm27869_vm3 = vcmp.ge.f32.partialorder %v27789_v35, 0.0  ;;  %v27153_v46 = vpop.f32.mrb[207].mxu0  ;;  %v45007_v15 = vpack.c.bf16 %v28009_v13, %v27989_v16  ;;  %v28043_v7 = vsel %vm27883_vm1, %v27803_v9, %v27963_v54  ;;  %v27949_v0 = vmul.f32 %v27789_v35, %v41951_v5  ;;  %v27086_v1 = vpop.f32.mrb[193].mxu1 }
 0xbfd   : > { %v28010_v47 = vsel %vm27850_vm2, %v27770_v21, %v27930_v4  ;;  %v45010_v34 = vpack.c.bf16 %v28043_v7, %v28023_v11  ;;  %v28044_v26 = vsel %vm27884_vm0, %v27804_v49, %v27964_v36  ;;  %v27747_v28 = vadd.f32 %v27084_v61, %v46560_v19  ;;  %v27088_v32 = vpop.f32.mrb[194].mxu1 }
 0xbfe   : > { %v45012_v51 = vpack.c.bf16 %v28010_v47, %v27990_v56  ;;  %v45015_v3 = vpack.c.bf16 %v28044_v26, %v28024_v33  ;;  %v28029_v41 = vsel %vm27869_vm3, %v27789_v35, %v27949_v0  ;;  %v27790_v37 = vadd.f32 %v27149_v52, %v41931_v43  ;;  %v27090_v14 = vpop.f32.mrb[195].mxu1 }
 0xbff   : > { %v27748_v16 = vadd.f32 %v27086_v1, %v46560_v19  ;;  %vm27827_vm4 = vcmp.ge.f32.partialorder %v27747_v28, 0.0  ;;  %v27907_v18 = vmul.f32 %v27747_v28, %v46561_v30  ;;  %v27809_v11 = vadd.f32 %v27151_v6, %v41929_v42 }
 0xc00   : > { %v27767_v56 = vadd.f32 %v27088_v32, %v46562_v2  ;;  %28443 = vmatprep.subr.bf16.mxu0 %v45012_v51  ;;  %vm27870_vm5 = vcmp.ge.f32.partialorder %v27790_v37, 0.0  ;;  %v27950_v9 = vmul.f32 %v27790_v37, %v41951_v5  ;;  %28256 = vmatprep.subr.bf16.mxu1 %v45015_v3  ;;  %v27810_v4 = vadd.f32 %v27153_v46, %v41929_v42 }
 0xc01   : > { %vm27828_vm7 = vcmp.ge.f32.partialorder %v27748_v16, 0.0  ;;  %v27908_v21 = vmul.f32 %v27748_v16, %v46561_v30  ;;  %v27243_v49 = vpop.f32.mrb[208].mxu0  ;;  %v27987_v55 = vsel %vm27827_vm4, %v27747_v28, %v27907_v18  ;;  %vm27889_vm10 = vcmp.ge.f32.partialorder %v27809_v11, 0.0  ;;  %28257 = vmatpush1.bf16.msra.mxu1 %v45010_v34  ;;  %36901 = vmatmul.mubr.msk.bf16.vlgmr.msra.gmra.mrb[236].mxu0 %vm10658_vm6, %v44928_v62 }
 0xc02   : > { %v27969_v33 = vmul.f32 %v27809_v11, %v41962_v10  ;;  %vm27847_vm11 = vcmp.ge.f32.partialorder %v27767_v56, 0.0  ;;  %v27245_v58 = vpop.f32.mrb[209].mxu0  ;;  %v28030_v35 = vsel %vm27870_vm5, %v27790_v37, %v27950_v9  ;;  %v27927_v54 = vmul.f32 %v27767_v56, %v46563_v57  ;;  %28444 = vmatpush1.bf16.msra.mxu0 %v45007_v15  ;;  %28359 = vmatprep.mubr.bf16.mxu0 %v46528_v50 }
 0xc03   : > { %v27988_v52 = vsel %vm27828_vm7, %v27748_v16, %v27908_v21  ;;  %v27247_v6 = vpop.f32.mrb[210].mxu0  ;;  %v27768_v36 = vadd.f32 %v27090_v14, %v46562_v2  ;;  %v27753_v61 = vadd.f32 %v27243_v49, %v46560_v19  ;;  %v27094_v7 = vpop.f32.mrb[196].mxu1  ;;  %v27754_v47 = vadd.f32 %v27245_v58, %v46560_v19 }
 0xc04   : > { %v28049_v13 = vsel %vm27889_vm10, %v27809_v11, %v27969_v33  ;;  %v27249_v0 = vpop.f32.mrb[211].mxu0  ;;  %v28007_v26 = vsel %vm27847_vm11, %v27767_v56, %v27927_v54  ;;  %vm27890_vm12 = vcmp.ge.f32.partialorder %v27810_v4, 0.0  ;;  %v27970_v46 = vmul.f32 %v27810_v4, %v41962_v10  ;;  %36898 = vmatmul.mubr.msk.bf16.vlgmr.msra.gmra.mrb[224].mxu1 %vm10658_vm6, %v44928_v62  ;;  %v27096_v28 = vpop.f32.mrb[197].mxu1 }
 0xc05   : > { %v45037_v1 = vpack.c.bf16 %v28049_v13, %v28029_v41  ;;  %v45043_v32 = vpack.c.bf16 %v28007_v26, %v27987_v55  ;;  %vm27848_vm13 = vcmp.ge.f32.partialorder %v27768_v36, 0.0  ;;  %v27928_v37 = vmul.f32 %v27768_v36, %v46563_v57  ;;  %v27098_v16 = vpop.f32.mrb[198].mxu1  ;;  %28296 = vmatprep.mubr.bf16.mxu1 %v46528_v50 }
 0xc06   : > { %vm27833_vm14 = vcmp.ge.f32.partialorder %v27753_v61, 0.0  ;;  %v28050_v41 = vsel %vm27890_vm12, %v27810_v4, %v27970_v46  ;;  %v27913_v14 = vmul.f32 %v27753_v61, %v46561_v30  ;;  %v27787_v18 = vadd.f32 %v27094_v7, %v41931_v43  ;;  %v27100_v11 = vpop.f32.mrb[199].mxu1 }
 0xc07   : > { %vm27834_vm15 = vcmp.ge.f32.partialorder %v27754_v47, 0.0  ;;  %v45049_v56 = vpack.c.bf16 %v28050_v41, %v28030_v35  ;;  %v28008_v9 = vsel %vm27848_vm13, %v27768_v36, %v27928_v37  ;;  %v27914_v21 = vmul.f32 %v27754_v47, %v46561_v30 }
 0xc08   : > { %v27788_v49 = vadd.f32 %v27096_v28, %v41931_v43  ;;  %v45053_v55 = vpack.c.bf16 %v28008_v9, %v27988_v52  ;;  %v27993_v33 = vsel %vm27833_vm14, %v27753_v61, %v27913_v14  ;;  %vm27867_vm1 = vcmp.ge.f32.partialorder %v27787_v18, 0.0 }
 0xc09   : > { %v27947_v58 = vmul.f32 %v27787_v18, %v41951_v5  ;;  %v27253_v54 = vpop.f32.mrb[212].mxu0  ;;  %v27994_v4 = vsel %vm27834_vm15, %v27754_v47, %v27914_v21  ;;  %v27773_v7 = vadd.f32 %v27247_v6, %v46562_v2  ;;  %28445 = vmatprep.subr.bf16.mxu0 %v45049_v56  ;;  %36902 = vmatmul.mubr.msk.bf16.gmra.mrb[240].mxu0 %vm10658_vm6, %v44949_v44 }
 0xc0a   : > { %vm27868_vm2 = vcmp.ge.f32.partialorder %v27788_v49, 0.0  ;;  %v27948_v13 = vmul.f32 %v27788_v49, %v41951_v5  ;;  %v27255_v35 = vpop.f32.mrb[213].mxu0  ;;  %v27807_v52 = vadd.f32 %v27098_v16, %v41929_v42  ;;  %v27774_v61 = vadd.f32 %v27249_v0, %v46562_v2  ;;  %28380 = vmatprep.subr.bf16.mxu1 %v45053_v55  ;;  %28446 = vmatpush1.bf16.msra.mxu0 %v45037_v1 }
 0xc0b   : > { %v28027_v36 = vsel %vm27867_vm1, %v27787_v18, %v27947_v58  ;;  %v27808_v26 = vadd.f32 %v27100_v11, %v41929_v42  ;;  %v27257_v47 = vpop.f32.mrb[214].mxu0  ;;  %vm27853_vm0 = vcmp.ge.f32.partialorder %v27773_v7, 0.0  ;;  %v27933_v6 = vmul.f32 %v27773_v7, %v46563_v57  ;;  %28381 = vmatpush1.bf16.msra.mxu1 %v45043_v32  ;;  %v27190_v37 = vpop.f32.mrb[200].mxu1  ;;  %28616 = vmatprep.subr.bf16.mxu0 %v44973_v24 }
 0xc0c   : > { %v28028_v46 = vsel %vm27868_vm2, %v27788_v49, %v27948_v13  ;;  %v27793_v28 = vadd.f32 %v27253_v54, %v41931_v43  ;;  %v27259_v41 = vpop.f32.mrb[215].mxu0  ;;  %vm27887_vm3 = vcmp.ge.f32.partialorder %v27807_v52, 0.0  ;;  %v27967_v0 = vmul.f32 %v27807_v52, %v41962_v10  ;;  %36899 = vmatmul.mubr.msk.bf16.gmra.mrb[228].mxu1 %vm10658_vm6, %v44949_v44  ;;  %v27192_v14 = vpop.f32.mrb[201].mxu1  ;;  %28369 = vmatprep.mubr.bf16.mxu0 %v46528_v50 }
 0xc0d   : > { %vm27854_vm4 = vcmp.ge.f32.partialorder %v27774_v61, 0.0  ;;  %v27934_v16 = vmul.f32 %v27774_v61, %v46563_v57  ;;  %v28013_v18 = vsel %vm27853_vm0, %v27773_v7, %v27933_v6  ;;  %vm27888_vm5 = vcmp.ge.f32.partialorder %v27808_v26, 0.0  ;;  %v27194_v9 = vpop.f32.mrb[202].mxu1  ;;  %28306 = vmatprep.mubr.bf16.mxu1 %v46528_v50 }
 0xc0e   : > { %v27968_v11 = vmul.f32 %v27808_v26, %v41962_v10  ;;  %vm27873_vm7 = vcmp.ge.f32.partialorder %v27793_v28, 0.0  ;;  %v45077_v21 = vpack.c.bf16 %v28013_v18, %v27993_v33  ;;  %v28047_v49 = vsel %vm27887_vm3, %v27807_v52, %v27967_v0  ;;  %v27196_v13 = vpop.f32.mrb[203].mxu1 }
 0xc0f   : > { %v28014_v58 = vsel %vm27854_vm4, %v27774_v61, %v27934_v16  ;;  %v27953_v54 = vmul.f32 %v27793_v28, %v41951_v5  ;;  %v45080_v8 = vpack.c.bf16 %v28047_v49, %v28027_v36  ;;  %v27751_v6 = vadd.f32 %v27190_v37, %v46560_v19 }
 0xc10   : > { %v45082_v20 = vpack.c.bf16 %v28014_v58, %v27994_v4  ;;  %v28048_v7 = vsel %vm27888_vm5, %v27808_v26, %v27968_v11  ;;  %v27794_v45 = vadd.f32 %v27255_v35, %v41931_v43  ;;  %v27752_v60 = vadd.f32 %v27192_v14, %v46560_v19 }
 0xc11   : > { %v45085_v59 = vpack.c.bf16 %v28048_v7, %v28028_v46  ;;  %v27349_v33 = vpop.f32.mrb[216].mxu0  ;;  %vm27831_vm10 = vcmp.ge.f32.partialorder %v27751_v6, 0.0  ;;  %v27911_v52 = vmul.f32 %v27751_v6, %v46561_v30  ;;  %v27813_v61 = vadd.f32 %v27257_v47, %v41929_v42  ;;  %36903 = vmatmul.mubr.msk.bf16.gmra.mrb[244].mxu0 %vm10658_vm6, %v44985_v40 }
 0xc12   : > { %v27771_v36 = vadd.f32 %v27194_v9, %v46562_v2  ;;  %v27351_v4 = vpop.f32.mrb[217].mxu0  ;;  %v28033_v26 = vsel %vm27873_vm7, %v27793_v28, %v27953_v54  ;;  %vm27874_vm11 = vcmp.ge.f32.partialorder %v27794_v45, 0.0  ;;  %v27954_v46 = vmul.f32 %v27794_v45, %v41951_v5  ;;  %28475 = vmatprep.mubr.bf16.mxu0 %v46528_v50 }
 0xc13   : > { %vm27832_vm12 = vcmp.ge.f32.partialorder %v27752_v60, 0.0  ;;  %28382 = vmatprep.subr.bf16.mxu1 %v45085_v59  ;;  %v27353_v35 = vpop.f32.mrb[218].mxu0  ;;  %v27912_v37 = vmul.f32 %v27752_v60, %v46561_v30  ;;  %vm27893_vm13 = vcmp.ge.f32.partialorder %v27813_v61, 0.0  ;;  %v27973_v47 = vmul.f32 %v27813_v61, %v41962_v10  ;;  %v27200_v0 = vpop.f32.mrb[204].mxu1 }
 0xc14   : > { %vm27851_vm14 = vcmp.ge.f32.partialorder %v27771_v36, 0.0  ;;  %28383 = vmatpush1.bf16.msra.mxu1 %v45080_v8  ;;  %v27355_v16 = vpop.f32.mrb[219].mxu0  ;;  %v27991_v28 = vsel %vm27831_vm10, %v27751_v6, %v27911_v52  ;;  %v28034_v14 = vsel %vm27874_vm11, %v27794_v45, %v27954_v46  ;;  %v27931_v18 = vmul.f32 %v27771_v36, %v46563_v57  ;;  %v27202_v9 = vpop.f32.mrb[205].mxu1 }
 0xc15   : > { %v27814_v11 = vadd.f32 %v27259_v41, %v41929_v42  ;;  %28679 = vmatprep.subr.bf16.mxu1 %v44936_v63  ;;  %v28053_v49 = vsel %vm27893_vm13, %v27813_v61, %v27973_v47  ;;  %v27772_v58 = vadd.f32 %v27196_v13, %v46562_v2  ;;  %v27757_v54 = vadd.f32 %v27349_v33, %v46560_v19  ;;  %v27204_v48 = vpop.f32.mrb[206].mxu1 }
 0xc16   : > { %36900 = vmatmul.mubr.msk.bf16.gmra.mrb[232].mxu1 %vm10658_vm6, %v44985_v40  ;;  %v27791_v7 = vadd.f32 %v27200_v0, %v41931_v43  ;;  %v45110_v6 = vpack.c.bf16 %v28053_v49, %v28033_v26  ;;  %v28011_v45 = vsel %vm27851_vm14, %v27771_v36, %v27931_v18  ;;  %v27206_v52 = vpop.f32.mrb[207].mxu1  ;;  %v27992_v36 = vsel %vm27832_vm12, %v27752_v60, %v27912_v37 }
 0xc17   : > { %vm27894_vm15 = vcmp.ge.f32.partialorder %v27814_v11, 0.0  ;;  %v27974_v41 = vmul.f32 %v27814_v11, %v41962_v10  ;;  %28412 = vmatprep.mubr.bf16.mxu1 %v46528_v50  ;;  %v45115_v61 = vpack.c.bf16 %v28011_v45, %v27991_v28  ;;  %vm27852_vm1 = vcmp.ge.f32.partialorder %v27772_v58, 0.0 }
 0xc18   : > { %v27932_v13 = vmul.f32 %v27772_v58, %v46563_v57  ;;  %vm27837_vm2 = vcmp.ge.f32.partialorder %v27757_v54, 0.0  ;;  %v27917_v46 = vmul.f32 %v27757_v54, %v46561_v30  ;;  %vm27871_vm0 = vcmp.ge.f32.partialorder %v27791_v7, 0.0 }
 0xc19   : > { %v28054_v33 = vsel %vm27894_vm15, %v27814_v11, %v27974_v41  ;;  %v27951_v26 = vmul.f32 %v27791_v7, %v41951_v5  ;;  %v27359_v47 = vpop.f32.mrb[220].mxu0  ;;  %v27792_v49 = vadd.f32 %v27202_v9, %v41931_v43  ;;  %36907 = vmatmul.mubr.msk.bf16.vlgmr.msra.gmra.mrb[248].mxu0 %vm10658_vm6, %v44928_v62  ;;  %v45129_v11 = vadd.f32 %v27351_v4, %v46560_v19 }
 0xc1a   : > { %v45121_v0 = vpack.c.bf16 %v28054_v33, %v28034_v14  ;;  %v28012_v18 = vsel %vm27852_vm1, %v27772_v58, %v27932_v13  ;;  %v27361_v28 = vpop.f32.mrb[221].mxu0  ;;  %v27777_v41 = vadd.f32 %v27353_v35, %v46562_v2  ;;  %28617 = vmatpush1.bf16.msra.mxu0 %v44908_v12  ;;  %v27997_v60 = vsel %vm27837_vm2, %v27757_v54, %v27917_v46 }
 0xc1b   : > { %v45126_v45 = vpack.c.bf16 %v28012_v18, %v27992_v36  ;;  %v27363_v39 = vpop.f32.mrb[222].mxu0  ;;  %v28031_v37 = vsel %vm27871_vm0, %v27791_v7, %v27951_v26  ;;  %v27952_v14 = vmul.f32 %v27792_v49, %v41951_v5  ;;  %28618 = vmatprep.subr.bf16.mxu0 %v45010_v34  ;;  %v27296_v9 = vpop.f32.mrb[208].mxu1  ;;  %28485 = vmatprep.mubr.bf16.mxu0 %v46528_v50  ;;  %vm27872_vm3 = vcmp.ge.f32.partialorder %v27792_v49, 0.0 }
 0xc1c   : > { %v27365_v58 = vpop.f32.mrb[223].mxu0  ;;  %vm27857_vm4 = vcmp.ge.f32.partialorder %v27777_v41, 0.0  ;;  %v27937_v4 = vmul.f32 %v27777_v41, %v46563_v57  ;;  %v27811_v35 = vadd.f32 %v27204_v48, %v41929_v42  ;;  %v27298_v13 = vpop.f32.mrb[209].mxu1  ;;  %v45140_v12 = vadd.f32 %v27355_v16, %v46562_v2 }
 0xc1d   : > { %v27812_v54 = vadd.f32 %v27206_v52, %v41929_v42  ;;  %v27797_v7 = vadd.f32 %v27359_v47, %v41931_v43  ;;  %v27755_v33 = vadd.f32 %v27296_v9, %v46560_v19  ;;  %v27300_v46 = vpop.f32.mrb[210].mxu1  ;;  %v45149_v26 = vmul.f32 %v45129_v11, %v46561_v30 }
 0xc1e   : > { %36904 = vmatmul.mubr.msk.bf16.vlgmr.msra.gmra.mrb[236].mxu1 %vm10658_vm6, %v44928_v62  ;;  %v28017_v36 = vsel %vm27857_vm4, %v27777_v41, %v27937_v4  ;;  %vm27891_vm5 = vcmp.ge.f32.partialorder %v27811_v35, 0.0  ;;  %v27971_v48 = vmul.f32 %v27811_v35, %v41962_v10  ;;  %28619 = vmatpush1.bf16.msra.mxu0 %v44919_v23  ;;  %v27302_v16 = vpop.f32.mrb[211].mxu1  ;;  %v28032_v52 = vsel %vm27872_vm3, %v27792_v49, %v27952_v14 }
 0xc1f   : > { %28680 = vmatpush1.bf16.msra.mxu1 %v44987_v25  ;;  %v45155_v47 = vpack.c.bf16 %v28017_v36, %v27997_v60  ;;  %vm27892_vm7 = vcmp.ge.f32.partialorder %v27812_v54, 0.0  ;;  %v27972_v62 = vmul.f32 %v27812_v54, %v41962_v10  ;;  %28742 = vmatprep.subr.bf16.mxu0 %v45043_v32  ;;  %vm27838_vm10 = vcmp.ge.f32.partialorder %v45129_v11, 0.0 }
 0xc20   : > { %28681 = vmatprep.subr.bf16.mxu1 %v44963_v53  ;;  %v28051_v18 = vsel %vm27891_vm5, %v27811_v35, %v27971_v48  ;;  %vm27877_vm11 = vcmp.ge.f32.partialorder %v27797_v7, 0.0  ;;  %v27957_v41 = vmul.f32 %v27797_v7, %v41951_v5  ;;  %vm27835_vm12 = vcmp.ge.f32.partialorder %v27755_v33, 0.0  ;;  %28422 = vmatprep.mubr.bf16.mxu1 %v46528_v50 }
 0xc21   : > { %v45163_v23 = vpack.c.bf16 %v28051_v18, %v28031_v37  ;;  %v27938_v49 = vmul.f32 %v45140_v12, %v46563_v57  ;;  %v28052_v60 = vsel %vm27892_vm7, %v27812_v54, %v27972_v62  ;;  %v27915_v14 = vmul.f32 %v27755_v33, %v46561_v30  ;;  %36908 = vmatmul.mubr.msk.bf16.gmra.mrb[252].mxu0 %vm10658_vm6, %v44949_v44 }
 0xc22   : > { %v45170_v9 = vpack.c.bf16 %v28052_v60, %v28032_v52  ;;  %v45173_v4 = vadd.f32 %v27361_v28, %v41931_v43  ;;  %v27756_v35 = vadd.f32 %v27298_v13, %v46560_v19  ;;  %v27817_v36 = vadd.f32 %v27363_v39, %v41929_v42  ;;  %28495 = vmatprep.mubr.bf16.mxu0 %v46528_v50 }
 0xc23   : > { %28682 = vmatpush1.bf16.msra.mxu1 %v45015_v3  ;;  %vm27858_vm13 = vcmp.ge.f32.partialorder %v45140_v12, 0.0  ;;  %v28037_v37 = vsel %vm27877_vm11, %v27797_v7, %v27957_v41  ;;  %v27995_v54 = vsel %vm27835_vm12, %v27755_v33, %v27915_v14  ;;  %v27775_v48 = vadd.f32 %v27300_v46, %v46562_v2  ;;  %v27306_v62 = vpop.f32.mrb[212].mxu1 }
 0xc24   : > { %28805 = vmatprep.subr.bf16.mxu1 %v45007_v15  ;;  %vm27836_vm14 = vcmp.ge.f32.partialorder %v27756_v35, 0.0  ;;  %v27916_v28 = vmul.f32 %v27756_v35, %v46561_v30  ;;  %vm27897_vm15 = vcmp.ge.f32.partialorder %v27817_v36, 0.0  ;;  %v27977_v13 = vmul.f32 %v27817_v36, %v41962_v10  ;;  %v27308_v39 = vpop.f32.mrb[213].mxu1 }
 0xc25   : > { %vm27855_vm1 = vcmp.ge.f32.partialorder %v27775_v48, 0.0  ;;  %v27935_v52 = vmul.f32 %v27775_v48, %v46563_v57  ;;  %v27818_v7 = vadd.f32 %v27365_v58, %v41929_v42  ;;  %v27776_v33 = vadd.f32 %v27302_v16, %v46562_v2  ;;  %v27310_v46 = vpop.f32.mrb[214].mxu1 }
 0xc26   : > { %36905 = vmatmul.mubr.msk.bf16.gmra.mrb[240].mxu1 %vm10658_vm6, %v44949_v44  ;;  %vm27878_vm2 = vcmp.ge.f32.partialorder %v45173_v4, 0.0  ;;  %v28057_v18 = vsel %vm27897_vm15, %v27817_v36, %v27977_v13  ;;  %v27795_v41 = vadd.f32 %v27306_v62, %v41931_v43  ;;  %v27796_v60 = vadd.f32 %v27308_v39, %v41931_v43  ;;  %v27312_v14 = vpop.f32.mrb[215].mxu1 }
 0xc27   : > { %28432 = vmatprep.mubr.bf16.mxu1 %v46528_v50  ;;  %v27958_v22 = vmul.f32 %v45173_v4, %v41951_v5  ;;  %v27996_v58 = vsel %vm27836_vm14, %v27756_v35, %v27916_v28  ;;  %v45196_v16 = vpack.c.bf16 %v28057_v18, %v28037_v37  ;;  %v28015_v31 = vsel %vm27855_vm1, %v27775_v48, %v27935_v52 }
 0xc28   : > { %v45198_v44 = vpack.c.bf16 %v28015_v31, %v27995_v54  ;;  %vm27898_vm0 = vcmp.ge.f32.partialorder %v27818_v7, 0.0  ;;  %vm27856_vm3 = vcmp.ge.f32.partialorder %v27776_v33, 0.0  ;;  %v27936_v36 = vmul.f32 %v27776_v33, %v46563_v57 }
 0xc29   : > { %v27978_v62 = vmul.f32 %v27818_v7, %v41962_v10  ;;  %vm27875_vm4 = vcmp.ge.f32.partialorder %v27795_v41, 0.0  ;;  %v27955_v13 = vmul.f32 %v27795_v41, %v41951_v5  ;;  %v27815_v39 = vadd.f32 %v27310_v46, %v41929_v42  ;;  %36909 = vmatmul.mubr.msk.bf16.gmra.mrb[0].mxu0 %vm10658_vm6, %v44985_v40 }
 0xc2a   : > { %v28016_v35 = vsel %vm27856_vm3, %v27776_v33, %v27936_v36  ;;  %v27956_v37 = vmul.f32 %v27796_v60, %v41951_v5  ;;  %v27816_v31 = vadd.f32 %v27312_v14, %v41929_v42  ;;  %28648 = vmatprep.mubr.bf16.mxu0 %v46528_v50  ;;  %v28018_v54 = vsel %vm27858_vm13, %v45140_v12, %v27938_v49 }
 0xc2b   : > { %v45212_v48 = vpack.c.bf16 %v28016_v35, %v27996_v58  ;;  %vm27876_vm5 = vcmp.ge.f32.partialorder %v27796_v60, 0.0  ;;  %vm27895_vm7 = vcmp.ge.f32.partialorder %v27815_v39, 0.0  ;;  %v27402_v28 = vpop.f32.mrb[216].mxu1  ;;  %v27998_v52 = vsel %vm27838_vm10, %v45129_v11, %v45149_v26  ;;  %v45228_v11 = vld [vmem:[%s46468_s2 + $0x18] sm:$0xff]  }
 0xc2c   : > { %v27975_v33 = vmul.f32 %v27815_v39, %v41962_v10  ;;  %vm27896_vm11 = vcmp.ge.f32.partialorder %v27816_v31, 0.0  ;;  %v27976_v46 = vmul.f32 %v27816_v31, %v41962_v10  ;;  %v27759_v18 = vadd.f32 %v27402_v28, %v46560_v19  ;;  %v27404_v14 = vpop.f32.mrb[217].mxu1 }
 0xc2d   : > { %v28035_v12 = vsel %vm27875_vm4, %v27795_v41, %v27955_v13  ;;  %v27760_v49 = vadd.f32 %v27404_v14, %v46560_v19  ;;  %v27406_v58 = vpop.f32.mrb[218].mxu1  ;;  %v45230_v26 = vpack.c.bf16 %v28018_v54, %v27998_v52  ;;  %v28058_v36 = vsel %vm27898_vm0, %v27818_v7, %v27978_v62 }
 0xc2e   : > { %36906 = vmatmul.mubr.msk.bf16.gmra.mrb[244].mxu1 %vm10658_vm6, %v44985_v40  ;;  %v28036_v35 = vsel %vm27876_vm5, %v27796_v60, %v27956_v37  ;;  %v28055_v28 = vsel %vm27895_vm7, %v27815_v39, %v27975_v33  ;;  %v28056_v41 = vsel %vm27896_vm11, %v27816_v31, %v27976_v46  ;;  %v27408_v13 = vpop.f32.mrb[219].mxu1  ;;  %v28038_v19 = vsel %vm27878_vm2, %v45173_v4, %v27958_v22 }
 0xc2f   : > { %28711 = vmatprep.mubr.bf16.mxu1 %v46528_v50  ;;  %v45239_v40 = vpack.c.bf16 %v28055_v28, %v28035_v12  ;;  %v45241_v14 = vpack.c.bf16 %v28056_v41, %v28036_v35  ;;  %vm27839_vm10 = vcmp.ge.f32.partialorder %v27759_v18, 0.0  ;;  %v27919_v54 = vmul.f32 %v27759_v18, %v46561_v30 }
 0xc30   : > { %v27920_v7 = vmul.f32 %v27760_v49, %v46561_v30  ;;  %v27779_v60 = vadd.f32 %v27406_v58, %v46562_v2  ;;  %v27780_v62 = vadd.f32 %v27408_v13, %v46562_v2  ;;  %v45247_v39 = vpack.c.bf16 %v28058_v36, %v28038_v19  ;;  %v45268_v58 = vld [vmem:[%s46468_s2 + $0x20] sm:$0xff]  }
 0xc31   : > { %vm27840_vm12 = vcmp.ge.f32.partialorder %v27760_v49, 0.0  ;;  %36919 = vmatmul.mubr.msk.bf16.vlgmr.msra.gmra.mrb[224].mxu0 %vm10658_vm6, %v45228_v11  ;;  %v27999_v2 = vsel %vm27839_vm10, %v27759_v18, %v27919_v54 }
 0xc32   : > { %vm27859_vm13 = vcmp.ge.f32.partialorder %v27779_v60, 0.0  ;;  %v27939_v22 = vmul.f32 %v27779_v60, %v46563_v57  ;;  %vm27860_vm14 = vcmp.ge.f32.partialorder %v27780_v62, 0.0  ;;  %v27940_v4 = vmul.f32 %v27780_v62, %v46563_v57  ;;  %28743 = vmatpush1.bf16.msra.mxu0 %v44939_v17  ;;  %28658 = vmatprep.mubr.bf16.mxu0 %v46528_v50 }
 0xc33   : > { %28744 = vmatprep.subr.bf16.mxu0 %v45080_v8  ;;  %v27412_v30 = vpop.f32.mrb[220].mxu1  ;;  %v45258_v33 = vsel %vm27840_vm12, %v27760_v49, %v27920_v7 }
 0xc34   : > { %v27799_v37 = vadd.f32 %v27412_v30, %v41931_v43  ;;  %v27414_v31 = vpop.f32.mrb[221].mxu1  ;;  %v28019_v52 = vsel %vm27859_vm13, %v27779_v60, %v27939_v22  ;;  %v45260_v46 = vsel %vm27860_vm14, %v27780_v62, %v27940_v4  ;;  %v40690_v62 = vld [vmem:[%s46468_s2 + $0x28] sm:$0xff]   ;;  %v40696_v22 = vld [vmem:[%s46468_s2 + $0x58] sm:$0xff]   ;;  %v40699_v4 = vld [vmem:[%s46468_s2 + $0x70] sm:$0xff]  }
 0xc35   : > { %v27800_v57 = vadd.f32 %v27414_v31, %v41931_v43  ;;  %v27416_v12 = vpop.f32.mrb[222].mxu1  ;;  %v45270_v18 = vpack.c.bf16 %v28019_v52, %v27999_v2  ;;  %v28080_v36 = vpack.c.bf16 %v45260_v46, %v45258_v33 }
 0xc36   : > { %36922 = vmatmul.mubr.msk.bf16.vlgmr.msra.gmra.mrb[224].mxu1 %vm10658_vm6, %v45228_v11  ;;  %v27959_v49 = vmul.f32 %v27799_v37, %v41951_v5  ;;  %v27819_v35 = vadd.f32 %v27416_v12, %v41929_v42  ;;  %28745 = vmatpush1.bf16.msra.mxu0 %v44976_v27  ;;  %v27418_v43 = vpop.f32.mrb[223].mxu1  ;;  %vm27879_vm15 = vcmp.ge.f32.partialorder %v27799_v37, 0.0 }
 0xc37   : > { %28806 = vmatpush1.bf16.msra.mxu1 %v45053_v55  ;;  %v27960_v28 = vmul.f32 %v27800_v57, %v41951_v5  ;;  %v27820_v41 = vadd.f32 %v27418_v43, %v41929_v42  ;;  %29161 = vmatprep.subr.bf16.mxu0 %v44987_v25  ;;  %vm27880_vm1 = vcmp.ge.f32.partialorder %v27800_v57, 0.0 }
 0xc38   : > { %28807 = vmatprep.subr.bf16.mxu1 %v45037_v1  ;;  %vm27899_vm2 = vcmp.ge.f32.partialorder %v27819_v35, 0.0  ;;  %v27979_v13 = vmul.f32 %v27819_v35, %v41962_v10  ;;  %28721 = vmatprep.mubr.bf16.mxu1 %v46528_v50  ;;  %v28039_v5 = vsel %vm27879_vm15, %v27799_v37, %v27959_v49 }
 0xc39   : > { %vm27900_vm0 = vcmp.ge.f32.partialorder %v27820_v41, 0.0  ;;  %v27980_v19 = vmul.f32 %v27820_v41, %v41962_v10  ;;  %36920 = vmatmul.mubr.msk.bf16.gmra.mrb[228].mxu0 %vm10658_vm6, %v45268_v58  ;;  %v45292_v7 = vsel %vm27880_vm1, %v27800_v57, %v27960_v28 }
 0xc3a   : > { %28668 = vmatprep.mubr.bf16.mxu0 %v46528_v50  ;;  %v28059_v42 = vsel %vm27899_vm2, %v27819_v35, %v27979_v13 }
 0xc3b   : > { %28808 = vmatpush1.bf16.msra.mxu1 %v45085_v59  ;;  %v45290_v54 = vpack.c.bf16 %v28059_v42, %v28039_v5  ;;  %v45294_v60 = vsel %vm27900_vm0, %v27820_v41, %v27980_v19  ;;  %v45572_v41 = vld [vmem:[%s46468_s2 + $0x88] sm:$0xff]  }
 0xc3c   : > { %28868 = vmatprep.subr.bf16.mxu1 %v45115_v61  ;;  %v28100_v10 = vpack.c.bf16 %v45294_v60, %v45292_v7 }
 0xc3e   : > { %36923 = vmatmul.mubr.msk.bf16.gmra.mrb[228].mxu1 %vm10658_vm6, %v45268_v58 }
 0xc3f   : > { %28731 = vmatprep.mubr.bf16.mxu1 %v46528_v50 }
 0xc41   : > { %36921 = vmatmul.mubr.msk.bf16.gmra.mrb[232].mxu0 %vm10658_vm6, %v40690_v62 }
 0xc42   : > { %28774 = vmatprep.mubr.bf16.mxu0 %v46528_v50 }
 0xc46   : > { %36924 = vmatmul.mubr.msk.bf16.gmra.mrb[232].mxu1 %vm10658_vm6, %v40690_v62 }
 0xc47   : > { %28837 = vmatprep.mubr.bf16.mxu1 %v46528_v50 }
 0xc49   : > { %36925 = vmatmul.mubr.msk.bf16.vlgmr.msra.gmra.mrb[236].mxu0 %vm10658_vm6, %v45228_v11 }
 0xc4a   : > { %29162 = vmatpush1.bf16.msra.mxu0 %v44973_v24  ;;  %28784 = vmatprep.mubr.bf16.mxu0 %v46528_v50  ;;  %v40691_v24 = vld [vmem:[%s46468_s2 + $0x30] sm:$0xff]  }
 0xc4b   : > { %29163 = vmatprep.subr.bf16.mxu0 %v45015_v3 }
 0xc4e   : > { %36928 = vmatmul.mubr.msk.bf16.vlgmr.msra.gmra.mrb[236].mxu1 %vm10658_vm6, %v45228_v11  ;;  %29164 = vmatpush1.bf16.msra.mxu0 %v45010_v34  ;;  %v40692_v34 = vld [vmem:[%s46468_s2 + $0x38] sm:$0xff]  }
 0xc4f   : > { %28869 = vmatpush1.bf16.msra.mxu1 %v45012_v51  ;;  %29287 = vmatprep.subr.bf16.mxu0 %v45053_v55 }
 0xc50   : > { %28870 = vmatprep.subr.bf16.mxu1 %v45163_v23  ;;  %28847 = vmatprep.mubr.bf16.mxu1 %v46528_v50 }
 0xc51   : > { %36926 = vmatmul.mubr.msk.bf16.gmra.mrb[240].mxu0 %vm10658_vm6, %v45268_v58 }
 0xc52   : > { %28794 = vmatprep.mubr.bf16.mxu0 %v46528_v50 }
 0xc53   : > { %28871 = vmatpush1.bf16.msra.mxu1 %v45049_v56 }
 0xc54   : > { %29224 = vmatprep.subr.bf16.mxu1 %v44939_v17 }
 0xc56   : > { %36929 = vmatmul.mubr.msk.bf16.gmra.mrb[240].mxu1 %vm10658_vm6, %v45268_v58 }
 0xc57   : > { %28857 = vmatprep.mubr.bf16.mxu1 %v46528_v50 }
 0xc59   : > { %36927 = vmatmul.mubr.msk.bf16.gmra.mrb[244].mxu0 %vm10658_vm6, %v40690_v62 }
 0xc5a   : > { %29193 = vmatprep.mubr.bf16.mxu0 %v46528_v50 }
 0xc5e   : > { %36930 = vmatmul.mubr.msk.bf16.gmra.mrb[244].mxu1 %vm10658_vm6, %v40690_v62 }
 0xc5f   : > { %28900 = vmatprep.mubr.bf16.mxu1 %v46528_v50 }
 0xc61   : > { %36943 = vmatmul.mubr.msk.bf16.vlgmr.msra.gmra.mrb[224].mxu0 %vm10658_vm6, %v40691_v24 }
 0xc62   : > { %29288 = vmatpush1.bf16.msra.mxu0 %v45043_v32  ;;  %29203 = vmatprep.mubr.bf16.mxu0 %v46528_v50 }
 0xc63   : > { %29289 = vmatprep.subr.bf16.mxu0 %v45085_v59 }
 0xc66   : > { %36931 = vmatmul.mubr.msk.bf16.vlgmr.msra.gmra.mrb[248].mxu1 %vm10658_vm6, %v45228_v11  ;;  %29290 = vmatpush1.bf16.msra.mxu0 %v45080_v8  ;;  %v40693_v11 = vld [vmem:[%s46468_s2 + $0x40] sm:$0xff]  }
 0xc67   : > { %29225 = vmatpush1.bf16.msra.mxu1 %v44936_v63  ;;  %29413 = vmatprep.subr.bf16.mxu0 %v45126_v45 }
 0xc68   : > { %29226 = vmatprep.subr.bf16.mxu1 %v44976_v27  ;;  %28910 = vmatprep.mubr.bf16.mxu1 %v46528_v50 }
 0xc69   : > { %36944 = vmatmul.mubr.msk.bf16.gmra.mrb[228].mxu0 %vm10658_vm6, %v40692_v34 }
 0xc6a   : > { %29213 = vmatprep.mubr.bf16.mxu0 %v46528_v50 }
 0xc6b   : > { %29227 = vmatpush1.bf16.msra.mxu1 %v44963_v53 }
 0xc6c   : > { %29350 = vmatprep.subr.bf16.mxu1 %v45012_v51 }
 0xc6e   : > { %36932 = vmatmul.mubr.msk.bf16.gmra.mrb[252].mxu1 %vm10658_vm6, %v45268_v58 }
 0xc6f   : > { %28920 = vmatprep.mubr.bf16.mxu1 %v46528_v50 }
 0xc71   : > { %36945 = vmatmul.mubr.msk.bf16.gmra.mrb[232].mxu0 %vm10658_vm6, %v40693_v11 }
 0xc72   : > { %29319 = vmatprep.mubr.bf16.mxu0 %v46528_v50 }
 0xc76   : > { %36933 = vmatmul.mubr.msk.bf16.gmra.mrb[0].mxu1 %vm10658_vm6, %v40690_v62 }
 0xc77   : > { %29256 = vmatprep.mubr.bf16.mxu1 %v46528_v50 }
 0xc79   : > { %36949 = vmatmul.mubr.msk.bf16.vlgmr.msra.gmra.mrb[236].mxu0 %vm10658_vm6, %v40691_v24 }
 0xc7a   : > { %29414 = vmatpush1.bf16.msra.mxu0 %v45115_v61  ;;  %29329 = vmatprep.mubr.bf16.mxu0 %v46528_v50 }
 0xc7b   : > { %29415 = vmatprep.subr.bf16.mxu0 %v45170_v9 }
 0xc7e   : > { %36946 = vmatmul.mubr.msk.bf16.vlgmr.msra.gmra.mrb[224].mxu1 %vm10658_vm6, %v40691_v24  ;;  %29416 = vmatpush1.bf16.msra.mxu0 %v45163_v23 }
 0xc7f   : > { %29351 = vmatpush1.bf16.msra.mxu1 %v45007_v15  ;;  %29706 = vmatprep.subr.bf16.mxu0 %v44936_v63 }
 0xc80   : > { %29352 = vmatprep.subr.bf16.mxu1 %v45049_v56  ;;  %29266 = vmatprep.mubr.bf16.mxu1 %v46528_v50 }
 0xc81   : > { %36950 = vmatmul.mubr.msk.bf16.gmra.mrb[240].mxu0 %vm10658_vm6, %v40692_v34 }
 0xc82   : > { %29339 = vmatprep.mubr.bf16.mxu0 %v46528_v50 }
 0xc83   : > { %29353 = vmatpush1.bf16.msra.mxu1 %v45037_v1 }
 0xc84   : > { %29769 = vmatprep.subr.bf16.mxu1 %v45043_v32 }
 0xc86   : > { %36947 = vmatmul.mubr.msk.bf16.gmra.mrb[228].mxu1 %vm10658_vm6, %v40692_v34 }
 0xc87   : > { %29276 = vmatprep.mubr.bf16.mxu1 %v46528_v50 }
 0xc89   : > { %36951 = vmatmul.mubr.msk.bf16.gmra.mrb[244].mxu0 %vm10658_vm6, %v40693_v11 }
 0xc8a   : > { %29445 = vmatprep.mubr.bf16.mxu0 %v46528_v50 }
 0xc8e   : > { %36948 = vmatmul.mubr.msk.bf16.gmra.mrb[232].mxu1 %vm10658_vm6, %v40693_v11 }
 0xc8f   : > { %29382 = vmatprep.mubr.bf16.mxu1 %v46528_v50 }
 0xc91   : > { %36955 = vmatmul.mubr.msk.bf16.vlgmr.msra.gmra.mrb[4].mxu0 %vm10658_vm6, %v40691_v24 }
 0xc92   : > { %29707 = vmatpush1.bf16.msra.mxu0 %v44987_v25  ;;  %29455 = vmatprep.mubr.bf16.mxu0 %v46528_v50  ;;  %v40694_v25 = vld [vmem:[%s46468_s2 + $0x48] sm:$0xff]  }
 0xc93   : > { %29708 = vmatprep.subr.bf16.mxu0 %v44963_v53 }
 0xc96   : > { %36952 = vmatmul.mubr.msk.bf16.vlgmr.msra.gmra.mrb[236].mxu1 %vm10658_vm6, %v40691_v24  ;;  %29709 = vmatpush1.bf16.msra.mxu0 %v45015_v3  ;;  %v40695_v3 = vld [vmem:[%s46468_s2 + $0x50] sm:$0xff]  }
 0xc97   : > { %29770 = vmatpush1.bf16.msra.mxu1 %v44939_v17  ;;  %29832 = vmatprep.subr.bf16.mxu0 %v45007_v15 }
 0xc98   : > { %29771 = vmatprep.subr.bf16.mxu1 %v45080_v8  ;;  %29392 = vmatprep.mubr.bf16.mxu1 %v46528_v50 }
 0xc99   : > { %36956 = vmatmul.mubr.msk.bf16.gmra.mrb[8].mxu0 %vm10658_vm6, %v40692_v34 }
 0xc9a   : > { %29465 = vmatprep.mubr.bf16.mxu0 %v46528_v50 }
 0xc9b   : > { %29772 = vmatpush1.bf16.msra.mxu1 %v44976_v27 }
 0xc9c   : > { %29895 = vmatprep.subr.bf16.mxu1 %v45115_v61 }
 0xc9e   : > { %36953 = vmatmul.mubr.msk.bf16.gmra.mrb[240].mxu1 %vm10658_vm6, %v40692_v34 }
 0xc9f   : > { %29402 = vmatprep.mubr.bf16.mxu1 %v46528_v50 }
 0xca1   : > { %36957 = vmatmul.mubr.msk.bf16.gmra.mrb[12].mxu0 %vm10658_vm6, %v40693_v11 }
 0xca2   : > { %29738 = vmatprep.mubr.bf16.mxu0 %v46528_v50 }
 0xca6   : > { %36954 = vmatmul.mubr.msk.bf16.gmra.mrb[244].mxu1 %vm10658_vm6, %v40693_v11 }
 0xca7   : > { %29801 = vmatprep.mubr.bf16.mxu1 %v46528_v50 }
 0xca9   : > { %36967 = vmatmul.mubr.msk.bf16.vlgmr.msra.gmra.mrb[224].mxu0 %vm10658_vm6, %v40694_v25 }
 0xcaa   : > { %29833 = vmatpush1.bf16.msra.mxu0 %v45053_v55  ;;  %29748 = vmatprep.mubr.bf16.mxu0 %v46528_v50 }
 0xcab   : > { %29834 = vmatprep.subr.bf16.mxu0 %v45037_v1 }
 0xcae   : > { %36970 = vmatmul.mubr.msk.bf16.vlgmr.msra.gmra.mrb[224].mxu1 %vm10658_vm6, %v40694_v25  ;;  %29835 = vmatpush1.bf16.msra.mxu0 %v45085_v59 }
 0xcaf   : > { %29896 = vmatpush1.bf16.msra.mxu1 %v45012_v51  ;;  %30251 = vmatprep.subr.bf16.mxu0 %v44939_v17 }
 0xcb0   : > { %29897 = vmatprep.subr.bf16.mxu1 %v45163_v23  ;;  %29811 = vmatprep.mubr.bf16.mxu1 %v46528_v50 }
 0xcb1   : > { %36968 = vmatmul.mubr.msk.bf16.gmra.mrb[228].mxu0 %vm10658_vm6, %v40695_v3 }
 0xcb2   : > { %29758 = vmatprep.mubr.bf16.mxu0 %v46528_v50 }
 0xcb3   : > { %29898 = vmatpush1.bf16.msra.mxu1 %v45049_v56 }
 0xcb4   : > { %29958 = vmatprep.subr.bf16.mxu1 %v45077_v21 }
 0xcb6   : > { %36971 = vmatmul.mubr.msk.bf16.gmra.mrb[228].mxu1 %vm10658_vm6, %v40695_v3 }
 0xcb7   : > { %29821 = vmatprep.mubr.bf16.mxu1 %v46528_v50 }
 0xcb9   : > { %36969 = vmatmul.mubr.msk.bf16.gmra.mrb[232].mxu0 %vm10658_vm6, %v40696_v22 }
 0xcba   : > { %29864 = vmatprep.mubr.bf16.mxu0 %v46528_v50 }
 0xcbe   : > { %36972 = vmatmul.mubr.msk.bf16.gmra.mrb[232].mxu1 %vm10658_vm6, %v40696_v22 }
 0xcbf   : > { %29927 = vmatprep.mubr.bf16.mxu1 %v46528_v50 }
 0xcc1   : > { %36973 = vmatmul.mubr.msk.bf16.vlgmr.msra.gmra.mrb[236].mxu0 %vm10658_vm6, %v40694_v25 }
 0xcc2   : > { %30252 = vmatpush1.bf16.msra.mxu0 %v44936_v63  ;;  %29874 = vmatprep.mubr.bf16.mxu0 %v46528_v50  ;;  %v40697_v63 = vld [vmem:[%s46468_s2 + $0x60] sm:$0xff]  }
 0xcc3   : > { %30253 = vmatprep.subr.bf16.mxu0 %v44976_v27 }
 0xcc6   : > { %36976 = vmatmul.mubr.msk.bf16.vlgmr.msra.gmra.mrb[236].mxu1 %vm10658_vm6, %v40694_v25  ;;  %30254 = vmatpush1.bf16.msra.mxu0 %v44963_v53  ;;  %v45463_v53 = vld [vmem:[%s46468_s2 + $0x68] sm:$0xff]  }
 0xcc7   : > { %29959 = vmatpush1.bf16.msra.mxu1 %v45126_v45  ;;  %30377 = vmatprep.subr.bf16.mxu0 %v45012_v51 }
 0xcc8   : > { %29960 = vmatprep.subr.bf16.mxu1 %v45110_v6  ;;  %29937 = vmatprep.mubr.bf16.mxu1 %v46528_v50 }
 0xcc9   : > { %36974 = vmatmul.mubr.msk.bf16.gmra.mrb[240].mxu0 %vm10658_vm6, %v40695_v3 }
 0xcca   : > { %29884 = vmatprep.mubr.bf16.mxu0 %v46528_v50 }
 0xccb   : > { %29961 = vmatpush1.bf16.msra.mxu1 %v45170_v9 }
 0xccc   : > { %30314 = vmatprep.subr.bf16.mxu1 %v45053_v55 }
 0xcce   : > { %36977 = vmatmul.mubr.msk.bf16.gmra.mrb[240].mxu1 %vm10658_vm6, %v40695_v3 }
 0xccf   : > { %29947 = vmatprep.mubr.bf16.mxu1 %v46528_v50 }
 0xcd1   : > { %36975 = vmatmul.mubr.msk.bf16.gmra.mrb[244].mxu0 %vm10658_vm6, %v40696_v22 }
 0xcd2   : > { %30283 = vmatprep.mubr.bf16.mxu0 %v46528_v50 }
 0xcd6   : > { %36978 = vmatmul.mubr.msk.bf16.gmra.mrb[244].mxu1 %vm10658_vm6, %v40696_v22 }
 0xcd7   : > { %29990 = vmatprep.mubr.bf16.mxu1 %v46528_v50 }
 0xcd9   : > { %36991 = vmatmul.mubr.msk.bf16.vlgmr.msra.gmra.mrb[224].mxu0 %vm10658_vm6, %v40697_v63 }
 0xcda   : > { %30378 = vmatpush1.bf16.msra.mxu0 %v45007_v15  ;;  %30293 = vmatprep.mubr.bf16.mxu0 %v46528_v50 }
 0xcdb   : > { %30379 = vmatprep.subr.bf16.mxu0 %v45049_v56 }
 0xcde   : > { %36979 = vmatmul.mubr.msk.bf16.vlgmr.msra.gmra.mrb[4].mxu1 %vm10658_vm6, %v40694_v25  ;;  %30380 = vmatpush1.bf16.msra.mxu0 %v45037_v1 }
 0xcdf   : > { %30315 = vmatpush1.bf16.msra.mxu1 %v45043_v32  ;;  %30503 = vmatprep.subr.bf16.mxu0 %v45082_v20 }
 0xce0   : > { %30316 = vmatprep.subr.bf16.mxu1 %v45085_v59  ;;  %30000 = vmatprep.mubr.bf16.mxu1 %v46528_v50 }
 0xce1   : > { %36992 = vmatmul.mubr.msk.bf16.gmra.mrb[228].mxu0 %vm10658_vm6, %v45463_v53 }
 0xce2   : > { %30303 = vmatprep.mubr.bf16.mxu0 %v46528_v50 }
 0xce3   : > { %30317 = vmatpush1.bf16.msra.mxu1 %v45080_v8 }
 0xce4   : > { %30440 = vmatprep.subr.bf16.mxu1 %v45126_v45 }
 0xce6   : > { %36980 = vmatmul.mubr.msk.bf16.gmra.mrb[8].mxu1 %vm10658_vm6, %v40695_v3 }
 0xce7   : > { %30010 = vmatprep.mubr.bf16.mxu1 %v46528_v50 }
 0xce9   : > { %36993 = vmatmul.mubr.msk.bf16.gmra.mrb[232].mxu0 %vm10658_vm6, %v40699_v4 }
 0xcea   : > { %30409 = vmatprep.mubr.bf16.mxu0 %v46528_v50 }
 0xcec   : > { %v45482_v30 = vpop.f32.mrb[248].mxu0 }
 0xced   : > { %v28479_v2 = vpop.f32.mrb[249].mxu0 }
 0xcee   : > { %36981 = vmatmul.mubr.msk.bf16.gmra.mrb[12].mxu1 %vm10658_vm6, %v40696_v22  ;;  %v45485_v37 = vpop.f32.mrb[250].mxu0 }
 0xcef   : > { %30346 = vmatprep.mubr.bf16.mxu1 %v46528_v50  ;;  %v28483_v31 = vpop.f32.mrb[251].mxu0 }
 0xcf0   : > { %v45628_v31 = vld [vmem:[%s46468_s2 + $0x98] sm:$0xff]  }
 0xcf1   : > { %36997 = vmatmul.mubr.msk.bf16.vlgmr.msra.gmra.mrb[236].mxu0 %vm10658_vm6, %v40697_v63 }
 0xcf2   : > { %30504 = vmatpush1.bf16.msra.mxu0 %v45077_v21  ;;  %30419 = vmatprep.mubr.bf16.mxu0 %v46528_v50 }
 0xcf3   : > { %30505 = vmatprep.subr.bf16.mxu0 %v45121_v0 }
 0xcf4   : > { %v45492_v52 = vpop.f32.mrb[252].mxu0 }
 0xcf5   : > { %v28489_v57 = vpop.f32.mrb[253].mxu0 }
 0xcf6   : > { %36994 = vmatmul.mubr.msk.bf16.vlgmr.msra.gmra.mrb[224].mxu1 %vm10658_vm6, %v40697_v63  ;;  %30506 = vmatpush1.bf16.msra.mxu0 %v45110_v6  ;;  %v45497_v12 = vpop.f32.mrb[254].mxu0 }
 0xcf7   : > { %30441 = vmatpush1.bf16.msra.mxu1 %v45115_v61  ;;  %30796 = vmatprep.subr.bf16.mxu0 %v45043_v32  ;;  %v28493_v58 = vpop.f32.mrb[255].mxu0 }
 0xcf8   : > { %30442 = vmatprep.subr.bf16.mxu1 %v45170_v9  ;;  %30356 = vmatprep.mubr.bf16.mxu1 %v46528_v50 }
 0xcf9   : > { %36998 = vmatmul.mubr.msk.bf16.gmra.mrb[240].mxu0 %vm10658_vm6, %v45463_v53 }
 0xcfa   : > { %30429 = vmatprep.mubr.bf16.mxu0 %v46528_v50 }
 0xcfb   : > { %30443 = vmatpush1.bf16.msra.mxu1 %v45163_v23 }
 0xcfc   : > { %30859 = vmatprep.subr.bf16.mxu1 %v45007_v15  ;;  %v45507_v49 = vpop.f32.mrb[0].mxu0 }
 0xcfd   : > { %v28499_v35 = vpop.f32.mrb[1].mxu0 }
 0xcfe   : > { %36995 = vmatmul.mubr.msk.bf16.gmra.mrb[228].mxu1 %vm10658_vm6, %v45463_v53  ;;  %v45511_v43 = vpop.f32.mrb[2].mxu0 }
 0xcff   : > { %30366 = vmatprep.mubr.bf16.mxu1 %v46528_v50  ;;  %v28503_v28 = vpop.f32.mrb[3].mxu0 }
 0xd01   : > { %36999 = vmatmul.mubr.msk.bf16.gmra.mrb[244].mxu0 %vm10658_vm6, %v40699_v4 }
 0xd02   : > { %30535 = vmatprep.mubr.bf16.mxu0 %v46528_v50 }
 0xd06   : > { %36996 = vmatmul.mubr.msk.bf16.gmra.mrb[232].mxu1 %vm10658_vm6, %v40699_v4 }
 0xd07   : > { %30472 = vmatprep.mubr.bf16.mxu1 %v46528_v50 }
 0xd09   : > { %37003 = vmatmul.mubr.msk.bf16.vlgmr.msra.gmra.mrb[16].mxu0 %vm10658_vm6, %v40697_v63 }
 0xd0a   : > { %30797 = vmatpush1.bf16.msra.mxu0 %v44939_v17  ;;  %30545 = vmatprep.mubr.bf16.mxu0 %v46528_v50  ;;  %v45542_v17 = vld [vmem:[%s46468_s2 + $0x78] sm:$0xff]  }
 0xd0b   : > { %30798 = vmatprep.subr.bf16.mxu0 %v45080_v8 }
 0xd0e   : > { %37000 = vmatmul.mubr.msk.bf16.vlgmr.msra.gmra.mrb[236].mxu1 %vm10658_vm6, %v40697_v63  ;;  %30799 = vmatpush1.bf16.msra.mxu0 %v44976_v27  ;;  %v45555_v27 = vld [vmem:[%s46468_s2 + $0x80] sm:$0xff]  }
 0xd0f   : > { %30860 = vmatpush1.bf16.msra.mxu1 %v45053_v55  ;;  %30922 = vmatprep.subr.bf16.mxu0 %v45115_v61 }
 0xd10   : > { %30861 = vmatprep.subr.bf16.mxu1 %v45037_v1  ;;  %30482 = vmatprep.mubr.bf16.mxu1 %v46528_v50 }
 0xd11   : > { %37004 = vmatmul.mubr.msk.bf16.gmra.mrb[20].mxu0 %vm10658_vm6, %v45463_v53 }
 0xd12   : > { %30555 = vmatprep.mubr.bf16.mxu0 %v46528_v50 }
 0xd13   : > { %30862 = vmatpush1.bf16.msra.mxu1 %v45085_v59 }
 0xd14   : > { %30985 = vmatprep.subr.bf16.mxu1 %v45077_v21 }
 0xd16   : > { %37001 = vmatmul.mubr.msk.bf16.gmra.mrb[240].mxu1 %vm10658_vm6, %v45463_v53 }
 0xd17   : > { %30492 = vmatprep.mubr.bf16.mxu1 %v46528_v50 }
 0xd19   : > { %37005 = vmatmul.mubr.msk.bf16.gmra.mrb[24].mxu0 %vm10658_vm6, %v40699_v4 }
 0xd1a   : > { %30828 = vmatprep.mubr.bf16.mxu0 %v46528_v50 }
 0xd1e   : > { %37002 = vmatmul.mubr.msk.bf16.gmra.mrb[244].mxu1 %vm10658_vm6, %v40699_v4 }
 0xd1f   : > { %30891 = vmatprep.mubr.bf16.mxu1 %v46528_v50 }
 0xd21   : > { %37015 = vmatmul.mubr.msk.bf16.vlgmr.msra.gmra.mrb[224].mxu0 %vm10658_vm6, %v45542_v17 }
 0xd22   : > { %30923 = vmatpush1.bf16.msra.mxu0 %v45012_v51  ;;  %30838 = vmatprep.mubr.bf16.mxu0 %v46528_v50 }
 0xd23   : > { %30924 = vmatprep.subr.bf16.mxu0 %v45163_v23 }
 0xd26   : > { %37018 = vmatmul.mubr.msk.bf16.vlgmr.msra.gmra.mrb[224].mxu1 %vm10658_vm6, %v45542_v17  ;;  %30925 = vmatpush1.bf16.msra.mxu0 %v45049_v56 }
 0xd27   : > { %30986 = vmatpush1.bf16.msra.mxu1 %v45126_v45  ;;  %31341 = vmatprep.subr.bf16.mxu0 %v45053_v55 }
 0xd28   : > { %30987 = vmatprep.subr.bf16.mxu1 %v45110_v6  ;;  %30901 = vmatprep.mubr.bf16.mxu1 %v46528_v50 }
 0xd29   : > { %37016 = vmatmul.mubr.msk.bf16.gmra.mrb[228].mxu0 %vm10658_vm6, %v45555_v27 }
 0xd2a   : > { %30848 = vmatprep.mubr.bf16.mxu0 %v46528_v50 }
 0xd2b   : > { %30988 = vmatpush1.bf16.msra.mxu1 %v45170_v9 }
 0xd2c   : > { %31048 = vmatprep.subr.bf16.mxu1 %v45198_v44 }
 0xd2e   : > { %37019 = vmatmul.mubr.msk.bf16.gmra.mrb[228].mxu1 %vm10658_vm6, %v45555_v27 }
 0xd2f   : > { %30911 = vmatprep.mubr.bf16.mxu1 %v46528_v50 }
 0xd31   : > { %37017 = vmatmul.mubr.msk.bf16.gmra.mrb[232].mxu0 %vm10658_vm6, %v45572_v41 }
 0xd32   : > { %30954 = vmatprep.mubr.bf16.mxu0 %v46528_v50 }
 0xd36   : > { %37020 = vmatmul.mubr.msk.bf16.gmra.mrb[232].mxu1 %vm10658_vm6, %v45572_v41 }
 0xd37   : > { %31017 = vmatprep.mubr.bf16.mxu1 %v46528_v50 }
 0xd39   : > { %v28902_v13 = vpop.f32.mrb[248].mxu1  ;;  %37021 = vmatmul.mubr.msk.bf16.vlgmr.msra.gmra.mrb[236].mxu0 %vm10658_vm6, %v45542_v17 }
 0xd3a   : > { %v28999_v19 = vadd.f32 %v28902_v13, %v45482_v30  ;;  %v28904_v5 = vpop.f32.mrb[249].mxu1  ;;  %31342 = vmatpush1.bf16.msra.mxu0 %v45043_v32  ;;  %30964 = vmatprep.mubr.bf16.mxu0 %v46528_v50 }
 0xd3b   : > { %v28906_v42 = vpop.f32.mrb[250].mxu1  ;;  %31343 = vmatprep.subr.bf16.mxu0 %v45085_v59 }
 0xd3c   : > { %v29009_v62 = vadd.f32 %v28906_v42, %v45485_v37  ;;  %v28908_v24 = vpop.f32.mrb[251].mxu1  ;;  %v45615_v37 = vld [vmem:[%s46468_s2 + $0x90] sm:$0xff]  }
 0xd3e   : > { %37024 = vmatmul.mubr.msk.bf16.vlgmr.msra.gmra.mrb[236].mxu1 %vm10658_vm6, %v45542_v17  ;;  %31344 = vmatpush1.bf16.msra.mxu0 %v45080_v8 }
 0xd3f   : > { %31049 = vmatpush1.bf16.msra.mxu1 %v45082_v20  ;;  %31467 = vmatprep.subr.bf16.mxu0 %v45126_v45 }
 0xd40   : > { %31050 = vmatprep.subr.bf16.mxu1 %v45239_v40  ;;  %31027 = vmatprep.mubr.bf16.mxu1 %v46528_v50 }
 0xd41   : > { %v28912_v34 = vpop.f32.mrb[252].mxu1  ;;  %37022 = vmatmul.mubr.msk.bf16.gmra.mrb[240].mxu0 %vm10658_vm6, %v45555_v27 }
 0xd42   : > { %v29019_v32 = vadd.f32 %v28912_v34, %v45492_v52  ;;  %v28914_v11 = vpop.f32.mrb[253].mxu1  ;;  %30974 = vmatprep.mubr.bf16.mxu0 %v46528_v50  ;;  %v40705_v52 = vld [vmem:[%s46468_s2 + $0xa0] sm:$0xff]  }
 0xd43   : > { %31051 = vmatpush1.bf16.msra.mxu1 %v45121_v0  ;;  %v28916_v25 = vpop.f32.mrb[254].mxu1  ;;  %v45743_v11 = vld [vmem:[%s46468_s2 + $0xb8] sm:$0xff]  }
 0xd44   : > { %v29029_v8 = vadd.f32 %v28916_v25, %v45497_v12  ;;  %31404 = vmatprep.subr.bf16.mxu1 %v45012_v51  ;;  %v28918_v3 = vpop.f32.mrb[255].mxu1 }
 0xd46   : > { %37025 = vmatmul.mubr.msk.bf16.gmra.mrb[240].mxu1 %vm10658_vm6, %v45555_v27 }
 0xd47   : > { %31037 = vmatprep.mubr.bf16.mxu1 %v46528_v50 }
 0xd49   : > { %v28922_v22 = vpop.f32.mrb[0].mxu1  ;;  %37023 = vmatmul.mubr.msk.bf16.gmra.mrb[244].mxu0 %vm10658_vm6, %v45572_v41 }
 0xd4a   : > { %v29039_v63 = vadd.f32 %v28922_v22, %v45507_v49  ;;  %v28924_v53 = vpop.f32.mrb[1].mxu1  ;;  %31373 = vmatprep.mubr.bf16.mxu0 %v46528_v50 }
 0xd4b   : > { %v28926_v4 = vpop.f32.mrb[2].mxu1 }
 0xd4c   : > { %v29049_v30 = vadd.f32 %v28926_v4, %v45511_v43  ;;  %v28928_v2 = vpop.f32.mrb[3].mxu1 }
 0xd4e   : > { %37026 = vmatmul.mubr.msk.bf16.gmra.mrb[244].mxu1 %vm10658_vm6, %v45572_v41 }
 0xd4f   : > { %31080 = vmatprep.mubr.bf16.mxu1 %v46528_v50 }
 0xd51   : > { %37039 = vmatmul.mubr.msk.bf16.vlgmr.msra.gmra.mrb[224].mxu0 %vm10658_vm6, %v45615_v37 }
 0xd52   : > { %31468 = vmatpush1.bf16.msra.mxu0 %v45115_v61  ;;  %31383 = vmatprep.mubr.bf16.mxu0 %v46528_v50 }
 0xd53   : > { %31469 = vmatprep.subr.bf16.mxu0 %v45170_v9 }
 0xd56   : > { %37027 = vmatmul.mubr.msk.bf16.vlgmr.msra.gmra.mrb[16].mxu1 %vm10658_vm6, %v45542_v17  ;;  %31470 = vmatpush1.bf16.msra.mxu0 %v45163_v23 }
 0xd57   : > { %31405 = vmatpush1.bf16.msra.mxu1 %v45007_v15  ;;  %31593 = vmatprep.subr.bf16.mxu0 %v45212_v48 }
 0xd58   : > { %31406 = vmatprep.subr.bf16.mxu1 %v45049_v56  ;;  %31090 = vmatprep.mubr.bf16.mxu1 %v46528_v50 }
 0xd59   : > { %37040 = vmatmul.mubr.msk.bf16.gmra.mrb[228].mxu0 %vm10658_vm6, %v45628_v31 }
 0xd5a   : > { %31393 = vmatprep.mubr.bf16.mxu0 %v46528_v50 }
 0xd5b   : > { %31407 = vmatpush1.bf16.msra.mxu1 %v45037_v1 }
 0xd5c   : > { %31530 = vmatprep.subr.bf16.mxu1 %v45082_v20 }
 0xd5e   : > { %37028 = vmatmul.mubr.msk.bf16.gmra.mrb[20].mxu1 %vm10658_vm6, %v45555_v27 }
 0xd5f   : > { %31100 = vmatprep.mubr.bf16.mxu1 %v46528_v50 }
 0xd61   : > { %37041 = vmatmul.mubr.msk.bf16.gmra.mrb[232].mxu0 %vm10658_vm6, %v40705_v52 }
 0xd62   : > { %31499 = vmatprep.mubr.bf16.mxu0 %v46528_v50 }
 0xd64   : > { %v29447_v57 = vpop.f32.mrb[4].mxu0 }
 0xd65   : > { %v45650_v12 = vadd.f32 %v29447_v57, %v28999_v19  ;;  %v29449_v58 = vpop.f32.mrb[5].mxu0 }
 0xd66   : > { %37029 = vmatmul.mubr.msk.bf16.gmra.mrb[24].mxu1 %vm10658_vm6, %v45572_v41  ;;  %v29451_v49 = vpop.f32.mrb[6].mxu0 }
 0xd67   : > { %31436 = vmatprep.mubr.bf16.mxu1 %v46528_v50  ;;  %v45653_v35 = vadd.f32 %v29451_v49, %v29009_v62  ;;  %v29453_v43 = vpop.f32.mrb[7].mxu0 }
 0xd68   : > { %v45799_v43 = vld [vmem:[%s46468_s2 + $0xc8] sm:$0xff]  }
 0xd69   : > { %37045 = vmatmul.mubr.msk.bf16.vlgmr.msra.gmra.mrb[236].mxu0 %vm10658_vm6, %v45615_v37 }
 0xd6a   : > { %31594 = vmatpush1.bf16.msra.mxu0 %v45198_v44  ;;  %31509 = vmatprep.mubr.bf16.mxu0 %v46528_v50 }
 0xd6b   : > { %31595 = vmatprep.subr.bf16.mxu0 %v45241_v14 }
 0xd6c   : > { %v29457_v28 = vpop.f32.mrb[8].mxu0 }
 0xd6d   : > { %v45662_v17 = vadd.f32 %v29457_v28, %v29019_v32  ;;  %v29459_v27 = vpop.f32.mrb[9].mxu0  ;;  %v40711_v28 = vld [vmem:[%s46468_s2 + $0xd0] sm:$0xff]  }
 0xd6e   : > { %37042 = vmatmul.mubr.msk.bf16.vlgmr.msra.gmra.mrb[224].mxu1 %vm10658_vm6, %v45615_v37  ;;  %31596 = vmatpush1.bf16.msra.mxu0 %v45239_v40  ;;  %v29461_v41 = vpop.f32.mrb[10].mxu0 }
 0xd6f   : > { %31531 = vmatpush1.bf16.msra.mxu1 %v45077_v21  ;;  %v45667_v13 = vadd.f32 %v29461_v41, %v29029_v8  ;;  %31886 = vmatprep.subr.bf16.mxu0 %v45007_v15  ;;  %v29463_v19 = vpop.f32.mrb[11].mxu0 }
 0xd70   : > { %31532 = vmatprep.subr.bf16.mxu1 %v45121_v0  ;;  %31446 = vmatprep.mubr.bf16.mxu1 %v46528_v50 }
 0xd71   : > { %37046 = vmatmul.mubr.msk.bf16.gmra.mrb[240].mxu0 %vm10658_vm6, %v45628_v31 }
 0xd72   : > { %31519 = vmatprep.mubr.bf16.mxu0 %v46528_v50 }
 0xd73   : > { %31533 = vmatpush1.bf16.msra.mxu1 %v45110_v6 }
 0xd74   : > { %31949 = vmatprep.subr.bf16.mxu1 %v45115_v61  ;;  %v29467_v5 = vpop.f32.mrb[12].mxu0 }
 0xd75   : > { %v45678_v42 = vadd.f32 %v29467_v5, %v29039_v63  ;;  %v29469_v62 = vpop.f32.mrb[13].mxu0 }
 0xd76   : > { %37043 = vmatmul.mubr.msk.bf16.gmra.mrb[228].mxu1 %vm10658_vm6, %v45628_v31  ;;  %v29471_v24 = vpop.f32.mrb[14].mxu0 }
 0xd77   : > { %31456 = vmatprep.mubr.bf16.mxu1 %v46528_v50  ;;  %v45681_v34 = vadd.f32 %v29471_v24, %v29049_v30  ;;  %v29473_v32 = vpop.f32.mrb[15].mxu0 }
 0xd79   : > { %37047 = vmatmul.mubr.msk.bf16.gmra.mrb[244].mxu0 %vm10658_vm6, %v40705_v52 }
 0xd7a   : > { %31625 = vmatprep.mubr.bf16.mxu0 %v46528_v50 }
 0xd7e   : > { %37044 = vmatmul.mubr.msk.bf16.gmra.mrb[232].mxu1 %vm10658_vm6, %v40705_v52 }
 0xd7f   : > { %31562 = vmatprep.mubr.bf16.mxu1 %v46528_v50 }
 0xd81   : > { %37051 = vmatmul.mubr.msk.bf16.vlgmr.msra.gmra.mrb[28].mxu0 %vm10658_vm6, %v45615_v37 }
 0xd82   : > { %31887 = vmatpush1.bf16.msra.mxu0 %v45053_v55  ;;  %31635 = vmatprep.mubr.bf16.mxu0 %v46528_v50  ;;  %v45726_v55 = vld [vmem:[%s46468_s2 + $0xb0] sm:$0xff]  }
 0xd83   : > { %31888 = vmatprep.subr.bf16.mxu0 %v45037_v1 }
 0xd86   : > { %37048 = vmatmul.mubr.msk.bf16.vlgmr.msra.gmra.mrb[236].mxu1 %vm10658_vm6, %v45615_v37  ;;  %31889 = vmatpush1.bf16.msra.mxu0 %v45085_v59  ;;  %v45713_v59 = vld [vmem:[%s46468_s2 + $0xa8] sm:$0xff]  }
 0xd87   : > { %31950 = vmatpush1.bf16.msra.mxu1 %v45012_v51  ;;  %32012 = vmatprep.subr.bf16.mxu0 %v45077_v21 }
 0xd88   : > { %31951 = vmatprep.subr.bf16.mxu1 %v45163_v23  ;;  %31572 = vmatprep.mubr.bf16.mxu1 %v46528_v50 }
 0xd89   : > { %37052 = vmatmul.mubr.msk.bf16.gmra.mrb[32].mxu0 %vm10658_vm6, %v45628_v31 }
 0xd8a   : > { %31645 = vmatprep.mubr.bf16.mxu0 %v46528_v50 }
 0xd8b   : > { %31952 = vmatpush1.bf16.msra.mxu1 %v45049_v56 }
 0xd8c   : > { %32075 = vmatprep.subr.bf16.mxu1 %v45198_v44 }
 0xd8e   : > { %37049 = vmatmul.mubr.msk.bf16.gmra.mrb[240].mxu1 %vm10658_vm6, %v45628_v31 }
 0xd8f   : > { %31582 = vmatprep.mubr.bf16.mxu1 %v46528_v50 }
 0xd91   : > { %37053 = vmatmul.mubr.msk.bf16.gmra.mrb[36].mxu0 %vm10658_vm6, %v40705_v52 }
 0xd92   : > { %31918 = vmatprep.mubr.bf16.mxu0 %v46528_v50 }
 0xd96   : > { %37050 = vmatmul.mubr.msk.bf16.gmra.mrb[244].mxu1 %vm10658_vm6, %v40705_v52 }
 0xd97   : > { %31981 = vmatprep.mubr.bf16.mxu1 %v46528_v50 }
 0xd99   : > { %37063 = vmatmul.mubr.msk.bf16.vlgmr.msra.gmra.mrb[224].mxu0 %vm10658_vm6, %v45713_v59 }
 0xd9a   : > { %32013 = vmatpush1.bf16.msra.mxu0 %v45126_v45  ;;  %31928 = vmatprep.mubr.bf16.mxu0 %v46528_v50 }
 0xd9b   : > { %32014 = vmatprep.subr.bf16.mxu0 %v45110_v6 }
 0xd9e   : > { %37066 = vmatmul.mubr.msk.bf16.vlgmr.msra.gmra.mrb[224].mxu1 %vm10658_vm6, %v45713_v59  ;;  %32015 = vmatpush1.bf16.msra.mxu0 %v45170_v9 }
 0xd9f   : > { %32076 = vmatpush1.bf16.msra.mxu1 %v45082_v20  ;;  %32431 = vmatprep.subr.bf16.mxu0 %v45012_v51 }
 0xda0   : > { %32077 = vmatprep.subr.bf16.mxu1 %v45239_v40  ;;  %31991 = vmatprep.mubr.bf16.mxu1 %v46528_v50 }
 0xda1   : > { %37064 = vmatmul.mubr.msk.bf16.gmra.mrb[228].mxu0 %vm10658_vm6, %v45726_v55 }
 0xda2   : > { %31938 = vmatprep.mubr.bf16.mxu0 %v46528_v50 }
 0xda3   : > { %32078 = vmatpush1.bf16.msra.mxu1 %v45121_v0 }
 0xda4   : > { %32138 = vmatprep.subr.bf16.mxu1 %v45155_v47 }
 0xda6   : > { %37067 = vmatmul.mubr.msk.bf16.gmra.mrb[228].mxu1 %vm10658_vm6, %v45726_v55 }
 0xda7   : > { %32001 = vmatprep.mubr.bf16.mxu1 %v46528_v50 }
 0xda9   : > { %37065 = vmatmul.mubr.msk.bf16.gmra.mrb[232].mxu0 %vm10658_vm6, %v45743_v11 }
 0xdaa   : > { %32044 = vmatprep.mubr.bf16.mxu0 %v46528_v50 }
 0xdae   : > { %37068 = vmatmul.mubr.msk.bf16.gmra.mrb[232].mxu1 %vm10658_vm6, %v45743_v11 }
 0xdaf   : > { %32107 = vmatprep.mubr.bf16.mxu1 %v46528_v50 }
 0xdb1   : > { %v29992_v25 = vpop.f32.mrb[4].mxu1  ;;  %37069 = vmatmul.mubr.msk.bf16.vlgmr.msra.gmra.mrb[236].mxu0 %vm10658_vm6, %v45713_v59 }
 0xdb2   : > { %v30089_v8 = vadd.f32 %v29992_v25, %v45650_v12  ;;  %v29994_v3 = vpop.f32.mrb[5].mxu1  ;;  %32432 = vmatpush1.bf16.msra.mxu0 %v45007_v15  ;;  %32054 = vmatprep.mubr.bf16.mxu0 %v46528_v50 }
 0xdb3   : > { %v29996_v22 = vpop.f32.mrb[6].mxu1  ;;  %32433 = vmatprep.subr.bf16.mxu0 %v45049_v56 }
 0xdb4   : > { %v30099_v63 = vadd.f32 %v29996_v22, %v45653_v35  ;;  %v29998_v53 = vpop.f32.mrb[7].mxu1  ;;  %v45786_v35 = vld [vmem:[%s46468_s2 + $0xc0] sm:$0xff]  }
 0xdb6   : > { %37072 = vmatmul.mubr.msk.bf16.vlgmr.msra.gmra.mrb[236].mxu1 %vm10658_vm6, %v45713_v59  ;;  %32434 = vmatpush1.bf16.msra.mxu0 %v45037_v1 }
 0xdb7   : > { %32139 = vmatpush1.bf16.msra.mxu1 %v45212_v48  ;;  %32557 = vmatprep.subr.bf16.mxu0 %v45082_v20 }
 0xdb8   : > { %32140 = vmatprep.subr.bf16.mxu1 %v45196_v16  ;;  %32117 = vmatprep.mubr.bf16.mxu1 %v46528_v50 }
 0xdb9   : > { %v30002_v4 = vpop.f32.mrb[8].mxu1  ;;  %37070 = vmatmul.mubr.msk.bf16.gmra.mrb[240].mxu0 %vm10658_vm6, %v45726_v55 }
 0xdba   : > { %v30109_v15 = vadd.f32 %v30002_v4, %v45662_v17  ;;  %v30004_v30 = vpop.f32.mrb[9].mxu1  ;;  %32064 = vmatprep.mubr.bf16.mxu0 %v46528_v50 }
 0xdbb   : > { %32141 = vmatpush1.bf16.msra.mxu1 %v45241_v14  ;;  %v30006_v2 = vpop.f32.mrb[10].mxu1 }
 0xdbc   : > { %v30119_v1 = vadd.f32 %v30006_v2, %v45667_v13  ;;  %32494 = vmatprep.subr.bf16.mxu1 %v45126_v45  ;;  %v30008_v37 = vpop.f32.mrb[11].mxu1 }
 0xdbe   : > { %37073 = vmatmul.mubr.msk.bf16.gmra.mrb[240].mxu1 %vm10658_vm6, %v45726_v55 }
 0xdbf   : > { %32127 = vmatprep.mubr.bf16.mxu1 %v46528_v50 }
 0xdc1   : > { %v30012_v31 = vpop.f32.mrb[12].mxu1  ;;  %37071 = vmatmul.mubr.msk.bf16.gmra.mrb[244].mxu0 %vm10658_vm6, %v45743_v11 }
 0xdc2   : > { %v30129_v52 = vadd.f32 %v30012_v31, %v45678_v42  ;;  %v30014_v57 = vpop.f32.mrb[13].mxu1  ;;  %32463 = vmatprep.mubr.bf16.mxu0 %v46528_v50 }
 0xdc3   : > { %v30016_v12 = vpop.f32.mrb[14].mxu1 }
 0xdc4   : > { %v30139_v58 = vadd.f32 %v30016_v12, %v45681_v34  ;;  %v30018_v49 = vpop.f32.mrb[15].mxu1 }
 0xdc6   : > { %37074 = vmatmul.mubr.msk.bf16.gmra.mrb[244].mxu1 %vm10658_vm6, %v45743_v11 }
 0xdc7   : > { %32170 = vmatprep.mubr.bf16.mxu1 %v46528_v50 }
 0xdc9   : > { %37087 = vmatmul.mubr.msk.bf16.vlgmr.msra.gmra.mrb[224].mxu0 %vm10658_vm6, %v45786_v35 }
 0xdca   : > { %32558 = vmatpush1.bf16.msra.mxu0 %v45077_v21  ;;  %32473 = vmatprep.mubr.bf16.mxu0 %v46528_v50 }
 0xdcb   : > { %32559 = vmatprep.subr.bf16.mxu0 %v45121_v0 }
 0xdce   : > { %37075 = vmatmul.mubr.msk.bf16.vlgmr.msra.gmra.mrb[28].mxu1 %vm10658_vm6, %v45713_v59  ;;  %32560 = vmatpush1.bf16.msra.mxu0 %v45110_v6 }
 0xdcf   : > { %32495 = vmatpush1.bf16.msra.mxu1 %v45115_v61  ;;  %32683 = vmatprep.subr.bf16.mxu0 %v45230_v26 }
 0xdd0   : > { %32496 = vmatprep.subr.bf16.mxu1 %v45170_v9  ;;  %32180 = vmatprep.mubr.bf16.mxu1 %v46528_v50 }
 0xdd1   : > { %37088 = vmatmul.mubr.msk.bf16.gmra.mrb[228].mxu0 %vm10658_vm6, %v45799_v43 }
 0xdd2   : > { %32483 = vmatprep.mubr.bf16.mxu0 %v46528_v50 }
 0xdd3   : > { %32497 = vmatpush1.bf16.msra.mxu1 %v45163_v23 }
 0xdd4   : > { %32620 = vmatprep.subr.bf16.mxu1 %v45212_v48 }
 0xdd6   : > { %37076 = vmatmul.mubr.msk.bf16.gmra.mrb[32].mxu1 %vm10658_vm6, %v45726_v55 }
 0xdd7   : > { %32190 = vmatprep.mubr.bf16.mxu1 %v46528_v50 }
 0xdd9   : > { %37089 = vmatmul.mubr.msk.bf16.gmra.mrb[232].mxu0 %vm10658_vm6, %v40711_v28 }
 0xdda   : > { %32589 = vmatprep.mubr.bf16.mxu0 %v46528_v50 }
 0xddc   : > { %v30537_v17 = vpop.f32.mrb[16].mxu0 }
 0xddd   : > { %v45821_v27 = vadd.f32 %v30537_v17, %v30089_v8  ;;  %v30539_v41 = vpop.f32.mrb[17].mxu0  ;;  %v46564_v17 = vmov 0.0  }
 0xdde   : > { %37077 = vmatmul.mubr.msk.bf16.gmra.mrb[36].mxu1 %vm10658_vm6, %v45743_v11  ;;  %v30541_v13 = vpop.f32.mrb[18].mxu0 }
 0xddf   : > { %32526 = vmatprep.mubr.bf16.mxu1 %v46528_v50  ;;  %v45824_v19 = vadd.f32 %v30541_v13, %v30099_v63  ;;  %v30543_v5 = vpop.f32.mrb[19].mxu0  ;;  %v45914_v63 = vld [vmem:[%s46468_s2 + $0xe8] sm:$0xff]  }
 0xde1   : > { %37093 = vmatmul.mubr.msk.bf16.vlgmr.msra.gmra.mrb[236].mxu0 %vm10658_vm6, %v45786_v35 }
 0xde2   : > { %32684 = vmatpush1.bf16.msra.mxu0 %v45155_v47  ;;  %32599 = vmatprep.mubr.bf16.mxu0 %v46528_v50 }
 0xde3   : > { %32685 = vmatprep.subr.bf16.mxu0 %v45247_v39 }
 0xde4   : > { %v30547_v42 = vpop.f32.mrb[20].mxu0 }
 0xde5   : > { %v45833_v62 = vadd.f32 %v30547_v42, %v30109_v15  ;;  %v30549_v24 = vpop.f32.mrb[21].mxu0 }
 0xde6   : > { %37090 = vmatmul.mubr.msk.bf16.vlgmr.msra.gmra.mrb[224].mxu1 %vm10658_vm6, %v45786_v35  ;;  %32686 = vmatpush1.bf16.msra.mxu0 %v45196_v16  ;;  %v30551_v34 = vpop.f32.mrb[22].mxu0 }
 0xde7   : > { %32621 = vmatpush1.bf16.msra.mxu1 %v45198_v44  ;;  %v45838_v32 = vadd.f32 %v30551_v34, %v30119_v1  ;;  %32976 = vmatprep.subr.bf16.mxu0 %v45115_v61  ;;  %v30553_v59 = vpop.f32.mrb[23].mxu0 }
 0xde8   : > { %32622 = vmatprep.subr.bf16.mxu1 %v45241_v14  ;;  %32536 = vmatprep.mubr.bf16.mxu1 %v46528_v50 }
 0xde9   : > { %37094 = vmatmul.mubr.msk.bf16.gmra.mrb[240].mxu0 %vm10658_vm6, %v45799_v43 }
 0xdea   : > { %32609 = vmatprep.mubr.bf16.mxu0 %v46528_v50 }
 0xdeb   : > { %32623 = vmatpush1.bf16.msra.mxu1 %v45239_v40 }
 0xdec   : > { %33039 = vmatprep.subr.bf16.mxu1 %v45077_v21  ;;  %v30557_v55 = vpop.f32.mrb[24].mxu0 }
 0xded   : > { %v45849_v11 = vadd.f32 %v30557_v55, %v30129_v52  ;;  %v30559_v25 = vpop.f32.mrb[25].mxu0 }
 0xdee   : > { %37091 = vmatmul.mubr.msk.bf16.gmra.mrb[228].mxu1 %vm10658_vm6, %v45799_v43  ;;  %v30561_v8 = vpop.f32.mrb[26].mxu0 }
 0xdef   : > { %32546 = vmatprep.mubr.bf16.mxu1 %v46528_v50  ;;  %v45852_v3 = vadd.f32 %v30561_v8, %v30139_v58  ;;  %v30563_v22 = vpop.f32.mrb[27].mxu0 }
 0xdf1   : > { %37095 = vmatmul.mubr.msk.bf16.gmra.mrb[244].mxu0 %vm10658_vm6, %v40711_v28 }
 0xdf2   : > { %32715 = vmatprep.mubr.bf16.mxu0 %v46528_v50 }
 0xdf6   : > { %37092 = vmatmul.mubr.msk.bf16.gmra.mrb[232].mxu1 %vm10658_vm6, %v40711_v28 }
 0xdf7   : > { %32652 = vmatprep.mubr.bf16.mxu1 %v46528_v50 }
 0xdf9   : > { %37099 = vmatmul.mubr.msk.bf16.vlgmr.msra.gmra.mrb[64].mxu0 %vm10658_vm6, %v45786_v35 }
 0xdfa   : > { %32977 = vmatpush1.bf16.msra.mxu0 %v45012_v51  ;;  %32725 = vmatprep.mubr.bf16.mxu0 %v46528_v50  ;;  %v45884_v51 = vld [vmem:[%s46468_s2 + $0xd8] sm:$0xff]  }
 0xdfb   : > { %32978 = vmatprep.subr.bf16.mxu0 %v45163_v23 }
 0xdfe   : > { %37096 = vmatmul.mubr.msk.bf16.vlgmr.msra.gmra.mrb[236].mxu1 %vm10658_vm6, %v45786_v35  ;;  %32979 = vmatpush1.bf16.msra.mxu0 %v45049_v56  ;;  %v45897_v56 = vld [vmem:[%s46468_s2 + $0xe0] sm:$0xff]   ;;  %v40716_v35 = vld [vmem:[%s46468_s2 + $0xf8] sm:$0xff]  }
 0xdff   : > { %33040 = vmatpush1.bf16.msra.mxu1 %v45126_v45  ;;  %33102 = vmatprep.subr.bf16.mxu0 %v45198_v44 }
 0xe00   : > { %33041 = vmatprep.subr.bf16.mxu1 %v45110_v6  ;;  %32662 = vmatprep.mubr.bf16.mxu1 %v46528_v50 }
 0xe01   : > { %37100 = vmatmul.mubr.msk.bf16.gmra.mrb[68].mxu0 %vm10658_vm6, %v45799_v43 }
 0xe02   : > { %32735 = vmatprep.mubr.bf16.mxu0 %v46528_v50 }
 0xe03   : > { %33042 = vmatpush1.bf16.msra.mxu1 %v45170_v9 }
 0xe04   : > { %33165 = vmatprep.subr.bf16.mxu1 %v45155_v47 }
 0xe06   : > { %37097 = vmatmul.mubr.msk.bf16.gmra.mrb[240].mxu1 %vm10658_vm6, %v45799_v43 }
 0xe07   : > { %32672 = vmatprep.mubr.bf16.mxu1 %v46528_v50 }
 0xe09   : > { %37101 = vmatmul.mubr.msk.bf16.gmra.mrb[72].mxu0 %vm10658_vm6, %v40711_v28 }
 0xe0a   : > { %33008 = vmatprep.mubr.bf16.mxu0 %v46528_v50 }
 0xe0e   : > { %37098 = vmatmul.mubr.msk.bf16.gmra.mrb[244].mxu1 %vm10658_vm6, %v40711_v28 }
 0xe0f   : > { %33071 = vmatprep.mubr.bf16.mxu1 %v46528_v50 }
 0xe11   : > { %37111 = vmatmul.mubr.msk.bf16.vlgmr.msra.gmra.mrb[224].mxu0 %vm10658_vm6, %v45884_v51 }
 0xe12   : > { %33103 = vmatpush1.bf16.msra.mxu0 %v45082_v20  ;;  %33018 = vmatprep.mubr.bf16.mxu0 %v46528_v50 }
 0xe13   : > { %33104 = vmatprep.subr.bf16.mxu0 %v45239_v40 }
 0xe16   : > { %37114 = vmatmul.mubr.msk.bf16.vlgmr.msra.gmra.mrb[224].mxu1 %vm10658_vm6, %v45884_v51  ;;  %33105 = vmatpush1.bf16.msra.mxu0 %v45121_v0 }
 0xe17   : > { %33166 = vmatpush1.bf16.msra.mxu1 %v45212_v48  ;;  %33521 = vmatprep.subr.bf16.mxu0 %v45126_v45 }
 0xe18   : > { %33167 = vmatprep.subr.bf16.mxu1 %v45196_v16  ;;  %33081 = vmatprep.mubr.bf16.mxu1 %v46528_v50 }
 0xe19   : > { %37112 = vmatmul.mubr.msk.bf16.gmra.mrb[228].mxu0 %vm10658_vm6, %v45897_v56 }
 0xe1a   : > { %33028 = vmatprep.mubr.bf16.mxu0 %v46528_v50 }
 0xe1b   : > { %33168 = vmatpush1.bf16.msra.mxu1 %v45241_v14 }
 0xe1c   : > { %33228 = vmatprep.subr.bf16.mxu1 %v45270_v18 }
 0xe1e   : > { %37115 = vmatmul.mubr.msk.bf16.gmra.mrb[228].mxu1 %vm10658_vm6, %v45897_v56 }
 0xe1f   : > { %33091 = vmatprep.mubr.bf16.mxu1 %v46528_v50 }
 0xe21   : > { %37113 = vmatmul.mubr.msk.bf16.gmra.mrb[232].mxu0 %vm10658_vm6, %v45914_v63 }
 0xe22   : > { %33134 = vmatprep.mubr.bf16.mxu0 %v46528_v50 }
 0xe26   : > { %37116 = vmatmul.mubr.msk.bf16.gmra.mrb[232].mxu1 %vm10658_vm6, %v45914_v63 }
 0xe27   : > { %33197 = vmatprep.mubr.bf16.mxu1 %v46528_v50 }
 0xe29   : > { %v31082_v45 = vpop.f32.mrb[16].mxu1  ;;  %37117 = vmatmul.mubr.msk.bf16.vlgmr.msra.gmra.mrb[236].mxu0 %vm10658_vm6, %v45884_v51 }
 0xe2a   : > { %v31179_v53 = vadd.f32 %v31082_v45, %v45821_v27  ;;  %v31084_v4 = vpop.f32.mrb[17].mxu1  ;;  %33522 = vmatpush1.bf16.msra.mxu0 %v45115_v61  ;;  %33144 = vmatprep.mubr.bf16.mxu0 %v46528_v50 }
 0xe2b   : > { %v31086_v15 = vpop.f32.mrb[18].mxu1  ;;  %33523 = vmatprep.subr.bf16.mxu0 %v45170_v9 }
 0xe2c   : > { %v31189_v30 = vadd.f32 %v31086_v15, %v45824_v19  ;;  %v31088_v2 = vpop.f32.mrb[19].mxu1 }
 0xe2e   : > { %37120 = vmatmul.mubr.msk.bf16.vlgmr.msra.gmra.mrb[236].mxu1 %vm10658_vm6, %v45884_v51  ;;  %33524 = vmatpush1.bf16.msra.mxu0 %v45163_v23 }
 0xe2f   : > { %33229 = vmatpush1.bf16.msra.mxu1 %v45230_v26  ;;  %33647 = vmatprep.subr.bf16.mxu0 %v45212_v48 }
 0xe30   : > { %33230 = vmatprep.subr.bf16.mxu1 %v45290_v54  ;;  %33207 = vmatprep.mubr.bf16.mxu1 %v46528_v50 }
 0xe31   : > { %v31092_v1 = vpop.f32.mrb[20].mxu1  ;;  %37118 = vmatmul.mubr.msk.bf16.gmra.mrb[240].mxu0 %vm10658_vm6, %v45897_v56 }
 0xe32   : > { %v31199_v61 = vadd.f32 %v31092_v1, %v45833_v62  ;;  %v31094_v37 = vpop.f32.mrb[21].mxu1  ;;  %33154 = vmatprep.mubr.bf16.mxu0 %v46528_v50 }
 0xe33   : > { %33231 = vmatpush1.bf16.msra.mxu1 %v45247_v39  ;;  %v31096_v9 = vpop.f32.mrb[22].mxu1 }
 0xe34   : > { %v31209_v23 = vadd.f32 %v31096_v9, %v45838_v32  ;;  %33584 = vmatprep.subr.bf16.mxu1 %v45082_v20  ;;  %v31098_v31 = vpop.f32.mrb[23].mxu1  ;;  %v45957_v20 = vld [vmem:[%s46468_s2 + $0xf0] sm:$0xff]  }
 0xe36   : > { %37121 = vmatmul.mubr.msk.bf16.gmra.mrb[240].mxu1 %vm10658_vm6, %v45897_v56 }
 0xe37   : > { %33217 = vmatprep.mubr.bf16.mxu1 %v46528_v50 }
 0xe39   : > { %v31102_v48 = vpop.f32.mrb[24].mxu1  ;;  %37119 = vmatmul.mubr.msk.bf16.gmra.mrb[244].mxu0 %vm10658_vm6, %v45914_v63 }
 0xe3a   : > { %v31219_v52 = vadd.f32 %v31102_v48, %v45849_v11  ;;  %v31104_v57 = vpop.f32.mrb[25].mxu1  ;;  %33553 = vmatprep.mubr.bf16.mxu0 %v46528_v50 }
 0xe3b   : > { %v31106_v12 = vpop.f32.mrb[26].mxu1 }
 0xe3c   : > { %v31229_v58 = vadd.f32 %v31106_v12, %v45852_v3  ;;  %v31108_v49 = vpop.f32.mrb[27].mxu1 }
 0xe3e   : > { %37122 = vmatmul.mubr.msk.bf16.gmra.mrb[244].mxu1 %vm10658_vm6, %v45914_v63 }
 0xe3f   : > { %33260 = vmatprep.mubr.bf16.mxu1 %v46528_v50 }
 0xe41   : > { %37135 = vmatmul.mubr.msk.bf16.vlgmr.msra.gmra.mrb[224].mxu0 %vm10658_vm6, %v45957_v20 }
 0xe42   : > { %33648 = vmatpush1.bf16.msra.mxu0 %v45198_v44  ;;  %33563 = vmatprep.mubr.bf16.mxu0 %v46528_v50 }
 0xe43   : > { %33649 = vmatprep.subr.bf16.mxu0 %v45241_v14 }
 0xe46   : > { %37123 = vmatmul.mubr.msk.bf16.vlgmr.msra.gmra.mrb[64].mxu1 %vm10658_vm6, %v45884_v51  ;;  %33650 = vmatpush1.bf16.msra.mxu0 %v45239_v40 }
 0xe47   : > { %33585 = vmatpush1.bf16.msra.mxu1 %v45077_v21  ;;  %33773 = vmatprep.subr.bf16.mxu0 %v28080_v36  ;;  %v40717_v21 = vld [vmem:[%s46468_s2 + $0x100] sm:$0xff]  }
 0xe48   : > { %33586 = vmatprep.subr.bf16.mxu1 %v45121_v0  ;;  %33270 = vmatprep.mubr.bf16.mxu1 %v46528_v50 }
 0xe49   : > { %37136 = vmatmul.mubr.msk.bf16.gmra.mrb[228].mxu0 %vm10658_vm6, %v40716_v35 }
 0xe4a   : > { %33573 = vmatprep.mubr.bf16.mxu0 %v46528_v50 }
 0xe4b   : > { %33587 = vmatpush1.bf16.msra.mxu1 %v45110_v6 }
 0xe4c   : > { %33710 = vmatprep.subr.bf16.mxu1 %v45230_v26 }
 0xe4e   : > { %37124 = vmatmul.mubr.msk.bf16.gmra.mrb[68].mxu1 %vm10658_vm6, %v45897_v56 }
 0xe4f   : > { %33280 = vmatprep.mubr.bf16.mxu1 %v46528_v50 }
 0xe51   : > { %37137 = vmatmul.mubr.msk.bf16.gmra.mrb[232].mxu0 %vm10658_vm6, %v40717_v21 }
 0xe52   : > { %33679 = vmatprep.mubr.bf16.mxu0 %v46528_v50 }
 0xe54   : > { %v31627_v0 = vpop.f32.mrb[28].mxu0 }
 0xe55   : > { %v31724_v6 = vadd.f32 %v31627_v0, %v31179_v53  ;;  %v31629_v44 = vpop.f32.mrb[29].mxu0 }
 0xe56   : > { %37125 = vmatmul.mubr.msk.bf16.gmra.mrb[72].mxu1 %vm10658_vm6, %v45914_v63  ;;  %v31631_v26 = vpop.f32.mrb[30].mxu0 }
 0xe57   : > { %33616 = vmatprep.mubr.bf16.mxu1 %v46528_v50  ;;  %v31734_v40 = vadd.f32 %v31631_v26, %v31189_v30  ;;  %v31633_v14 = vpop.f32.mrb[31].mxu0 }
 0xe59   : > { %37141 = vmatmul.mubr.msk.bf16.vlgmr.msra.gmra.mrb[236].mxu0 %vm10658_vm6, %v45957_v20 }
 0xe5a   : > { %33774 = vmatpush1.bf16.msra.mxu0 %v45270_v18  ;;  %33689 = vmatprep.mubr.bf16.mxu0 %v46528_v50 }
 0xe5b   : > { %33775 = vmatprep.subr.bf16.mxu0 %v28100_v10 }
 0xe5c   : > { %v31637_v33 = vpop.f32.mrb[32].mxu0 }
 0xe5d   : > { %v31744_v46 = vadd.f32 %v31637_v33, %v31199_v61  ;;  %v31639_v36 = vpop.f32.mrb[33].mxu0 }
 0xe5e   : > { %37138 = vmatmul.mubr.msk.bf16.vlgmr.msra.gmra.mrb[224].mxu1 %vm10658_vm6, %v45957_v20  ;;  %33776 = vmatpush1.bf16.msra.mxu0 %v45290_v54  ;;  %v31641_v43 = vpop.f32.mrb[34].mxu0 }
 0xe5f   : > { %33711 = vmatpush1.bf16.msra.mxu1 %v45155_v47  ;;  %v31754_v18 = vadd.f32 %v31641_v43, %v31209_v23  ;;  %v31643_v28 = vpop.f32.mrb[35].mxu0  ;;  %33626 = vmatprep.mubr.bf16.mxu1 %v46528_v50 }
 0xe60   : > { %33712 = vmatprep.subr.bf16.mxu1 %v45247_v39  ;;  %37548 = vmatprep.subr.bf16.mxu0 %v46564_v17 }
 0xe61   : > { %37142 = vmatmul.mubr.msk.bf16.gmra.mrb[240].mxu0 %vm10658_vm6, %v40716_v35 }
 0xe62   : > { %33699 = vmatprep.mubr.bf16.mxu0 %v46528_v50 }
 0xe63   : > { %33713 = vmatpush1.bf16.msra.mxu1 %v45196_v16 }
 0xe64   : > { %37530 = vmatprep.subr.bf16.mxu1 %v46564_v17  ;;  %v31647_v47 = vpop.f32.mrb[36].mxu0 }
 0xe65   : > { %v31764_v54 = vadd.f32 %v31647_v47, %v31219_v52  ;;  %v31649_v7 = vpop.f32.mrb[37].mxu0 }
 0xe66   : > { %37139 = vmatmul.mubr.msk.bf16.gmra.mrb[228].mxu1 %vm10658_vm6, %v40716_v35  ;;  %v31651_v39 = vpop.f32.mrb[38].mxu0 }
 0xe67   : > { %33636 = vmatprep.mubr.bf16.mxu1 %v46528_v50  ;;  %v31774_v60 = vadd.f32 %v31651_v39, %v31229_v58  ;;  %v31653_v10 = vpop.f32.mrb[39].mxu0 }
 0xe69   : > { %37143 = vmatmul.mubr.msk.bf16.gmra.mrb[244].mxu0 %vm10658_vm6, %v40717_v21 }
 0xe6a   : > { %33805 = vmatprep.mubr.bf16.mxu0 %v46528_v50 }
 0xe6e   : > { %37140 = vmatmul.mubr.msk.bf16.gmra.mrb[232].mxu1 %vm10658_vm6, %v40717_v21 }
 0xe6f   : > { %33742 = vmatprep.mubr.bf16.mxu1 %v46528_v50 }
 0xe71   : > { %37147 = vmatmul.mubr.msk.bf16.vlgmr.msra.gmra.mrb[76].mxu0 %vm10658_vm6, %v45957_v20 }
 0xe72   : > { %33815 = vmatprep.mubr.bf16.mxu0 %v46528_v50 }
 0xe76   : > { %37144 = vmatmul.mubr.msk.bf16.vlgmr.msra.gmra.mrb[236].mxu1 %vm10658_vm6, %v45957_v20 }
 0xe77   : > { %33752 = vmatprep.mubr.bf16.mxu1 %v46528_v50 }
 0xe79   : > { %37148 = vmatmul.mubr.msk.bf16.gmra.mrb[80].mxu0 %vm10658_vm6, %v40716_v35 }
 0xe7a   : > { %33825 = vmatprep.mubr.bf16.mxu0 %v46528_v50 }
 0xe7e   : > { %37145 = vmatmul.mubr.msk.bf16.gmra.mrb[240].mxu1 %vm10658_vm6, %v40716_v35 }
 0xe7f   : > { %33762 = vmatprep.mubr.bf16.mxu1 %v46528_v50 }
 0xe81   : > { %37149 = vmatmul.mubr.msk.bf16.gmra.mrb[84].mxu0 %vm10658_vm6, %v40717_v21 }
 0xe82   : > { %37554 = vmatprep.mubr.msk.bf16.mxu0 %vm40793_vm9, %v46564_v17 }
 0xe86   : > { %37146 = vmatmul.mubr.msk.bf16.gmra.mrb[244].mxu1 %vm10658_vm6, %v40717_v21  ;;  %v46565_v21 = vld [vmem:[#allocation13_spill] sm:$0xff] }
 0xe87   : > { %37536 = vmatprep.mubr.msk.bf16.mxu1 %vm40793_vm9, %v46564_v17 }
 0xea1   : > { %v32172_v16 = vpop.f32.mrb[28].mxu1 }
 0xea2   : > { %v32269_v27 = vadd.f32 %v32172_v16, %v31724_v6  ;;  %v32174_v41 = vpop.f32.mrb[29].mxu1 }
 0xea3   : > { %v32176_v13 = vpop.f32.mrb[30].mxu1  ;;  %v46567_v41 = vld [vmem:[#allocation16_spill] sm:$0xff] }
 0xea4   : > { %v32279_v19 = vadd.f32 %v32176_v13, %v31734_v40  ;;  %v32178_v5 = vpop.f32.mrb[31].mxu1 }
 0xea9   : > { %v32182_v42 = vpop.f32.mrb[32].mxu1 }
 0xeaa   : > { %v32289_v62 = vadd.f32 %v32182_v42, %v31744_v46  ;;  %v32184_v24 = vpop.f32.mrb[33].mxu1  ;;  %v46566_v46 = vld [vmem:[#allocation11_spill] sm:$0xff] }
 0xeab   : > { %v32186_v50 = vpop.f32.mrb[34].mxu1 }
 0xeac   : > { %v32299_v34 = vadd.f32 %v32186_v50, %v31754_v18  ;;  %v32188_v32 = vpop.f32.mrb[35].mxu1  ;;  %v46569_v50 = vld [vmem:[#allocation15_spill] sm:$0xff] }
 0xeb1   : > { %v32192_v59 = vpop.f32.mrb[36].mxu1 }
 0xeb2   : > { %v32309_v55 = vadd.f32 %v32192_v59, %v31764_v54  ;;  %v32194_v11 = vpop.f32.mrb[37].mxu1 }
 0xeb3   : > { %v32196_v25 = vpop.f32.mrb[38].mxu1 }
 0xeb4   : > { %v32319_v8 = vadd.f32 %v32196_v25, %v31774_v60  ;;  %v32198_v3 = vpop.f32.mrb[39].mxu1 }
 0xeb5   : > { %v46570_v3 = vld [vmem:[#allocation12_spill] sm:$0xff] }
 0xecc   : > { %v32717_v22 = vpop.f32.mrb[64].mxu0 }
 0xecd   : > { %v32814_v51 = vadd.f32 %v32717_v22, %v32269_v27  ;;  %v32719_v56 = vpop.f32.mrb[65].mxu0 }
 0xece   : > { %v32721_v63 = vpop.f32.mrb[66].mxu0 }
 0xecf   : > { %v32824_v45 = vadd.f32 %v32721_v63, %v32279_v19  ;;  %v32723_v53 = vpop.f32.mrb[67].mxu0 }
 0xed4   : > { %v32727_v4 = vpop.f32.mrb[68].mxu0 }
 0xed5   : > { %v32834_v15 = vadd.f32 %v32727_v4, %v32289_v62  ;;  %v32729_v30 = vpop.f32.mrb[69].mxu0  ;;  %v46568_v62 = vld [vmem:[#allocation10_spill] sm:$0xff] }
 0xed6   : > { %v32731_v2 = vpop.f32.mrb[70].mxu0 }
 0xed7   : > { %v46032_v1 = vadd.f32 %v32731_v2, %v32299_v34  ;;  %v32733_v61 = vpop.f32.mrb[71].mxu0 }
 0xedc   : > { %v32737_v37 = vpop.f32.mrb[72].mxu0 }
 0xedd   : > { %v46034_v9 = vadd.f32 %v32737_v37, %v32309_v55  ;;  %v32739_v23 = vpop.f32.mrb[73].mxu0 }
 0xede   : > { %v32741_v31 = vpop.f32.mrb[74].mxu0  ;;  %v46571_v23 = vld [vmem:[#allocation14_spill] sm:$0xff] }
 0xedf   : > { %v46036_v48 = vadd.f32 %v32741_v31, %v32319_v8  ;;  %v32743_v52 = vpop.f32.mrb[75].mxu0 }
 0xf14   : > { %v33555_v57 = vpop.f32.mrb[224].mxu0 }
 0xf15   : > { %v34076_v12 = vadd.f32 %v33555_v57, %v43114_v38  ;;  %v33557_v58 = vpop.f32.mrb[225].mxu0 }
 0xf16   : > { %v34077_v49 = vadd.f32 %v33557_v58, %v43114_v38  ;;  %v33559_v20 = vpop.f32.mrb[226].mxu0  ;;  %v46572_v58 = vld [vmem:[#allocation17_spill] sm:$0xff] }
 0xf17   : > { %v34196_v35 = vmul.f32 %v34076_v12, %v43118_v29  ;;  %v34086_v0 = vadd.f32 %v33559_v20, %v46565_v21  ;;  %v33561_v6 = vpop.f32.mrb[227].mxu0  ;;  %vm34136_vm6 = vcmp.ge.f32.partialorder %v34076_v12, 0.0  ;;  %v46573_v20 = vld [vmem:[#allocation18_spill] sm:$0xff] }
 0xf18   : > { %v34197_v26 = vmul.f32 %v34077_v49, %v43118_v29  ;;  %v34087_v40 = vadd.f32 %v33561_v6, %v46565_v21  ;;  %vm34137_vm3 = vcmp.ge.f32.partialorder %v34077_v49, 0.0 }
 0xf19   : > { %v33262_v44 = vpop.f32.mrb[64].mxu1  ;;  %vm34146_vm4 = vcmp.ge.f32.partialorder %v34086_v0, 0.0  ;;  %v34206_v36 = vmul.f32 %v34086_v0, %v46566_v46  ;;  %v34256_v28 = vsel %vm34136_vm6, %v34076_v12, %v34196_v35 }
 0xf1a   : > { %v46044_v14 = vadd.f32 %v33262_v44, %v32814_v51  ;;  %v33264_v33 = vpop.f32.mrb[65].mxu1  ;;  %vm34147_vm5 = vcmp.ge.f32.partialorder %v34087_v40, 0.0  ;;  %v34207_v18 = vmul.f32 %v34087_v40, %v46566_v46  ;;  %v34257_v39 = vsel %vm34137_vm3, %v34077_v49, %v34197_v26 }
 0xf1b   : > { %v33266_v43 = vpop.f32.mrb[66].mxu1  ;;  %v34266_v47 = vsel %vm34146_vm4, %v34086_v0, %v34206_v36  ;;  %v46574_v33 = vld [vmem:[#allocation19_spill] sm:$0xff] }
 0xf1c   : > { %v46048_v54 = vadd.f32 %v33266_v43, %v32824_v45  ;;  %v33268_v7 = vpop.f32.mrb[67].mxu1  ;;  %v34316_v60 = vpack.c.bf16 %v34266_v47, %v34256_v28  ;;  %v34267_v10 = vsel %vm34147_vm5, %v34087_v40, %v34207_v18  ;;  %v33565_v16 = vpop.f32.mrb[228].mxu0 }
 0xf1d   : > { %v34317_v27 = vpack.c.bf16 %v34267_v10, %v34257_v39  ;;  %v34096_v13 = vadd.f32 %v33565_v16, %v46567_v41  ;;  %v33567_v19 = vpop.f32.mrb[229].mxu0 }
 0xf1e   : > { %v34097_v5 = vadd.f32 %v33567_v19, %v46567_v41  ;;  %v33569_v42 = vpop.f32.mrb[230].mxu0  ;;  %37549 = vmatpush3.bf16.msra.mxu0 %v34316_v60 }
 0xf1f   : > { %v34216_v24 = vmul.f32 %v34096_v13, %v46568_v62  ;;  %v34106_v34 = vadd.f32 %v33569_v42, %v46569_v50  ;;  %v33571_v32 = vpop.f32.mrb[231].mxu0  ;;  %37531 = vmatpush3.bf16.msra.mxu1 %v34317_v27  ;;  %37550 = vmatprep.subr.bf16.mxu0 %v46564_v17  ;;  %vm34156_vm7 = vcmp.ge.f32.partialorder %v34096_v13, 0.0 }
 0xf20   : > { %v34217_v55 = vmul.f32 %v34097_v5, %v46568_v62  ;;  %v34107_v11 = vadd.f32 %v33571_v32, %v46569_v50  ;;  %37532 = vmatprep.subr.bf16.mxu1 %v46564_v17  ;;  %vm34157_vm11 = vcmp.ge.f32.partialorder %v34097_v5, 0.0 }
 0xf21   : > { %v33272_v59 = vpop.f32.mrb[68].mxu1  ;;  %vm34166_vm10 = vcmp.ge.f32.partialorder %v34106_v34, 0.0  ;;  %v34226_v22 = vmul.f32 %v34106_v34, %v46570_v3  ;;  %v34276_v63 = vsel %vm34156_vm7, %v34096_v13, %v34216_v24 }
 0xf22   : > { %v46058_v25 = vadd.f32 %v33272_v59, %v32834_v15  ;;  %v33274_v8 = vpop.f32.mrb[69].mxu1  ;;  %vm34167_vm12 = vcmp.ge.f32.partialorder %v34107_v11, 0.0  ;;  %v34227_v56 = vmul.f32 %v34107_v11, %v46570_v3  ;;  %v34277_v30 = vsel %vm34157_vm11, %v34097_v5, %v34217_v55  ;;  %v40719_v5 = vld [vmem:[%s46469_s3] sm:$0xff]  }
 0xf23   : > { %v33276_v51 = vpop.f32.mrb[70].mxu1  ;;  %v34286_v45 = vsel %vm34166_vm10, %v34106_v34, %v34226_v22 }
 0xf24   : > { %v46063_v53 = vadd.f32 %v33276_v51, %v46032_v1  ;;  %v33278_v4 = vpop.f32.mrb[71].mxu1  ;;  %v34326_v2 = vpack.c.bf16 %v34286_v45, %v34276_v63  ;;  %v34287_v61 = vsel %vm34167_vm12, %v34107_v11, %v34227_v56  ;;  %v33575_v15 = vpop.f32.mrb[232].mxu0 }
 0xf25   : > { %v34327_v37 = vpack.c.bf16 %v34287_v61, %v34277_v30  ;;  %v34116_v31 = vadd.f32 %v33575_v15, %v46571_v23  ;;  %v33577_v52 = vpop.f32.mrb[233].mxu0 }
 0xf26   : > { %v34117_v57 = vadd.f32 %v33577_v52, %v46571_v23  ;;  %v33579_v12 = vpop.f32.mrb[234].mxu0  ;;  %37551 = vmatpush3.bf16.msra.mxu0 %v34326_v2 }
 0xf27   : > { %v34236_v49 = vmul.f32 %v34116_v31, %v46572_v58  ;;  %v34126_v35 = vadd.f32 %v33579_v12, %v46573_v20  ;;  %v33581_v0 = vpop.f32.mrb[235].mxu0  ;;  %37533 = vmatpush3.bf16.msra.mxu1 %v34327_v37  ;;  %37552 = vmatprep.subr.bf16.mxu0 %v46564_v17  ;;  %vm34176_vm13 = vcmp.ge.f32.partialorder %v34116_v31, 0.0 }
 0xf28   : > { %v34237_v6 = vmul.f32 %v34117_v57, %v46572_v58  ;;  %v34127_v44 = vadd.f32 %v33581_v0, %v46573_v20  ;;  %37534 = vmatprep.subr.bf16.mxu1 %v46564_v17  ;;  %vm34177_vm14 = vcmp.ge.f32.partialorder %v34117_v57, 0.0 }
 0xf29   : > { %v33282_v1 = vpop.f32.mrb[72].mxu1  ;;  %vm34186_vm15 = vcmp.ge.f32.partialorder %v34126_v35, 0.0  ;;  %v34246_v36 = vmul.f32 %v34126_v35, %v46574_v33  ;;  %v34296_v28 = vsel %vm34176_vm13, %v34116_v31, %v34236_v49 }
 0xf2a   : > { %v46074_v26 = vadd.f32 %v33282_v1, %v46034_v9  ;;  %v33284_v40 = vpop.f32.mrb[73].mxu1  ;;  %vm34187_vm1 = vcmp.ge.f32.partialorder %v34127_v44, 0.0  ;;  %v34247_v18 = vmul.f32 %v34127_v44, %v46574_v33  ;;  %v34297_v60 = vsel %vm34177_vm14, %v34117_v57, %v34237_v6  ;;  %v40721_v6 = vld [vmem:[%s46469_s3 + $0x8] sm:$0xff]  }
 0xf2b   : > { %v33286_v43 = vpop.f32.mrb[74].mxu1  ;;  %v34306_v47 = vsel %vm34186_vm15, %v34126_v35, %v34246_v36 }
 0xf2c   : > { %v46079_v7 = vadd.f32 %v33286_v43, %v46036_v48  ;;  %v33288_v39 = vpop.f32.mrb[75].mxu1  ;;  %v34336_v10 = vpack.c.bf16 %v34306_v47, %v34296_v28  ;;  %v34307_v16 = vsel %vm34187_vm1, %v34127_v44, %v34247_v18  ;;  %v33681_v9 = vpop.f32.mrb[236].mxu0  ;;  %v40718_v48 = vld [vmem:[%s46469_s3 + $0x18] sm:$0xff]  }
 0xf2d   : > { %v34337_v27 = vpack.c.bf16 %v34307_v16, %v34297_v60  ;;  %v34080_v13 = vadd.f32 %v33681_v9, %v43114_v38  ;;  %v33683_v19 = vpop.f32.mrb[237].mxu0 }
 0xf2e   : > { %v34081_v42 = vadd.f32 %v33683_v19, %v43114_v38  ;;  %v33685_v24 = vpop.f32.mrb[238].mxu0  ;;  %37553 = vmatpush3.bf16.msra.mxu0 %v34336_v10  ;;  %v40720_v10 = vld [vmem:[%s46469_s3 + $0x20] sm:$0xff]  }
 0xf2f   : > { %vm34140_vm2 = vcmp.ge.f32.partialorder %v34080_v13, 0.0  ;;  %v34200_v34 = vmul.f32 %v34080_v13, %v43118_v29  ;;  %v34090_v32 = vadd.f32 %v33685_v24, %v46565_v21  ;;  %v33687_v59 = vpop.f32.mrb[239].mxu0  ;;  %37535 = vmatpush3.bf16.msra.mxu1 %v34337_v27  ;;  %37584 = vmatprep.subr.bf16.mxu0 %v46564_v17 }
 0xf30   : > { %vm34141_vm0 = vcmp.ge.f32.partialorder %v34081_v42, 0.0  ;;  %v34201_v11 = vmul.f32 %v34081_v42, %v43118_v29  ;;  %v34091_v8 = vadd.f32 %v33687_v59, %v46565_v21  ;;  %37566 = vmatprep.subr.bf16.mxu1 %v46564_v17 }
 0xf31   : > { %v33618_v55 = vpop.f32.mrb[224].mxu1  ;;  %v46095_v22 = vsel %vm34140_vm2, %v34080_v13, %v34200_v34  ;;  %vm34150_vm6 = vcmp.ge.f32.partialorder %v34090_v32, 0.0  ;;  %v34210_v63 = vmul.f32 %v34090_v32, %v46566_v46  ;;  %37555 = vmatmul.mubr.msk.bf16.vlgmr.msra.gmra.mrb[88].mxu0 %vm16947_vm8, %v40719_v5 }
 0xf32   : > { %v34078_v51 = vadd.f32 %v33618_v55, %v43114_v38  ;;  %v33620_v56 = vpop.f32.mrb[225].mxu1  ;;  %v46100_v45 = vsel %vm34141_vm0, %v34081_v42, %v34201_v11  ;;  %vm34151_vm3 = vcmp.ge.f32.partialorder %v34091_v8, 0.0  ;;  %v34211_v2 = vmul.f32 %v34091_v8, %v46566_v46  ;;  %37537 = vmatmul.mubr.msk.bf16.vlgmr.msra.gmra.mrb[76].mxu1 %vm16947_vm8, %v40718_v48  ;;  %37558 = vmatprep.mubr.msk.bf16.mxu0 %vm40793_vm9, %v46564_v17 }
 0xf33   : > { %v34079_v4 = vadd.f32 %v33620_v56, %v43114_v38  ;;  %v33622_v30 = vpop.f32.mrb[226].mxu1  ;;  %v46108_v15 = vsel %vm34150_vm6, %v34090_v32, %v34210_v63  ;;  %37540 = vmatprep.mubr.msk.bf16.mxu1 %vm40793_vm9, %v46564_v17 }
 0xf34   : > { %vm34138_vm4 = vcmp.ge.f32.partialorder %v34078_v51, 0.0  ;;  %v34198_v61 = vmul.f32 %v34078_v51, %v43118_v29  ;;  %v34088_v37 = vadd.f32 %v33622_v30, %v46565_v21  ;;  %v33624_v31 = vpop.f32.mrb[227].mxu1  ;;  %v34320_v57 = vpack.c.bf16 %v46108_v15, %v46095_v22  ;;  %v33691_v49 = vpop.f32.mrb[240].mxu0 }
 0xf35   : > { %vm34139_vm5 = vcmp.ge.f32.partialorder %v34079_v4, 0.0  ;;  %v34199_v52 = vmul.f32 %v34079_v4, %v43118_v29  ;;  %v46116_v12 = vsel %vm34151_vm3, %v34091_v8, %v34211_v2  ;;  %v33693_v1 = vpop.f32.mrb[241].mxu0  ;;  %v34089_v44 = vadd.f32 %v33624_v31, %v46565_v21 }
 0xf36   : > { %vm34148_vm7 = vcmp.ge.f32.partialorder %v34088_v37, 0.0  ;;  %v34208_v35 = vmul.f32 %v34088_v37, %v46566_v46  ;;  %v34321_v0 = vpack.c.bf16 %v46116_v12, %v46100_v45  ;;  %v34100_v40 = vadd.f32 %v33691_v49, %v46567_v41  ;;  %v33695_v43 = vpop.f32.mrb[242].mxu0 }
 0xf37   : > { %v34101_v36 = vadd.f32 %v33693_v1, %v46567_v41  ;;  %v34258_v18 = vsel %vm34138_vm4, %v34078_v51, %v34198_v61  ;;  %v34259_v28 = vsel %vm34139_vm5, %v34079_v4, %v34199_v52  ;;  %v34110_v39 = vadd.f32 %v33695_v43, %v46569_v50  ;;  %v33697_v60 = vpop.f32.mrb[243].mxu0  ;;  %v40723_v52 = vld [vmem:[%s46469_s3 + $0x10] sm:$0xff]  }
 0xf38   : > { %v34268_v47 = vsel %vm34148_vm7, %v34088_v37, %v34208_v35  ;;  %vm34149_vm11 = vcmp.ge.f32.partialorder %v34089_v44, 0.0  ;;  %v34209_v9 = vmul.f32 %v34089_v44, %v46566_v46  ;;  %vm34160_vm10 = vcmp.ge.f32.partialorder %v34100_v40, 0.0 }
 0xf39   : > { %v34318_v16 = vpack.c.bf16 %v34268_v47, %v34258_v18  ;;  %v33628_v27 = vpop.f32.mrb[228].mxu1  ;;  %v34220_v13 = vmul.f32 %v34100_v40, %v46568_v62  ;;  %vm34161_vm12 = vcmp.ge.f32.partialorder %v34101_v36, 0.0  ;;  %v34221_v5 = vmul.f32 %v34101_v36, %v46568_v62  ;;  %37559 = vmatmul.mubr.msk.bf16.gmra.mrb[92].mxu0 %vm16947_vm8, %v40721_v6  ;;  %v40722_v18 = vld [vmem:[%s46469_s3 + $0x28] sm:$0xff]  }
 0xf3a   : > { %v34098_v19 = vadd.f32 %v33628_v27, %v46567_v41  ;;  %v33630_v42 = vpop.f32.mrb[229].mxu1  ;;  %v34269_v24 = vsel %vm34149_vm11, %v34089_v44, %v34209_v9  ;;  %vm34170_vm13 = vcmp.ge.f32.partialorder %v34110_v39, 0.0  ;;  %v34230_v34 = vmul.f32 %v34110_v39, %v46570_v3  ;;  %37562 = vmatprep.mubr.msk.bf16.mxu0 %vm40793_vm9, %v46564_v17  ;;  %37541 = vmatmul.mubr.msk.bf16.gmra.mrb[80].mxu1 %vm16947_vm8, %v40720_v10 }
 0xf3b   : > { %v34099_v48 = vadd.f32 %v33630_v42, %v46567_v41  ;;  %v33632_v32 = vpop.f32.mrb[230].mxu1  ;;  %37567 = vmatpush3.bf16.msra.mxu1 %v34318_v16  ;;  %v34319_v59 = vpack.c.bf16 %v34269_v24, %v34259_v28  ;;  %v46142_v55 = vsel %vm34160_vm10, %v34100_v40, %v34220_v13  ;;  %v46148_v51 = vsel %vm34161_vm12, %v34101_v36, %v34221_v5 }
 0xf3c   : > { %vm34158_vm14 = vcmp.ge.f32.partialorder %v34098_v19, 0.0  ;;  %v34218_v11 = vmul.f32 %v34098_v19, %v46568_v62  ;;  %v33634_v8 = vpop.f32.mrb[231].mxu1  ;;  %37568 = vmatprep.subr.bf16.mxu1 %v46564_v17  ;;  %v46151_v63 = vsel %vm34170_vm13, %v34110_v39, %v34230_v34  ;;  %v33701_v4 = vpop.f32.mrb[244].mxu0  ;;  %37544 = vmatprep.mubr.msk.bf16.mxu1 %vm40793_vm9, %v46564_v17  ;;  %v34108_v61 = vadd.f32 %v33632_v32, %v46569_v50 }
 0xf3d   : > { %vm34159_vm15 = vcmp.ge.f32.partialorder %v34099_v48, 0.0  ;;  %v34219_v56 = vmul.f32 %v34099_v48, %v46568_v62  ;;  %v34330_v2 = vpack.c.bf16 %v46151_v63, %v46142_v55  ;;  %v34111_v37 = vadd.f32 %v33697_v60, %v46569_v50  ;;  %37585 = vmatpush3.bf16.msra.mxu0 %v34319_v59  ;;  %v33703_v31 = vpop.f32.mrb[245].mxu0 }
 0xf3e   : > { %v34278_v30 = vsel %vm34158_vm14, %v34098_v19, %v34218_v11  ;;  %v34109_v35 = vadd.f32 %v33634_v8, %v46569_v50  ;;  %v34120_v1 = vadd.f32 %v33701_v4, %v46571_v23  ;;  %v34121_v6 = vadd.f32 %v33703_v31, %v46571_v23  ;;  %v33705_v44 = vpop.f32.mrb[246].mxu0  ;;  %37586 = vmatprep.subr.bf16.mxu0 %v46564_v17 }
 0xf3f   : > { %v34279_v49 = vsel %vm34159_vm15, %v34099_v48, %v34219_v56  ;;  %vm34168_vm1 = vcmp.ge.f32.partialorder %v34108_v61, 0.0  ;;  %v34228_v40 = vmul.f32 %v34108_v61, %v46570_v3  ;;  %vm34171_vm2 = vcmp.ge.f32.partialorder %v34111_v37, 0.0  ;;  %v33707_v43 = vpop.f32.mrb[247].mxu0 }
 0xf40   : > { %v34231_v36 = vmul.f32 %v34111_v37, %v46570_v3  ;;  %vm34169_vm0 = vcmp.ge.f32.partialorder %v34109_v35, 0.0  ;;  %v34229_v28 = vmul.f32 %v34109_v35, %v46570_v3  ;;  %vm34180_vm6 = vcmp.ge.f32.partialorder %v34120_v1, 0.0 }
 0xf41   : > { %v34240_v47 = vmul.f32 %v34120_v1, %v46572_v58  ;;  %v33638_v39 = vpop.f32.mrb[232].mxu1  ;;  %v34288_v60 = vsel %vm34168_vm1, %v34108_v61, %v34228_v40  ;;  %vm34181_vm3 = vcmp.ge.f32.partialorder %v34121_v6, 0.0  ;;  %37563 = vmatmul.mubr.msk.bf16.gmra.mrb[96].mxu0 %vm16947_vm8, %v40723_v52  ;;  %v34241_v34 = vmul.f32 %v34121_v6, %v46572_v58 }
 0xf42   : > { %v46173_v10 = vsel %vm34171_vm2, %v34111_v37, %v34231_v36  ;;  %v34118_v16 = vadd.f32 %v33638_v39, %v46571_v23  ;;  %v33640_v9 = vpop.f32.mrb[233].mxu1  ;;  %v34328_v27 = vpack.c.bf16 %v34288_v60, %v34278_v30  ;;  %v34289_v19 = vsel %vm34169_vm0, %v34109_v35, %v34229_v28  ;;  %37590 = vmatprep.mubr.msk.bf16.mxu0 %vm40793_vm9, %v46564_v17 }
 0xf43   : > { %v34331_v13 = vpack.c.bf16 %v46173_v10, %v46148_v51  ;;  %v46179_v5 = vsel %vm34180_vm6, %v34120_v1, %v34240_v47  ;;  %v33642_v42 = vpop.f32.mrb[234].mxu1  ;;  %v34329_v24 = vpack.c.bf16 %v34289_v19, %v34279_v49  ;;  %37545 = vmatmul.mubr.msk.bf16.gmra.mrb[84].mxu1 %vm16947_vm8, %v40722_v18  ;;  %v34119_v59 = vadd.f32 %v33640_v9, %v46571_v23 }
 0xf44   : > { %vm34178_vm4 = vcmp.ge.f32.partialorder %v34118_v16, 0.0  ;;  %v34238_v48 = vmul.f32 %v34118_v16, %v46572_v58  ;;  %v33644_v32 = vpop.f32.mrb[235].mxu1  ;;  %v34130_v11 = vadd.f32 %v33705_v44, %v46573_v20  ;;  %v34128_v8 = vadd.f32 %v33642_v42, %v46573_v20  ;;  %37569 = vmatpush3.bf16.msra.mxu1 %v34328_v27  ;;  %v33807_v4 = vpop.f32.mrb[76].mxu0  ;;  %37572 = vmatprep.mubr.msk.bf16.mxu1 %vm40793_vm9, %v46564_v17 }
 0xf45   : > { %v34131_v56 = vadd.f32 %v33707_v43, %v46573_v20  ;;  %v46191_v61 = vsel %vm34181_vm3, %v34121_v6, %v34241_v34  ;;  %v34129_v37 = vadd.f32 %v33644_v32, %v46573_v20  ;;  %37587 = vmatpush3.bf16.msra.mxu0 %v34329_v24  ;;  %v33904_v31 = vadd.f32 %v33807_v4, %v46044_v14  ;;  %v33809_v52 = vpop.f32.mrb[77].mxu0  ;;  %v40725_v4 = vld [vmem:[%s46469_s3 + $0x48] sm:$0xff]  }
 0xf46   : > { %v34298_v30 = vsel %vm34178_vm4, %v34118_v16, %v34238_v48  ;;  %vm34179_vm5 = vcmp.ge.f32.partialorder %v34119_v59, 0.0  ;;  %v34239_v49 = vmul.f32 %v34119_v59, %v46572_v58  ;;  %vm34190_vm7 = vcmp.ge.f32.partialorder %v34130_v11, 0.0  ;;  %v33811_v1 = vpop.f32.mrb[78].mxu0  ;;  %37570 = vmatprep.subr.bf16.mxu1 %v46564_v17  ;;  %37588 = vmatprep.subr.bf16.mxu0 %v46564_v17 }
 0xf47   : > { %v34250_v35 = vmul.f32 %v34130_v11, %v46574_v33  ;;  %vm34188_vm11 = vcmp.ge.f32.partialorder %v34128_v8, 0.0  ;;  %v34248_v6 = vmul.f32 %v34128_v8, %v46574_v33  ;;  %vm34191_vm10 = vcmp.ge.f32.partialorder %v34131_v56, 0.0  ;;  %v33813_v14 = vpop.f32.mrb[79].mxu0 }
 0xf48   : > { %v34251_v44 = vmul.f32 %v34131_v56, %v46574_v33  ;;  %v34299_v40 = vsel %vm34179_vm5, %v34119_v59, %v34239_v49  ;;  %vm34189_vm12 = vcmp.ge.f32.partialorder %v34129_v37, 0.0  ;;  %v34249_v43 = vmul.f32 %v34129_v37, %v46574_v33  ;;  %v40724_v59 = vld [vmem:[%s46469_s3 + $0x30] sm:$0xff]  }
 0xf49   : > { %v46203_v36 = vsel %vm34190_vm7, %v34130_v11, %v34250_v35  ;;  %v33744_v18 = vpop.f32.mrb[236].mxu1  ;;  %v34308_v47 = vsel %vm34188_vm11, %v34128_v8, %v34248_v6  ;;  %v34084_v60 = vadd.f32 %v33904_v31, %v43114_v38  ;;  %v33914_v8 = vadd.f32 %v33811_v1, %v46048_v54 }
 0xf4a   : > { %v34340_v28 = vpack.c.bf16 %v46203_v36, %v46179_v5  ;;  %v46208_v39 = vsel %vm34191_vm10, %v34131_v56, %v34251_v44  ;;  %v33746_v16 = vpop.f32.mrb[237].mxu1  ;;  %v34338_v9 = vpack.c.bf16 %v34308_v47, %v34298_v30  ;;  %v34309_v19 = vsel %vm34189_vm12, %v34129_v37, %v34249_v43 }
 0xf4b   : > { %v34341_v27 = vpack.c.bf16 %v46208_v39, %v46191_v61  ;;  %v34082_v42 = vadd.f32 %v33744_v18, %v43114_v38  ;;  %v33748_v24 = vpop.f32.mrb[238].mxu1  ;;  %v34339_v48 = vpack.c.bf16 %v34309_v19, %v34299_v40  ;;  %vm34144_vm13 = vcmp.ge.f32.partialorder %v34084_v60, 0.0 }
 0xf4c   : > { %v34083_v34 = vadd.f32 %v33746_v16, %v43114_v38  ;;  %v33750_v32 = vpop.f32.mrb[239].mxu1  ;;  %v34092_v56 = vadd.f32 %v33748_v24, %v46565_v21  ;;  %37571 = vmatpush3.bf16.msra.mxu1 %v34338_v9  ;;  %v33817_v30 = vpop.f32.mrb[80].mxu0  ;;  %v34204_v38 = vmul.f32 %v34084_v60, %v43118_v29  ;;  %v34094_v49 = vadd.f32 %v33914_v8, %v46565_v21  ;;  %v40727_v24 = vld [vmem:[%s46469_s3 + $0x50] sm:$0xff]  }
 0xf4d   : > { %vm34142_vm14 = vcmp.ge.f32.partialorder %v34082_v42, 0.0  ;;  %v34202_v11 = vmul.f32 %v34082_v42, %v43118_v29  ;;  %v34093_v31 = vadd.f32 %v33750_v32, %v46565_v21  ;;  %37589 = vmatpush3.bf16.msra.mxu0 %v34339_v48  ;;  %37602 = vmatprep.subr.bf16.mxu1 %v46564_v17  ;;  %v33819_v52 = vpop.f32.mrb[81].mxu0  ;;  %v33924_v44 = vadd.f32 %v33817_v30, %v46058_v25 }
 0xf4e   : > { %vm34143_vm15 = vcmp.ge.f32.partialorder %v34083_v34, 0.0  ;;  %v34203_v37 = vmul.f32 %v34083_v34, %v43118_v29  ;;  %vm34152_vm1 = vcmp.ge.f32.partialorder %v34092_v56, 0.0  ;;  %v34212_v35 = vmul.f32 %v34092_v56, %v46566_v46  ;;  %37620 = vmatprep.subr.bf16.mxu0 %v46564_v17  ;;  %v33821_v1 = vpop.f32.mrb[82].mxu0  ;;  %v40728_v52 = vld [vmem:[%s46469_s3 + $0x40] sm:$0xff]  }
 0xf4f   : > { %v46228_v54 = vsel %vm34142_vm14, %v34082_v42, %v34202_v11  ;;  %vm34153_vm2 = vcmp.ge.f32.partialorder %v34093_v31, 0.0  ;;  %v34213_v29 = vmul.f32 %v34093_v31, %v46566_v46  ;;  %37573 = vmatmul.mubr.msk.bf16.vlgmr.msra.gmra.mrb[88].mxu1 %vm16947_vm8, %v40724_v59  ;;  %v33823_v14 = vpop.f32.mrb[83].mxu0  ;;  %vm34154_vm0 = vcmp.ge.f32.partialorder %v34094_v49, 0.0 }
 0xf50   : > { %v46233_v6 = vsel %vm34143_vm15, %v34083_v34, %v34203_v37  ;;  %v34214_v40 = vmul.f32 %v34094_v49, %v46566_v46  ;;  %v46239_v21 = vsel %vm34152_vm1, %v34092_v56, %v34212_v35  ;;  %37591 = vmatmul.mubr.msk.bf16.vlgmr.msra.gmra.mrb[100].mxu0 %vm16947_vm8, %v40725_v4  ;;  %37603 = vmatpush3.bf16.msra.mxu1 %v34320_v57 }
 0xf51   : > { %v33754_v43 = vpop.f32.mrb[240].mxu1  ;;  %v33934_v18 = vadd.f32 %v33821_v1, %v46063_v53  ;;  %v34322_v47 = vpack.c.bf16 %v46239_v21, %v46228_v54  ;;  %v46248_v16 = vsel %vm34153_vm2, %v34093_v31, %v34213_v29  ;;  %v34104_v25 = vadd.f32 %v33924_v44, %v46567_v41  ;;  %37621 = vmatpush3.bf16.msra.mxu0 %v34321_v0  ;;  %v40729_v29 = vld [vmem:[%s46469_s3 + $0x58] sm:$0xff]   ;;  %v40733_v54 = vld [vmem:[%s46469_s3 + $0x80] sm:$0xff]   ;;  %v40735_v21 = vld [vmem:[%s46469_s3 + $0x88] sm:$0xff]  }
 0xf52   : > { %v34102_v46 = vadd.f32 %v33754_v43, %v46567_v41  ;;  %v33756_v9 = vpop.f32.mrb[241].mxu1  ;;  %v34323_v22 = vpack.c.bf16 %v46248_v16, %v46233_v6  ;;  %37604 = vmatprep.subr.bf16.mxu1 %v46564_v17  ;;  %v46261_v19 = vsel %vm34144_vm13, %v34084_v60, %v34204_v38  ;;  %v46264_v42 = vsel %vm34154_vm0, %v34094_v49, %v34214_v40  ;;  %v40734_v6 = vld [vmem:[%s46469_s3 + $0x70] sm:$0xff]   ;;  %v40737_v16 = vld [vmem:[%s46469_s3 + $0xa8] sm:$0xff]  }
 0xf53   : > { %v34103_v15 = vadd.f32 %v33756_v9, %v46567_v41  ;;  %v34114_v53 = vadd.f32 %v33934_v18, %v46569_v50  ;;  %v33758_v57 = vpop.f32.mrb[242].mxu1  ;;  %37622 = vmatprep.subr.bf16.mxu0 %v46564_v17  ;;  %37576 = vmatprep.mubr.msk.bf16.mxu1 %vm40793_vm9, %v46564_v17  ;;  %v40726_v41 = vld [vmem:[%s46469_s3 + $0x38] sm:$0xff]   ;;  %v34224_v34 = vmul.f32 %v34104_v25, %v46568_v62  ;;  %vm34164_vm5 = vcmp.ge.f32.partialorder %v34104_v25, 0.0 }
 0xf54   : > { %vm34162_vm6 = vcmp.ge.f32.partialorder %v34102_v46, 0.0  ;;  %v34222_v45 = vmul.f32 %v34102_v46, %v46568_v62  ;;  %v33760_v12 = vpop.f32.mrb[243].mxu1  ;;  %37605 = vmatpush3.bf16.msra.mxu1 %v34330_v2  ;;  %37594 = vmatprep.mubr.msk.bf16.mxu0 %vm40793_vm9, %v46564_v17  ;;  %v33827_v48 = vpop.f32.mrb[84].mxu0  ;;  %v34112_v59 = vadd.f32 %v33758_v57, %v46569_v50  ;;  %v34324_v4 = vpack.c.bf16 %v46264_v42, %v46261_v19  ;;  %v40739_v19 = vld [vmem:[%s46469_s3 + $0xb0] sm:$0xff]   ;;  %v40740_v42 = vld [vmem:[%s46469_s3 + $0xa0] sm:$0xff]  }
 0xf55   : > { %vm34163_vm3 = vcmp.ge.f32.partialorder %v34103_v15, 0.0  ;;  %v34223_v0 = vmul.f32 %v34103_v15, %v46568_v62  ;;  %vm34174_vm4 = vcmp.ge.f32.partialorder %v34114_v53, 0.0  ;;  %v34234_v60 = vmul.f32 %v34114_v53, %v46570_v3  ;;  %37623 = vmatpush3.bf16.msra.mxu0 %v34331_v13  ;;  %v33829_v55 = vpop.f32.mrb[85].mxu0  ;;  %37606 = vmatprep.subr.bf16.mxu1 %v46564_v17 }
 0xf56   : > { %v46284_v32 = vsel %vm34162_vm6, %v34102_v46, %v34222_v45  ;;  %v34113_v11 = vadd.f32 %v33760_v12, %v46569_v50  ;;  %37624 = vmatprep.subr.bf16.mxu0 %v46564_v17  ;;  %v33944_v62 = vadd.f32 %v33827_v48, %v46074_v26  ;;  %v33831_v8 = vpop.f32.mrb[86].mxu0  ;;  %vm34172_vm7 = vcmp.ge.f32.partialorder %v34112_v59, 0.0  ;;  %v40731_v45 = vld [vmem:[%s46469_s3 + $0x78] sm:$0xff]   ;;  %v40732_v12 = vld [vmem:[%s46469_s3 + $0x68] sm:$0xff]  }
 0xf57   : > { %v46291_v63 = vsel %vm34163_vm3, %v34103_v15, %v34223_v0  ;;  %v46293_v2 = vsel %vm34174_vm4, %v34114_v53, %v34234_v60  ;;  %v34232_v50 = vmul.f32 %v34112_v59, %v46570_v3  ;;  %37577 = vmatmul.mubr.msk.bf16.gmra.mrb[92].mxu1 %vm16947_vm8, %v40726_v41  ;;  %v33833_v10 = vpop.f32.mrb[87].mxu0  ;;  %v33954_v26 = vadd.f32 %v33831_v8, %v46079_v7  ;;  %v40741_v41 = vld [vmem:[%s46469_s3 + $0xb8] sm:$0xff]   ;;  %v40742_v0 = vld [vmem:[%s46469_s3 + $0xc0] sm:$0xff]   ;;  %v40743_v60 = vld [vmem:[%s46469_s3 + $0xc8] sm:$0xff]  }
 0xf58   : > { %vm34173_vm11 = vcmp.ge.f32.partialorder %v34113_v11, 0.0  ;;  %v34233_v51 = vmul.f32 %v34113_v11, %v46570_v3  ;;  %37595 = vmatmul.mubr.msk.bf16.gmra.mrb[104].mxu0 %vm16947_vm8, %v40727_v24  ;;  %37607 = vmatpush3.bf16.msra.mxu1 %v34340_v28  ;;  %v34124_v13 = vadd.f32 %v33944_v62, %v46571_v23  ;;  %v46316_v5 = vsel %vm34164_vm5, %v34104_v25, %v34224_v34  ;;  %v40744_v24 = vld [vmem:[%s46469_s3 + $0xd0] sm:$0xff]  }
 0xf59   : > { %v33764_v56 = vpop.f32.mrb[244].mxu1  ;;  %v34292_v30 = vsel %vm34172_vm7, %v34112_v59, %v34232_v50  ;;  %37625 = vmatpush3.bf16.msra.mxu0 %v34341_v27  ;;  %37580 = vmatprep.mubr.msk.bf16.mxu1 %vm40793_vm9, %v46564_v17  ;;  %v34134_v27 = vadd.f32 %v33954_v26, %v46573_v20 }
 0xf5a   : > { %v34293_v38 = vsel %vm34173_vm11, %v34113_v11, %v34233_v51  ;;  %v34122_v3 = vadd.f32 %v33764_v56, %v46571_v23  ;;  %v33766_v37 = vpop.f32.mrb[245].mxu1  ;;  %v34332_v7 = vpack.c.bf16 %v34292_v30, %v46284_v32  ;;  %37598 = vmatprep.mubr.msk.bf16.mxu0 %vm40793_vm9, %v46564_v17  ;;  %37638 = vmatprep.subr.bf16.mxu1 %v46564_v17  ;;  %vm34184_vm10 = vcmp.ge.f32.partialorder %v34124_v13, 0.0 }
 0xf5b   : > { %v34333_v36 = vpack.c.bf16 %v34293_v38, %v46291_v63  ;;  %v33768_v28 = vpop.f32.mrb[246].mxu1  ;;  %v34244_v61 = vmul.f32 %v34124_v13, %v46572_v58  ;;  %v34123_v39 = vadd.f32 %v33766_v37, %v46571_v23  ;;  %37656 = vmatprep.subr.bf16.mxu0 %v46564_v17  ;;  %v34334_v23 = vpack.c.bf16 %v46293_v2, %v46316_v5 }
 0xf5c   : > { %v33770_v31 = vpop.f32.mrb[247].mxu1  ;;  %v34242_v49 = vmul.f32 %v34122_v3, %v46572_v58  ;;  %v34132_v35 = vadd.f32 %v33768_v28, %v46573_v20  ;;  %vm34182_vm12 = vcmp.ge.f32.partialorder %v34122_v3, 0.0  ;;  %vm34194_vm14 = vcmp.ge.f32.partialorder %v34134_v27, 0.0 }
 0xf5d   : > { %v34133_v1 = vadd.f32 %v33770_v31, %v46573_v20  ;;  %vm34183_vm13 = vcmp.ge.f32.partialorder %v34123_v39, 0.0  ;;  %v34243_v44 = vmul.f32 %v34123_v39, %v46572_v58  ;;  %v34254_v14 = vmul.f32 %v34134_v27, %v46574_v33 }
 0xf5e   : > { %vm34192_vm15 = vcmp.ge.f32.partialorder %v34132_v35, 0.0  ;;  %v34252_v40 = vmul.f32 %v34132_v35, %v46574_v33  ;;  %v34304_v20 = vsel %vm34184_vm10, %v34124_v13, %v34244_v61  ;;  %v34302_v18 = vsel %vm34182_vm12, %v34122_v3, %v34242_v49 }
 0xf5f   : > { %vm34193_vm1 = vcmp.ge.f32.partialorder %v34133_v1, 0.0  ;;  %v34253_v43 = vmul.f32 %v34133_v1, %v46574_v33  ;;  %37581 = vmatmul.mubr.msk.bf16.gmra.mrb[96].mxu1 %vm16947_vm8, %v40728_v52  ;;  %v34314_v25 = vsel %vm34194_vm14, %v34134_v27, %v34254_v14  ;;  %v34303_v58 = vsel %vm34183_vm13, %v34123_v39, %v34243_v44  ;;  %v40730_v33 = vld [vmem:[%s46469_s3 + $0x60] sm:$0xff]  }
 0xf60   : > { %v34312_v46 = vsel %vm34192_vm15, %v34132_v35, %v34252_v40  ;;  %37599 = vmatmul.mubr.msk.bf16.gmra.mrb[108].mxu0 %vm16947_vm8, %v40729_v29  ;;  %37608 = vmatprep.mubr.msk.bf16.mxu1 %vm40793_vm9, %v46564_v17  ;;  %v34344_v53 = vpack.c.bf16 %v34314_v25, %v34304_v20 }
 0xf61   : > { %v34342_v9 = vpack.c.bf16 %v34312_v46, %v34302_v18  ;;  %v34313_v15 = vsel %vm34193_vm1, %v34133_v1, %v34253_v43  ;;  %37626 = vmatprep.mubr.msk.bf16.mxu0 %vm40793_vm9, %v46564_v17 }
 0xf62   : > { %v34343_v57 = vpack.c.bf16 %v34313_v15, %v34303_v58 }
 0xf67   : > { %37609 = vmatmul.mubr.msk.bf16.vlgmr.msra.gmra.mrb[100].mxu1 %vm16947_vm8, %v40730_v33 }
 0xf68   : > { %37639 = vmatpush3.bf16.msra.mxu1 %v34322_v47  ;;  %37627 = vmatmul.mubr.msk.bf16.vlgmr.msra.gmra.mrb[112].mxu0 %vm16947_vm8, %v40731_v45  ;;  %v40736_v47 = vld [vmem:[%s46469_s3 + $0x90] sm:$0xff]  }
 0xf69   : > { %37657 = vmatpush3.bf16.msra.mxu0 %v34323_v22  ;;  %37640 = vmatprep.subr.bf16.mxu1 %v46564_v17  ;;  %v40738_v22 = vld [vmem:[%s46469_s3 + $0x98] sm:$0xff]  }
 0xf6a   : > { %37658 = vmatprep.subr.bf16.mxu0 %v46564_v17  ;;  %37612 = vmatprep.mubr.msk.bf16.mxu1 %vm40793_vm9, %v46564_v17 }
 0xf6b   : > { %37630 = vmatprep.mubr.msk.bf16.mxu0 %vm40793_vm9, %v46564_v17 }
 0xf6c   : > { %37641 = vmatpush3.bf16.msra.mxu1 %v34332_v7 }
 0xf6d   : > { %37659 = vmatpush3.bf16.msra.mxu0 %v34333_v36  ;;  %37642 = vmatprep.subr.bf16.mxu1 %v46564_v17 }
 0xf6e   : > { %37660 = vmatprep.subr.bf16.mxu0 %v46564_v17 }
 0xf6f   : > { %37613 = vmatmul.mubr.msk.bf16.gmra.mrb[104].mxu1 %vm16947_vm8, %v40732_v12 }
 0xf70   : > { %37643 = vmatpush3.bf16.msra.mxu1 %v34342_v9  ;;  %37631 = vmatmul.mubr.msk.bf16.gmra.mrb[116].mxu0 %vm16947_vm8, %v40733_v54 }
 0xf71   : > { %37661 = vmatpush3.bf16.msra.mxu0 %v34343_v57  ;;  %37616 = vmatprep.mubr.msk.bf16.mxu1 %vm40793_vm9, %v46564_v17 }
 0xf72   : > { %37634 = vmatprep.mubr.msk.bf16.mxu0 %vm40793_vm9, %v46564_v17  ;;  %37674 = vmatprep.subr.bf16.mxu1 %v46564_v17 }
 0xf77   : > { %37617 = vmatmul.mubr.msk.bf16.gmra.mrb[108].mxu1 %vm16947_vm8, %v40734_v6 }
 0xf78   : > { %37635 = vmatmul.mubr.msk.bf16.gmra.mrb[120].mxu0 %vm16947_vm8, %v40735_v21  ;;  %37644 = vmatprep.mubr.msk.bf16.mxu1 %vm40793_vm9, %v46564_v17 }
 0xf79   : > { %37662 = vmatprep.mubr.msk.bf16.mxu0 %vm40793_vm9, %v46564_v17 }
 0xf7f   : > { %37645 = vmatmul.mubr.msk.bf16.vlgmr.msra.gmra.mrb[112].mxu1 %vm16947_vm8, %v40736_v47 }
 0xf80   : > { %37675 = vmatpush3.bf16.msra.mxu1 %v34324_v4  ;;  %37663 = vmatmul.mubr.msk.bf16.vlgmr.msra.gmra.mrb[40].mxu0 %vm16947_vm8, %v40737_v16 }
 0xf81   : > { %37676 = vmatprep.subr.bf16.mxu1 %v46564_v17  ;;  %37648 = vmatprep.mubr.msk.bf16.mxu1 %vm40793_vm9, %v46564_v17 }
 0xf82   : > { %37666 = vmatprep.mubr.msk.bf16.mxu0 %vm40793_vm9, %v46564_v17 }
 0xf84   : > { %37677 = vmatpush3.bf16.msra.mxu1 %v34334_v23 }
 0xf85   : > { %37678 = vmatprep.subr.bf16.mxu1 %v46564_v17 }
 0xf87   : > { %37649 = vmatmul.mubr.msk.bf16.gmra.mrb[116].mxu1 %vm16947_vm8, %v40738_v22 }
 0xf88   : > { %37679 = vmatpush3.bf16.msra.mxu1 %v34344_v53  ;;  %37667 = vmatmul.mubr.msk.bf16.gmra.mrb[44].mxu0 %vm16947_vm8, %v40739_v19 }
 0xf89   : > { %37652 = vmatprep.mubr.msk.bf16.mxu1 %vm40793_vm9, %v46564_v17  ;;  %37670 = vmatprep.mubr.msk.bf16.mxu0 %vm40793_vm9, %v46564_v17 }
 0xf8f   : > { %37653 = vmatmul.mubr.msk.bf16.gmra.mrb[120].mxu1 %vm16947_vm8, %v40740_v42 }
 0xf90   : > { %37671 = vmatmul.mubr.msk.bf16.gmra.mrb[48].mxu0 %vm16947_vm8, %v40741_v41  ;;  %37680 = vmatprep.mubr.msk.bf16.mxu1 %vm40793_vm9, %v46564_v17 }
 0xf97   : > { %37681 = vmatmul.mubr.msk.bf16.vlgmr.msra.gmra.mrb[40].mxu1 %vm16947_vm8, %v40742_v0 }
 0xf98   : > { %37684 = vmatprep.mubr.msk.bf16.mxu1 %vm40793_vm9, %v46564_v17 }
 0xf9f   : > { %37685 = vmatmul.mubr.msk.bf16.gmra.mrb[44].mxu1 %vm16947_vm8, %v40743_v60 }
 0xfa0   : > { %37688 = vmatprep.mubr.msk.bf16.mxu1 %vm40793_vm9, %v46564_v17 }
 0xfa7   : > { %37689 = vmatmul.mubr.msk.bf16.gmra.mrb[48].mxu1 %vm16947_vm8, %v40744_v24 }
0x1004   : > { %v34533_v48 = vpop.f32.mrb[88].mxu0 }
0x1005   : > { %v34452_v34 = vpop.f32.mrb[76].mxu1  ;;  %v37556_v32 = vpop.f32.mrb[89].mxu0 }
0x1006   : > { %v37538_v59 = vpop.f32.mrb[77].mxu1  ;;  %v34534_v11 = vadd.f32 %v34533_v48, %v34452_v34  ;;  %v34536_v55 = vpop.f32.mrb[90].mxu0 }
0x1007   : > { %v34455_v63 = vpop.f32.mrb[78].mxu1  ;;  %v37557_v2 = vpop.f32.mrb[91].mxu0 }
0x1008   : > { %v37539_v62 = vpop.f32.mrb[79].mxu1  ;;  %v34537_v8 = vadd.f32 %v34536_v55, %v34455_v63 }
0x100c   : > { %v34541_v50 = vpop.f32.mrb[92].mxu0 }
0x100d   : > { %v37560_v51 = vpop.f32.mrb[93].mxu0  ;;  %v34460_v10 = vpop.f32.mrb[80].mxu1 }
0x100e   : > { %v34544_v17 = vpop.f32.mrb[94].mxu0  ;;  %v37542_v13 = vpop.f32.mrb[81].mxu1  ;;  %v34542_v56 = vadd.f32 %v34541_v50, %v34460_v10 }
0x100f   : > { %v37561_v26 = vpop.f32.mrb[95].mxu0  ;;  %v34463_v4 = vpop.f32.mrb[82].mxu1 }
0x1010   : > { %v37543_v30 = vpop.f32.mrb[83].mxu1  ;;  %v34545_v38 = vadd.f32 %v34544_v17, %v34463_v4 }
0x1014   : > { %v34549_v3 = vpop.f32.mrb[96].mxu0 }
0x1015   : > { %v37564_v37 = vpop.f32.mrb[97].mxu0 }
0x1016   : > { %v34468_v5 = vpop.f32.mrb[84].mxu1  ;;  %v34552_v7 = vpop.f32.mrb[98].mxu0 }
0x1017   : > { %v37546_v36 = vpop.f32.mrb[85].mxu1  ;;  %v34550_v28 = vadd.f32 %v34549_v3, %v34468_v5  ;;  %v37565_v61 = vpop.f32.mrb[99].mxu0 }
0x1018   : > { %v34471_v39 = vpop.f32.mrb[86].mxu1 }
0x1019   : > { %v37547_v27 = vpop.f32.mrb[87].mxu1  ;;  %v34553_v31 = vadd.f32 %v34552_v7, %v34471_v39 }
0x1022   : > { %v34623_v52 = vpop.f32.mrb[88].mxu1 }
0x1023   : > { %v34646_v49 = vadd.f32 %v34623_v52, %v34534_v11  ;;  %v37574_v35 = vpop.f32.mrb[89].mxu1  ;;  %v34719_v1 = vpop.f32.mrb[100].mxu0 }
0x1024   : > { %v34626_v29 = vpop.f32.mrb[90].mxu1  ;;  %v37592_v23 = vpop.f32.mrb[101].mxu0 }
0x1025   : > { %v34647_v44 = vadd.f32 %v34626_v29, %v34537_v8  ;;  %v34742_v14 = vadd.f32 %v34719_v1, %v34646_v49  ;;  %v34722_v40 = vpop.f32.mrb[102].mxu0  ;;  %v37575_v20 = vpop.f32.mrb[91].mxu1 }
0x1026   : > { %v37593_v43 = vpop.f32.mrb[103].mxu0 }
0x1027   : > { %v34743_v18 = vadd.f32 %v34722_v40, %v34647_v44 }
0x102a   : > { %v34631_v25 = vpop.f32.mrb[92].mxu1 }
0x102b   : > { %v34648_v46 = vadd.f32 %v34631_v25, %v34542_v56  ;;  %v37578_v58 = vpop.f32.mrb[93].mxu1  ;;  %v34727_v9 = vpop.f32.mrb[104].mxu0 }
0x102c   : > { %v34634_v15 = vpop.f32.mrb[94].mxu1  ;;  %v37596_v53 = vpop.f32.mrb[105].mxu0 }
0x102d   : > { %v34649_v57 = vadd.f32 %v34634_v15, %v34545_v38  ;;  %v34744_v33 = vadd.f32 %v34727_v9, %v34648_v46  ;;  %v34730_v45 = vpop.f32.mrb[106].mxu0  ;;  %v37579_v12 = vpop.f32.mrb[95].mxu1 }
0x102e   : > { %v37597_v54 = vpop.f32.mrb[107].mxu0 }
0x102f   : > { %v34745_v6 = vadd.f32 %v34730_v45, %v34649_v57 }
0x1032   : > { %v34639_v21 = vpop.f32.mrb[96].mxu1 }
0x1033   : > { %v34650_v47 = vadd.f32 %v34639_v21, %v34550_v28  ;;  %v37582_v16 = vpop.f32.mrb[97].mxu1  ;;  %v34735_v22 = vpop.f32.mrb[108].mxu0 }
0x1034   : > { %v34642_v19 = vpop.f32.mrb[98].mxu1  ;;  %v37600_v42 = vpop.f32.mrb[109].mxu0 }
0x1035   : > { %v34651_v41 = vadd.f32 %v34642_v19, %v34553_v31  ;;  %v34746_v0 = vadd.f32 %v34735_v22, %v34650_v47  ;;  %v34738_v60 = vpop.f32.mrb[110].mxu0  ;;  %v37583_v24 = vpop.f32.mrb[99].mxu1 }
0x1036   : > { %v37601_v48 = vpop.f32.mrb[111].mxu0 }
0x1037   : > { %v34747_v34 = vadd.f32 %v34738_v60, %v34651_v41 }
0x103a   : > { %v34815_v32 = vpop.f32.mrb[100].mxu1 }
0x103b   : > { %v34838_v59 = vadd.f32 %v34815_v32, %v34742_v14  ;;  %v37610_v11 = vpop.f32.mrb[101].mxu1  ;;  %v34911_v55 = vpop.f32.mrb[112].mxu0 }
0x103c   : > { %v34818_v63 = vpop.f32.mrb[102].mxu1  ;;  %v37628_v2 = vpop.f32.mrb[113].mxu0 }
0x103d   : > { %v34839_v62 = vadd.f32 %v34818_v63, %v34743_v18  ;;  %v34934_v8 = vadd.f32 %v34911_v55, %v34838_v59  ;;  %v34914_v50 = vpop.f32.mrb[114].mxu0  ;;  %v37611_v51 = vpop.f32.mrb[103].mxu1 }
0x103e   : > { %v37629_v10 = vpop.f32.mrb[115].mxu0 }
0x103f   : > { %v34935_v17 = vadd.f32 %v34914_v50, %v34839_v62 }
0x1042   : > { %v34823_v13 = vpop.f32.mrb[104].mxu1 }
0x1043   : > { %v34840_v56 = vadd.f32 %v34823_v13, %v34744_v33  ;;  %v37614_v26 = vpop.f32.mrb[105].mxu1  ;;  %v34919_v4 = vpop.f32.mrb[116].mxu0  ;;  %v46575_v13 = vld [vmem:[#allocation20_spill] sm:$0xff] }
0x1044   : > { %v34826_v30 = vpop.f32.mrb[106].mxu1  ;;  %v37632_v38 = vpop.f32.mrb[117].mxu0 }
0x1045   : > { %v34841_v3 = vadd.f32 %v34826_v30, %v34745_v6  ;;  %v34936_v37 = vadd.f32 %v34919_v4, %v34840_v56  ;;  %v34922_v5 = vpop.f32.mrb[118].mxu0  ;;  %v37615_v7 = vpop.f32.mrb[107].mxu1  ;;  %v46576_v30 = vld [vmem:[#allocation21_spill] sm:$0xff] }
0x1046   : > { %v37633_v36 = vpop.f32.mrb[119].mxu0 }
0x1047   : > { %v34937_v28 = vadd.f32 %v34922_v5, %v34841_v3  ;;  %v46577_v36 = vld [vmem:[#allocation22_spill] sm:$0xff] }
0x104a   : > { %v34831_v61 = vpop.f32.mrb[108].mxu1 }
0x104b   : > { %v34842_v39 = vadd.f32 %v34831_v61, %v34746_v0  ;;  %v37618_v27 = vpop.f32.mrb[109].mxu1  ;;  %v34927_v31 = vpop.f32.mrb[120].mxu0 }
0x104c   : > { %v34834_v52 = vpop.f32.mrb[110].mxu1  ;;  %v37636_v49 = vpop.f32.mrb[121].mxu0  ;;  %v46578_v27 = vld [vmem:[#allocation23_spill] sm:$0xff] }
0x104d   : > { %v34843_v35 = vadd.f32 %v34834_v52, %v34747_v34  ;;  %v34938_v1 = vadd.f32 %v34927_v31, %v34842_v39  ;;  %v34930_v29 = vpop.f32.mrb[122].mxu0  ;;  %v37619_v23 = vpop.f32.mrb[111].mxu1 }
0x104e   : > { %v37637_v44 = vpop.f32.mrb[123].mxu0 }
0x104f   : > { %v34939_v14 = vadd.f32 %v34930_v29, %v34843_v35  ;;  %v46579_v29 = vld [vmem:[#allocation24_spill] sm:$0xff] }
0x1052   : > { %v35007_v40 = vpop.f32.mrb[112].mxu1 }
0x1053   : > { %v35030_v20 = vadd.f32 %v35007_v40, %v34934_v8  ;;  %v37646_v43 = vpop.f32.mrb[113].mxu1  ;;  %v35103_v18 = vpop.f32.mrb[40].mxu0  ;;  %v46580_v40 = vld [vmem:[#allocation25_spill] sm:$0xff] }
0x1054   : > { %v35010_v25 = vpop.f32.mrb[114].mxu1  ;;  %v37664_v46 = vpop.f32.mrb[41].mxu0 }
0x1055   : > { %v35031_v58 = vadd.f32 %v35010_v25, %v34935_v17  ;;  %v35126_v9 = vadd.f32 %v35103_v18, %v35030_v20  ;;  %v35106_v15 = vpop.f32.mrb[42].mxu0  ;;  %v37647_v53 = vpop.f32.mrb[115].mxu1 }
0x1056   : > { %v37665_v57 = vpop.f32.mrb[43].mxu0 }
0x1057   : > { %v35127_v33 = vadd.f32 %v35106_v15, %v35031_v58 }
0x105a   : > { %v35015_v45 = vpop.f32.mrb[116].mxu1 }
0x105b   : > { %v35032_v12 = vadd.f32 %v35015_v45, %v34936_v37  ;;  %v37650_v54 = vpop.f32.mrb[117].mxu1  ;;  %v35111_v6 = vpop.f32.mrb[44].mxu0 }
0x105c   : > { %v35018_v21 = vpop.f32.mrb[118].mxu1  ;;  %v37668_v47 = vpop.f32.mrb[45].mxu0 }
0x105d   : > { %v35033_v16 = vadd.f32 %v35018_v21, %v34937_v28  ;;  %v35128_v22 = vadd.f32 %v35111_v6, %v35032_v12  ;;  %v35114_v19 = vpop.f32.mrb[46].mxu0  ;;  %v37651_v42 = vpop.f32.mrb[119].mxu1 }
0x105e   : > { %v37669_v41 = vpop.f32.mrb[47].mxu0 }
0x105f   : > { %v35129_v0 = vadd.f32 %v35114_v19, %v35033_v16 }
0x1062   : > { %v35023_v60 = vpop.f32.mrb[120].mxu1 }
0x1063   : > { %v35034_v24 = vadd.f32 %v35023_v60, %v34938_v1  ;;  %v37654_v48 = vpop.f32.mrb[121].mxu1  ;;  %v35119_v34 = vpop.f32.mrb[48].mxu0 }
0x1064   : > { %v35026_v32 = vpop.f32.mrb[122].mxu1  ;;  %v37672_v59 = vpop.f32.mrb[49].mxu0 }
0x1065   : > { %v35035_v11 = vadd.f32 %v35026_v32, %v34939_v14  ;;  %v35130_v55 = vadd.f32 %v35119_v34, %v35034_v24  ;;  %v35122_v63 = vpop.f32.mrb[50].mxu0  ;;  %v37655_v2 = vpop.f32.mrb[123].mxu1 }
0x1066   : > { %v37673_v62 = vpop.f32.mrb[51].mxu0 }
0x1067   : > { %v35131_v8 = vadd.f32 %v35122_v63, %v35035_v11 }
0x106a   : > { %v35199_v50 = vpop.f32.mrb[40].mxu1 }
0x106b   : > { %v35222_v51 = vadd.f32 %v35199_v50, %v35126_v9  ;;  %v37682_v10 = vpop.f32.mrb[41].mxu1 }
0x106c   : > { %v35202_v17 = vpop.f32.mrb[42].mxu1 }
0x106d   : > { %v35228_v56 = vadd.f32 %v35222_v51, %v46575_v13  ;;  %v35223_v26 = vadd.f32 %v35202_v17, %v35127_v33  ;;  %v37683_v4 = vpop.f32.mrb[43].mxu1 }
0x106f   : > { %37252 = vst [vmem:[%s43994_s13 + $0x30] sm:$0xff] %v35228_v56  ;;  %v35229_v38 = vadd.f32 %v35223_v26, %v46576_v30 }
0x1071   : > { %37253 = vst [vmem:[%s43994_s13 + $0x38] sm:$0xff] %v35229_v38 }
0x1072   : > { %v35207_v3 = vpop.f32.mrb[44].mxu1 }
0x1073   : > { %v35224_v37 = vadd.f32 %v35207_v3, %v35128_v22  ;;  %v37686_v5 = vpop.f32.mrb[45].mxu1 }
0x1074   : > { %v35210_v7 = vpop.f32.mrb[46].mxu1 }
0x1075   : > { %v35230_v28 = vadd.f32 %v35224_v37, %v46577_v36  ;;  %v35225_v61 = vadd.f32 %v35210_v7, %v35129_v0  ;;  %v37687_v39 = vpop.f32.mrb[47].mxu1 }
0x1077   : > { %37254 = vst [vmem:[%s43994_s13 + $0x40] sm:$0xff] %v35230_v28  ;;  %v35231_v31 = vadd.f32 %v35225_v61, %v46578_v27 }
0x1079   : > { %37255 = vst [vmem:[%s43994_s13 + $0x48] sm:$0xff] %v35231_v31 }
0x107a   : > { %v35215_v52 = vpop.f32.mrb[48].mxu1 }
0x107b   : > { %v35226_v49 = vadd.f32 %v35215_v52, %v35130_v55  ;;  %v37690_v35 = vpop.f32.mrb[49].mxu1 }
0x107c   : > { %v35218_v1 = vpop.f32.mrb[50].mxu1 }
0x107d   : > { %v35232_v23 = vadd.f32 %v35226_v49, %v46579_v29  ;;  %v35227_v44 = vadd.f32 %v35218_v1, %v35131_v8  ;;  %v37691_v14 = vpop.f32.mrb[51].mxu1 }
0x107f   : > { %37256 = vst [vmem:[%s43994_s13 + $0x50] sm:$0xff] %v35232_v23  ;;  %v35233_v20 = vadd.f32 %v35227_v44, %v46580_v40 }
0x1081   : > { %37257 = vst [vmem:[%s43994_s13 + $0x58] sm:$0xff] %v35233_v20 }
0x1082 PF: > { %s15_s18 = sadd.s32 1, %s40786_s18  }
0x1083   : > { %p12_p4 = scmp.ge.s32.totalorder %s15_s18, 6  }
0x1085   :  { %14 = sbr.rel (!%p12_p4) target bundleno = 1 (0x1), region = 100 }

</bundles_post_ra>
